<compile_context>
chip_gen: v7x
topology: tpu7x:2x2x1
jax: 0.10.0
libtpu: 0.0.40
codegen_flags: <defaults>
</compile_context>

<pallas_src>
import functools
import math

import jax
import jax.numpy as jnp
from jax import lax
from jax.experimental import pallas as pl
from jax.experimental.pallas import tpu as pltpu


_VMEM_SPEC = pl.BlockSpec(memory_space=pltpu.MemorySpace.VMEM)
_ANY_SPEC = pl.BlockSpec(memory_space=pl.ANY)

# Actual footprint < 10 MiB; 32 MiB scoped limit is safe on v5e/v6e/v7x.
_CPARAMS = pltpu.CompilerParams(vmem_limit_bytes=32 * 1024 * 1024)


# ----------------------------------------------------------------------------
# Small-parameter slab packing (host side) + static in-kernel slicing
# ----------------------------------------------------------------------------
def pack_slab(entries, width):
    """entries: list of (name, array [rows, cols<=width]) -> (slab [R, width] f32, layout)."""
    rows, layout, r = [], {}, 0
    for name, arr in entries:
        arr = jnp.asarray(arr, jnp.float32)
        if arr.ndim == 1:
            arr = arr[None, :]
        h, w = arr.shape
        assert w <= width, (name, w, width)
        rows.append(jnp.concatenate([arr, jnp.zeros((h, width - w), jnp.float32)], axis=1))
        layout[name] = (r, h, w)
        r += h
    return jnp.concatenate(rows, axis=0), layout


# ----------------------------------------------------------------------------
# Single fused kernel: GATConv x3 -> mean-pool -> MLP -> LN   and
#                      mini-BERT stand-in -> CLS -> Linear -> LN
# ----------------------------------------------------------------------------
def fused_model_kernel(
        # graph inputs
        x_ref, adj_ref, pool_ref, w1_ref, w2_ref, w3_ref, hw1_ref, hw2_ref, gslab_ref,
        # text inputs
        xt_ref, addmask_ref, wp_ref, tslab_ref,
        wq_hbm, wk_hbm, wv_hbm, wo_hbm, wf1_hbm, wf2_hbm,
        # outputs
        graph_out_ref, text_out_ref,
        # scratch
        wq_buf, wk_buf, wv_buf, wo_buf, wf1_buf, wf2_buf, sem,
        *, heads, out_ch, negative_slope, eps, glayout, tlayout):

    # ---- kick off all heavy text-weight DMAs immediately (hidden behind graph math) ----
    copies = []
    for i, (src, dst) in enumerate(((wq_hbm, wq_buf), (wk_hbm, wk_buf), (wv_hbm, wv_buf),
                                    (wo_hbm, wo_buf), (wf1_hbm, wf1_buf), (wf2_hbm, wf2_buf))):
        cp = pltpu.make_async_copy(src, dst, sem.at[i])
        cp.start()
        copies.append(cp)
    cp_wq, cp_wk, cp_wv, cp_wo, cp_wf1, cp_wf2 = copies

    def ln(z, g, b):
        mu = jnp.mean(z, axis=-1, keepdims=True)
        var = jnp.mean((z - mu) ** 2, axis=-1, keepdims=True)
        return (z - mu) * lax.rsqrt(var + eps) * g + b

    def gvec(name):
        r, h, w = glayout[name]
        return gslab_ref[r:r + h, :w]

    def tvec(name):
        r, h, w = tlayout[name]
        return tslab_ref[r:r + h, :w]

    # ======================= graph branch =======================
    adj = adj_ref[...]                           # [N, N] (dst, src)
    edge = adj > 0.0                             # hoisted once, shared by all 3 layers
    neg_big = jnp.float32(-1e30)
    C = out_ch

    def gat_attention(h, a_src, a_dst, nheads):
        # Attention coefficients via MXU with block-diagonal att matrices
        # (trans contraction gives a_src directly as rows -> no XLU transpose).
        a_d = lax.dot_general(h, a_dst, (((1,), (1,)), ((), ())),
                              preferred_element_type=jnp.float32)        # [N, H]
        a_s = lax.dot_general(a_src, h, (((1,), (1,)), ((), ())),
                              preferred_element_type=jnp.float32)        # [H, N]
        outs = []
        for hd in range(nheads):
            e = a_d[:, hd:hd + 1] + a_s[hd:hd + 1, :]                    # [N, N]
            e = jnp.where(e > 0, e, negative_slope * e)                  # leaky_relu
            e = jnp.where(edge, e, neg_big)                              # mask non-edges
            e = e - jnp.max(e, axis=-1, keepdims=True)
            p = jnp.exp(e)
            alpha = p * pl.reciprocal(jnp.sum(p, axis=-1, keepdims=True), approx=True)
            outs.append(jnp.dot(alpha, h[:, hd * C:(hd + 1) * C],
                                preferred_element_type=jnp.float32))     # [N, C]
        return outs

    # conv1
    h1 = jnp.dot(x_ref[...], w1_ref[...], preferred_element_type=jnp.float32)  # [N, H*C]
    o1 = gat_attention(h1, gvec("as1"), gvec("ad1"), heads)
    # conv2 linear map accumulated per head slice (no lane concatenate)
    b1 = gvec("b1")
    w2 = w2_ref[...]
    h2 = None
    for hd in range(heads):
        part = jnp.maximum(o1[hd] + b1[:, hd * C:(hd + 1) * C], 0.0)
        contrib = jnp.dot(part, w2[hd * C:(hd + 1) * C, :],
                          preferred_element_type=jnp.float32)
        h2 = contrib if h2 is None else h2 + contrib                     # [N, H*C]
    o2 = gat_attention(h2, gvec("as2"), gvec("ad2"), heads)
    # conv3 linear map accumulated per head slice
    b2 = gvec("b2")
    w3 = w3_ref[...]
    h3 = None
    for hd in range(heads):
        part = jnp.maximum(o2[hd] + b2[:, hd * C:(hd + 1) * C], 0.0)
        contrib = jnp.dot(part, w3[hd * C:(hd + 1) * C, :],
                          preferred_element_type=jnp.float32)
        h3 = contrib if h3 is None else h3 + contrib                     # [N, C]
    # conv3 attention (1 head, no relu afterwards)
    o3 = gat_attention(h3, gvec("as3"), gvec("ad3"), 1)[0] + gvec("b3")  # [N, C]

    # global_mean_pool as a matmul, then mol_hidden1 -> relu -> mol_hidden2 -> LN
    xg = jnp.dot(pool_ref[...], o3, preferred_element_type=jnp.float32)  # [B, C]
    hm = jnp.maximum(jnp.dot(xg, hw1_ref[...], preferred_element_type=jnp.float32)
                     + gvec("hb1"), 0.0)
    y = jnp.dot(hm, hw2_ref[...], preferred_element_type=jnp.float32) + gvec("hb2")
    graph_out_ref[...] = ln(y, gvec("lng"), gvec("lnb"))

    # ======================= text branch =======================
    bsz, seq, d_model = xt_ref.shape
    scale = 1.0 / math.sqrt(d_model)

    x = xt_ref[...]                                      # [B, S, D] f32
    x2 = x.reshape(bsz * seq, d_model)                   # [B*S, D]
    x_cls = x[:, 0, :]                                   # [B, D]  (CLS rows)
    x2_bf = x2.astype(jnp.bfloat16)
    x_cls_bf = x_cls.astype(jnp.bfloat16)

    # Q for CLS rows only
    cp_wq.wait()
    q = jnp.dot(x_cls_bf, wq_buf[...], preferred_element_type=jnp.float32)       # [B, D]

    # scores = (q @ Wk^T) @ x2^T  (K never materialised at M=B*S)
    cp_wk.wait()
    t = lax.dot_general(q.astype(jnp.bfloat16), wk_buf[...], (((1,), (1,)), ((), ())),
                        preferred_element_type=jnp.float32)                      # [B, D]
    scores = lax.dot_general(t.astype(jnp.bfloat16), x2_bf, (((1,), (1,)), ((), ())),
                             preferred_element_type=jnp.float32) * scale         # [B, B*S]
    scores = scores + addmask_ref[...]                   # block-diag + padding mask
    scores = scores - jnp.max(scores, axis=-1, keepdims=True)
    p = jnp.exp(scores)
    alpha = p * pl.reciprocal(jnp.sum(p, axis=-1, keepdims=True), approx=True)   # [B, B*S]

    # ctx = (alpha @ x2) @ Wv  (V never materialised at M=B*S)
    av = jnp.dot(alpha, x2, preferred_element_type=jnp.float32)                  # [B, D]
    cp_wv.wait()
    ctx = jnp.dot(av.astype(jnp.bfloat16), wv_buf[...],
                  preferred_element_type=jnp.float32)                            # [B, D]

    cp_wo.wait()
    ao = jnp.dot(ctx.astype(jnp.bfloat16), wo_buf[...],
                 preferred_element_type=jnp.float32)
    h1t = ln(x_cls + ao, tvec("ln1_g"), tvec("ln1_b"))

    cp_wf1.wait()
    ff = jnp.dot(h1t.astype(jnp.bfloat16), wf1_buf[...],
                 preferred_element_type=jnp.float32) + tvec("bf1")
    ff = jnp.maximum(ff, 0.0)
    cp_wf2.wait()
    ff = jnp.dot(ff.astype(jnp.bfloat16), wf2_buf[...],
                 preferred_element_type=jnp.float32) + tvec("bf2")
    h2t = ln(h1t + ff, tvec("ln2_g"), tvec("ln2_b"))

    # nn.Dropout(0.1) -> identity (eval mode)
    proj = jnp.dot(h2t, wp_ref[...], preferred_element_type=jnp.float32) + tvec("bp")
    text_out_ref[...] = ln(proj, tvec("ln3_g"), tvec("ln3_b"))


# ----------------------------------------------------------------------------
# Wrapper: one fused pallas_call for the whole GATModel forward
# ----------------------------------------------------------------------------
def gat_model_forward(x_nodes, adj, pool_mat, x_text_emb, addmask, params):
    b = pool_mat.shape[0]
    nout = params["nout"]
    tp = params["text"]
    d_model = tp["wq"].shape[0]
    d_ff = tp["wf1"].shape[1]

    kernel = functools.partial(
        fused_model_kernel, heads=params["nheads"], out_ch=params["ghc"],
        negative_slope=0.2, eps=1e-5,
        glayout=params["glayout"], tlayout=params["tlayout"])

    out_sds = jax.ShapeDtypeStruct((b, nout), jnp.float32)
    return pl.pallas_call(
        kernel,
        out_shape=(out_sds, out_sds),
        in_specs=[_VMEM_SPEC] * 13 + [_ANY_SPEC] * 6,
        out_specs=(_VMEM_SPEC, _VMEM_SPEC),
        scratch_shapes=[
            pltpu.VMEM((d_model, d_model), jnp.bfloat16),   # wq
            pltpu.VMEM((d_model, d_model), jnp.bfloat16),   # wk
            pltpu.VMEM((d_model, d_model), jnp.bfloat16),   # wv
            pltpu.VMEM((d_model, d_model), jnp.bfloat16),   # wo
            pltpu.VMEM((d_model, d_ff), jnp.bfloat16),      # wf1
            pltpu.VMEM((d_ff, d_model), jnp.bfloat16),      # wf2
            pltpu.SemaphoreType.DMA((6,)),
        ],
        compiler_params=_CPARAMS,
    )(x_nodes, adj, pool_mat,
      params["conv1"]["w"], params["conv2"]["w"], params["conv3"]["w"],
      params["head"]["w1"], params["head"]["w2"], params["gslab"],
      x_text_emb, addmask, tp["wp"], params["tslab"],
      tp["wq"], tp["wk"], tp["wv"], tp["wo"], tp["wf1"], tp["wf2"])


# ----------------------------------------------------------------------------
# Parameter construction (deterministic, synthetic)
# ----------------------------------------------------------------------------
def _dense(key, fan_in, fan_out):
    return jax.random.normal(key, (fan_in, fan_out), jnp.float32) / math.sqrt(fan_in)


def _block_diag_att(att):  # [H, C] -> [H, H*C] block-diagonal stack
    h, c = att.shape
    full = jnp.zeros((h, h * c), jnp.float32)
    for i in range(h):
        full = full.at[i, i * c:(i + 1) * c].set(att[i])
    return full


def make_gat_params(key, fan_in, out_ch, heads):
    k = jax.random.split(key, 4)
    att_src = 0.1 * jax.random.normal(k[1], (heads, out_ch), jnp.float32)
    att_dst = 0.1 * jax.random.normal(k[2], (heads, out_ch), jnp.float32)
    return {
        "w": _dense(k[0], fan_in, heads * out_ch),
        "att_src_full": _block_diag_att(att_src),
        "att_dst_full": _block_diag_att(att_dst),
        "bias": 0.01 * jax.random.normal(k[3], (1, heads * out_ch), jnp.float32),
    }


def make_head_params(key, ghc, nhid, nout):
    k = jax.random.split(key, 4)
    return {
        "w1": _dense(k[0], ghc, nhid),
        "b1": 0.01 * jax.random.normal(k[1], (1, nhid), jnp.float32),
        "w2": _dense(k[2], nhid, nout),
        "b2": 0.01 * jax.random.normal(k[3], (1, nout), jnp.float32),
        "ln_g": jnp.ones((1, nout), jnp.float32),
        "ln_b": jnp.zeros((1, nout), jnp.float32),
    }


def make_text_params(key, vocab, seq, d_model, d_ff, nout):
    k = jax.random.split(key, 12)
    bf = jnp.bfloat16
    # TODO(synk): int8 (v5e/v6e) or fp8 (v7x) weight storage would halve the weight
    # DMA again; kept bf16 for a single portable code path.
    return {
        "tok_emb": 0.02 * jax.random.normal(k[0], (vocab, d_model), jnp.float32),
        "pos_emb": 0.02 * jax.random.normal(k[1], (seq, d_model), jnp.float32),
        # heavy weights stored bf16 in HBM (f32 accumulation in-kernel)
        "wq": _dense(k[2], d_model, d_model).astype(bf),
        "wk": _dense(k[3], d_model, d_model).astype(bf),
        "wv": _dense(k[4], d_model, d_model).astype(bf),
        "wo": _dense(k[5], d_model, d_model).astype(bf),
        "ln1_g": jnp.ones((1, d_model), jnp.float32), "ln1_b": jnp.zeros((1, d_model), jnp.float32),
        "wf1": _dense(k[6], d_model, d_ff).astype(bf), "bf1": jnp.zeros((1, d_ff), jnp.float32),
        "wf2": _dense(k[7], d_ff, d_model).astype(bf), "bf2": jnp.zeros((1, d_model), jnp.float32),
        "ln2_g": jnp.ones((1, d_model), jnp.float32), "ln2_b": jnp.zeros((1, d_model), jnp.float32),
        "wp": _dense(k[8], d_model, nout),
        "bp": 0.01 * jax.random.normal(k[9], (1, nout), jnp.float32),
        "ln3_g": jnp.ones((1, nout), jnp.float32), "ln3_b": jnp.zeros((1, nout), jnp.float32),
    }


if __name__ == "__main__":
    # ---- model hyper-parameters ----
    num_node_features = 16
    graph_hidden_channels = 32
    nheads = 4
    nhid = 32
    nout = 32
    d_model, d_ff, vocab, seq_len = 768, 1024, 64, 8
    n_graphs, nodes_per_graph = 2, 12
    n_nodes = n_graphs * nodes_per_graph

    key = jax.random.PRNGKey(0)
    kx, kid, kp1, kp2, kp3, kph, kpt = jax.random.split(key, 7)

    # ---- graph batch (2 ring graphs of 12 nodes) ----
    x_nodes = jax.random.normal(kx, (n_nodes, num_node_features), jnp.float32)
    src, dst = [], []
    for g in range(n_graphs):
        off = g * nodes_per_graph
        for i in range(nodes_per_graph):
            j = (i + 1) % nodes_per_graph
            src += [off + i, off + j]
            dst += [off + j, off + i]
    edge_index = jnp.array([src, dst], dtype=jnp.int32)             # [2, E]
    adj = jnp.zeros((n_nodes, n_nodes), jnp.float32)
    adj = adj.at[edge_index[1], edge_index[0]].set(1.0)              # adj[dst, src]
    adj = adj.at[jnp.arange(n_nodes), jnp.arange(n_nodes)].set(1.0)  # self-loops
    batch_vec = jnp.repeat(jnp.arange(n_graphs, dtype=jnp.int32), nodes_per_graph)
    onehot = (batch_vec[None, :] == jnp.arange(n_graphs)[:, None]).astype(jnp.float32)
    pool_mat = onehot / jnp.sum(onehot, axis=1, keepdims=True)       # global_mean_pool matrix

    # ---- text batch ----
    input_ids = jax.random.randint(kid, (n_graphs, seq_len), 0, vocab, dtype=jnp.int32)
    attention_mask = jnp.array([[1] * seq_len, [1] * 6 + [0] * 2], jnp.float32)

    # ---- parameters ----
    conv1 = make_gat_params(kp1, num_node_features, graph_hidden_channels, nheads)
    conv2 = make_gat_params(kp2, nheads * graph_hidden_channels, graph_hidden_channels, nheads)
    conv3 = make_gat_params(kp3, nheads * graph_hidden_channels, graph_hidden_channels, 1)
    head = make_head_params(kph, graph_hidden_channels, nhid, nout)
    text = make_text_params(kpt, vocab, seq_len, d_model, d_ff, nout)

    # ---- pack tiny params into two lane-dense slabs (one DMA each) ----
    gslab, glayout = pack_slab([
        ("b1", conv1["bias"]), ("b2", conv2["bias"]), ("b3", conv3["bias"]),
        ("hb1", head["b1"]), ("hb2", head["b2"]), ("lng", head["ln_g"]), ("lnb", head["ln_b"]),
        ("as1", conv1["att_src_full"]), ("ad1", conv1["att_dst_full"]),
        ("as2", conv2["att_src_full"]), ("ad2", conv2["att_dst_full"]),
        ("as3", conv3["att_src_full"]), ("ad3", conv3["att_dst_full"]),
    ], width=nheads * graph_hidden_channels)
    tslab, tlayout = pack_slab([
        ("ln1_g", text["ln1_g"]), ("ln1_b", text["ln1_b"]),
        ("bf1", text["bf1"]), ("bf2", text["bf2"]),
        ("ln2_g", text["ln2_g"]), ("ln2_b", text["ln2_b"]),
        ("bp", text["bp"]), ("ln3_g", text["ln3_g"]), ("ln3_b", text["ln3_b"]),
    ], width=d_ff)

    params = {
        "nheads": nheads, "ghc": graph_hidden_channels, "nout": nout,
        "conv1": conv1, "conv2": conv2, "conv3": conv3, "head": head, "text": text,
        "gslab": gslab, "glayout": glayout, "tslab": tslab, "tlayout": tlayout,
    }

    # token + position embeddings (glue / parameter gather, outside the kernel)
    x_text_emb = text["tok_emb"][input_ids] + text["pos_emb"][None, :, :]

    # block-diagonal + padding additive key mask over the flattened [B*S] key axis
    seg = jnp.repeat(jnp.arange(n_graphs), seq_len)                          # [B*S]
    valid = (seg[None, :] == jnp.arange(n_graphs)[:, None]) & \
            (attention_mask.reshape(1, -1) > 0)
    addmask = jnp.where(valid, 0.0, -1e30).astype(jnp.float32)               # [B, B*S]

    graph_encoded, text_encoded = gat_model_forward(
        x_nodes, adj, pool_mat, x_text_emb, addmask, params)
    jax.block_until_ready((graph_encoded, text_encoded))

    assert graph_encoded.shape == (n_graphs, nout)
    assert text_encoded.shape == (n_graphs, nout)
    assert bool(jnp.all(jnp.isfinite(graph_encoded))) and bool(jnp.all(jnp.isfinite(text_encoded)))
    print("KERNEL_OK")
</pallas_src>

<mosaic_0001>
module attributes {stable_mosaic.version = 11 : i64} {
  func.func @fused_model_kernel(%arg0: memref<24x16xf32, #tpu.memory_space<vmem>>, %arg1: memref<24x24xf32, #tpu.memory_space<vmem>>, %arg2: memref<2x24xf32, #tpu.memory_space<vmem>>, %arg3: memref<16x128xf32, #tpu.memory_space<vmem>>, %arg4: memref<128x128xf32, #tpu.memory_space<vmem>>, %arg5: memref<128x32xf32, #tpu.memory_space<vmem>>, %arg6: memref<32x32xf32, #tpu.memory_space<vmem>>, %arg7: memref<32x32xf32, #tpu.memory_space<vmem>>, %arg8: memref<25x128xf32, #tpu.memory_space<vmem>>, %arg9: memref<2x8x768xf32, #tpu.memory_space<vmem>>, %arg10: memref<2x16xf32, #tpu.memory_space<vmem>>, %arg11: memref<768x32xf32, #tpu.memory_space<vmem>>, %arg12: memref<9x1024xf32, #tpu.memory_space<vmem>>, %arg13: memref<768x768xbf16, #tpu.memory_space<any>>, %arg14: memref<768x768xbf16, #tpu.memory_space<any>>, %arg15: memref<768x768xbf16, #tpu.memory_space<any>>, %arg16: memref<768x768xbf16, #tpu.memory_space<any>>, %arg17: memref<768x1024xbf16, #tpu.memory_space<any>>, %arg18: memref<1024x768xbf16, #tpu.memory_space<any>>, %arg19: memref<2x32xf32, #tpu.memory_space<vmem>>, %arg20: memref<2x32xf32, #tpu.memory_space<vmem>>, %arg21: memref<768x768xbf16, #tpu.memory_space<vmem>>, %arg22: memref<768x768xbf16, #tpu.memory_space<vmem>>, %arg23: memref<768x768xbf16, #tpu.memory_space<vmem>>, %arg24: memref<768x768xbf16, #tpu.memory_space<vmem>>, %arg25: memref<768x1024xbf16, #tpu.memory_space<vmem>>, %arg26: memref<1024x768xbf16, #tpu.memory_space<vmem>>, %arg27: memref<6x!tpu.dma_semaphore, #tpu.memory_space<semaphore_mem>>) attributes {dimension_semantics = [], scalar_prefetch = 0 : i64, scratch_operands = 7 : i64, tpu.core_type = #tpu.core_type<tc>} {
    %c0_i32 = arith.constant 0 : i32
    %0 = tpu.memref_slice %arg27[%c0_i32] : memref<6x!tpu.dma_semaphore, #tpu.memory_space<semaphore_mem>> -> memref<1x!tpu.dma_semaphore, #tpu.memory_space<semaphore_mem>>
    %1 = tpu.memref_squeeze %0 : memref<1x!tpu.dma_semaphore, #tpu.memory_space<semaphore_mem>> -> memref<!tpu.dma_semaphore, #tpu.memory_space<semaphore_mem>>
    tpu.enqueue_dma source(%arg13 : memref<768x768xbf16, #tpu.memory_space<any>>) target(%arg21 : memref<768x768xbf16, #tpu.memory_space<vmem>>) target_semaphore(%1 : memref<!tpu.dma_semaphore, #tpu.memory_space<semaphore_mem>>)
    %c1_i32 = arith.constant 1 : i32
    %2 = tpu.memref_slice %arg27[%c1_i32] : memref<6x!tpu.dma_semaphore, #tpu.memory_space<semaphore_mem>> -> memref<1x!tpu.dma_semaphore, #tpu.memory_space<semaphore_mem>>
    %3 = tpu.memref_squeeze %2 : memref<1x!tpu.dma_semaphore, #tpu.memory_space<semaphore_mem>> -> memref<!tpu.dma_semaphore, #tpu.memory_space<semaphore_mem>>
    tpu.enqueue_dma source(%arg14 : memref<768x768xbf16, #tpu.memory_space<any>>) target(%arg22 : memref<768x768xbf16, #tpu.memory_space<vmem>>) target_semaphore(%3 : memref<!tpu.dma_semaphore, #tpu.memory_space<semaphore_mem>>)
    %c2_i32 = arith.constant 2 : i32
    %4 = tpu.memref_slice %arg27[%c2_i32] : memref<6x!tpu.dma_semaphore, #tpu.memory_space<semaphore_mem>> -> memref<1x!tpu.dma_semaphore, #tpu.memory_space<semaphore_mem>>
    %5 = tpu.memref_squeeze %4 : memref<1x!tpu.dma_semaphore, #tpu.memory_space<semaphore_mem>> -> memref<!tpu.dma_semaphore, #tpu.memory_space<semaphore_mem>>
    tpu.enqueue_dma source(%arg15 : memref<768x768xbf16, #tpu.memory_space<any>>) target(%arg23 : memref<768x768xbf16, #tpu.memory_space<vmem>>) target_semaphore(%5 : memref<!tpu.dma_semaphore, #tpu.memory_space<semaphore_mem>>)
    %c3_i32 = arith.constant 3 : i32
    %6 = tpu.memref_slice %arg27[%c3_i32] : memref<6x!tpu.dma_semaphore, #tpu.memory_space<semaphore_mem>> -> memref<1x!tpu.dma_semaphore, #tpu.memory_space<semaphore_mem>>
    %7 = tpu.memref_squeeze %6 : memref<1x!tpu.dma_semaphore, #tpu.memory_space<semaphore_mem>> -> memref<!tpu.dma_semaphore, #tpu.memory_space<semaphore_mem>>
    tpu.enqueue_dma source(%arg16 : memref<768x768xbf16, #tpu.memory_space<any>>) target(%arg24 : memref<768x768xbf16, #tpu.memory_space<vmem>>) target_semaphore(%7 : memref<!tpu.dma_semaphore, #tpu.memory_space<semaphore_mem>>)
    %c4_i32 = arith.constant 4 : i32
    %8 = tpu.memref_slice %arg27[%c4_i32] : memref<6x!tpu.dma_semaphore, #tpu.memory_space<semaphore_mem>> -> memref<1x!tpu.dma_semaphore, #tpu.memory_space<semaphore_mem>>
    %9 = tpu.memref_squeeze %8 : memref<1x!tpu.dma_semaphore, #tpu.memory_space<semaphore_mem>> -> memref<!tpu.dma_semaphore, #tpu.memory_space<semaphore_mem>>
    tpu.enqueue_dma source(%arg17 : memref<768x1024xbf16, #tpu.memory_space<any>>) target(%arg25 : memref<768x1024xbf16, #tpu.memory_space<vmem>>) target_semaphore(%9 : memref<!tpu.dma_semaphore, #tpu.memory_space<semaphore_mem>>)
    %c5_i32 = arith.constant 5 : i32
    %10 = tpu.memref_slice %arg27[%c5_i32] : memref<6x!tpu.dma_semaphore, #tpu.memory_space<semaphore_mem>> -> memref<1x!tpu.dma_semaphore, #tpu.memory_space<semaphore_mem>>
    %11 = tpu.memref_squeeze %10 : memref<1x!tpu.dma_semaphore, #tpu.memory_space<semaphore_mem>> -> memref<!tpu.dma_semaphore, #tpu.memory_space<semaphore_mem>>
    tpu.enqueue_dma source(%arg18 : memref<1024x768xbf16, #tpu.memory_space<any>>) target(%arg26 : memref<1024x768xbf16, #tpu.memory_space<vmem>>) target_semaphore(%11 : memref<!tpu.dma_semaphore, #tpu.memory_space<semaphore_mem>>)
    %c0 = arith.constant 0 : index
    %c0_0 = arith.constant 0 : index
    %12 = vector.load %arg1[%c0, %c0_0] : memref<24x24xf32, #tpu.memory_space<vmem>>, vector<24x24xf32>
    %cst = arith.constant 0.000000e+00 : f32
    %13 = vector.broadcast %cst : f32 to vector<24x24xf32>
    %14 = arith.cmpf ogt, %12, %13 : vector<24x24xf32>
    %c0_1 = arith.constant 0 : index
    %c0_2 = arith.constant 0 : index
    %15 = vector.load %arg0[%c0_1, %c0_2] : memref<24x16xf32, #tpu.memory_space<vmem>>, vector<24x16xf32>
    %c0_3 = arith.constant 0 : index
    %c0_4 = arith.constant 0 : index
    %16 = vector.load %arg3[%c0_3, %c0_4] : memref<16x128xf32, #tpu.memory_space<vmem>>, vector<16x128xf32>
    %cst_5 = arith.constant dense<0.000000e+00> : vector<24x128xf32>
    %17 = tpu.matmul %15, %16, %cst_5 {dimension_numbers = #tpu.dot_dimension_numbers<[1], [0], [0], [1], [0, 0, 1, 1], [], []>} : vector<24x16xf32>, vector<16x128xf32>, vector<24x128xf32> -> vector<24x128xf32>
    %c7 = arith.constant 7 : index
    %c0_6 = arith.constant 0 : index
    %18 = vector.load %arg8[%c7, %c0_6] : memref<25x128xf32, #tpu.memory_space<vmem>>, vector<4x128xf32>
    %c11 = arith.constant 11 : index
    %c0_7 = arith.constant 0 : index
    %19 = vector.load %arg8[%c11, %c0_7] : memref<25x128xf32, #tpu.memory_space<vmem>>, vector<4x128xf32>
    %cst_8 = arith.constant dense<0.000000e+00> : vector<24x4xf32>
    %20 = tpu.matmul %17, %19, %cst_8 {dimension_numbers = #tpu.dot_dimension_numbers<[1], [1], [0], [0], [0, 0, 1, 0], [], []>} : vector<24x128xf32>, vector<4x128xf32>, vector<24x4xf32> -> vector<24x4xf32>
    %cst_9 = arith.constant dense<0.000000e+00> : vector<4x24xf32>
    %21 = tpu.matmul %18, %17, %cst_9 {dimension_numbers = #tpu.dot_dimension_numbers<[1], [1], [0], [0], [0, 0, 1, 0], [], []>} : vector<4x128xf32>, vector<24x128xf32>, vector<4x24xf32> -> vector<4x24xf32>
    %22 = vector.extract_strided_slice %20 {offsets = [0, 0], sizes = [24, 1], strides = [1, 1]} : vector<24x4xf32> to vector<24x1xf32>
    %23 = vector.extract_strided_slice %21 {offsets = [0, 0], sizes = [1, 24], strides = [1, 1]} : vector<4x24xf32> to vector<1x24xf32>
    %24 = vector.broadcast %22 : vector<24x1xf32> to vector<24x24xf32>
    %25 = vector.broadcast %23 : vector<1x24xf32> to vector<24x24xf32>
    %26 = arith.addf %24, %25 : vector<24x24xf32>
    %cst_10 = arith.constant 0.000000e+00 : f32
    %27 = vector.broadcast %cst_10 : f32 to vector<24x24xf32>
    %28 = arith.cmpf ogt, %26, %27 : vector<24x24xf32>
    %cst_11 = arith.constant 2.000000e-01 : f32
    %29 = vector.broadcast %cst_11 : f32 to vector<24x24xf32>
    %30 = arith.mulf %29, %26 : vector<24x24xf32>
    %31 = arith.select %28, %26, %30 : vector<24x24xi1>, vector<24x24xf32>
    %cst_12 = arith.constant -1.000000e+30 : f32
    %32 = vector.broadcast %cst_12 : f32 to vector<24x24xf32>
    %33 = arith.select %14, %31, %32 : vector<24x24xi1>, vector<24x24xf32>
    %cst_13 = arith.constant dense<0xFF800000> : vector<24xf32>
    %34 = vector.multi_reduction <maximumf>, %33, %cst_13 [1] : vector<24x24xf32> to vector<24xf32>
    %35 = vector.shape_cast %34 : vector<24xf32> to vector<24x1xf32>
    %36 = vector.broadcast %35 : vector<24x1xf32> to vector<24x24xf32>
    %37 = arith.subf %33, %36 : vector<24x24xf32>
    %38 = math.exp %37 : vector<24x24xf32>
    %cst_14 = arith.constant dense<0.000000e+00> : vector<24xf32>
    %39 = vector.multi_reduction <add>, %38, %cst_14 [1] : vector<24x24xf32> to vector<24xf32>
    %40 = vector.shape_cast %39 : vector<24xf32> to vector<24x1xf32>
    %41 = tpu.reciprocal %40 {approx = true} : vector<24x1xf32> -> vector<24x1xf32>
    %42 = vector.broadcast %41 : vector<24x1xf32> to vector<24x24xf32>
    %43 = arith.mulf %38, %42 : vector<24x24xf32>
    %44 = vector.extract_strided_slice %17 {offsets = [0, 0], sizes = [24, 32], strides = [1, 1]} : vector<24x128xf32> to vector<24x32xf32>
    %cst_15 = arith.constant dense<0.000000e+00> : vector<24x32xf32>
    %45 = tpu.matmul %43, %44, %cst_15 {dimension_numbers = #tpu.dot_dimension_numbers<[1], [0], [0], [1], [0, 0, 1, 1], [], []>} : vector<24x24xf32>, vector<24x32xf32>, vector<24x32xf32> -> vector<24x32xf32>
    %46 = vector.extract_strided_slice %20 {offsets = [0, 1], sizes = [24, 1], strides = [1, 1]} : vector<24x4xf32> to vector<24x1xf32>
    %47 = vector.extract_strided_slice %21 {offsets = [1, 0], sizes = [1, 24], strides = [1, 1]} : vector<4x24xf32> to vector<1x24xf32>
    %48 = vector.broadcast %46 : vector<24x1xf32> to vector<24x24xf32>
    %49 = vector.broadcast %47 : vector<1x24xf32> to vector<24x24xf32>
    %50 = arith.addf %48, %49 : vector<24x24xf32>
    %cst_16 = arith.constant 0.000000e+00 : f32
    %51 = vector.broadcast %cst_16 : f32 to vector<24x24xf32>
    %52 = arith.cmpf ogt, %50, %51 : vector<24x24xf32>
    %cst_17 = arith.constant 2.000000e-01 : f32
    %53 = vector.broadcast %cst_17 : f32 to vector<24x24xf32>
    %54 = arith.mulf %53, %50 : vector<24x24xf32>
    %55 = arith.select %52, %50, %54 : vector<24x24xi1>, vector<24x24xf32>
    %cst_18 = arith.constant -1.000000e+30 : f32
    %56 = vector.broadcast %cst_18 : f32 to vector<24x24xf32>
    %57 = arith.select %14, %55, %56 : vector<24x24xi1>, vector<24x24xf32>
    %cst_19 = arith.constant dense<0xFF800000> : vector<24xf32>
    %58 = vector.multi_reduction <maximumf>, %57, %cst_19 [1] : vector<24x24xf32> to vector<24xf32>
    %59 = vector.shape_cast %58 : vector<24xf32> to vector<24x1xf32>
    %60 = vector.broadcast %59 : vector<24x1xf32> to vector<24x24xf32>
    %61 = arith.subf %57, %60 : vector<24x24xf32>
    %62 = math.exp %61 : vector<24x24xf32>
    %cst_20 = arith.constant dense<0.000000e+00> : vector<24xf32>
    %63 = vector.multi_reduction <add>, %62, %cst_20 [1] : vector<24x24xf32> to vector<24xf32>
    %64 = vector.shape_cast %63 : vector<24xf32> to vector<24x1xf32>
    %65 = tpu.reciprocal %64 {approx = true} : vector<24x1xf32> -> vector<24x1xf32>
    %66 = vector.broadcast %65 : vector<24x1xf32> to vector<24x24xf32>
    %67 = arith.mulf %62, %66 : vector<24x24xf32>
    %68 = vector.extract_strided_slice %17 {offsets = [0, 32], sizes = [24, 32], strides = [1, 1]} : vector<24x128xf32> to vector<24x32xf32>
    %cst_21 = arith.constant dense<0.000000e+00> : vector<24x32xf32>
    %69 = tpu.matmul %67, %68, %cst_21 {dimension_numbers = #tpu.dot_dimension_numbers<[1], [0], [0], [1], [0, 0, 1, 1], [], []>} : vector<24x24xf32>, vector<24x32xf32>, vector<24x32xf32> -> vector<24x32xf32>
    %70 = vector.extract_strided_slice %20 {offsets = [0, 2], sizes = [24, 1], strides = [1, 1]} : vector<24x4xf32> to vector<24x1xf32>
    %71 = vector.extract_strided_slice %21 {offsets = [2, 0], sizes = [1, 24], strides = [1, 1]} : vector<4x24xf32> to vector<1x24xf32>
    %72 = vector.broadcast %70 : vector<24x1xf32> to vector<24x24xf32>
    %73 = vector.broadcast %71 : vector<1x24xf32> to vector<24x24xf32>
    %74 = arith.addf %72, %73 : vector<24x24xf32>
    %cst_22 = arith.constant 0.000000e+00 : f32
    %75 = vector.broadcast %cst_22 : f32 to vector<24x24xf32>
    %76 = arith.cmpf ogt, %74, %75 : vector<24x24xf32>
    %cst_23 = arith.constant 2.000000e-01 : f32
    %77 = vector.broadcast %cst_23 : f32 to vector<24x24xf32>
    %78 = arith.mulf %77, %74 : vector<24x24xf32>
    %79 = arith.select %76, %74, %78 : vector<24x24xi1>, vector<24x24xf32>
    %cst_24 = arith.constant -1.000000e+30 : f32
    %80 = vector.broadcast %cst_24 : f32 to vector<24x24xf32>
    %81 = arith.select %14, %79, %80 : vector<24x24xi1>, vector<24x24xf32>
    %cst_25 = arith.constant dense<0xFF800000> : vector<24xf32>
    %82 = vector.multi_reduction <maximumf>, %81, %cst_25 [1] : vector<24x24xf32> to vector<24xf32>
    %83 = vector.shape_cast %82 : vector<24xf32> to vector<24x1xf32>
    %84 = vector.broadcast %83 : vector<24x1xf32> to vector<24x24xf32>
    %85 = arith.subf %81, %84 : vector<24x24xf32>
    %86 = math.exp %85 : vector<24x24xf32>
    %cst_26 = arith.constant dense<0.000000e+00> : vector<24xf32>
    %87 = vector.multi_reduction <add>, %86, %cst_26 [1] : vector<24x24xf32> to vector<24xf32>
    %88 = vector.shape_cast %87 : vector<24xf32> to vector<24x1xf32>
    %89 = tpu.reciprocal %88 {approx = true} : vector<24x1xf32> -> vector<24x1xf32>
    %90 = vector.broadcast %89 : vector<24x1xf32> to vector<24x24xf32>
    %91 = arith.mulf %86, %90 : vector<24x24xf32>
    %92 = vector.extract_strided_slice %17 {offsets = [0, 64], sizes = [24, 32], strides = [1, 1]} : vector<24x128xf32> to vector<24x32xf32>
    %cst_27 = arith.constant dense<0.000000e+00> : vector<24x32xf32>
    %93 = tpu.matmul %91, %92, %cst_27 {dimension_numbers = #tpu.dot_dimension_numbers<[1], [0], [0], [1], [0, 0, 1, 1], [], []>} : vector<24x24xf32>, vector<24x32xf32>, vector<24x32xf32> -> vector<24x32xf32>
    %94 = vector.extract_strided_slice %20 {offsets = [0, 3], sizes = [24, 1], strides = [1, 1]} : vector<24x4xf32> to vector<24x1xf32>
    %95 = vector.extract_strided_slice %21 {offsets = [3, 0], sizes = [1, 24], strides = [1, 1]} : vector<4x24xf32> to vector<1x24xf32>
    %96 = vector.broadcast %94 : vector<24x1xf32> to vector<24x24xf32>
    %97 = vector.broadcast %95 : vector<1x24xf32> to vector<24x24xf32>
    %98 = arith.addf %96, %97 : vector<24x24xf32>
    %cst_28 = arith.constant 0.000000e+00 : f32
    %99 = vector.broadcast %cst_28 : f32 to vector<24x24xf32>
    %100 = arith.cmpf ogt, %98, %99 : vector<24x24xf32>
    %cst_29 = arith.constant 2.000000e-01 : f32
    %101 = vector.broadcast %cst_29 : f32 to vector<24x24xf32>
    %102 = arith.mulf %101, %98 : vector<24x24xf32>
    %103 = arith.select %100, %98, %102 : vector<24x24xi1>, vector<24x24xf32>
    %cst_30 = arith.constant -1.000000e+30 : f32
    %104 = vector.broadcast %cst_30 : f32 to vector<24x24xf32>
    %105 = arith.select %14, %103, %104 : vector<24x24xi1>, vector<24x24xf32>
    %cst_31 = arith.constant dense<0xFF800000> : vector<24xf32>
    %106 = vector.multi_reduction <maximumf>, %105, %cst_31 [1] : vector<24x24xf32> to vector<24xf32>
    %107 = vector.shape_cast %106 : vector<24xf32> to vector<24x1xf32>
    %108 = vector.broadcast %107 : vector<24x1xf32> to vector<24x24xf32>
    %109 = arith.subf %105, %108 : vector<24x24xf32>
    %110 = math.exp %109 : vector<24x24xf32>
    %cst_32 = arith.constant dense<0.000000e+00> : vector<24xf32>
    %111 = vector.multi_reduction <add>, %110, %cst_32 [1] : vector<24x24xf32> to vector<24xf32>
    %112 = vector.shape_cast %111 : vector<24xf32> to vector<24x1xf32>
    %113 = tpu.reciprocal %112 {approx = true} : vector<24x1xf32> -> vector<24x1xf32>
    %114 = vector.broadcast %113 : vector<24x1xf32> to vector<24x24xf32>
    %115 = arith.mulf %110, %114 : vector<24x24xf32>
    %116 = vector.extract_strided_slice %17 {offsets = [0, 96], sizes = [24, 32], strides = [1, 1]} : vector<24x128xf32> to vector<24x32xf32>
    %cst_33 = arith.constant dense<0.000000e+00> : vector<24x32xf32>
    %117 = tpu.matmul %115, %116, %cst_33 {dimension_numbers = #tpu.dot_dimension_numbers<[1], [0], [0], [1], [0, 0, 1, 1], [], []>} : vector<24x24xf32>, vector<24x32xf32>, vector<24x32xf32> -> vector<24x32xf32>
    %c0_34 = arith.constant 0 : index
    %c0_35 = arith.constant 0 : index
    %118 = vector.load %arg8[%c0_34, %c0_35] : memref<25x128xf32, #tpu.memory_space<vmem>>, vector<1x128xf32>
    %c0_36 = arith.constant 0 : index
    %c0_37 = arith.constant 0 : index
    %119 = vector.load %arg4[%c0_36, %c0_37] : memref<128x128xf32, #tpu.memory_space<vmem>>, vector<128x128xf32>
    %120 = vector.extract_strided_slice %118 {offsets = [0, 0], sizes = [1, 32], strides = [1, 1]} : vector<1x128xf32> to vector<1x32xf32>
    %121 = vector.broadcast %120 : vector<1x32xf32> to vector<24x32xf32>
    %122 = arith.addf %45, %121 : vector<24x32xf32>
    %cst_38 = arith.constant 0.000000e+00 : f32
    %123 = vector.broadcast %cst_38 : f32 to vector<24x32xf32>
    %124 = arith.maximumf %122, %123 : vector<24x32xf32>
    %125 = vector.extract_strided_slice %119 {offsets = [0, 0], sizes = [32, 128], strides = [1, 1]} : vector<128x128xf32> to vector<32x128xf32>
    %cst_39 = arith.constant dense<0.000000e+00> : vector<24x128xf32>
    %126 = tpu.matmul %124, %125, %cst_39 {dimension_numbers = #tpu.dot_dimension_numbers<[1], [0], [0], [1], [0, 0, 1, 1], [], []>} : vector<24x32xf32>, vector<32x128xf32>, vector<24x128xf32> -> vector<24x128xf32>
    %127 = vector.extract_strided_slice %118 {offsets = [0, 32], sizes = [1, 32], strides = [1, 1]} : vector<1x128xf32> to vector<1x32xf32>
    %128 = vector.broadcast %127 : vector<1x32xf32> to vector<24x32xf32>
    %129 = arith.addf %69, %128 : vector<24x32xf32>
    %cst_40 = arith.constant 0.000000e+00 : f32
    %130 = vector.broadcast %cst_40 : f32 to vector<24x32xf32>
    %131 = arith.maximumf %129, %130 : vector<24x32xf32>
    %132 = vector.extract_strided_slice %119 {offsets = [32, 0], sizes = [32, 128], strides = [1, 1]} : vector<128x128xf32> to vector<32x128xf32>
    %cst_41 = arith.constant dense<0.000000e+00> : vector<24x128xf32>
    %133 = tpu.matmul %131, %132, %cst_41 {dimension_numbers = #tpu.dot_dimension_numbers<[1], [0], [0], [1], [0, 0, 1, 1], [], []>} : vector<24x32xf32>, vector<32x128xf32>, vector<24x128xf32> -> vector<24x128xf32>
    %134 = arith.addf %126, %133 : vector<24x128xf32>
    %135 = vector.extract_strided_slice %118 {offsets = [0, 64], sizes = [1, 32], strides = [1, 1]} : vector<1x128xf32> to vector<1x32xf32>
    %136 = vector.broadcast %135 : vector<1x32xf32> to vector<24x32xf32>
    %137 = arith.addf %93, %136 : vector<24x32xf32>
    %cst_42 = arith.constant 0.000000e+00 : f32
    %138 = vector.broadcast %cst_42 : f32 to vector<24x32xf32>
    %139 = arith.maximumf %137, %138 : vector<24x32xf32>
    %140 = vector.extract_strided_slice %119 {offsets = [64, 0], sizes = [32, 128], strides = [1, 1]} : vector<128x128xf32> to vector<32x128xf32>
    %cst_43 = arith.constant dense<0.000000e+00> : vector<24x128xf32>
    %141 = tpu.matmul %139, %140, %cst_43 {dimension_numbers = #tpu.dot_dimension_numbers<[1], [0], [0], [1], [0, 0, 1, 1], [], []>} : vector<24x32xf32>, vector<32x128xf32>, vector<24x128xf32> -> vector<24x128xf32>
    %142 = arith.addf %134, %141 : vector<24x128xf32>
    %143 = vector.extract_strided_slice %118 {offsets = [0, 96], sizes = [1, 32], strides = [1, 1]} : vector<1x128xf32> to vector<1x32xf32>
    %144 = vector.broadcast %143 : vector<1x32xf32> to vector<24x32xf32>
    %145 = arith.addf %117, %144 : vector<24x32xf32>
    %cst_44 = arith.constant 0.000000e+00 : f32
    %146 = vector.broadcast %cst_44 : f32 to vector<24x32xf32>
    %147 = arith.maximumf %145, %146 : vector<24x32xf32>
    %148 = vector.extract_strided_slice %119 {offsets = [96, 0], sizes = [32, 128], strides = [1, 1]} : vector<128x128xf32> to vector<32x128xf32>
    %cst_45 = arith.constant dense<0.000000e+00> : vector<24x128xf32>
    %149 = tpu.matmul %147, %148, %cst_45 {dimension_numbers = #tpu.dot_dimension_numbers<[1], [0], [0], [1], [0, 0, 1, 1], [], []>} : vector<24x32xf32>, vector<32x128xf32>, vector<24x128xf32> -> vector<24x128xf32>
    %150 = arith.addf %142, %149 : vector<24x128xf32>
    %c15 = arith.constant 15 : index
    %c0_46 = arith.constant 0 : index
    %151 = vector.load %arg8[%c15, %c0_46] : memref<25x128xf32, #tpu.memory_space<vmem>>, vector<4x128xf32>
    %c19 = arith.constant 19 : index
    %c0_47 = arith.constant 0 : index
    %152 = vector.load %arg8[%c19, %c0_47] : memref<25x128xf32, #tpu.memory_space<vmem>>, vector<4x128xf32>
    %cst_48 = arith.constant dense<0.000000e+00> : vector<24x4xf32>
    %153 = tpu.matmul %150, %152, %cst_48 {dimension_numbers = #tpu.dot_dimension_numbers<[1], [1], [0], [0], [0, 0, 1, 0], [], []>} : vector<24x128xf32>, vector<4x128xf32>, vector<24x4xf32> -> vector<24x4xf32>
    %cst_49 = arith.constant dense<0.000000e+00> : vector<4x24xf32>
    %154 = tpu.matmul %151, %150, %cst_49 {dimension_numbers = #tpu.dot_dimension_numbers<[1], [1], [0], [0], [0, 0, 1, 0], [], []>} : vector<4x128xf32>, vector<24x128xf32>, vector<4x24xf32> -> vector<4x24xf32>
    %155 = vector.extract_strided_slice %153 {offsets = [0, 0], sizes = [24, 1], strides = [1, 1]} : vector<24x4xf32> to vector<24x1xf32>
    %156 = vector.extract_strided_slice %154 {offsets = [0, 0], sizes = [1, 24], strides = [1, 1]} : vector<4x24xf32> to vector<1x24xf32>
    %157 = vector.broadcast %155 : vector<24x1xf32> to vector<24x24xf32>
    %158 = vector.broadcast %156 : vector<1x24xf32> to vector<24x24xf32>
    %159 = arith.addf %157, %158 : vector<24x24xf32>
    %cst_50 = arith.constant 0.000000e+00 : f32
    %160 = vector.broadcast %cst_50 : f32 to vector<24x24xf32>
    %161 = arith.cmpf ogt, %159, %160 : vector<24x24xf32>
    %cst_51 = arith.constant 2.000000e-01 : f32
    %162 = vector.broadcast %cst_51 : f32 to vector<24x24xf32>
    %163 = arith.mulf %162, %159 : vector<24x24xf32>
    %164 = arith.select %161, %159, %163 : vector<24x24xi1>, vector<24x24xf32>
    %cst_52 = arith.constant -1.000000e+30 : f32
    %165 = vector.broadcast %cst_52 : f32 to vector<24x24xf32>
    %166 = arith.select %14, %164, %165 : vector<24x24xi1>, vector<24x24xf32>
    %cst_53 = arith.constant dense<0xFF800000> : vector<24xf32>
    %167 = vector.multi_reduction <maximumf>, %166, %cst_53 [1] : vector<24x24xf32> to vector<24xf32>
    %168 = vector.shape_cast %167 : vector<24xf32> to vector<24x1xf32>
    %169 = vector.broadcast %168 : vector<24x1xf32> to vector<24x24xf32>
    %170 = arith.subf %166, %169 : vector<24x24xf32>
    %171 = math.exp %170 : vector<24x24xf32>
    %cst_54 = arith.constant dense<0.000000e+00> : vector<24xf32>
    %172 = vector.multi_reduction <add>, %171, %cst_54 [1] : vector<24x24xf32> to vector<24xf32>
    %173 = vector.shape_cast %172 : vector<24xf32> to vector<24x1xf32>
    %174 = tpu.reciprocal %173 {approx = true} : vector<24x1xf32> -> vector<24x1xf32>
    %175 = vector.broadcast %174 : vector<24x1xf32> to vector<24x24xf32>
    %176 = arith.mulf %171, %175 : vector<24x24xf32>
    %177 = vector.extract_strided_slice %150 {offsets = [0, 0], sizes = [24, 32], strides = [1, 1]} : vector<24x128xf32> to vector<24x32xf32>
    %cst_55 = arith.constant dense<0.000000e+00> : vector<24x32xf32>
    %178 = tpu.matmul %176, %177, %cst_55 {dimension_numbers = #tpu.dot_dimension_numbers<[1], [0], [0], [1], [0, 0, 1, 1], [], []>} : vector<24x24xf32>, vector<24x32xf32>, vector<24x32xf32> -> vector<24x32xf32>
    %179 = vector.extract_strided_slice %153 {offsets = [0, 1], sizes = [24, 1], strides = [1, 1]} : vector<24x4xf32> to vector<24x1xf32>
    %180 = vector.extract_strided_slice %154 {offsets = [1, 0], sizes = [1, 24], strides = [1, 1]} : vector<4x24xf32> to vector<1x24xf32>
    %181 = vector.broadcast %179 : vector<24x1xf32> to vector<24x24xf32>
    %182 = vector.broadcast %180 : vector<1x24xf32> to vector<24x24xf32>
    %183 = arith.addf %181, %182 : vector<24x24xf32>
    %cst_56 = arith.constant 0.000000e+00 : f32
    %184 = vector.broadcast %cst_56 : f32 to vector<24x24xf32>
    %185 = arith.cmpf ogt, %183, %184 : vector<24x24xf32>
    %cst_57 = arith.constant 2.000000e-01 : f32
    %186 = vector.broadcast %cst_57 : f32 to vector<24x24xf32>
    %187 = arith.mulf %186, %183 : vector<24x24xf32>
    %188 = arith.select %185, %183, %187 : vector<24x24xi1>, vector<24x24xf32>
    %cst_58 = arith.constant -1.000000e+30 : f32
    %189 = vector.broadcast %cst_58 : f32 to vector<24x24xf32>
    %190 = arith.select %14, %188, %189 : vector<24x24xi1>, vector<24x24xf32>
    %cst_59 = arith.constant dense<0xFF800000> : vector<24xf32>
    %191 = vector.multi_reduction <maximumf>, %190, %cst_59 [1] : vector<24x24xf32> to vector<24xf32>
    %192 = vector.shape_cast %191 : vector<24xf32> to vector<24x1xf32>
    %193 = vector.broadcast %192 : vector<24x1xf32> to vector<24x24xf32>
    %194 = arith.subf %190, %193 : vector<24x24xf32>
    %195 = math.exp %194 : vector<24x24xf32>
    %cst_60 = arith.constant dense<0.000000e+00> : vector<24xf32>
    %196 = vector.multi_reduction <add>, %195, %cst_60 [1] : vector<24x24xf32> to vector<24xf32>
    %197 = vector.shape_cast %196 : vector<24xf32> to vector<24x1xf32>
    %198 = tpu.reciprocal %197 {approx = true} : vector<24x1xf32> -> vector<24x1xf32>
    %199 = vector.broadcast %198 : vector<24x1xf32> to vector<24x24xf32>
    %200 = arith.mulf %195, %199 : vector<24x24xf32>
    %201 = vector.extract_strided_slice %150 {offsets = [0, 32], sizes = [24, 32], strides = [1, 1]} : vector<24x128xf32> to vector<24x32xf32>
    %cst_61 = arith.constant dense<0.000000e+00> : vector<24x32xf32>
    %202 = tpu.matmul %200, %201, %cst_61 {dimension_numbers = #tpu.dot_dimension_numbers<[1], [0], [0], [1], [0, 0, 1, 1], [], []>} : vector<24x24xf32>, vector<24x32xf32>, vector<24x32xf32> -> vector<24x32xf32>
    %203 = vector.extract_strided_slice %153 {offsets = [0, 2], sizes = [24, 1], strides = [1, 1]} : vector<24x4xf32> to vector<24x1xf32>
    %204 = vector.extract_strided_slice %154 {offsets = [2, 0], sizes = [1, 24], strides = [1, 1]} : vector<4x24xf32> to vector<1x24xf32>
    %205 = vector.broadcast %203 : vector<24x1xf32> to vector<24x24xf32>
    %206 = vector.broadcast %204 : vector<1x24xf32> to vector<24x24xf32>
    %207 = arith.addf %205, %206 : vector<24x24xf32>
    %cst_62 = arith.constant 0.000000e+00 : f32
    %208 = vector.broadcast %cst_62 : f32 to vector<24x24xf32>
    %209 = arith.cmpf ogt, %207, %208 : vector<24x24xf32>
    %cst_63 = arith.constant 2.000000e-01 : f32
    %210 = vector.broadcast %cst_63 : f32 to vector<24x24xf32>
    %211 = arith.mulf %210, %207 : vector<24x24xf32>
    %212 = arith.select %209, %207, %211 : vector<24x24xi1>, vector<24x24xf32>
    %cst_64 = arith.constant -1.000000e+30 : f32
    %213 = vector.broadcast %cst_64 : f32 to vector<24x24xf32>
    %214 = arith.select %14, %212, %213 : vector<24x24xi1>, vector<24x24xf32>
    %cst_65 = arith.constant dense<0xFF800000> : vector<24xf32>
    %215 = vector.multi_reduction <maximumf>, %214, %cst_65 [1] : vector<24x24xf32> to vector<24xf32>
    %216 = vector.shape_cast %215 : vector<24xf32> to vector<24x1xf32>
    %217 = vector.broadcast %216 : vector<24x1xf32> to vector<24x24xf32>
    %218 = arith.subf %214, %217 : vector<24x24xf32>
    %219 = math.exp %218 : vector<24x24xf32>
    %cst_66 = arith.constant dense<0.000000e+00> : vector<24xf32>
    %220 = vector.multi_reduction <add>, %219, %cst_66 [1] : vector<24x24xf32> to vector<24xf32>
    %221 = vector.shape_cast %220 : vector<24xf32> to vector<24x1xf32>
    %222 = tpu.reciprocal %221 {approx = true} : vector<24x1xf32> -> vector<24x1xf32>
    %223 = vector.broadcast %222 : vector<24x1xf32> to vector<24x24xf32>
    %224 = arith.mulf %219, %223 : vector<24x24xf32>
    %225 = vector.extract_strided_slice %150 {offsets = [0, 64], sizes = [24, 32], strides = [1, 1]} : vector<24x128xf32> to vector<24x32xf32>
    %cst_67 = arith.constant dense<0.000000e+00> : vector<24x32xf32>
    %226 = tpu.matmul %224, %225, %cst_67 {dimension_numbers = #tpu.dot_dimension_numbers<[1], [0], [0], [1], [0, 0, 1, 1], [], []>} : vector<24x24xf32>, vector<24x32xf32>, vector<24x32xf32> -> vector<24x32xf32>
    %227 = vector.extract_strided_slice %153 {offsets = [0, 3], sizes = [24, 1], strides = [1, 1]} : vector<24x4xf32> to vector<24x1xf32>
    %228 = vector.extract_strided_slice %154 {offsets = [3, 0], sizes = [1, 24], strides = [1, 1]} : vector<4x24xf32> to vector<1x24xf32>
    %229 = vector.broadcast %227 : vector<24x1xf32> to vector<24x24xf32>
    %230 = vector.broadcast %228 : vector<1x24xf32> to vector<24x24xf32>
    %231 = arith.addf %229, %230 : vector<24x24xf32>
    %cst_68 = arith.constant 0.000000e+00 : f32
    %232 = vector.broadcast %cst_68 : f32 to vector<24x24xf32>
    %233 = arith.cmpf ogt, %231, %232 : vector<24x24xf32>
    %cst_69 = arith.constant 2.000000e-01 : f32
    %234 = vector.broadcast %cst_69 : f32 to vector<24x24xf32>
    %235 = arith.mulf %234, %231 : vector<24x24xf32>
    %236 = arith.select %233, %231, %235 : vector<24x24xi1>, vector<24x24xf32>
    %cst_70 = arith.constant -1.000000e+30 : f32
    %237 = vector.broadcast %cst_70 : f32 to vector<24x24xf32>
    %238 = arith.select %14, %236, %237 : vector<24x24xi1>, vector<24x24xf32>
    %cst_71 = arith.constant dense<0xFF800000> : vector<24xf32>
    %239 = vector.multi_reduction <maximumf>, %238, %cst_71 [1] : vector<24x24xf32> to vector<24xf32>
    %240 = vector.shape_cast %239 : vector<24xf32> to vector<24x1xf32>
    %241 = vector.broadcast %240 : vector<24x1xf32> to vector<24x24xf32>
    %242 = arith.subf %238, %241 : vector<24x24xf32>
    %243 = math.exp %242 : vector<24x24xf32>
    %cst_72 = arith.constant dense<0.000000e+00> : vector<24xf32>
    %244 = vector.multi_reduction <add>, %243, %cst_72 [1] : vector<24x24xf32> to vector<24xf32>
    %245 = vector.shape_cast %244 : vector<24xf32> to vector<24x1xf32>
    %246 = tpu.reciprocal %245 {approx = true} : vector<24x1xf32> -> vector<24x1xf32>
    %247 = vector.broadcast %246 : vector<24x1xf32> to vector<24x24xf32>
    %248 = arith.mulf %243, %247 : vector<24x24xf32>
    %249 = vector.extract_strided_slice %150 {offsets = [0, 96], sizes = [24, 32], strides = [1, 1]} : vector<24x128xf32> to vector<24x32xf32>
    %cst_73 = arith.constant dense<0.000000e+00> : vector<24x32xf32>
    %250 = tpu.matmul %248, %249, %cst_73 {dimension_numbers = #tpu.dot_dimension_numbers<[1], [0], [0], [1], [0, 0, 1, 1], [], []>} : vector<24x24xf32>, vector<24x32xf32>, vector<24x32xf32> -> vector<24x32xf32>
    %c1 = arith.constant 1 : index
    %c0_74 = arith.constant 0 : index
    %251 = vector.load %arg8[%c1, %c0_74] : memref<25x128xf32, #tpu.memory_space<vmem>>, vector<1x128xf32>
    %c0_75 = arith.constant 0 : index
    %c0_76 = arith.constant 0 : index
    %252 = vector.load %arg5[%c0_75, %c0_76] : memref<128x32xf32, #tpu.memory_space<vmem>>, vector<128x32xf32>
    %253 = vector.extract_strided_slice %251 {offsets = [0, 0], sizes = [1, 32], strides = [1, 1]} : vector<1x128xf32> to vector<1x32xf32>
    %254 = vector.broadcast %253 : vector<1x32xf32> to vector<24x32xf32>
    %255 = arith.addf %178, %254 : vector<24x32xf32>
    %cst_77 = arith.constant 0.000000e+00 : f32
    %256 = vector.broadcast %cst_77 : f32 to vector<24x32xf32>
    %257 = arith.maximumf %255, %256 : vector<24x32xf32>
    %258 = vector.extract_strided_slice %252 {offsets = [0, 0], sizes = [32, 32], strides = [1, 1]} : vector<128x32xf32> to vector<32x32xf32>
    %cst_78 = arith.constant dense<0.000000e+00> : vector<24x32xf32>
    %259 = tpu.matmul %257, %258, %cst_78 {dimension_numbers = #tpu.dot_dimension_numbers<[1], [0], [0], [1], [0, 0, 1, 1], [], []>} : vector<24x32xf32>, vector<32x32xf32>, vector<24x32xf32> -> vector<24x32xf32>
    %260 = vector.extract_strided_slice %251 {offsets = [0, 32], sizes = [1, 32], strides = [1, 1]} : vector<1x128xf32> to vector<1x32xf32>
    %261 = vector.broadcast %260 : vector<1x32xf32> to vector<24x32xf32>
    %262 = arith.addf %202, %261 : vector<24x32xf32>
    %cst_79 = arith.constant 0.000000e+00 : f32
    %263 = vector.broadcast %cst_79 : f32 to vector<24x32xf32>
    %264 = arith.maximumf %262, %263 : vector<24x32xf32>
    %265 = vector.extract_strided_slice %252 {offsets = [32, 0], sizes = [32, 32], strides = [1, 1]} : vector<128x32xf32> to vector<32x32xf32>
    %cst_80 = arith.constant dense<0.000000e+00> : vector<24x32xf32>
    %266 = tpu.matmul %264, %265, %cst_80 {dimension_numbers = #tpu.dot_dimension_numbers<[1], [0], [0], [1], [0, 0, 1, 1], [], []>} : vector<24x32xf32>, vector<32x32xf32>, vector<24x32xf32> -> vector<24x32xf32>
    %267 = arith.addf %259, %266 : vector<24x32xf32>
    %268 = vector.extract_strided_slice %251 {offsets = [0, 64], sizes = [1, 32], strides = [1, 1]} : vector<1x128xf32> to vector<1x32xf32>
    %269 = vector.broadcast %268 : vector<1x32xf32> to vector<24x32xf32>
    %270 = arith.addf %226, %269 : vector<24x32xf32>
    %cst_81 = arith.constant 0.000000e+00 : f32
    %271 = vector.broadcast %cst_81 : f32 to vector<24x32xf32>
    %272 = arith.maximumf %270, %271 : vector<24x32xf32>
    %273 = vector.extract_strided_slice %252 {offsets = [64, 0], sizes = [32, 32], strides = [1, 1]} : vector<128x32xf32> to vector<32x32xf32>
    %cst_82 = arith.constant dense<0.000000e+00> : vector<24x32xf32>
    %274 = tpu.matmul %272, %273, %cst_82 {dimension_numbers = #tpu.dot_dimension_numbers<[1], [0], [0], [1], [0, 0, 1, 1], [], []>} : vector<24x32xf32>, vector<32x32xf32>, vector<24x32xf32> -> vector<24x32xf32>
    %275 = arith.addf %267, %274 : vector<24x32xf32>
    %276 = vector.extract_strided_slice %251 {offsets = [0, 96], sizes = [1, 32], strides = [1, 1]} : vector<1x128xf32> to vector<1x32xf32>
    %277 = vector.broadcast %276 : vector<1x32xf32> to vector<24x32xf32>
    %278 = arith.addf %250, %277 : vector<24x32xf32>
    %cst_83 = arith.constant 0.000000e+00 : f32
    %279 = vector.broadcast %cst_83 : f32 to vector<24x32xf32>
    %280 = arith.maximumf %278, %279 : vector<24x32xf32>
    %281 = vector.extract_strided_slice %252 {offsets = [96, 0], sizes = [32, 32], strides = [1, 1]} : vector<128x32xf32> to vector<32x32xf32>
    %cst_84 = arith.constant dense<0.000000e+00> : vector<24x32xf32>
    %282 = tpu.matmul %280, %281, %cst_84 {dimension_numbers = #tpu.dot_dimension_numbers<[1], [0], [0], [1], [0, 0, 1, 1], [], []>} : vector<24x32xf32>, vector<32x32xf32>, vector<24x32xf32> -> vector<24x32xf32>
    %283 = arith.addf %275, %282 : vector<24x32xf32>
    %c23 = arith.constant 23 : index
    %c0_85 = arith.constant 0 : index
    %284 = vector.load %arg8[%c23, %c0_85] : memref<25x128xf32, #tpu.memory_space<vmem>>, vector<1x32xf32>
    %c24 = arith.constant 24 : index
    %c0_86 = arith.constant 0 : index
    %285 = vector.load %arg8[%c24, %c0_86] : memref<25x128xf32, #tpu.memory_space<vmem>>, vector<1x32xf32>
    %cst_87 = arith.constant dense<0.000000e+00> : vector<24x1xf32>
    %286 = tpu.matmul %283, %285, %cst_87 {dimension_numbers = #tpu.dot_dimension_numbers<[1], [1], [0], [0], [0, 0, 1, 0], [], []>} : vector<24x32xf32>, vector<1x32xf32>, vector<24x1xf32> -> vector<24x1xf32>
    %cst_88 = arith.constant dense<0.000000e+00> : vector<1x24xf32>
    %287 = tpu.matmul %284, %283, %cst_88 {dimension_numbers = #tpu.dot_dimension_numbers<[1], [1], [0], [0], [0, 0, 1, 0], [], []>} : vector<1x32xf32>, vector<24x32xf32>, vector<1x24xf32> -> vector<1x24xf32>
    %288 = vector.broadcast %286 : vector<24x1xf32> to vector<24x24xf32>
    %289 = vector.broadcast %287 : vector<1x24xf32> to vector<24x24xf32>
    %290 = arith.addf %288, %289 : vector<24x24xf32>
    %cst_89 = arith.constant 0.000000e+00 : f32
    %291 = vector.broadcast %cst_89 : f32 to vector<24x24xf32>
    %292 = arith.cmpf ogt, %290, %291 : vector<24x24xf32>
    %cst_90 = arith.constant 2.000000e-01 : f32
    %293 = vector.broadcast %cst_90 : f32 to vector<24x24xf32>
    %294 = arith.mulf %293, %290 : vector<24x24xf32>
    %295 = arith.select %292, %290, %294 : vector<24x24xi1>, vector<24x24xf32>
    %cst_91 = arith.constant -1.000000e+30 : f32
    %296 = vector.broadcast %cst_91 : f32 to vector<24x24xf32>
    %297 = arith.select %14, %295, %296 : vector<24x24xi1>, vector<24x24xf32>
    %cst_92 = arith.constant dense<0xFF800000> : vector<24xf32>
    %298 = vector.multi_reduction <maximumf>, %297, %cst_92 [1] : vector<24x24xf32> to vector<24xf32>
    %299 = vector.shape_cast %298 : vector<24xf32> to vector<24x1xf32>
    %300 = vector.broadcast %299 : vector<24x1xf32> to vector<24x24xf32>
    %301 = arith.subf %297, %300 : vector<24x24xf32>
    %302 = math.exp %301 : vector<24x24xf32>
    %cst_93 = arith.constant dense<0.000000e+00> : vector<24xf32>
    %303 = vector.multi_reduction <add>, %302, %cst_93 [1] : vector<24x24xf32> to vector<24xf32>
    %304 = vector.shape_cast %303 : vector<24xf32> to vector<24x1xf32>
    %305 = tpu.reciprocal %304 {approx = true} : vector<24x1xf32> -> vector<24x1xf32>
    %306 = vector.broadcast %305 : vector<24x1xf32> to vector<24x24xf32>
    %307 = arith.mulf %302, %306 : vector<24x24xf32>
    %cst_94 = arith.constant dense<0.000000e+00> : vector<24x32xf32>
    %308 = tpu.matmul %307, %283, %cst_94 {dimension_numbers = #tpu.dot_dimension_numbers<[1], [0], [0], [1], [0, 0, 1, 1], [], []>} : vector<24x24xf32>, vector<24x32xf32>, vector<24x32xf32> -> vector<24x32xf32>
    %c2 = arith.constant 2 : index
    %c0_95 = arith.constant 0 : index
    %309 = vector.load %arg8[%c2, %c0_95] : memref<25x128xf32, #tpu.memory_space<vmem>>, vector<1x32xf32>
    %310 = vector.broadcast %309 : vector<1x32xf32> to vector<24x32xf32>
    %311 = arith.addf %308, %310 : vector<24x32xf32>
    %c0_96 = arith.constant 0 : index
    %c0_97 = arith.constant 0 : index
    %312 = vector.load %arg2[%c0_96, %c0_97] : memref<2x24xf32, #tpu.memory_space<vmem>>, vector<2x24xf32>
    %cst_98 = arith.constant dense<0.000000e+00> : vector<2x32xf32>
    %313 = tpu.matmul %312, %311, %cst_98 {dimension_numbers = #tpu.dot_dimension_numbers<[1], [0], [0], [1], [0, 0, 1, 1], [], []>} : vector<2x24xf32>, vector<24x32xf32>, vector<2x32xf32> -> vector<2x32xf32>
    %c0_99 = arith.constant 0 : index
    %c0_100 = arith.constant 0 : index
    %314 = vector.load %arg6[%c0_99, %c0_100] : memref<32x32xf32, #tpu.memory_space<vmem>>, vector<32x32xf32>
    %cst_101 = arith.constant dense<0.000000e+00> : vector<2x32xf32>
    %315 = tpu.matmul %313, %314, %cst_101 {dimension_numbers = #tpu.dot_dimension_numbers<[1], [0], [0], [1], [0, 0, 1, 1], [], []>} : vector<2x32xf32>, vector<32x32xf32>, vector<2x32xf32> -> vector<2x32xf32>
    %c3 = arith.constant 3 : index
    %c0_102 = arith.constant 0 : index
    %316 = vector.load %arg8[%c3, %c0_102] : memref<25x128xf32, #tpu.memory_space<vmem>>, vector<1x32xf32>
    %317 = vector.broadcast %316 : vector<1x32xf32> to vector<2x32xf32>
    %318 = arith.addf %315, %317 : vector<2x32xf32>
    %cst_103 = arith.constant 0.000000e+00 : f32
    %319 = vector.broadcast %cst_103 : f32 to vector<2x32xf32>
    %320 = arith.maximumf %318, %319 : vector<2x32xf32>
    %c0_104 = arith.constant 0 : index
    %c0_105 = arith.constant 0 : index
    %321 = vector.load %arg7[%c0_104, %c0_105] : memref<32x32xf32, #tpu.memory_space<vmem>>, vector<32x32xf32>
    %cst_106 = arith.constant dense<0.000000e+00> : vector<2x32xf32>
    %322 = tpu.matmul %320, %321, %cst_106 {dimension_numbers = #tpu.dot_dimension_numbers<[1], [0], [0], [1], [0, 0, 1, 1], [], []>} : vector<2x32xf32>, vector<32x32xf32>, vector<2x32xf32> -> vector<2x32xf32>
    %c4 = arith.constant 4 : index
    %c0_107 = arith.constant 0 : index
    %323 = vector.load %arg8[%c4, %c0_107] : memref<25x128xf32, #tpu.memory_space<vmem>>, vector<1x32xf32>
    %324 = vector.broadcast %323 : vector<1x32xf32> to vector<2x32xf32>
    %325 = arith.addf %322, %324 : vector<2x32xf32>
    %c5 = arith.constant 5 : index
    %c0_108 = arith.constant 0 : index
    %326 = vector.load %arg8[%c5, %c0_108] : memref<25x128xf32, #tpu.memory_space<vmem>>, vector<1x32xf32>
    %c6 = arith.constant 6 : index
    %c0_109 = arith.constant 0 : index
    %327 = vector.load %arg8[%c6, %c0_109] : memref<25x128xf32, #tpu.memory_space<vmem>>, vector<1x32xf32>
    %cst_110 = arith.constant dense<0.000000e+00> : vector<2xf32>
    %328 = vector.multi_reduction <add>, %325, %cst_110 [1] : vector<2x32xf32> to vector<2xf32>
    %329 = vector.shape_cast %328 : vector<2xf32> to vector<2x1xf32>
    %cst_111 = arith.constant 3.200000e+01 : f32
    %330 = vector.broadcast %cst_111 : f32 to vector<2x1xf32>
    %331 = arith.divf %329, %330 : vector<2x1xf32>
    %332 = vector.broadcast %331 : vector<2x1xf32> to vector<2x32xf32>
    %333 = arith.subf %325, %332 : vector<2x32xf32>
    %334 = arith.mulf %333, %333 : vector<2x32xf32>
    %cst_112 = arith.constant dense<0.000000e+00> : vector<2xf32>
    %335 = vector.multi_reduction <add>, %334, %cst_112 [1] : vector<2x32xf32> to vector<2xf32>
    %336 = vector.shape_cast %335 : vector<2xf32> to vector<2x1xf32>
    %cst_113 = arith.constant 3.200000e+01 : f32
    %337 = vector.broadcast %cst_113 : f32 to vector<2x1xf32>
    %338 = arith.divf %336, %337 : vector<2x1xf32>
    %339 = vector.broadcast %331 : vector<2x1xf32> to vector<2x32xf32>
    %340 = arith.subf %325, %339 : vector<2x32xf32>
    %cst_114 = arith.constant 9.99999974E-6 : f32
    %341 = vector.broadcast %cst_114 : f32 to vector<2x1xf32>
    %342 = arith.addf %338, %341 : vector<2x1xf32>
    %343 = math.rsqrt %342 : vector<2x1xf32>
    %344 = vector.broadcast %343 : vector<2x1xf32> to vector<2x32xf32>
    %345 = arith.mulf %340, %344 : vector<2x32xf32>
    %346 = vector.broadcast %326 : vector<1x32xf32> to vector<2x32xf32>
    %347 = arith.mulf %345, %346 : vector<2x32xf32>
    %348 = vector.broadcast %327 : vector<1x32xf32> to vector<2x32xf32>
    %349 = arith.addf %347, %348 : vector<2x32xf32>
    %c0_115 = arith.constant 0 : index
    %c0_116 = arith.constant 0 : index
    %350 = vector.load %arg19[%c0_115, %c0_116] : memref<2x32xf32, #tpu.memory_space<vmem>>, vector<2x32xf32>
    tpu.vector_store %arg19[%c0_115, %c0_116], %349 {strides = array<i32>} : memref<2x32xf32, #tpu.memory_space<vmem>>, vector<2x32xf32>,
    %c0_117 = arith.constant 0 : index
    %c0_118 = arith.constant 0 : index
    %c0_119 = arith.constant 0 : index
    %351 = vector.load %arg9[%c0_117, %c0_118, %c0_119] : memref<2x8x768xf32, #tpu.memory_space<vmem>>, vector<2x8x768xf32>
    %352 = vector.shape_cast %351 : vector<2x8x768xf32> to vector<16x768xf32>
    %353 = vector.extract_strided_slice %351 {offsets = [0, 0, 0], sizes = [2, 1, 768], strides = [1, 1, 1]} : vector<2x8x768xf32> to vector<2x1x768xf32>
    %354 = vector.shape_cast %353 : vector<2x1x768xf32> to vector<2x768xf32>
    %355 = arith.truncf %352 : vector<16x768xf32> to vector<16x768xbf16>
    %356 = arith.truncf %354 : vector<2x768xf32> to vector<2x768xbf16>
    %c0_i32_120 = arith.constant 0 : i32
    %357 = tpu.memref_slice %arg27[%c0_i32_120] : memref<6x!tpu.dma_semaphore, #tpu.memory_space<semaphore_mem>> -> memref<1x!tpu.dma_semaphore, #tpu.memory_space<semaphore_mem>>
    %358 = tpu.memref_squeeze %357 : memref<1x!tpu.dma_semaphore, #tpu.memory_space<semaphore_mem>> -> memref<!tpu.dma_semaphore, #tpu.memory_space<semaphore_mem>>
    tpu.wait_dma2 semaphore(%358 : memref<!tpu.dma_semaphore, #tpu.memory_space<semaphore_mem>>) src(%arg13 : memref<768x768xbf16, #tpu.memory_space<any>>) dst(%arg21 : memref<768x768xbf16, #tpu.memory_space<vmem>>)
    %c0_121 = arith.constant 0 : index
    %c0_122 = arith.constant 0 : index
    %359 = vector.load %arg21[%c0_121, %c0_122] : memref<768x768xbf16, #tpu.memory_space<vmem>>, vector<768x768xbf16>
    %cst_123 = arith.constant dense<0.000000e+00> : vector<2x768xf32>
    %360 = tpu.matmul %356, %359, %cst_123 {dimension_numbers = #tpu.dot_dimension_numbers<[1], [0], [0], [1], [0, 0, 1, 1], [], []>} : vector<2x768xbf16>, vector<768x768xbf16>, vector<2x768xf32> -> vector<2x768xf32>
    %c1_i32_124 = arith.constant 1 : i32
    %361 = tpu.memref_slice %arg27[%c1_i32_124] : memref<6x!tpu.dma_semaphore, #tpu.memory_space<semaphore_mem>> -> memref<1x!tpu.dma_semaphore, #tpu.memory_space<semaphore_mem>>
    %362 = tpu.memref_squeeze %361 : memref<1x!tpu.dma_semaphore, #tpu.memory_space<semaphore_mem>> -> memref<!tpu.dma_semaphore, #tpu.memory_space<semaphore_mem>>
    tpu.wait_dma2 semaphore(%362 : memref<!tpu.dma_semaphore, #tpu.memory_space<semaphore_mem>>) src(%arg14 : memref<768x768xbf16, #tpu.memory_space<any>>) dst(%arg22 : memref<768x768xbf16, #tpu.memory_space<vmem>>)
    %363 = arith.truncf %360 : vector<2x768xf32> to vector<2x768xbf16>
    %c0_125 = arith.constant 0 : index
    %c0_126 = arith.constant 0 : index
    %364 = vector.load %arg22[%c0_125, %c0_126] : memref<768x768xbf16, #tpu.memory_space<vmem>>, vector<768x768xbf16>
    %cst_127 = arith.constant dense<0.000000e+00> : vector<2x768xf32>
    %365 = tpu.matmul %363, %364, %cst_127 {dimension_numbers = #tpu.dot_dimension_numbers<[1], [1], [0], [0], [0, 0, 1, 0], [], []>} : vector<2x768xbf16>, vector<768x768xbf16>, vector<2x768xf32> -> vector<2x768xf32>
    %366 = arith.truncf %365 : vector<2x768xf32> to vector<2x768xbf16>
    %cst_128 = arith.constant dense<0.000000e+00> : vector<2x16xf32>
    %367 = tpu.matmul %366, %355, %cst_128 {dimension_numbers = #tpu.dot_dimension_numbers<[1], [1], [0], [0], [0, 0, 1, 0], [], []>} : vector<2x768xbf16>, vector<16x768xbf16>, vector<2x16xf32> -> vector<2x16xf32>
    %cst_129 = arith.constant 0.0360843912 : f32
    %368 = vector.broadcast %cst_129 : f32 to vector<2x16xf32>
    %369 = arith.mulf %367, %368 : vector<2x16xf32>
    %c0_130 = arith.constant 0 : index
    %c0_131 = arith.constant 0 : index
    %370 = vector.load %arg10[%c0_130, %c0_131] : memref<2x16xf32, #tpu.memory_space<vmem>>, vector<2x16xf32>
    %371 = arith.addf %369, %370 : vector<2x16xf32>
    %cst_132 = arith.constant dense<0xFF800000> : vector<2xf32>
    %372 = vector.multi_reduction <maximumf>, %371, %cst_132 [1] : vector<2x16xf32> to vector<2xf32>
    %373 = vector.shape_cast %372 : vector<2xf32> to vector<2x1xf32>
    %374 = vector.broadcast %373 : vector<2x1xf32> to vector<2x16xf32>
    %375 = arith.subf %371, %374 : vector<2x16xf32>
    %376 = math.exp %375 : vector<2x16xf32>
    %cst_133 = arith.constant dense<0.000000e+00> : vector<2xf32>
    %377 = vector.multi_reduction <add>, %376, %cst_133 [1] : vector<2x16xf32> to vector<2xf32>
    %378 = vector.shape_cast %377 : vector<2xf32> to vector<2x1xf32>
    %379 = tpu.reciprocal %378 {approx = true} : vector<2x1xf32> -> vector<2x1xf32>
    %380 = vector.broadcast %379 : vector<2x1xf32> to vector<2x16xf32>
    %381 = arith.mulf %376, %380 : vector<2x16xf32>
    %cst_134 = arith.constant dense<0.000000e+00> : vector<2x768xf32>
    %382 = tpu.matmul %381, %352, %cst_134 {dimension_numbers = #tpu.dot_dimension_numbers<[1], [0], [0], [1], [0, 0, 1, 1], [], []>} : vector<2x16xf32>, vector<16x768xf32>, vector<2x768xf32> -> vector<2x768xf32>
    %c2_i32_135 = arith.constant 2 : i32
    %383 = tpu.memref_slice %arg27[%c2_i32_135] : memref<6x!tpu.dma_semaphore, #tpu.memory_space<semaphore_mem>> -> memref<1x!tpu.dma_semaphore, #tpu.memory_space<semaphore_mem>>
    %384 = tpu.memref_squeeze %383 : memref<1x!tpu.dma_semaphore, #tpu.memory_space<semaphore_mem>> -> memref<!tpu.dma_semaphore, #tpu.memory_space<semaphore_mem>>
    tpu.wait_dma2 semaphore(%384 : memref<!tpu.dma_semaphore, #tpu.memory_space<semaphore_mem>>) src(%arg15 : memref<768x768xbf16, #tpu.memory_space<any>>) dst(%arg23 : memref<768x768xbf16, #tpu.memory_space<vmem>>)
    %385 = arith.truncf %382 : vector<2x768xf32> to vector<2x768xbf16>
    %c0_136 = arith.constant 0 : index
    %c0_137 = arith.constant 0 : index
    %386 = vector.load %arg23[%c0_136, %c0_137] : memref<768x768xbf16, #tpu.memory_space<vmem>>, vector<768x768xbf16>
    %cst_138 = arith.constant dense<0.000000e+00> : vector<2x768xf32>
    %387 = tpu.matmul %385, %386, %cst_138 {dimension_numbers = #tpu.dot_dimension_numbers<[1], [0], [0], [1], [0, 0, 1, 1], [], []>} : vector<2x768xbf16>, vector<768x768xbf16>, vector<2x768xf32> -> vector<2x768xf32>
    %c3_i32_139 = arith.constant 3 : i32
    %388 = tpu.memref_slice %arg27[%c3_i32_139] : memref<6x!tpu.dma_semaphore, #tpu.memory_space<semaphore_mem>> -> memref<1x!tpu.dma_semaphore, #tpu.memory_space<semaphore_mem>>
    %389 = tpu.memref_squeeze %388 : memref<1x!tpu.dma_semaphore, #tpu.memory_space<semaphore_mem>> -> memref<!tpu.dma_semaphore, #tpu.memory_space<semaphore_mem>>
    tpu.wait_dma2 semaphore(%389 : memref<!tpu.dma_semaphore, #tpu.memory_space<semaphore_mem>>) src(%arg16 : memref<768x768xbf16, #tpu.memory_space<any>>) dst(%arg24 : memref<768x768xbf16, #tpu.memory_space<vmem>>)
    %390 = arith.truncf %387 : vector<2x768xf32> to vector<2x768xbf16>
    %c0_140 = arith.constant 0 : index
    %c0_141 = arith.constant 0 : index
    %391 = vector.load %arg24[%c0_140, %c0_141] : memref<768x768xbf16, #tpu.memory_space<vmem>>, vector<768x768xbf16>
    %cst_142 = arith.constant dense<0.000000e+00> : vector<2x768xf32>
    %392 = tpu.matmul %390, %391, %cst_142 {dimension_numbers = #tpu.dot_dimension_numbers<[1], [0], [0], [1], [0, 0, 1, 1], [], []>} : vector<2x768xbf16>, vector<768x768xbf16>, vector<2x768xf32> -> vector<2x768xf32>
    %393 = arith.addf %354, %392 : vector<2x768xf32>
    %c0_143 = arith.constant 0 : index
    %c0_144 = arith.constant 0 : index
    %394 = vector.load %arg12[%c0_143, %c0_144] : memref<9x1024xf32, #tpu.memory_space<vmem>>, vector<1x768xf32>
    %c1_145 = arith.constant 1 : index
    %c0_146 = arith.constant 0 : index
    %395 = vector.load %arg12[%c1_145, %c0_146] : memref<9x1024xf32, #tpu.memory_space<vmem>>, vector<1x768xf32>
    %cst_147 = arith.constant dense<0.000000e+00> : vector<2xf32>
    %396 = vector.multi_reduction <add>, %393, %cst_147 [1] : vector<2x768xf32> to vector<2xf32>
    %397 = vector.shape_cast %396 : vector<2xf32> to vector<2x1xf32>
    %cst_148 = arith.constant 7.680000e+02 : f32
    %398 = vector.broadcast %cst_148 : f32 to vector<2x1xf32>
    %399 = arith.divf %397, %398 : vector<2x1xf32>
    %400 = vector.broadcast %399 : vector<2x1xf32> to vector<2x768xf32>
    %401 = arith.subf %393, %400 : vector<2x768xf32>
    %402 = arith.mulf %401, %401 : vector<2x768xf32>
    %cst_149 = arith.constant dense<0.000000e+00> : vector<2xf32>
    %403 = vector.multi_reduction <add>, %402, %cst_149 [1] : vector<2x768xf32> to vector<2xf32>
    %404 = vector.shape_cast %403 : vector<2xf32> to vector<2x1xf32>
    %cst_150 = arith.constant 7.680000e+02 : f32
    %405 = vector.broadcast %cst_150 : f32 to vector<2x1xf32>
    %406 = arith.divf %404, %405 : vector<2x1xf32>
    %407 = vector.broadcast %399 : vector<2x1xf32> to vector<2x768xf32>
    %408 = arith.subf %393, %407 : vector<2x768xf32>
    %cst_151 = arith.constant 9.99999974E-6 : f32
    %409 = vector.broadcast %cst_151 : f32 to vector<2x1xf32>
    %410 = arith.addf %406, %409 : vector<2x1xf32>
    %411 = math.rsqrt %410 : vector<2x1xf32>
    %412 = vector.broadcast %411 : vector<2x1xf32> to vector<2x768xf32>
    %413 = arith.mulf %408, %412 : vector<2x768xf32>
    %414 = vector.broadcast %394 : vector<1x768xf32> to vector<2x768xf32>
    %415 = arith.mulf %413, %414 : vector<2x768xf32>
    %416 = vector.broadcast %395 : vector<1x768xf32> to vector<2x768xf32>
    %417 = arith.addf %415, %416 : vector<2x768xf32>
    %c4_i32_152 = arith.constant 4 : i32
    %418 = tpu.memref_slice %arg27[%c4_i32_152] : memref<6x!tpu.dma_semaphore, #tpu.memory_space<semaphore_mem>> -> memref<1x!tpu.dma_semaphore, #tpu.memory_space<semaphore_mem>>
    %419 = tpu.memref_squeeze %418 : memref<1x!tpu.dma_semaphore, #tpu.memory_space<semaphore_mem>> -> memref<!tpu.dma_semaphore, #tpu.memory_space<semaphore_mem>>
    tpu.wait_dma2 semaphore(%419 : memref<!tpu.dma_semaphore, #tpu.memory_space<semaphore_mem>>) src(%arg17 : memref<768x1024xbf16, #tpu.memory_space<any>>) dst(%arg25 : memref<768x1024xbf16, #tpu.memory_space<vmem>>)
    %420 = arith.truncf %417 : vector<2x768xf32> to vector<2x768xbf16>
    %c0_153 = arith.constant 0 : index
    %c0_154 = arith.constant 0 : index
    %421 = vector.load %arg25[%c0_153, %c0_154] : memref<768x1024xbf16, #tpu.memory_space<vmem>>, vector<768x1024xbf16>
    %cst_155 = arith.constant dense<0.000000e+00> : vector<2x1024xf32>
    %422 = tpu.matmul %420, %421, %cst_155 {dimension_numbers = #tpu.dot_dimension_numbers<[1], [0], [0], [1], [0, 0, 1, 1], [], []>} : vector<2x768xbf16>, vector<768x1024xbf16>, vector<2x1024xf32> -> vector<2x1024xf32>
    %c2_156 = arith.constant 2 : index
    %c0_157 = arith.constant 0 : index
    %423 = vector.load %arg12[%c2_156, %c0_157] : memref<9x1024xf32, #tpu.memory_space<vmem>>, vector<1x1024xf32>
    %424 = vector.broadcast %423 : vector<1x1024xf32> to vector<2x1024xf32>
    %425 = arith.addf %422, %424 : vector<2x1024xf32>
    %cst_158 = arith.constant 0.000000e+00 : f32
    %426 = vector.broadcast %cst_158 : f32 to vector<2x1024xf32>
    %427 = arith.maximumf %425, %426 : vector<2x1024xf32>
    %c5_i32_159 = arith.constant 5 : i32
    %428 = tpu.memref_slice %arg27[%c5_i32_159] : memref<6x!tpu.dma_semaphore, #tpu.memory_space<semaphore_mem>> -> memref<1x!tpu.dma_semaphore, #tpu.memory_space<semaphore_mem>>
    %429 = tpu.memref_squeeze %428 : memref<1x!tpu.dma_semaphore, #tpu.memory_space<semaphore_mem>> -> memref<!tpu.dma_semaphore, #tpu.memory_space<semaphore_mem>>
    tpu.wait_dma2 semaphore(%429 : memref<!tpu.dma_semaphore, #tpu.memory_space<semaphore_mem>>) src(%arg18 : memref<1024x768xbf16, #tpu.memory_space<any>>) dst(%arg26 : memref<1024x768xbf16, #tpu.memory_space<vmem>>)
    %430 = arith.truncf %427 : vector<2x1024xf32> to vector<2x1024xbf16>
    %c0_160 = arith.constant 0 : index
    %c0_161 = arith.constant 0 : index
    %431 = vector.load %arg26[%c0_160, %c0_161] : memref<1024x768xbf16, #tpu.memory_space<vmem>>, vector<1024x768xbf16>
    %cst_162 = arith.constant dense<0.000000e+00> : vector<2x768xf32>
    %432 = tpu.matmul %430, %431, %cst_162 {dimension_numbers = #tpu.dot_dimension_numbers<[1], [0], [0], [1], [0, 0, 1, 1], [], []>} : vector<2x1024xbf16>, vector<1024x768xbf16>, vector<2x768xf32> -> vector<2x768xf32>
    %c3_163 = arith.constant 3 : index
    %c0_164 = arith.constant 0 : index
    %433 = vector.load %arg12[%c3_163, %c0_164] : memref<9x1024xf32, #tpu.memory_space<vmem>>, vector<1x768xf32>
    %434 = vector.broadcast %433 : vector<1x768xf32> to vector<2x768xf32>
    %435 = arith.addf %432, %434 : vector<2x768xf32>
    %436 = arith.addf %417, %435 : vector<2x768xf32>
    %c4_165 = arith.constant 4 : index
    %c0_166 = arith.constant 0 : index
    %437 = vector.load %arg12[%c4_165, %c0_166] : memref<9x1024xf32, #tpu.memory_space<vmem>>, vector<1x768xf32>
    %c5_167 = arith.constant 5 : index
    %c0_168 = arith.constant 0 : index
    %438 = vector.load %arg12[%c5_167, %c0_168] : memref<9x1024xf32, #tpu.memory_space<vmem>>, vector<1x768xf32>
    %cst_169 = arith.constant dense<0.000000e+00> : vector<2xf32>
    %439 = vector.multi_reduction <add>, %436, %cst_169 [1] : vector<2x768xf32> to vector<2xf32>
    %440 = vector.shape_cast %439 : vector<2xf32> to vector<2x1xf32>
    %cst_170 = arith.constant 7.680000e+02 : f32
    %441 = vector.broadcast %cst_170 : f32 to vector<2x1xf32>
    %442 = arith.divf %440, %441 : vector<2x1xf32>
    %443 = vector.broadcast %442 : vector<2x1xf32> to vector<2x768xf32>
    %444 = arith.subf %436, %443 : vector<2x768xf32>
    %445 = arith.mulf %444, %444 : vector<2x768xf32>
    %cst_171 = arith.constant dense<0.000000e+00> : vector<2xf32>
    %446 = vector.multi_reduction <add>, %445, %cst_171 [1] : vector<2x768xf32> to vector<2xf32>
    %447 = vector.shape_cast %446 : vector<2xf32> to vector<2x1xf32>
    %cst_172 = arith.constant 7.680000e+02 : f32
    %448 = vector.broadcast %cst_172 : f32 to vector<2x1xf32>
    %449 = arith.divf %447, %448 : vector<2x1xf32>
    %450 = vector.broadcast %442 : vector<2x1xf32> to vector<2x768xf32>
    %451 = arith.subf %436, %450 : vector<2x768xf32>
    %cst_173 = arith.constant 9.99999974E-6 : f32
    %452 = vector.broadcast %cst_173 : f32 to vector<2x1xf32>
    %453 = arith.addf %449, %452 : vector<2x1xf32>
    %454 = math.rsqrt %453 : vector<2x1xf32>
    %455 = vector.broadcast %454 : vector<2x1xf32> to vector<2x768xf32>
    %456 = arith.mulf %451, %455 : vector<2x768xf32>
    %457 = vector.broadcast %437 : vector<1x768xf32> to vector<2x768xf32>
    %458 = arith.mulf %456, %457 : vector<2x768xf32>
    %459 = vector.broadcast %438 : vector<1x768xf32> to vector<2x768xf32>
    %460 = arith.addf %458, %459 : vector<2x768xf32>
    %c0_174 = arith.constant 0 : index
    %c0_175 = arith.constant 0 : index
    %461 = vector.load %arg11[%c0_174, %c0_175] : memref<768x32xf32, #tpu.memory_space<vmem>>, vector<768x32xf32>
    %cst_176 = arith.constant dense<0.000000e+00> : vector<2x32xf32>
    %462 = tpu.matmul %460, %461, %cst_176 {dimension_numbers = #tpu.dot_dimension_numbers<[1], [0], [0], [1], [0, 0, 1, 1], [], []>} : vector<2x768xf32>, vector<768x32xf32>, vector<2x32xf32> -> vector<2x32xf32>
    %c6_177 = arith.constant 6 : index
    %c0_178 = arith.constant 0 : index
    %463 = vector.load %arg12[%c6_177, %c0_178] : memref<9x1024xf32, #tpu.memory_space<vmem>>, vector<1x32xf32>
    %464 = vector.broadcast %463 : vector<1x32xf32> to vector<2x32xf32>
    %465 = arith.addf %462, %464 : vector<2x32xf32>
    %c7_179 = arith.constant 7 : index
    %c0_180 = arith.constant 0 : index
    %466 = vector.load %arg12[%c7_179, %c0_180] : memref<9x1024xf32, #tpu.memory_space<vmem>>, vector<1x32xf32>
    %c8 = arith.constant 8 : index
    %c0_181 = arith.constant 0 : index
    %467 = vector.load %arg12[%c8, %c0_181] : memref<9x1024xf32, #tpu.memory_space<vmem>>, vector<1x32xf32>
    %cst_182 = arith.constant dense<0.000000e+00> : vector<2xf32>
    %468 = vector.multi_reduction <add>, %465, %cst_182 [1] : vector<2x32xf32> to vector<2xf32>
    %469 = vector.shape_cast %468 : vector<2xf32> to vector<2x1xf32>
    %cst_183 = arith.constant 3.200000e+01 : f32
    %470 = vector.broadcast %cst_183 : f32 to vector<2x1xf32>
    %471 = arith.divf %469, %470 : vector<2x1xf32>
    %472 = vector.broadcast %471 : vector<2x1xf32> to vector<2x32xf32>
    %473 = arith.subf %465, %472 : vector<2x32xf32>
    %474 = arith.mulf %473, %473 : vector<2x32xf32>
    %cst_184 = arith.constant dense<0.000000e+00> : vector<2xf32>
    %475 = vector.multi_reduction <add>, %474, %cst_184 [1] : vector<2x32xf32> to vector<2xf32>
    %476 = vector.shape_cast %475 : vector<2xf32> to vector<2x1xf32>
    %cst_185 = arith.constant 3.200000e+01 : f32
    %477 = vector.broadcast %cst_185 : f32 to vector<2x1xf32>
    %478 = arith.divf %476, %477 : vector<2x1xf32>
    %479 = vector.broadcast %471 : vector<2x1xf32> to vector<2x32xf32>
    %480 = arith.subf %465, %479 : vector<2x32xf32>
    %cst_186 = arith.constant 9.99999974E-6 : f32
    %481 = vector.broadcast %cst_186 : f32 to vector<2x1xf32>
    %482 = arith.addf %478, %481 : vector<2x1xf32>
    %483 = math.rsqrt %482 : vector<2x1xf32>
    %484 = vector.broadcast %483 : vector<2x1xf32> to vector<2x32xf32>
    %485 = arith.mulf %480, %484 : vector<2x32xf32>
    %486 = vector.broadcast %466 : vector<1x32xf32> to vector<2x32xf32>
    %487 = arith.mulf %485, %486 : vector<2x32xf32>
    %488 = vector.broadcast %467 : vector<1x32xf32> to vector<2x32xf32>
    %489 = arith.addf %487, %488 : vector<2x32xf32>
    %c0_187 = arith.constant 0 : index
    %c0_188 = arith.constant 0 : index
    %490 = vector.load %arg20[%c0_187, %c0_188] : memref<2x32xf32, #tpu.memory_space<vmem>>, vector<2x32xf32>
    tpu.vector_store %arg20[%c0_187, %c0_188], %489 {strides = array<i32>} : memref<2x32xf32, #tpu.memory_space<vmem>>, vector<2x32xf32>,
    return
  }
}

</mosaic_0001>

<bundles_post_ra>
// kernel: tpu_custom_call.1
= control target key start
LH: loop header
LB: loop body
LE: loop exit
PB: predicated region body
PF: predicated region fallthrough
CT: control target
= control target key end

     0   :  { %s13266_s0 = inlined_call_operand.vmem [shape: f32[24,16], index: 0, kind: input, shape index: {}]   ;;  %s13267_s1 = inlined_call_operand.hbm [shape: f32[24,24], index: 1, kind: input, shape index: {}]   ;;  %s13268_s2 = inlined_call_operand.hbm [shape: f32[2,24], index: 2, kind: input, shape index: {}]   ;;  %s13269_s3 = inlined_call_operand.hbm [shape: f32[16,128], index: 3, kind: input, shape index: {}]   ;;  %s13270_s4 = inlined_call_operand.hbm [shape: f32[128,128], index: 4, kind: input, shape index: {}]   ;;  %s13271_s5 = inlined_call_operand.vmem [shape: f32[128,32], index: 5, kind: input, shape index: {}]   ;;  %s13272_s6 = inlined_call_operand.hbm [shape: f32[32,32], index: 6, kind: input, shape index: {}]   ;;  %s13273_s7 = inlined_call_operand.hbm [shape: f32[32,32], index: 7, kind: input, shape index: {}]   ;;  %s13274_s8 = inlined_call_operand.hbm [shape: f32[25,128], index: 8, kind: input, shape index: {}]   ;;  %s13275_s9 = inlined_call_operand.hbm [shape: f32[2,8,768], index: 9, kind: input, shape index: {}]   ;;  %s13276_s10 = inlined_call_operand.hbm [shape: f32[2,16], index: 10, kind: input, shape index: {}]   ;;  %s13277_s11 = inlined_call_operand.vmem [shape: f32[768,32], index: 11, kind: input, shape index: {}]   ;;  %s13278_s12 = inlined_call_operand.hbm [shape: f32[9,1024], index: 12, kind: input, shape index: {}]   ;;  %s13279_s13 = inlined_call_operand.hbm [shape: bf16[768,768], index: 13, kind: input, shape index: {}]   ;;  %s13280_s14 = inlined_call_operand.hbm [shape: bf16[768,768], index: 14, kind: input, shape index: {}]   ;;  %s13281_s15 = inlined_call_operand.hbm [shape: bf16[768,768], index: 15, kind: input, shape index: {}]   ;;  %s13282_s16 = inlined_call_operand.hbm [shape: bf16[768,768], index: 16, kind: input, shape index: {}]   ;;  %s13283_s17 = inlined_call_operand.hbm [shape: bf16[768,1024], index: 17, kind: input, shape index: {}]   ;;  %s13284_s18 = inlined_call_operand.hbm [shape: bf16[1024,768], index: 18, kind: input, shape index: {}]   ;;  %s13285_s19 = inlined_call_operand.hbm [shape: f32[2,32], index: 19, kind: output, shape index: {0}]   ;;  %s13286_s20 = inlined_call_operand.hbm [shape: f32[2,32], index: 20, kind: output, shape index: {1}]  }
   0x1   :  { %13297 = sst [smem:[#allocation55_spill]] %s13266_s0 }
   0x2   :  { %13298 = sst [smem:[#allocation56_spill]] %s13267_s1 }
   0x3   :  { %13299 = sst [smem:[#allocation57_spill]] %s13268_s2 }
   0x4   :  { %13300 = sst [smem:[#allocation58_spill]] %s13269_s3 }
   0x5   :  { %13301 = sst [smem:[#allocation59_spill]] %s13270_s4 }
   0x6   :  { %13302 = sst [smem:[#allocation60_spill]] %s13286_s20 }
   0x7   :  { %26 = vsyncpa [#allocation10], 0 }
   0x8   :  { %27 = vsyncpa [#allocation13], 0 }
   0x9   :  { %28 = vsyncpa [#allocation16], 0 }
   0xa   :  { %29 = vsyncpa [#allocation19], 0 }
   0xb   :  { %30 = vsyncpa [#allocation22], 0 }
   0xc   :  { %31 = vsyncpa [#allocation25], 0 }
   0xd   :  { %32 = vsyncpa [#allocation11], 0 }
   0xe   :  { %33 = vsyncpa [#allocation28], 0  ;;  %s11039_s1 = smov [#allocation12]   ;;  %s13303_s2 = sld [smem:[#allocation57_spill]] }
   0xf   :  { %s54_s22 = sshll.u32 %s11039_s1, 4  ;;  %s55_s22 = int_to_ptr.vmem [resolvable:$true] %s54_s22 }
  0x14   :  { %s10747_s25 = scalar_lea.hbm %s13303_s2, 32 }
  0x15   :  { %p10748_p0 = scmp.ne.s32.totalorder %s13303_s2, %s10747_s25  ;;  %p10751_p1 = scmp.lt.u32.totalorder %s10747_s25, %s13303_s2 }
  0x17   :  { %p10753_p2 = pnand %p10751_p1, %p10748_p0 }
  0x19   :  { %10756 = shalt.err (!%p10753_p2)
}
  0x1a   :  { %s10757_s4 = scalar_lea.vmem %s55_s22, 32  ;;  %p10762_p4 = scmp.lt.s32.totalorder %s55_s22, %s55_s22 }
  0x1b   :  { %p10758_p3 = scmp.ne.s32.totalorder %s55_s22, %s10757_s4  ;;  %p10763_p5 = scmp.lt.s32.totalorder %s10757_s4, %s10757_s4 }
  0x1d   :  { %p10764_p6 = por %p10763_p5, %p10762_p4 }
  0x1f   :  { %p10765_p7 = pnand %p10764_p6, %p10758_p3 }
  0x21   :  { %10768 = shalt.err (!%p10765_p7)
}
  0x22   :  { %57 = dma.hbm_to_vmem [thread:$0]  %s13303_s2, 32, %s55_s22, [#allocation13]  }
  0x23   :  { %s11040_s0 = smov [#allocation15]   ;;  %s11041_s1 = smov [#allocation18]  }
  0x24   :  { %s75_s21 = sshll.u32 %s11040_s0, 4  ;;  %s101_s23 = sshll.u32 %s11041_s1, 4  ;;  %s76_s21 = int_to_ptr.vmem [resolvable:$true] %s75_s21  ;;  %s102_s23 = int_to_ptr.vmem [resolvable:$true] %s101_s23 }
  0x25   :  { %s13304_s3 = sld [smem:[#allocation59_spill]] }
  0x2b   :  { %s10769_s26 = scalar_lea.hbm %s13304_s3, 2048 }
  0x2c   :  { %p10770_p8 = scmp.ne.s32.totalorder %s13304_s3, %s10769_s26  ;;  %p10773_p9 = scmp.lt.u32.totalorder %s10769_s26, %s13304_s3 }
  0x2e   :  { %p10775_p10 = pnand %p10773_p9, %p10770_p8 }
  0x30   :  { %10778 = shalt.err (!%p10775_p10)
}
  0x31   :  { %s10779_s22 = scalar_lea.vmem %s76_s21, 2048  ;;  %p10784_p12 = scmp.lt.s32.totalorder %s76_s21, %s76_s21 }
  0x32   :  { %p10780_p11 = scmp.ne.s32.totalorder %s76_s21, %s10779_s22  ;;  %p10785_p13 = scmp.lt.s32.totalorder %s10779_s22, %s10779_s22 }
  0x34   :  { %p10786_p0 = por %p10785_p13, %p10784_p12 }
  0x36   :  { %p10787_p1 = pnand %p10786_p0, %p10780_p11 }
  0x38   :  { %10790 = shalt.err (!%p10787_p1)
}
  0x39   :  { %s13293_s2 = smov 128   ;;  %s13295_s29 = smov 8  }
  0x3a   :  { %81 = dma.hbm_to_vmem [thread:$0]  %s13304_s3, 2048, %s76_s21, [#allocation16], %s13293_s2, %s13293_s2, %s13295_s29  }
  0x3b   :  { %s10791_s24 = scalar_lea.hbm %s13273_s7, 512 }
  0x3c   :  { %p10792_p2 = scmp.ne.s32.totalorder %s13273_s7, %s10791_s24  ;;  %p10795_p3 = scmp.lt.u32.totalorder %s10791_s24, %s13273_s7 }
  0x3e   :  { %p10797_p4 = pnand %p10795_p3, %p10792_p2 }
  0x40   :  { %10800 = shalt.err (!%p10797_p4)
}
  0x41   :  { %s10801_s4 = scalar_lea.vmem %s102_s23, 512  ;;  %p10806_p6 = scmp.lt.s32.totalorder %s102_s23, %s102_s23 }
  0x42   :  { %p10802_p5 = scmp.ne.s32.totalorder %s102_s23, %s10801_s4  ;;  %p10807_p7 = scmp.lt.s32.totalorder %s10801_s4, %s10801_s4 }
  0x44   :  { %p10808_p8 = por %p10807_p7, %p10806_p6 }
  0x46   :  { %p10809_p9 = pnand %p10808_p8, %p10802_p5 }
  0x48   :  { %10812 = shalt.err (!%p10809_p9)
}
  0x49   :  { %107 = dma.hbm_to_vmem [thread:$0]  %s13273_s7, 512, %s102_s23, [#allocation19], %s13293_s2, %s13293_s2, %s13295_s29  }
  0x4a   :  { %s11044_s22 = smov [#allocation21]   ;;  %s10813_s1 = scalar_lea.hbm %s13275_s9, 1536 }
  0x4b   :  { %s125_s30 = sshll.u32 %s11044_s22, 4  ;;  %p10814_p10 = scmp.ne.s32.totalorder %s13275_s9, %s10813_s1  ;;  %s126_s30 = int_to_ptr.vmem [resolvable:$true] %s125_s30 }
  0x4c   :  { %p10817_p11 = scmp.lt.u32.totalorder %s10813_s1, %s13275_s9 }
  0x4e   :  { %p10819_p12 = pnand %p10817_p11, %p10814_p10 }
  0x50   :  { %10822 = shalt.err (!%p10819_p12)
}
  0x51   :  { %s10823_s28 = scalar_lea.vmem %s126_s30, 1536  ;;  %p10828_p0 = scmp.lt.s32.totalorder %s126_s30, %s126_s30 }
  0x52   :  { %p10824_p13 = scmp.ne.s32.totalorder %s126_s30, %s10823_s28  ;;  %p10829_p1 = scmp.lt.s32.totalorder %s10823_s28, %s10823_s28 }
  0x54   :  { %p10830_p2 = por %p10829_p1, %p10828_p0 }
  0x56   :  { %p10831_p3 = pnand %p10830_p2, %p10824_p13 }
  0x58   :  { %10834 = shalt.err (!%p10831_p3)
}
  0x59   :  { %s11045_s7 = smov 768   ;;  %s11046_s23 = smov 48  }
  0x5a   :  { %131 = dma.hbm_to_vmem [thread:$0]  %s13275_s9, 1536, %s126_s30, [#allocation22], %s11045_s7, %s11045_s7, %s11046_s23  }
  0x5b   :  { %s11047_s3 = smov [#allocation9]   ;;  %s11048_s0 = smov [#allocation14]  }
  0x5c   :  { %s41_s22 = sshll.u32 %s11047_s3, 4  ;;  %s63_s20 = sshll.u32 %s11048_s0, 4  ;;  %s42_s22 = int_to_ptr.vmem [resolvable:$true] %s41_s22  ;;  %s11250_s20 = int_to_ptr.vmem [resolvable:$true] %s63_s20 }
  0x5d   :  { %s13305_s25 = sld [smem:[#allocation56_spill]] }
  0x63   :  { %s10835_s26 = scalar_lea.hbm %s13305_s25, 384 }
  0x64   :  { %p10836_p4 = scmp.ne.s32.totalorder %s13305_s25, %s10835_s26  ;;  %p10839_p5 = scmp.lt.u32.totalorder %s10835_s26, %s13305_s25 }
  0x66   :  { %p10841_p6 = pnand %p10839_p5, %p10836_p4 }
  0x68   :  { %10844 = shalt.err (!%p10841_p6)
}
  0x69   :  { %s10845_s9 = scalar_lea.vmem %s42_s22, 384  ;;  %p10850_p8 = scmp.lt.s32.totalorder %s42_s22, %s42_s22 }
  0x6a   :  { %p10846_p7 = scmp.ne.s32.totalorder %s42_s22, %s10845_s9  ;;  %p10851_p9 = scmp.lt.s32.totalorder %s10845_s9, %s10845_s9 }
  0x6c   :  { %p10852_p10 = por %p10851_p9, %p10850_p8 }
  0x6e   :  { %p10853_p11 = pnand %p10852_p10, %p10846_p7 }
  0x70   :  { %10856 = shalt.err (!%p10853_p11)
}
  0x71   :  { %s13306_s30 = smov 8   ;;  %s13307_s23 = smov 128  }
  0x72   :  { %47 = dma.hbm_to_vmem [thread:$0]  %s13305_s25, 384, %s42_s22, [#allocation10], %s13307_s23, %s13307_s23, %s13306_s30  }
  0x73   :  { %s13308_s2 = sld [smem:[#allocation58_spill]] }
  0x79   :  { %s10857_s29 = scalar_lea.hbm %s13308_s2, 256 }
  0x7a   :  { %p10858_p12 = scmp.ne.s32.totalorder %s13308_s2, %s10857_s29  ;;  %p10861_p13 = scmp.lt.u32.totalorder %s10857_s29, %s13308_s2 }
  0x7c   :  { %p10863_p0 = pnand %p10861_p13, %p10858_p12 }
  0x7e   :  { %10866 = shalt.err (!%p10863_p0)
}
  0x7f   :  { %s10867_s28 = scalar_lea.vmem %s11250_s20, 256  ;;  %p10872_p2 = scmp.lt.s32.totalorder %s11250_s20, %s11250_s20 }
  0x80   :  { %p10868_p1 = scmp.ne.s32.totalorder %s11250_s20, %s10867_s28  ;;  %p10873_p3 = scmp.lt.s32.totalorder %s10867_s28, %s10867_s28 }
  0x82   :  { %p10874_p4 = por %p10873_p3, %p10872_p2 }
  0x84   :  { %p10875_p5 = pnand %p10874_p4, %p10868_p1 }
  0x86   :  { %10878 = shalt.err (!%p10875_p5)
}
  0x87   :  { %69 = dma.hbm_to_vmem [thread:$0]  %s13308_s2, 256, %s11250_s20, [#allocation13], %s13307_s23, %s13307_s23, %s13306_s30  }
  0x88   :  { %s11049_s9 = smov [#allocation17]   ;;  %s11050_s21 = smov [#allocation20]  }
  0x89   :  { %s89_s4 = sshll.u32 %s11049_s9, 4  ;;  %s113_s3 = sshll.u32 %s11050_s21, 4  ;;  %s90_s4 = int_to_ptr.vmem [resolvable:$true] %s89_s4  ;;  %s11287_s3 = int_to_ptr.vmem [resolvable:$true] %s113_s3 }
  0x8a   :  { %s10879_s1 = scalar_lea.hbm %s13272_s6, 512 }
  0x8b   :  { %p10880_p6 = scmp.ne.s32.totalorder %s13272_s6, %s10879_s1  ;;  %p10883_p7 = scmp.lt.u32.totalorder %s10879_s1, %s13272_s6 }
  0x8d   :  { %p10885_p8 = pnand %p10883_p7, %p10880_p6 }
  0x8f   :  { %10888 = shalt.err (!%p10885_p8)
}
  0x90   :  { %s10889_s20 = scalar_lea.vmem %s90_s4, 512  ;;  %p10894_p10 = scmp.lt.s32.totalorder %s90_s4, %s90_s4 }
  0x91   :  { %p10890_p9 = scmp.ne.s32.totalorder %s90_s4, %s10889_s20  ;;  %p10895_p11 = scmp.lt.s32.totalorder %s10889_s20, %s10889_s20 }
  0x93   :  { %p10896_p12 = por %p10895_p11, %p10894_p10 }
  0x95   :  { %p10897_p13 = pnand %p10896_p12, %p10890_p9 }
  0x97   :  { %10900 = shalt.err (!%p10897_p13)
}
  0x98   :  { %95 = dma.hbm_to_vmem [thread:$0]  %s13272_s6, 512, %s90_s4, [#allocation16], %s13307_s23, %s13307_s23, %s13306_s30  }
  0x99   :  { %s10901_s21 = scalar_lea.hbm %s13274_s8, 512 }
  0x9a   :  { %p10902_p0 = scmp.ne.s32.totalorder %s13274_s8, %s10901_s21  ;;  %p10905_p1 = scmp.lt.u32.totalorder %s10901_s21, %s13274_s8 }
  0x9c   :  { %p10907_p2 = pnand %p10905_p1, %p10902_p0 }
  0x9e   :  { %10910 = shalt.err (!%p10907_p2)
}
  0x9f   :  { %s10911_s26 = scalar_lea.vmem %s11287_s3, 512  ;;  %p10916_p4 = scmp.lt.s32.totalorder %s11287_s3, %s11287_s3 }
  0xa0   :  { %p10912_p3 = scmp.ne.s32.totalorder %s11287_s3, %s10911_s26  ;;  %p10917_p5 = scmp.lt.s32.totalorder %s10911_s26, %s10911_s26 }
  0xa2   :  { %p10918_p6 = por %p10917_p5, %p10916_p4 }
  0xa4   :  { %p10919_p7 = pnand %p10918_p6, %p10912_p3 }
  0xa6   :  { %10922 = shalt.err (!%p10919_p7)
}
  0xa7   :  { %119 = dma.hbm_to_vmem [thread:$0]  %s13274_s8, 512, %s11287_s3, [#allocation19], %s13307_s23, %s13307_s23, %s13306_s30  }
  0xa8   :  { %s11051_s27 = smov [#allocation23]   ;;  %s11052_s20 = smov [#allocation24]  }
  0xa9   :  { %s138_s28 = sshll.u32 %s11051_s27, 4  ;;  %s149_s2 = sshll.u32 %s11052_s20, 4  ;;  %s139_s28 = int_to_ptr.vmem [resolvable:$true] %s138_s28  ;;  %s11324_s2 = int_to_ptr.vmem [resolvable:$true] %s149_s2 }
  0xaa   :  { %s10923_s9 = scalar_lea.hbm %s13276_s10, 32 }
  0xab   :  { %p10924_p8 = scmp.ne.s32.totalorder %s13276_s10, %s10923_s9  ;;  %p10927_p9 = scmp.lt.u32.totalorder %s10923_s9, %s13276_s10 }
  0xad   :  { %p10929_p10 = pnand %p10927_p9, %p10924_p8 }
  0xaf   :  { %10932 = shalt.err (!%p10929_p10)
}
  0xb0   :  { %s10933_s8 = scalar_lea.vmem %s139_s28, 32  ;;  %p10938_p12 = scmp.lt.s32.totalorder %s139_s28, %s139_s28 }
  0xb1   :  { %p10934_p11 = scmp.ne.s32.totalorder %s139_s28, %s10933_s8  ;;  %p10939_p13 = scmp.lt.s32.totalorder %s10933_s8, %s10933_s8 }
  0xb3   :  { %p10940_p0 = por %p10939_p13, %p10938_p12 }
  0xb5   :  { %p10941_p1 = pnand %p10940_p0, %p10934_p11 }
  0xb7   :  { %10944 = shalt.err (!%p10941_p1)
}
  0xb8   :  { %141 = dma.hbm_to_vmem [thread:$0]  %s13276_s10, 32, %s139_s28, [#allocation22]  }
  0xb9   :  { %s10945_s4 = scalar_lea.hbm %s13278_s12, 2048 }
  0xba   :  { %p10946_p2 = scmp.ne.s32.totalorder %s13278_s12, %s10945_s4  ;;  %p10949_p3 = scmp.lt.u32.totalorder %s10945_s4, %s13278_s12 }
  0xbc   :  { %p10951_p4 = pnand %p10949_p3, %p10946_p2 }
  0xbe   :  { %10954 = shalt.err (!%p10951_p4)
}
  0xbf   :  { %s10955_s9 = scalar_lea.vmem %s11324_s2, 2048  ;;  %p10960_p6 = scmp.lt.s32.totalorder %s11324_s2, %s11324_s2 }
  0xc0   :  { %p10956_p5 = scmp.ne.s32.totalorder %s11324_s2, %s10955_s9  ;;  %p10961_p7 = scmp.lt.s32.totalorder %s10955_s9, %s10955_s9 }
  0xc2   :  { %p10962_p8 = por %p10961_p7, %p10960_p6 }
  0xc4   :  { %p10963_p9 = pnand %p10962_p8, %p10956_p5 }
  0xc6   :  { %10966 = shalt.err (!%p10963_p9)
}
  0xc7   :  { %s11053_s10 = smov 1024   ;;  %s11054_s28 = smov 64  }
  0xc8   :  { %155 = dma.hbm_to_vmem [thread:$0]  %s13278_s12, 2048, %s11324_s2, [#allocation25], %s11053_s10, %s11053_s10, %s11054_s28  }
  0xc9   :  { %11011 = dma.done.wait [#allocation10], 384  }
  0xca   :  { %11012 = vsyncadd [#allocation10], 4294966912 }
  0xcb   :  { %11013 = dma.done.wait [#allocation13], 288  }
  0xcc   :  { %11014 = vsyncadd [#allocation13], 4294967008 }
  0xcd   :  { %11015 = dma.done.wait [#allocation16], 2560  }
  0xce   :  { %11016 = vsyncadd [#allocation16], 4294964736 }
  0xcf   :  { %11017 = dma.done.wait [#allocation19], 1024  }
  0xd0   :  { %11018 = vsyncadd [#allocation19], 4294966272 }
  0xd1   :  { %11019 = dma.done.wait [#allocation22], 1568  }
  0xd2   :  { %11020 = vsyncadd [#allocation22], 4294965728 }
  0xd3   :  { %11021 = dma.done.wait [#allocation25], 2048  }
  0xd4   :  { %11022 = vsyncadd [#allocation25], 4294965248  ;;  %s191_s29 = sld [smem:[#allocation0]]   ;;  %203 = sst [smem:[#allocation30]] %s11045_s7  ;;  %v11055_v0 = vmov 0.0|0.0   ;;  %vm11056_vm0 = vmmov 0   ;;  %v665_v60 = vlaneseq }
  0xd5   :  { %10091 = vmatprep.subr.bf16.mxu0 %v11055_v0  ;;  %205 = sst [smem:[#allocation30 + $0x1]] %s11045_s7  ;;  %v11057_v1 = vmov 0.0   ;;  %s11058_s12 = smov 6   ;;  %vm408_vm1 = vcmask 130048   ;;  %v11081_v39 = vmov 1   ;;  %v11082_v40 = vmov 0  }
  0xd6   :  { %9731 = vmatprep.mubr.msk.f32.mxu0 %vm11056_vm0, %v11057_v1  ;;  %9740 = vmatprep.subr.mxu1 %v11057_v1  ;;  %207 = sst [smem:[#allocation30 + $0x2]] %s11058_s12  ;;  %s11059_s2 = smov [#allocation2]   ;;  %v11083_v53 = vmov 2   ;;  %v11084_v57 = vmov 3   ;;  %v11567_v61 = vshrl.u32 %v665_v60, 7  ;;  %vm684_vm5 = vcmask 195584  }
  0xd7   :  { %9742 = vmatprep.mubr.msk.f32.mxu1 %vm11056_vm0, %v11057_v1  ;;  %209 = sst [smem:[#allocation30 + $0x3]] %s11054_s28  ;;  %s199_s1 = sshll.u32 %s11059_s2, 4  ;;  %10574 = vset.pattern.permute.xlu0 %v11081_v39  ;;  %s200_s1 = int_to_ptr.vmem [resolvable:$true] %s199_s1 }
  0xd8   :  { %211 = sst [smem:[#allocation30 + $0x4]] %s13307_s23  ;;  %s11060_s8 = smov 2   ;;  %10575 = vset.pattern.permute.xlu1 %v11082_v40  ;;  %v11570_v62 = vsub.s32 0, %v11567_v61  ;;  %v11573_v63 = vsub.s32 1, %v11567_v61 }
  0xd9   :  { %213 = sst [smem:[#allocation30 + $0x5]] %s11060_s8  ;;  %s11061_s24 = smov 384  }
  0xda   :  { %s9383_s3 = sshll.u32 %s191_s29, 26  ;;  %215 = sst [smem:[#allocation30 + $0x6]] %s11061_s24 }
  0xdb   :  { %s11371_s26 = sadd.s32 134217728, %s9383_s3  ;;  %217 = sst [smem:[#allocation30 + $0x7]] %s11054_s28 }
  0xdc   :  { %s11062_s6 = smov 4   ;;  %s11063_s4 = smov [#allocation8]  }
  0xdd   :  { %219 = sst [smem:[#allocation30 + $0x8]] %s11062_s6  ;;  %s11064_s27 = smov [#allocation29]  }
  0xde   :  { %221 = dma.general %s13279_s13, 36864, %s200_s1, %s11063_s4, %s11064_s27, [#allocation30], %s11371_s26, 0  }
  0xdf   :  { %238 = sst [smem:[#allocation32]] %s11045_s7  ;;  %s11065_s25 = smov [#allocation3]  }
  0xe0   :  { %240 = sst [smem:[#allocation32 + $0x1]] %s11045_s7  ;;  %s234_s9 = sshll.u32 %s11065_s25, 4  ;;  %s235_s9 = int_to_ptr.vmem [resolvable:$true] %s234_s9 }
  0xe1   :  { %242 = sst [smem:[#allocation32 + $0x2]] %s11058_s12  ;;  %s11066_s13 = smov [#allocation8 + $0x1]  }
  0xe2   :  { %244 = sst [smem:[#allocation32 + $0x3]] %s11054_s28  ;;  %s11067_s21 = smov [#allocation31]  }
  0xe3   :  { %246 = sst [smem:[#allocation32 + $0x4]] %s13307_s23  ;;  %s11068_s2 = smov [#allocation4]  }
  0xe4   :  { %248 = sst [smem:[#allocation32 + $0x5]] %s11060_s8  ;;  %s269_s1 = sshll.u32 %s11068_s2, 4  ;;  %s270_s1 = int_to_ptr.vmem [resolvable:$true] %s269_s1 }
  0xe5   :  { %250 = sst [smem:[#allocation32 + $0x6]] %s11061_s24  ;;  %s11070_s3 = smov [#allocation33]  }
  0xe6   :  { %252 = sst [smem:[#allocation32 + $0x7]] %s11054_s28  ;;  %s11071_s20 = smov [#allocation5]  }
  0xe7   :  { %254 = sst [smem:[#allocation32 + $0x8]] %s11062_s6  ;;  %s304_s22 = sshll.u32 %s11071_s20, 4  ;;  %s305_s22 = int_to_ptr.vmem [resolvable:$true] %s304_s22 }
  0xe8   :  { %256 = dma.general %s13280_s14, 36864, %s235_s9, %s11066_s13, %s11067_s21, [#allocation32], %s11371_s26, 0  }
  0xe9   :  { %273 = sst [smem:[#allocation34]] %s11045_s7  ;;  %s11069_s14 = smov [#allocation8 + $0x2]  }
  0xea   :  { %275 = sst [smem:[#allocation34 + $0x1]] %s11045_s7  ;;  %s11073_s25 = smov [#allocation35]  }
  0xeb   :  { %277 = sst [smem:[#allocation34 + $0x2]] %s11058_s12  ;;  %s11074_s21 = smov [#allocation6]  }
  0xec   :  { %279 = sst [smem:[#allocation34 + $0x3]] %s11054_s28  ;;  %s339_s0 = sshll.u32 %s11074_s21, 4  ;;  %s340_s0 = int_to_ptr.vmem [resolvable:$true] %s339_s0 }
  0xed   :  { %281 = sst [smem:[#allocation34 + $0x4]] %s13307_s23  ;;  %s11075_s29 = smov 512  }
  0xee   :  { %283 = sst [smem:[#allocation34 + $0x5]] %s11060_s8  ;;  %s11077_s2 = smov [#allocation37]  }
  0xef   :  { %285 = sst [smem:[#allocation34 + $0x6]] %s11061_s24  ;;  %s11085_s27 = smov 96  }
  0xf0   :  { %287 = sst [smem:[#allocation34 + $0x7]] %s11054_s28  ;;  %s11086_s20 = smov 32  }
  0xf1   :  { %289 = sst [smem:[#allocation34 + $0x8]] %s11062_s6 }
  0xf2   :  { %291 = dma.general %s13281_s15, 36864, %s270_s1, %s11069_s14, %s11070_s3, [#allocation34], %s11371_s26, 0  }
  0xf3   :  { %308 = sst [smem:[#allocation36]] %s11045_s7  ;;  %s11072_s15 = smov [#allocation8 + $0x3]  }
  0xf4   :  { %310 = sst [smem:[#allocation36 + $0x1]] %s11045_s7  ;;  %s11080_s3 = smov [#allocation39]  }
  0xf5   :  { %312 = sst [smem:[#allocation36 + $0x2]] %s11058_s12 }
  0xf6   :  { %314 = sst [smem:[#allocation36 + $0x3]] %s11054_s28 }
  0xf7   :  { %316 = sst [smem:[#allocation36 + $0x4]] %s13307_s23 }
  0xf8   :  { %318 = sst [smem:[#allocation36 + $0x5]] %s11060_s8 }
  0xf9   :  { %320 = sst [smem:[#allocation36 + $0x6]] %s11061_s24 }
  0xfa   :  { %322 = sst [smem:[#allocation36 + $0x7]] %s11054_s28 }
  0xfb   :  { %324 = sst [smem:[#allocation36 + $0x8]] %s11062_s6 }
  0xfc   :  { %326 = dma.general %s13282_s16, 36864, %s305_s22, %s11072_s15, %s11073_s25, [#allocation36], %s11371_s26, 0  }
  0xfd   :  { %343 = sst [smem:[#allocation38]] %s11053_s10  ;;  %s11076_s16 = smov [#allocation8 + $0x4]  }
  0xfe   :  { %345 = sst [smem:[#allocation38 + $0x1]] %s11053_s10 }
  0xff   :  { %347 = sst [smem:[#allocation38 + $0x2]] %s13306_s30  ;;  %s11078_s30 = smov [#allocation7]  }
 0x100   :  { %349 = sst [smem:[#allocation38 + $0x3]] %s11054_s28  ;;  %s374_s14 = sshll.u32 %s11078_s30, 4  ;;  %s375_s14 = int_to_ptr.vmem [resolvable:$true] %s374_s14 }
 0x101   :  { %351 = sst [smem:[#allocation38 + $0x4]] %s13307_s23 }
 0x102   :  { %353 = sst [smem:[#allocation38 + $0x5]] %s11060_s8 }
 0x103   :  { %355 = sst [smem:[#allocation38 + $0x6]] %s11075_s29 }
 0x104   :  { %357 = sst [smem:[#allocation38 + $0x7]] %s11054_s28 }
 0x105   :  { %359 = sst [smem:[#allocation38 + $0x8]] %s11062_s6 }
 0x106   :  { %361 = dma.general %s13283_s17, 49152, %s340_s0, %s11076_s16, %s11077_s2, [#allocation38], %s11371_s26, 0  }
 0x107   :  { %378 = sst [smem:[#allocation40]] %s11045_s7  ;;  %s11079_s17 = smov [#allocation8 + $0x5]  }
 0x108   :  { %380 = sst [smem:[#allocation40 + $0x1]] %s11045_s7 }
 0x109   :  { %382 = sst [smem:[#allocation40 + $0x2]] %s11058_s12 }
 0x10a   :  { %384 = sst [smem:[#allocation40 + $0x3]] %s11054_s28 }
 0x10b   :  { %386 = sst [smem:[#allocation40 + $0x4]] %s13307_s23 }
 0x10c   :  { %388 = sst [smem:[#allocation40 + $0x5]] %s11060_s8 }
 0x10d   :  { %390 = sst [smem:[#allocation40 + $0x6]] %s11061_s24 }
 0x10e   :  { %392 = sst [smem:[#allocation40 + $0x7]] %s11054_s28 }
 0x10f   :  { %394 = sst [smem:[#allocation40 + $0x8]] %s11062_s6 }
 0x110   :  { %396 = dma.general %s13284_s18, 49152, %s375_s14, %s11079_s17, %s11080_s3, [#allocation40], %s11371_s26, 0  }
 0x111   :  { %v11443_v2 = vld [vmem:[#allocation21] sm:$0xff]  ;;  %v11445_v3 = vld [vmem:[#allocation21 + $0x8] sm:$0xff]  ;;  %v11447_v4 = vld [vmem:[#allocation21 + $0x10] sm:$0xff]  ;;  %s13309_s12 = sld [smem:[#allocation55_spill]] }
 0x112   :  { %v11449_v5 = vld [vmem:[#allocation21 + $0x18] sm:$0xff]  ;;  %v11451_v6 = vld [vmem:[#allocation21 + $0x20] sm:$0xff]  ;;  %v11453_v7 = vld [vmem:[#allocation21 + $0x28] sm:$0xff]  ;;  %v3436_v9 = vpack.c.bf16 %v11445_v3, %v11445_v3 }
 0x113   :  { %v11461_v11 = vld [vmem:[#allocation21 + $0x30] sm:$0xff]  ;;  %v11463_v12 = vld [vmem:[#allocation21 + $0x38] sm:$0xff]  ;;  %v11465_v13 = vld [vmem:[#allocation21 + $0x40] sm:$0xff] }
 0x114   :  { %v11473_v17 = vld [vmem:[#allocation21 + $0x48] sm:$0xff]  ;;  %v11475_v18 = vld [vmem:[#allocation21 + $0x50] sm:$0xff]  ;;  %v11477_v19 = vld [vmem:[#allocation21 + $0x58] sm:$0xff]  ;;  %v11481_v20 = vpack.c.bf16 %v11461_v11, %v11443_v2  ;;  %v11485_v21 = vpack.c.bf16 %v11463_v12, %v11445_v3  ;;  %v11489_v22 = vpack.c.bf16 %v11465_v13, %v11447_v4  ;;  %v3441_v23 = vpack.c.bf16 %v11461_v11, %v11461_v11 }
 0x115   :  { %v11495_v24 = vpack.c.bf16 %v11473_v17, %v11449_v5  ;;  %v11499_v25 = vpack.c.bf16 %v11475_v18, %v11451_v6  ;;  %v11503_v26 = vpack.c.bf16 %v11477_v19, %v11453_v7  ;;  %v3442_v27 = vpack.c.bf16 %v11463_v12, %v11463_v12  ;;  %v406_v28 = vld [vmem:[#allocation14] sm:$0xff]  ;;  %v407_v29 = vld [vmem:[#allocation14 + $0x8] sm:$0xff]  ;;  %v499_v34 = vld [vmem:[#allocation20 + $0xb] sm:$0xf] }
 0x116   :  { %v3444_v31 = vpack.c.bf16 %v11473_v17, %v11473_v17  ;;  %v10092_v35 = vpack.c.bf16 %v407_v29, %v406_v28  ;;  %9741 = vmatpush3.xpose.msra.mxu1 %v499_v34  ;;  %v498_v49 = vld [vmem:[#allocation20 + $0x7] sm:$0xf]  ;;  %v11579_v34 = vld [vmem:[#allocation9] sm:$0xff] }
 0x117   :  { %10094 = vmatprep.subr.bf16.mxu1 %v11055_v0  ;;  %v403_v36 = vld [vmem:[%s13309_s12] sm:$0xff]  ;;  %v404_v37 = vld [vmem:[%s13309_s12 + $0x8] sm:$0xff]  ;;  %v405_v38 = vld [vmem:[%s13309_s12 + $0x10] sm:$0xff]  ;;  %vm400_vm2 = vcmp.gt.f32.partialorder %v11579_v34, 0.0 }
 0x118   :  { %10093 = vmatpush3.bf16.msra.mxu0 %v10092_v35 }
 0x119   :  { %10100 = vmatprep.subr.bf16.mxu0 %v11055_v0 }
 0x11b   :  { %9732 = vmatmul.mubr.msk.f32.vlgmr.msra.gmra.mrb[0].mxu0 %vm408_vm1, %v403_v36 }
 0x11c   :  { %9734 = vmatprep.mubr.msk.f32.mxu0 %vm11056_vm0, %v11057_v1 }
 0x11f   :  { %9735 = vmatmul.mubr.msk.f32.gmra.mrb[2].mxu0 %vm408_vm1, %v404_v37 }
 0x120   :  { %9737 = vmatprep.mubr.msk.f32.mxu0 %vm11056_vm0, %v11057_v1 }
 0x123   :  { %9738 = vmatmul.mubr.msk.f32.gmra.mrb[4].mxu0 %vm408_vm1, %v405_v38 }
 0x124   :  { %9781 = vmatprep.mubr.msk.f32.mxu0 %vm11056_vm0, %v11057_v1 }
 0x1ee   :  { %v484_v41 = vpop.f32.mrb[0].mxu0 }
 0x1ef   :  { %v9733_v42 = vpop.f32.mrb[1].mxu0  ;;  %9743 = vmatmul.mubr.f32.vlgmr.msra.gmra.mrb[0].mxu1 %v484_v41 }
 0x1f0   :  { %9745 = vmatprep.mubr.msk.f32.mxu1 %vm11056_vm0, %v11057_v1 }
 0x1f2   :  { %v489_v43 = vpop.f32.mrb[2].mxu0 }
 0x1f3   :  { %9746 = vmatmul.mubr.f32.gmra.mrb[2].mxu1 %v489_v43  ;;  %v9736_v44 = vpop.f32.mrb[3].mxu0  ;;  %v10095_v45 = vpack.c.bf16 %v489_v43, %v484_v41  ;;  %v11539_v46 = vpack.i.bf16 %v489_v43, %v484_v41  ;;  %v11583_v41 = vsub.s32 2, %v11567_v61 }
 0x1f4   :  { %9748 = vmatprep.mubr.msk.f32.mxu1 %vm11056_vm0, %v11057_v1 }
 0x1f5   :  { %10096 = vmatpush3.bf16.xpose.msra.mxu1 %v10095_v45 }
 0x1f6   :  { %v11543_v47 = vpop.f32.mrb[4].mxu0  ;;  %9755 = vmatprep.subr.mxu1 %v11057_v1 }
 0x1f7   :  { %v9739_v48 = vpop.f32.mrb[5].mxu0  ;;  %9749 = vmatmul.mubr.f32.gmra.mrb[4].mxu1 %v11543_v47 }
 0x1f8   :  { %9757 = vmatprep.mubr.msk.f32.mxu1 %vm11056_vm0, %v11057_v1 }
 0x1fd   :  { %9756 = vmatpush3.xpose.msra.mxu1 %v11543_v47 }
 0x1fe   :  { %10097 = vmatprep.subr.bf16.mxu1 %v11055_v0 }
 0x200   :  { %9758 = vmatmul.mubr.f32.vlgmr.msra.gmra.mrb[6].mxu1 %v498_v49 }
 0x201   :  { %10099 = vmatpush3.bf16.msra.mxu1 %v10095_v45  ;;  %9766 = vmatprep.mubr.msk.f32.mxu1 %vm11056_vm0, %v11057_v1  ;;  %v11586_v45 = vld [vmem:[#allocation9 + $0x8] sm:$0xff] }
 0x202   :  { %9764 = vmatprep.subr.mxu1 %v11057_v1  ;;  %vm401_vm6 = vcmp.gt.f32.partialorder %v11586_v45, 0.0 }
 0x205   :  { %9765 = vmatpush3.msra.mxu1 %v11543_v47 }
 0x206   :  { %10103 = vmatprep.subr.bf16.mxu1 %v11055_v0 }
 0x2c2   :  { %v566_v50 = vpop.f32.mrb[0].mxu1 }
 0x2c3   :  { %652 = vperm.xlu1 %10575, %v566_v50   ;;  %719 = vperm.xlu0 %10574, %v566_v50   ;;  %v9744_v51 = vpop.f32.mrb[1].mxu1 }
 0x2c6   :  { %v571_v52 = vpop.f32.mrb[2].mxu1 }
 0x2c7   :  { %10576 = vset.pattern.permute.xlu1 %v11083_v53  ;;  %723 = vperm.xlu0 %10574, %v571_v52   ;;  %v9747_v54 = vpop.f32.mrb[3].mxu1 }
 0x2c8   :  { %783 = vperm.xlu1 %10576, %v566_v50  }
 0x2ca   :  { %v576_v55 = vpop.f32.mrb[4].mxu1 }
 0x2cb   :  { %10577 = vset.pattern.permute.xlu0 %v11082_v40  ;;  %v9750_v56 = vpop.f32.mrb[5].mxu1 }
 0x2cc   :  { %10579 = vset.pattern.permute.xlu1 %v11081_v39  ;;  %657 = vperm.xlu0 %10577, %v571_v52  }
 0x2cd   :  { %727 = vperm.xlu1 %10579, %v576_v55  }
 0x2d0   :  { %10578 = vset.pattern.permute.xlu0 %v11083_v53 }
 0x2d1   :  { %787 = vperm.xlu0 %10578, %v571_v52   ;;  %10580 = vset.pattern.permute.xlu1 %v11084_v57 }
 0x2d2   :  { %847 = vperm.xlu1 %10580, %v566_v50  }
 0x2d3   :  { %v646_v58 = vpop.f32.mrb[6].mxu1 }
 0x2d4   :  { %v9759_v59 = vpop.f32.mrb[7].mxu1  ;;  %v11576_v28 = vrot.slane %v646_v58, %v11570_v62  ;;  %v733_v29 = vrot.slane %v646_v58, %v11573_v63 }
 0x2d5   :  { %10581 = vset.pattern.permute.xlu0 %v11084_v57 }
 0x2d6   :  { %851 = vperm.xlu0 %10581, %v571_v52   ;;  %10582 = vset.pattern.permute.xlu1 %v11082_v40  ;;  %v11589_v52 = vrot.slane %v646_v58, %v11583_v41 }
 0x2d7   :  { %662 = vperm.xlu1 %10582, %v576_v55  }
 0x2da   :  { %10600 = vset.pattern.permute.xlu0 %v11081_v39 }
 0x2db   :  { %10583 = vset.pattern.permute.xlu1 %v11083_v53 }
 0x2dc   :  { %791 = vperm.xlu1 %10583, %v576_v55  }
 0x2e0   :  { %10584 = vset.pattern.permute.xlu1 %v11084_v57 }
 0x2e1   :  { %855 = vperm.xlu1 %10584, %v576_v55  }
 0x2e5   :  { %10603 = vset.pattern.permute.xlu1 %v11081_v39 }
 0x342   :  { %v653_v35 = vpop.permute.xlu1 %652  ;;  %v720_v36 = vpop.permute.xlu0 %719 }
 0x343   :  { %v669_v37 = vadd.f32 %v11576_v28, %v653_v35  ;;  %v734_v38 = vadd.f32 %v733_v29, %v720_v36  ;;  %v11603_v36 = vsub.s32 3, %v11567_v61 }
 0x345   :  { %v675_v42 = vmul.f32 0.2, %v669_v37  ;;  %v740_v43 = vmul.f32 0.2, %v734_v38  ;;  %vm737_vm3 = vcmp.gt.f32.partialorder %v734_v38, 0.0  ;;  %vm672_vm4 = vcmp.gt.f32.partialorder %v669_v37, 0.0 }
 0x346   :  { %v724_v44 = vpop.permute.xlu0 %723 }
 0x347   :  { %v735_v48 = vadd.f32 %v733_v29, %v724_v44  ;;  %v784_v49 = vpop.permute.xlu1 %783  ;;  %v743_v50 = vsel %vm737_vm3, %v734_v38, %v740_v43  ;;  %v678_v51 = vsel %vm672_vm4, %v669_v37, %v675_v42  ;;  %v11611_v44 = vld [vmem:[#allocation9 + $0x10] sm:$0xff] }
 0x348   :  { %v11593_v54 = vsel %vm400_vm2, %v743_v50, -1e+30  ;;  %v11600_v59 = vsel %vm400_vm2, %v678_v51, -1e+30  ;;  %v798_v37 = vadd.f32 %v11589_v52, %v784_v49  ;;  %vm402_vm9 = vcmp.gt.f32.partialorder %v11611_v44, 0.0 }
 0x349   :  { %v741_v55 = vmul.f32 0.2, %v735_v48  ;;  %v749_v56 = vsel %vm684_vm5, %v11593_v54, -inf  ;;  %vm738_vm7 = vcmp.gt.f32.partialorder %v735_v48, 0.0 }
 0x34a   :  { %750 = vmax.xlane.f32.xlu1 %v749_v56  ;;  %v861_v56 = vrot.slane %v646_v58, %v11603_v36  ;;  %vm801_vm11 = vcmp.gt.f32.partialorder %v798_v37, 0.0 }
 0x34b   :  { %v658_v60 = vpop.permute.xlu0 %657  ;;  %v744_v35 = vsel %vm738_vm7, %v735_v48, %v741_v55  ;;  %v685_v48 = vsel %vm684_vm5, %v11600_v59, -inf  ;;  %vm1131_vm7 = vcmask 261120  }
 0x34c   :  { %v670_v38 = vadd.f32 %v11576_v28, %v658_v60  ;;  %v728_v42 = vpop.permute.xlu1 %727  ;;  %v11609_v43 = vsel %vm401_vm6, %v744_v35, -1e+30  ;;  %v804_v60 = vmul.f32 0.2, %v798_v37 }
 0x34d   :  { %v736_v50 = vadd.f32 %v733_v29, %v728_v42  ;;  %v752_v51 = vsel %vm684_vm5, %v11609_v43, -inf }
 0x34e   :  { %v676_v55 = vmul.f32 0.2, %v670_v38  ;;  %753 = vmax.xlane.f32.xlu0 %v752_v51  ;;  %686 = vmax.xlane.f32.xlu1 %v685_v48  ;;  %vm673_vm8 = vcmp.gt.f32.partialorder %v670_v38, 0.0 }
 0x34f   :  { %v742_v49 = vmul.f32 0.2, %v736_v50  ;;  %vm739_vm10 = vcmp.gt.f32.partialorder %v736_v50, 0.0 }
 0x350   :  { %v788_v35 = vpop.permute.xlu0 %787  ;;  %v679_v32 = vsel %vm673_vm8, %v670_v38, %v676_v55 }
 0x351   :  { %v799_v29 = vadd.f32 %v11589_v52, %v788_v35  ;;  %v848_v42 = vpop.permute.xlu1 %847  ;;  %v745_v15 = vsel %vm739_vm10, %v736_v50, %v742_v49  ;;  %v11628_v58 = vsel %vm401_vm6, %v679_v32, -1e+30  ;;  %v807_v35 = vsel %vm801_vm11, %v798_v37, %v804_v60 }
 0x352   :  { %v862_v16 = vadd.f32 %v861_v56, %v848_v42  ;;  %v11622_v51 = vsel %vm402_vm9, %v745_v15, -1e+30  ;;  %v11641_v37 = vsel %vm400_vm2, %v807_v35, -1e+30 }
 0x353   :  { %v805_v48 = vmul.f32 0.2, %v799_v29  ;;  %v755_v10 = vsel %vm684_vm5, %v11622_v51, -inf  ;;  %vm802_vm12 = vcmp.gt.f32.partialorder %v799_v29, 0.0 }
 0x354   :  { %v868_v33 = vmul.f32 0.2, %v862_v16  ;;  %756 = vmax.xlane.f32.xlu0 %v755_v10  ;;  %vm865_vm13 = vcmp.gt.f32.partialorder %v862_v16, 0.0  ;;  %v688_v10 = vsel %vm684_vm5, %v11628_v58, -inf }
 0x355   :  { %v852_v38 = vpop.permute.xlu0 %851  ;;  %v808_v50 = vsel %vm802_vm12, %v799_v29, %v805_v48  ;;  %v813_v48 = vsel %vm684_vm5, %v11641_v37, -inf }
 0x356   :  { %v863_v55 = vadd.f32 %v861_v56, %v852_v38  ;;  %v663_v49 = vpop.permute.xlu1 %662  ;;  %v11632_v15 = vsel %vm401_vm6, %v808_v50, -1e+30  ;;  %v871_v42 = vsel %vm865_vm13, %v862_v16, %v868_v33 }
 0x357   :  { %v671_v30 = vadd.f32 %v11576_v28, %v663_v49  ;;  %v816_v32 = vsel %vm684_vm5, %v11632_v15, -inf  ;;  %v11645_v29 = vsel %vm400_vm2, %v871_v42, -1e+30 }
 0x358   :  { %v869_v60 = vmul.f32 0.2, %v863_v55  ;;  %689 = vmax.xlane.f32.xlu0 %v688_v10  ;;  %817 = vmax.xlane.f32.xlu1 %v816_v32  ;;  %vm866_vm14 = vcmp.gt.f32.partialorder %v863_v55, 0.0  ;;  %v877_v38 = vsel %vm684_vm5, %v11645_v29, -inf }
 0x359   :  { %v677_v16 = vmul.f32 0.2, %v671_v30  ;;  %vm674_vm15 = vcmp.gt.f32.partialorder %v671_v30, 0.0 }
 0x35a   :  { %v872_v33 = vsel %vm866_vm14, %v863_v55, %v869_v60 }
 0x35b   :  { %v792_v28 = vpop.permute.xlu1 %791  ;;  %v680_v35 = vsel %vm674_vm15, %v671_v30, %v677_v16  ;;  %v11654_v49 = vsel %vm401_vm6, %v872_v33, -1e+30 }
 0x35c   :  { %v800_v50 = vadd.f32 %v11589_v52, %v792_v28  ;;  %814 = vmax.xlane.f32.xlu0 %v813_v48  ;;  %878 = vmax.xlane.f32.xlu1 %v877_v38  ;;  %v11658_v42 = vsel %vm402_vm9, %v680_v35, -1e+30  ;;  %v880_v10 = vsel %vm684_vm5, %v11654_v49, -inf }
 0x35d   :  { %v691_v30 = vsel %vm684_vm5, %v11658_v42, -inf }
 0x35e   :  { %v806_v55 = vmul.f32 0.2, %v800_v50  ;;  %vm803_vm3 = vcmp.gt.f32.partialorder %v800_v50, 0.0 }
 0x360   :  { %881 = vmax.xlane.f32.xlu0 %v880_v10  ;;  %692 = vmax.xlane.f32.xlu1 %v691_v30  ;;  %v809_v52 = vsel %vm803_vm3, %v800_v50, %v806_v55  ;;  %v856_v16 = vpop.permute.xlu1 %855 }
 0x361   :  { %v11666_v32 = vsel %vm402_vm9, %v809_v52, -1e+30  ;;  %v864_v33 = vadd.f32 %v861_v56, %v856_v16 }
 0x362   :  { %v819_v60 = vsel %vm684_vm5, %v11666_v32, -inf }
 0x363   :  { %v870_v28 = vmul.f32 0.2, %v864_v33  ;;  %vm867_vm4 = vcmp.gt.f32.partialorder %v864_v33, 0.0 }
 0x364   :  { %820 = vmax.xlane.f32.xlu0 %v819_v60 }
 0x365   :  { %v873_v48 = vsel %vm867_vm4, %v864_v33, %v870_v28 }
 0x366   :  { %v11676_v38 = vsel %vm402_vm9, %v873_v48, -1e+30 }
 0x367   :  { %v883_v35 = vsel %vm684_vm5, %v11676_v38, -inf }
 0x371   :  { %1030 = vrot.lane.b32.xlu1 %v11543_v47, %s11085_s27 }
 0x37a   :  { %10586 = vrot.lane.b32.xlu0 %v11539_v46, %s11085_s27 }
 0x395   :  { %884 = vmax.xlane.f32.xlu1 %v883_v35 }
 0x3d7   :  { %v751_v50 = vpop.xlane.xlu1 %750 }
 0x3d8   :  { %v758_v55 = vsub.f32 %v11593_v54, %v751_v50 }
 0x3da   :  { %v761_v10 = vmul.f32 1.442695, %v758_v55 }
 0x3db   :  { %v687_v30 = vpop.xlane.xlu1 %686  ;;  %v754_v56 = vpop.xlane.xlu0 %753 }
 0x3dc   :  { %10627 = vpow2.f32 %v761_v10  ;;  %v694_v52 = vsub.f32 %v11600_v59, %v687_v30  ;;  %v759_v50 = vsub.f32 %v11609_v43, %v754_v56 }
 0x3de   :  { %v697_v60 = vmul.f32 1.442695, %v694_v52 }
 0x3e0   :  { %10629 = vpow2.f32 %v697_v60 }
 0x3e1   :  { %v757_v16 = vpop.xlane.xlu0 %756 }
 0x3e2   :  { %v760_v59 = vsub.f32 %v11622_v51, %v757_v16 }
 0x3e5   :  { %v690_v33 = vpop.xlane.xlu0 %689  ;;  %v818_v28 = vpop.xlane.xlu1 %817 }
 0x3e6   :  { %v11682_v48 = vpop.eup %10627  ;;  %v695_v14 = vsub.f32 %v11628_v58, %v690_v33  ;;  %v823_v35 = vsub.f32 %v11632_v15, %v818_v28  ;;  %v763_v58 = vmul.f32 1.442695, %v759_v50  ;;  %v765_v28 = vmul.f32 1.442695, %v760_v59 }
 0x3e7   :  { %v767_v54 = vsel %vm684_vm5, %v11682_v48, 0.0 }
 0x3e8   :  { %v699_v55 = vmul.f32 1.442695, %v695_v14  ;;  %768 = vadd.xlane.f32.xlu0 %v767_v54  ;;  %v827_v10 = vmul.f32 1.442695, %v823_v35 }
 0x3e9   :  { %v815_v30 = vpop.xlane.xlu0 %814  ;;  %v879_v60 = vpop.xlane.xlu1 %878 }
 0x3ea   :  { %10631 = vpow2.f32 %v699_v55  ;;  %v822_v52 = vsub.f32 %v11641_v37, %v815_v30  ;;  %v11691_v8 = vpop.eup %10629  ;;  %v886_v14 = vsub.f32 %v11645_v29, %v879_v60 }
 0x3eb   :  { %v703_v15 = vsel %vm684_vm5, %v11691_v8, 0.0  ;;  %10633 = vpow2.f32 %v827_v10 }
 0x3ec   :  { %v825_v33 = vmul.f32 1.442695, %v822_v52  ;;  %704 = vadd.xlane.f32.xlu1 %v703_v15  ;;  %v889_v51 = vmul.f32 1.442695, %v886_v14 }
 0x3ed   :  { %v882_v43 = vpop.xlane.xlu0 %881  ;;  %v693_v10 = vpop.xlane.xlu1 %692 }
 0x3ee   :  { %10635 = vpow2.f32 %v825_v33  ;;  %v887_v37 = vsub.f32 %v11654_v49, %v882_v43 }
 0x3ef   :  { %10637 = vpow2.f32 %v763_v58 }
 0x3f0   :  { %10639 = vpow2.f32 %v765_v28  ;;  %v891_v35 = vmul.f32 1.442695, %v887_v37 }
 0x3f1   :  { %v821_v56 = vpop.xlane.xlu0 %820  ;;  %10641 = vpow2.f32 %v889_v51  ;;  %v1031_v15 = vpop.permute.xlu1 %1030 }
 0x3f2   :  { %10643 = vpow2.f32 %v891_v35 }
 0x3f4   :  { %v11697_v16 = vpop.eup %10631 }
 0x3f5   :  { %v10587_v54 = vpop.permute.xlu0 %10586  ;;  %v706_v50 = vsel %vm684_vm5, %v11697_v16, 0.0  ;;  %v11701_v29 = vpop.eup %10633 }
 0x3f6   :  { %v10589_v55 = vunpack.i.h.bf16 %v10587_v54  ;;  %v10588_v59 = vunpack.i.l.bf16 %v10587_v54  ;;  %707 = vadd.xlane.f32.xlu0 %v706_v50  ;;  %v834_v58 = vsel %vm684_vm5, %v11701_v29, 0.0  ;;  %v696_v54 = vsub.f32 %v11658_v42, %v693_v10 }
 0x3f8   :  { %v11703_v30 = vpop.eup %10635  ;;  %v10101_v52 = vpack.c.bf16 %v10589_v55, %v10588_v59  ;;  %v701_v50 = vmul.f32 1.442695, %v696_v54  ;;  %v824_v55 = vsub.f32 %v11666_v32, %v821_v56  ;;  %v11750_v56 = vld [vmem:[#allocation20] ss:$0 sm:$0xff] }
 0x3f9   :  { %v831_v49 = vsel %vm684_vm5, %v11703_v30, 0.0  ;;  %v11707_v60 = vpop.eup %10637  ;;  %v915_v54 = vld [vmem:[#allocation15 + $0x20] sm:$0xff] }
 0x3fa   :  { %10102 = vmatpush3.bf16.msra.mxu0 %v10101_v52  ;;  %832 = vadd.xlane.f32.xlu1 %v831_v49  ;;  %v11711_v33 = vpop.eup %10639  ;;  %v770_v28 = vsel %vm684_vm5, %v11707_v60, 0.0  ;;  %10645 = vpow2.f32 %v701_v50  ;;  %v829_v52 = vmul.f32 1.442695, %v824_v55 }
 0x3fb   :  { %835 = vadd.xlane.f32.xlu0 %v834_v58  ;;  %9779 = vmatprep.subr.mxu0 %v11057_v1  ;;  %v773_v14 = vsel %vm684_vm5, %v11711_v33, 0.0  ;;  %v11718_v43 = vpop.eup %10641 }
 0x3fc   :  { %v895_v51 = vsel %vm684_vm5, %v11718_v43, 0.0  ;;  %v11723_v37 = vpop.eup %10643  ;;  %10647 = vpow2.f32 %v829_v52 }
 0x3fd   :  { %v898_v35 = vsel %vm684_vm5, %v11723_v37, 0.0 }
 0x3fe   :  { %771 = vadd.xlane.f32.xlu1 %v770_v28  ;;  %9780 = vmatpush3.msra.mxu0 %v1031_v15 }
 0x3ff   :  { %774 = vadd.xlane.f32.xlu0 %v773_v14  ;;  %10115 = vmatprep.subr.bf16.mxu0 %v11055_v0 }
 0x403   :  { %896 = vadd.xlane.f32.xlu0 %v895_v51 }
 0x404   :  { %v11736_v15 = vpop.eup %10645 }
 0x405   :  { %v709_v42 = vsel %vm684_vm5, %v11736_v15, 0.0 }
 0x406   :  { %v11740_v10 = vpop.eup %10647 }
 0x407   :  { %899 = vadd.xlane.f32.xlu0 %v898_v35  ;;  %v837_v32 = vsel %vm684_vm5, %v11740_v10, 0.0 }
 0x40f   :  { %1314 = vrot.lane.b32.xlu1 %v11543_v47, %s11054_s28 }
 0x41d   :  { %10591 = vrot.lane.b32.xlu0 %v11539_v46, %s11054_s28 }
 0x421   :  { %1510 = vrot.lane.b32.xlu0 %v11543_v47, %s11086_s20 }
 0x422   :  { %v885_v59 = vpop.xlane.xlu1 %884 }
 0x423   :  { %v888_v49 = vsub.f32 %v11676_v38, %v885_v59 }
 0x425   :  { %v893_v58 = vmul.f32 1.442695, %v888_v49  ;;  %1319 = vrot.lane.b32.xlu0 %v11750_v56, %s11054_s28 }
 0x427   :  { %10649 = vpow2.f32 %v893_v58 }
 0x431   :  { %v11744_v47 = vpop.eup %10649 }
 0x432   :  { %v901_v38 = vsel %vm684_vm5, %v11744_v47, 0.0 }
 0x433   :  { %710 = vadd.xlane.f32.xlu1 %v709_v42 }
 0x437   :  { %838 = vadd.xlane.f32.xlu1 %v837_v32 }
 0x43b   :  { %902 = vadd.xlane.f32.xlu1 %v901_v38 }
 0x44c   :  { %10596 = vrot.lane.b32.xlu1 %v11539_v46, %s11086_s20  ;;  %v916_v46 = vld [vmem:[#allocation15 + $0x28] sm:$0xff] }
 0x44d   :  { %v10104_v59 = vpack.c.bf16 %v916_v46, %v915_v54 }
 0x450   :  { %1036 = vrot.lane.b32.xlu1 %v11750_v56, %s11085_s27 }
 0x454   :  { %1515 = vrot.lane.b32.xlu1 %v11750_v56, %s11086_s20 }
 0x475   :  { %v769_v28 = vpop.xlane.xlu0 %768 }
 0x476   :  { %10651 = vrcp.f32 %v769_v28 }
 0x479   :  { %v705_v14 = vpop.xlane.xlu1 %704 }
 0x47a   :  { %10653 = vrcp.f32 %v705_v14 }
 0x480   :  { %v10652_v51 = vpop.eup %10651 }
 0x481   :  { %v779_v35 = vmul.f32 %v10652_v51, %v11682_v48 }
 0x483   :  { %v708_v50 = vpop.xlane.xlu0 %707  ;;  %9782 = vmatmul.mubr.msk.f32.vlgmr.msra.gmra.mrb[6].mxu0 %vm684_vm5, %v779_v35 }
 0x484   :  { %10655 = vrcp.f32 %v708_v50  ;;  %9784 = vmatprep.mubr.msk.f32.mxu0 %vm11056_vm0, %v11057_v1  ;;  %v10654_v55 = vpop.eup %10653 }
 0x485   :  { %v715_v52 = vmul.f32 %v10654_v55, %v11691_v8 }
 0x487   :  { %v833_v49 = vpop.xlane.xlu1 %832  ;;  %9767 = vmatmul.mubr.msk.f32.vlgmr.msra.gmra.mrb[8].mxu1 %vm684_vm5, %v715_v52 }
 0x488   :  { %v836_v58 = vpop.xlane.xlu0 %835  ;;  %9769 = vmatprep.mubr.msk.f32.mxu1 %vm11056_vm0, %v11057_v1  ;;  %10105 = vmatpush3.bf16.msra.mxu1 %v10104_v59 }
 0x489   :  { %10106 = vmatprep.subr.bf16.mxu1 %v11055_v0 }
 0x48b   :  { %v772_v48 = vpop.xlane.xlu1 %771 }
 0x48c   :  { %v775_v42 = vpop.xlane.xlu0 %774  ;;  %10657 = vrcp.f32 %v772_v48 }
 0x48d   :  { %10659 = vrcp.f32 %v775_v42 }
 0x48e   :  { %v10656_v32 = vpop.eup %10655  ;;  %10661 = vrcp.f32 %v833_v49 }
 0x48f   :  { %v716_v38 = vmul.f32 %v10656_v32, %v11697_v16  ;;  %10663 = vrcp.f32 %v836_v58  ;;  %v1315_v52 = vpop.permute.xlu1 %1314 }
 0x490   :  { %v897_v28 = vpop.xlane.xlu0 %896 }
 0x491   :  { %9770 = vmatmul.mubr.msk.f32.gmra.mrb[10].mxu1 %vm684_vm5, %v716_v38 }
 0x492   :  { %9772 = vmatprep.mubr.msk.f32.mxu1 %vm11056_vm0, %v11057_v1 }
 0x494   :  { %v900_v8 = vpop.xlane.xlu0 %899 }
 0x496   :  { %v10658_v14 = vpop.eup %10657 }
 0x497   :  { %v780_v51 = vmul.f32 %v10658_v14, %v11707_v60  ;;  %v10660_v54 = vpop.eup %10659 }
 0x498   :  { %v10592_v35 = vpop.permute.xlu0 %10591  ;;  %v781_v55 = vmul.f32 %v10660_v54, %v11711_v33  ;;  %v10662_v59 = vpop.eup %10661 }
 0x499   :  { %v10594_v46 = vunpack.i.h.bf16 %v10592_v35  ;;  %v10593_v50 = vunpack.i.l.bf16 %v10592_v35  ;;  %9785 = vmatmul.mubr.msk.f32.gmra.mrb[8].mxu0 %vm684_vm5, %v780_v51  ;;  %v843_v60 = vmul.f32 %v10662_v59, %v11703_v30  ;;  %v10664_v49 = vpop.eup %10663 }
 0x49a   :  { %9787 = vmatprep.mubr.msk.f32.mxu0 %vm11056_vm0, %v11057_v1  ;;  %v844_v33 = vmul.f32 %v10664_v49, %v11701_v29  ;;  %v912_v49 = vld [vmem:[#allocation15 + $0x8] sm:$0xff] }
 0x49b   :  { %v10116_v16 = vpack.c.bf16 %v10594_v46, %v10593_v50  ;;  %v917_v50 = vld [vmem:[#allocation15 + $0x30] sm:$0xff] }
 0x49d   :  { %10117 = vmatpush3.bf16.msra.mxu0 %v10116_v16  ;;  %v918_v16 = vld [vmem:[#allocation15 + $0x38] sm:$0xff] }
 0x49e   :  { %9788 = vmatmul.mubr.msk.f32.gmra.mrb[10].mxu0 %vm684_vm5, %v781_v55  ;;  %9828 = vmatprep.subr.mxu0 %v11057_v1 }
 0x49f   :  { %9830 = vmatprep.mubr.msk.f32.mxu0 %vm11056_vm0, %v11057_v1 }
 0x4a1   :  { %9829 = vmatpush3.msra.mxu0 %v1315_v52  ;;  %v911_v52 = vld [vmem:[#allocation15] sm:$0xff] }
 0x4a2   :  { %9831 = vmatmul.mubr.msk.f32.vlgmr.msra.gmra.mrb[12].mxu0 %vm684_vm5, %v843_v60  ;;  %10124 = vmatprep.subr.bf16.mxu0 %v11055_v0  ;;  %v1703_v60 = vld [vmem:[#allocation20 + $0x13] sm:$0xf] }
 0x4a3   :  { %9833 = vmatprep.mubr.msk.f32.mxu0 %vm11056_vm0, %v11057_v1 }
 0x4a6   :  { %9834 = vmatmul.mubr.msk.f32.gmra.mrb[14].mxu0 %vm684_vm5, %v844_v33 }
 0x4a7   :  { %9836 = vmatprep.mubr.msk.f32.mxu0 %vm11056_vm0, %v11057_v1 }
 0x4c0   :  { %v711_v58 = vpop.xlane.xlu1 %710 }
 0x4c1   :  { %10665 = vrcp.f32 %v711_v58 }
 0x4c4   :  { %v839_v30 = vpop.xlane.xlu1 %838 }
 0x4c5   :  { %10667 = vrcp.f32 %v839_v30 }
 0x4c6   :  { %10669 = vrcp.f32 %v897_v28  ;;  %v1511_v28 = vpop.permute.xlu0 %1510 }
 0x4c7   :  { %10671 = vrcp.f32 %v900_v8 }
 0x4c8   :  { %v903_v48 = vpop.xlane.xlu1 %902 }
 0x4c9   :  { %10673 = vrcp.f32 %v903_v48  ;;  %v10110_v48 = vpack.c.bf16 %v912_v49, %v911_v52 }
 0x4cb   :  { %v10666_v42 = vpop.eup %10665 }
 0x4cc   :  { %v10597_v32 = vpop.permute.xlu1 %10596  ;;  %v717_v38 = vmul.f32 %v10666_v42, %v11736_v15 }
 0x4cd   :  { %v10599_v14 = vunpack.i.h.bf16 %v10597_v32  ;;  %v10598_v51 = vunpack.i.l.bf16 %v10597_v32  ;;  %v913_v32 = vld [vmem:[#allocation15 + $0x10] sm:$0xff] }
 0x4ce   :  { %9773 = vmatmul.mubr.msk.f32.gmra.mrb[12].mxu1 %vm684_vm5, %v717_v38 }
 0x4cf   :  { %v10668_v29 = vpop.eup %10667  ;;  %v10125_v35 = vpack.c.bf16 %v10599_v14, %v10598_v51  ;;  %9798 = vmatprep.mubr.msk.f32.mxu1 %vm11056_vm0, %v11057_v1 }
 0x4d0   :  { %v845_v54 = vmul.f32 %v10668_v29, %v11740_v10  ;;  %v10670_v46 = vpop.eup %10669  ;;  %v10107_v10 = vpack.c.bf16 %v918_v16, %v917_v50 }
 0x4d1   :  { %10126 = vmatpush3.bf16.msra.mxu0 %v10125_v35  ;;  %v907_v15 = vmul.f32 %v10670_v46, %v11718_v43  ;;  %v10672_v8 = vpop.eup %10671 }
 0x4d2   :  { %9837 = vmatmul.mubr.msk.f32.gmra.mrb[16].mxu0 %vm684_vm5, %v845_v54  ;;  %9860 = vmatprep.subr.mxu0 %v11057_v1  ;;  %v908_v55 = vmul.f32 %v10672_v8, %v11723_v37  ;;  %v1037_v37 = vpop.permute.xlu1 %1036 }
 0x4d3   :  { %9862 = vmatprep.mubr.msk.f32.mxu0 %vm11056_vm0, %v11057_v1  ;;  %v10674_v59 = vpop.eup %10673  ;;  %10108 = vmatpush3.bf16.msra.mxu1 %v10107_v10 }
 0x4d4   :  { %10109 = vmatprep.subr.bf16.mxu1 %v11055_v0  ;;  %v909_v43 = vmul.f32 %v10674_v59, %v11744_v47  ;;  %v914_v47 = vld [vmem:[#allocation15 + $0x18] sm:$0xff]  ;;  %v919_v59 = vld [vmem:[#allocation15 + $0x40] sm:$0xff] }
 0x4d5   :  { %9861 = vmatpush3.msra.mxu0 %v1511_v28  ;;  %v10113_v51 = vpack.c.bf16 %v914_v47, %v913_v32 }
 0x4d6   :  { %9863 = vmatmul.mubr.msk.f32.vlgmr.msra.gmra.mrb[18].mxu0 %vm684_vm5, %v907_v15  ;;  %9888 = vmatprep.subr.mxu0 %v11057_v1 }
 0x4d7   :  { %9865 = vmatprep.mubr.msk.f32.mxu0 %vm11056_vm0, %v11057_v1 }
 0x4da   :  { %9866 = vmatmul.mubr.msk.f32.gmra.mrb[20].mxu0 %vm684_vm5, %v908_v55 }
 0x4db   :  { %9868 = vmatprep.mubr.msk.f32.mxu0 %vm11056_vm0, %v11057_v1 }
 0x4dc   :  { %9889 = vmatpush3.xpose.msra.mxu0 %v1703_v60 }
 0x4dd   :  { %10133 = vmatprep.subr.bf16.mxu0 %v11055_v0 }
 0x4de   :  { %9869 = vmatmul.mubr.msk.f32.gmra.mrb[22].mxu0 %vm684_vm5, %v909_v43  ;;  %v920_v43 = vld [vmem:[#allocation15 + $0x48] sm:$0xff] }
 0x4df   :  { %9890 = vmatprep.mubr.msk.f32.mxu0 %vm11056_vm0, %v11057_v1  ;;  %v10119_v49 = vpack.c.bf16 %v920_v43, %v919_v59  ;;  %v926_v59 = vld [vmem:[#allocation15 + $0x78] sm:$0xff] }
 0x556   :  { %v1114_v33 = vpop.f32.mrb[6].mxu0 }
 0x557   :  { %v1115_v58 = vadd.f32 %v1114_v33, %v1037_v37  ;;  %v9783_v30 = vpop.f32.mrb[7].mxu0 }
 0x558   :  { %v922_v30 = vld [vmem:[#allocation15 + $0x58] sm:$0xff] }
 0x559   :  { %v1128_v42 = vmax.f32 %v1115_v58, 0.0  ;;  %v921_v58 = vld [vmem:[#allocation15 + $0x50] sm:$0xff] }
 0x55a   :  { %v1006_v38 = vpop.f32.mrb[8].mxu1  ;;  %v10122_v32 = vpack.c.bf16 %v922_v30, %v921_v58 }
 0x55b   :  { %9799 = vmatmul.mubr.msk.f32.vlgmr.msra.gmra.mrb[14].mxu1 %vm1131_vm7, %v1128_v42  ;;  %v9768_v14 = vpop.f32.mrb[9].mxu1  ;;  %v1007_v10 = vadd.f32 %v11750_v56, %v1006_v38  ;;  %v1320_v38 = vpop.permute.xlu0 %1319 }
 0x55c   :  { %9801 = vmatprep.mubr.msk.f32.mxu1 %vm11056_vm0, %v11057_v1  ;;  %10111 = vmatpush3.bf16.msra.mxu1 %v10110_v48 }
 0x55d   :  { %10112 = vmatprep.subr.bf16.mxu1 %v11055_v0  ;;  %v1020_v33 = vmax.f32 %v1007_v10, 0.0 }
 0x560   :  { %10114 = vmatpush3.bf16.msra.mxu1 %v10113_v51 }
 0x561   :  { %10118 = vmatprep.subr.bf16.mxu1 %v11055_v0 }
 0x564   :  { %v1011_v29 = vpop.f32.mrb[10].mxu1 }
 0x565   :  { %v9771_v35 = vpop.f32.mrb[11].mxu1 }
 0x56c   :  { %v1119_v54 = vpop.f32.mrb[8].mxu0 }
 0x56d   :  { %v1120_v46 = vadd.f32 %v1119_v54, %v1037_v37  ;;  %v9786_v15 = vpop.f32.mrb[9].mxu0 }
 0x56e   :  { %v924_v15 = vld [vmem:[#allocation15 + $0x68] sm:$0xff] }
 0x56f   :  { %v1129_v28 = vmax.f32 %v1120_v46, 0.0  ;;  %v923_v46 = vld [vmem:[#allocation15 + $0x60] sm:$0xff] }
 0x571   :  { %v1124_v8 = vpop.f32.mrb[10].mxu0  ;;  %9802 = vmatmul.mubr.msk.f32.gmra.mrb[16].mxu1 %vm1131_vm7, %v1129_v28 }
 0x572   :  { %v1125_v50 = vadd.f32 %v1124_v8, %v1037_v37  ;;  %v9789_v16 = vpop.f32.mrb[11].mxu0  ;;  %9804 = vmatprep.mubr.msk.f32.mxu1 %vm11056_vm0, %v11057_v1  ;;  %v1012_v37 = vadd.f32 %v11750_v56, %v1011_v29 }
 0x574   :  { %v1130_v55 = vmax.f32 %v1125_v50, 0.0  ;;  %v1021_v47 = vmax.f32 %v1012_v37, 0.0  ;;  %v10128_v50 = vpack.c.bf16 %v924_v15, %v923_v46 }
 0x575   :  { %v1397_v60 = vpop.f32.mrb[12].mxu0 }
 0x576   :  { %9805 = vmatmul.mubr.msk.f32.gmra.mrb[18].mxu1 %vm1131_vm7, %v1130_v55  ;;  %v9832_v52 = vpop.f32.mrb[13].mxu0  ;;  %v1398_v35 = vadd.f32 %v1397_v60, %v1320_v38  ;;  %v925_v55 = vld [vmem:[#allocation15 + $0x70] sm:$0xff] }
 0x577   :  { %9815 = vmatprep.mubr.msk.f32.mxu1 %vm11056_vm0, %v11057_v1  ;;  %v10131_v60 = vpack.c.bf16 %v926_v59, %v925_v55 }
 0x578   :  { %v1411_v16 = vmax.f32 %v1398_v35, 0.0 }
 0x579   :  { %v1402_v48 = vpop.f32.mrb[14].mxu0 }
 0x57a   :  { %9816 = vmatmul.mubr.msk.f32.vlgmr.msra.gmra.mrb[14].mxu1 %vm1131_vm7, %v1020_v33  ;;  %v9835_v42 = vpop.f32.mrb[15].mxu0  ;;  %v1403_v10 = vadd.f32 %v1402_v48, %v1320_v38  ;;  %v1516_v33 = vpop.permute.xlu1 %1515 }
 0x57b   :  { %9818 = vmatprep.mubr.msk.f32.mxu1 %vm11056_vm0, %v11057_v1  ;;  %10120 = vmatpush3.bf16.msra.mxu1 %v10119_v49 }
 0x57c   :  { %10121 = vmatprep.subr.bf16.mxu1 %v11055_v0  ;;  %v1412_v52 = vmax.f32 %v1403_v10, 0.0  ;;  %v1702_v10 = vld [vmem:[#allocation20 + $0xf] sm:$0xf] }
 0x57e   :  { %9819 = vmatmul.mubr.msk.f32.gmra.mrb[16].mxu1 %vm1131_vm7, %v1021_v47 }
 0x57f   :  { %9821 = vmatprep.mubr.msk.f32.mxu1 %vm11056_vm0, %v11057_v1  ;;  %10123 = vmatpush3.bf16.msra.mxu1 %v10122_v32 }
 0x580   :  { %10127 = vmatprep.subr.bf16.mxu1 %v11055_v0 }
 0x5a1   :  { %v1016_v14 = vpop.f32.mrb[12].mxu1 }
 0x5a2   :  { %v1017_v51 = vadd.f32 %v11750_v56, %v1016_v14  ;;  %v9774_v29 = vpop.f32.mrb[13].mxu1 }
 0x5a4   :  { %v1022_v54 = vmax.f32 %v1017_v51, 0.0 }
 0x5a5   :  { %v1407_v28 = vpop.f32.mrb[16].mxu0 }
 0x5a6   :  { %9822 = vmatmul.mubr.msk.f32.gmra.mrb[18].mxu1 %vm1131_vm7, %v1022_v54  ;;  %v9838_v8 = vpop.f32.mrb[17].mxu0  ;;  %v1408_v49 = vadd.f32 %v1407_v28, %v1320_v38 }
 0x5a7   :  { %9847 = vmatprep.mubr.msk.f32.mxu1 %vm11056_vm0, %v11057_v1 }
 0x5a8   :  { %v1413_v30 = vmax.f32 %v1408_v49, 0.0 }
 0x5a9   :  { %v1593_v43 = vpop.f32.mrb[18].mxu0 }
 0x5aa   :  { %9848 = vmatmul.mubr.msk.f32.vlgmr.msra.gmra.mrb[14].mxu1 %vm1131_vm7, %v1411_v16  ;;  %v9864_v56 = vpop.f32.mrb[19].mxu0  ;;  %v1594_v48 = vadd.f32 %v1593_v43, %v1516_v33 }
 0x5ab   :  { %9850 = vmatprep.mubr.msk.f32.mxu1 %vm11056_vm0, %v11057_v1  ;;  %10129 = vmatpush3.bf16.msra.mxu1 %v10128_v50 }
 0x5ac   :  { %10130 = vmatprep.subr.bf16.mxu1 %v11055_v0  ;;  %v1607_v47 = vmax.f32 %v1594_v48, 0.0 }
 0x5ad   :  { %v1598_v37 = vpop.f32.mrb[20].mxu0 }
 0x5ae   :  { %9851 = vmatmul.mubr.msk.f32.gmra.mrb[16].mxu1 %vm1131_vm7, %v1412_v52  ;;  %v9867_v58 = vpop.f32.mrb[21].mxu0  ;;  %v1599_v38 = vadd.f32 %v1598_v37, %v1516_v33 }
 0x5af   :  { %9853 = vmatprep.mubr.msk.f32.mxu1 %vm11056_vm0, %v11057_v1  ;;  %10132 = vmatpush3.bf16.msra.mxu1 %v10131_v60 }
 0x5b0   :  { %10139 = vmatprep.subr.bf16.mxu1 %v11055_v0  ;;  %v1608_v14 = vmax.f32 %v1599_v38, 0.0 }
 0x5b1   :  { %v1603_v42 = vpop.f32.mrb[22].mxu0 }
 0x5b2   :  { %9854 = vmatmul.mubr.msk.f32.gmra.mrb[18].mxu1 %vm1131_vm7, %v1413_v30  ;;  %v9870_v32 = vpop.f32.mrb[23].mxu0  ;;  %v1604_v51 = vadd.f32 %v1603_v42, %v1516_v33 }
 0x5b3   :  { %9879 = vmatprep.mubr.msk.f32.mxu1 %vm11056_vm0, %v11057_v1 }
 0x5b4   :  { %v1609_v29 = vmax.f32 %v1604_v51, 0.0 }
 0x5b6   :  { %9880 = vmatmul.mubr.msk.f32.vlgmr.msra.gmra.mrb[14].mxu1 %vm1131_vm7, %v1607_v47 }
 0x5b7   :  { %9882 = vmatprep.mubr.msk.f32.mxu1 %vm11056_vm0, %v11057_v1 }
 0x5ba   :  { %9883 = vmatmul.mubr.msk.f32.gmra.mrb[16].mxu1 %vm1131_vm7, %v1608_v14 }
 0x5bb   :  { %9885 = vmatprep.mubr.msk.f32.mxu1 %vm11056_vm0, %v11057_v1 }
 0x5be   :  { %9886 = vmatmul.mubr.msk.f32.gmra.mrb[18].mxu1 %vm1131_vm7, %v1609_v29 }
 0x5bf   :  { %9929 = vmatprep.mubr.msk.f32.mxu1 %vm11056_vm0, %v11057_v1 }
 0x689   :  { %v1685_v35 = vpop.f32.mrb[14].mxu1 }
 0x68a   :  { %v9881_v54 = vpop.f32.mrb[15].mxu1  ;;  %9891 = vmatmul.mubr.f32.vlgmr.msra.gmra.mrb[24].mxu0 %v1685_v35 }
 0x68b   :  { %9893 = vmatprep.mubr.msk.f32.mxu0 %vm11056_vm0, %v11057_v1 }
 0x68d   :  { %v1690_v46 = vpop.f32.mrb[16].mxu1 }
 0x68e   :  { %v9884_v15 = vpop.f32.mrb[17].mxu1  ;;  %9894 = vmatmul.mubr.f32.gmra.mrb[26].mxu0 %v1690_v46  ;;  %v10134_v28 = vpack.c.bf16 %v1690_v46, %v1685_v35  ;;  %v11860_v8 = vpack.i.bf16 %v1690_v46, %v1685_v35 }
 0x68f   :  { %9896 = vmatprep.mubr.msk.f32.mxu0 %vm11056_vm0, %v11057_v1 }
 0x690   :  { %10135 = vmatpush3.bf16.xpose.msra.mxu0 %v10134_v28 }
 0x691   :  { %v11864_v50 = vpop.f32.mrb[18].mxu1  ;;  %9903 = vmatprep.subr.mxu0 %v11057_v1 }
 0x692   :  { %v9887_v16 = vpop.f32.mrb[19].mxu1  ;;  %9897 = vmatmul.mubr.f32.gmra.mrb[28].mxu0 %v11864_v50 }
 0x693   :  { %9905 = vmatprep.mubr.msk.f32.mxu0 %vm11056_vm0, %v11057_v1 }
 0x698   :  { %9904 = vmatpush3.xpose.msra.mxu0 %v11864_v50 }
 0x699   :  { %10136 = vmatprep.subr.bf16.mxu0 %v11055_v0 }
 0x69b   :  { %9906 = vmatmul.mubr.f32.vlgmr.msra.gmra.mrb[30].mxu0 %v1702_v10 }
 0x69c   :  { %10138 = vmatpush3.bf16.msra.mxu0 %v10134_v28  ;;  %9914 = vmatprep.mubr.msk.f32.mxu0 %vm11056_vm0, %v11057_v1 }
 0x69d   :  { %9912 = vmatprep.subr.mxu0 %v11057_v1 }
 0x6a0   :  { %9913 = vmatpush3.msra.mxu0 %v11864_v50 }
 0x6a1   :  { %10142 = vmatprep.subr.bf16.mxu0 %v11055_v0 }
 0x75d   :  { %v1770_v55 = vpop.f32.mrb[24].mxu0 }
 0x75e   :  { %1922 = vperm.xlu0 %10600, %v1770_v55   ;;  %v9892_v59 = vpop.f32.mrb[25].mxu0 }
 0x761   :  { %v1775_v43 = vpop.f32.mrb[26].mxu0 }
 0x762   :  { %10601 = vset.pattern.permute.xlu0 %v11082_v40  ;;  %1926 = vperm.xlu1 %10603, %v1775_v43   ;;  %v9895_v56 = vpop.f32.mrb[27].mxu0 }
 0x763   :  { %1856 = vperm.xlu0 %10601, %v1770_v55  }
 0x765   :  { %v1780_v60 = vpop.f32.mrb[28].mxu0 }
 0x766   :  { %10604 = vset.pattern.permute.xlu1 %v11082_v40  ;;  %v9898_v52 = vpop.f32.mrb[29].mxu0 }
 0x767   :  { %10602 = vset.pattern.permute.xlu0 %v11083_v53  ;;  %1861 = vperm.xlu1 %10604, %v1775_v43  }
 0x768   :  { %1986 = vperm.xlu0 %10602, %v1770_v55  }
 0x76b   :  { %10605 = vset.pattern.permute.xlu1 %v11081_v39 }
 0x76c   :  { %10607 = vset.pattern.permute.xlu0 %v11084_v57  ;;  %1930 = vperm.xlu1 %10605, %v1780_v60  }
 0x76d   :  { %2050 = vperm.xlu0 %10607, %v1770_v55  }
 0x76e   :  { %v1850_v49 = vpop.f32.mrb[30].mxu0 }
 0x76f   :  { %v9907_v33 = vpop.f32.mrb[31].mxu0  ;;  %v1936_v39 = vrot.slane %v1850_v49, %v11573_v63  ;;  %v11889_v30 = vrot.slane %v1850_v49, %v11570_v62  ;;  %v11899_v14 = vrot.slane %v1850_v49, %v11583_v41 }
 0x770   :  { %10606 = vset.pattern.permute.xlu1 %v11083_v53 }
 0x771   :  { %1990 = vperm.xlu1 %10606, %v1775_v43  }
 0x775   :  { %10608 = vset.pattern.permute.xlu1 %v11084_v57 }
 0x776   :  { %2054 = vperm.xlu1 %10608, %v1775_v43   ;;  %v11910_v43 = vrot.slane %v1850_v49, %v11603_v36 }
 0x77a   :  { %10609 = vset.pattern.permute.xlu1 %v11082_v40 }
 0x77b   :  { %1866 = vperm.xlu1 %10609, %v1780_v60  }
 0x77f   :  { %10610 = vset.pattern.permute.xlu1 %v11083_v53 }
 0x780   :  { %1994 = vperm.xlu1 %10610, %v1780_v60  }
 0x784   :  { %10611 = vset.pattern.permute.xlu1 %v11084_v57 }
 0x785   :  { %2058 = vperm.xlu1 %10611, %v1780_v60  }
 0x7dd   :  { %v1923_v37 = vpop.permute.xlu0 %1922 }
 0x7de   :  { %v1937_v58 = vadd.f32 %v1936_v39, %v1923_v37 }
 0x7e0   :  { %v1943_v48 = vmul.f32 0.2, %v1937_v58  ;;  %vm1940_vm8 = vcmp.gt.f32.partialorder %v1937_v58, 0.0 }
 0x7e1   :  { %v1927_v42 = vpop.permute.xlu1 %1926 }
 0x7e2   :  { %v1857_v32 = vpop.permute.xlu0 %1856  ;;  %v1946_v47 = vsel %vm1940_vm8, %v1937_v58, %v1943_v48  ;;  %v1938_v57 = vadd.f32 %v1936_v39, %v1927_v42 }
 0x7e3   :  { %v1873_v40 = vadd.f32 %v11889_v30, %v1857_v32  ;;  %v11894_v53 = vsel %vm400_vm2, %v1946_v47, -1e+30 }
 0x7e4   :  { %v1952_v38 = vsel %vm684_vm5, %v11894_v53, -inf  ;;  %v1944_v46 = vmul.f32 0.2, %v1938_v57  ;;  %vm1941_vm11 = vcmp.gt.f32.partialorder %v1938_v57, 0.0 }
 0x7e5   :  { %v1879_v51 = vmul.f32 0.2, %v1873_v40  ;;  %1953 = vmax.xlane.f32.xlu0 %v1952_v38  ;;  %vm1876_vm10 = vcmp.gt.f32.partialorder %v1873_v40, 0.0 }
 0x7e6   :  { %v1862_v29 = vpop.permute.xlu1 %1861  ;;  %v1947_v33 = vsel %vm1941_vm11, %v1938_v57, %v1944_v46 }
 0x7e7   :  { %v1987_v35 = vpop.permute.xlu0 %1986  ;;  %v1882_v54 = vsel %vm1876_vm10, %v1873_v40, %v1879_v51  ;;  %v1874_v15 = vadd.f32 %v11889_v30, %v1862_v29  ;;  %v11921_v49 = vsel %vm401_vm6, %v1947_v33, -1e+30 }
 0x7e8   :  { %v2001_v28 = vadd.f32 %v11899_v14, %v1987_v35  ;;  %v11905_v16 = vsel %vm400_vm2, %v1882_v54, -1e+30  ;;  %v1955_v51 = vsel %vm684_vm5, %v11921_v49, -inf }
 0x7e9   :  { %v1888_v10 = vsel %vm684_vm5, %v11905_v16, -inf  ;;  %v1880_v56 = vmul.f32 0.2, %v1874_v15  ;;  %vm1877_vm13 = vcmp.gt.f32.partialorder %v1874_v15, 0.0 }
 0x7ea   :  { %v2007_v55 = vmul.f32 0.2, %v2001_v28  ;;  %1889 = vmax.xlane.f32.xlu0 %v1888_v10  ;;  %vm2004_vm12 = vcmp.gt.f32.partialorder %v2001_v28, 0.0 }
 0x7eb   :  { %v1931_v59 = vpop.permute.xlu1 %1930  ;;  %v1883_v40 = vsel %vm1877_vm13, %v1874_v15, %v1880_v56 }
 0x7ec   :  { %v2051_v60 = vpop.permute.xlu0 %2050  ;;  %v2010_v52 = vsel %vm2004_vm12, %v2001_v28, %v2007_v55  ;;  %v1939_v37 = vadd.f32 %v1936_v39, %v1931_v59  ;;  %v11934_v46 = vsel %vm401_vm6, %v1883_v40, -1e+30  ;;  %vm10174_vm12 = vmpackc.low %vm1131_vm7, %vm1131_vm7 }
 0x7ed   :  { %v2065_v58 = vadd.f32 %v11910_v43, %v2051_v60  ;;  %v11915_v48 = vsel %vm400_vm2, %v2010_v52, -1e+30  ;;  %v1891_v59 = vsel %vm684_vm5, %v11934_v46, -inf }
 0x7ee   :  { %v2016_v42 = vsel %vm684_vm5, %v11915_v48, -inf  ;;  %v1945_v39 = vmul.f32 0.2, %v1939_v37  ;;  %vm1942_vm15 = vcmp.gt.f32.partialorder %v1939_v37, 0.0 }
 0x7ef   :  { %v2071_v32 = vmul.f32 0.2, %v2065_v58  ;;  %2017 = vmax.xlane.f32.xlu1 %v2016_v42  ;;  %vm2068_vm14 = vcmp.gt.f32.partialorder %v2065_v58, 0.0 }
 0x7f0   :  { %v1991_v47 = vpop.permute.xlu1 %1990  ;;  %v1948_v10 = vsel %vm1942_vm15, %v1939_v37, %v1945_v39 }
 0x7f1   :  { %v2002_v57 = vadd.f32 %v11899_v14, %v1991_v47  ;;  %v2074_v38 = vsel %vm2068_vm14, %v2065_v58, %v2071_v32  ;;  %v11947_v33 = vsel %vm402_vm9, %v1948_v10, -1e+30 }
 0x7f2   :  { %v11928_v29 = vsel %vm400_vm2, %v2074_v38, -1e+30  ;;  %v1958_v32 = vsel %vm684_vm5, %v11947_v33, -inf }
 0x7f3   :  { %v2008_v35 = vmul.f32 0.2, %v2002_v57  ;;  %1956 = vmax.xlane.f32.xlu1 %v1955_v51  ;;  %v2080_v54 = vsel %vm684_vm5, %v11928_v29, -inf  ;;  %vm2005_vm3 = vcmp.gt.f32.partialorder %v2002_v57, 0.0 }
 0x7f4   :  { %2081 = vmax.xlane.f32.xlu0 %v2080_v54 }
 0x7f5   :  { %v2055_v15 = vpop.permute.xlu1 %2054  ;;  %v2011_v28 = vsel %vm2005_vm3, %v2002_v57, %v2008_v35 }
 0x7f6   :  { %v2066_v55 = vadd.f32 %v11910_v43, %v2055_v15  ;;  %v11941_v56 = vsel %vm401_vm6, %v2011_v28, -1e+30 }
 0x7f7   :  { %1892 = vmax.xlane.f32.xlu1 %v1891_v59  ;;  %v2019_v60 = vsel %vm684_vm5, %v11941_v56, -inf }
 0x7f8   :  { %v2072_v52 = vmul.f32 0.2, %v2066_v55  ;;  %2020 = vmax.xlane.f32.xlu0 %v2019_v60  ;;  %vm2069_vm4 = vcmp.gt.f32.partialorder %v2066_v55, 0.0 }
 0x7fa   :  { %v1867_v37 = vpop.permute.xlu1 %1866  ;;  %v2075_v58 = vsel %vm2069_vm4, %v2066_v55, %v2072_v52 }
 0x7fb   :  { %v1875_v42 = vadd.f32 %v11889_v30, %v1867_v37  ;;  %v11954_v47 = vsel %vm401_vm6, %v2075_v58, -1e+30 }
 0x7fc   :  { %1959 = vmax.xlane.f32.xlu0 %v1958_v32  ;;  %v2083_v40 = vsel %vm684_vm5, %v11954_v47, -inf }
 0x7fd   :  { %v1881_v39 = vmul.f32 0.2, %v1875_v42  ;;  %2084 = vmax.xlane.f32.xlu1 %v2083_v40  ;;  %vm1878_vm8 = vcmp.gt.f32.partialorder %v1875_v42, 0.0 }
 0x7ff   :  { %v1995_v57 = vpop.permute.xlu1 %1994  ;;  %v1884_v38 = vsel %vm1878_vm8, %v1875_v42, %v1881_v39 }
 0x800   :  { %v2003_v51 = vadd.f32 %v11899_v14, %v1995_v57  ;;  %v11961_v30 = vsel %vm402_vm9, %v1884_v38, -1e+30 }
 0x801   :  { %v1894_v35 = vsel %vm684_vm5, %v11961_v30, -inf }
 0x802   :  { %v2009_v54 = vmul.f32 0.2, %v2003_v51  ;;  %1895 = vmax.xlane.f32.xlu0 %v1894_v35  ;;  %vm2006_vm10 = vcmp.gt.f32.partialorder %v2003_v51, 0.0 }
 0x804   :  { %v2012_v15 = vsel %vm2006_vm10, %v2003_v51, %v2009_v54  ;;  %v2059_v14 = vpop.permute.xlu1 %2058 }
 0x805   :  { %v11967_v28 = vsel %vm402_vm9, %v2012_v15, -1e+30  ;;  %v2067_v55 = vadd.f32 %v11910_v43, %v2059_v14 }
 0x806   :  { %v2022_v10 = vsel %vm684_vm5, %v11967_v28, -inf }
 0x807   :  { %2023 = vmax.xlane.f32.xlu1 %v2022_v10  ;;  %v2073_v59 = vmul.f32 0.2, %v2067_v55  ;;  %vm2070_vm11 = vcmp.gt.f32.partialorder %v2067_v55, 0.0 }
 0x809   :  { %v2076_v60 = vsel %vm2070_vm11, %v2067_v55, %v2073_v59 }
 0x80a   :  { %v11978_v52 = vsel %vm402_vm9, %v2076_v60, -1e+30 }
 0x80b   :  { %v2086_v37 = vsel %vm684_vm5, %v11978_v52, -inf }
 0x818   :  { %10613 = vrot.lane.b32.xlu1 %v11860_v8, %s11085_s27  ;;  %2233 = vrot.lane.b32.xlu0 %v11864_v50, %s11085_s27 }
 0x837   :  { %2087 = vmax.xlane.f32.xlu0 %v2086_v37 }
 0x872   :  { %v1954_v58 = vpop.xlane.xlu0 %1953 }
 0x873   :  { %v1961_v42 = vsub.f32 %v11894_v53, %v1954_v58 }
 0x875   :  { %v1964_v32 = vmul.f32 1.442695, %v1961_v42 }
 0x877   :  { %10675 = vpow2.f32 %v1964_v32  ;;  %v1890_v40 = vpop.xlane.xlu0 %1889 }
 0x878   :  { %v1897_v39 = vsub.f32 %v11905_v16, %v1890_v40 }
 0x87a   :  { %v1900_v43 = vmul.f32 1.442695, %v1897_v39 }
 0x87c   :  { %10677 = vpow2.f32 %v1900_v43  ;;  %v2018_v57 = vpop.xlane.xlu1 %2017 }
 0x87d   :  { %v2025_v38 = vsub.f32 %v11915_v48, %v2018_v57 }
 0x87f   :  { %v2028_v51 = vmul.f32 1.442695, %v2025_v38 }
 0x880   :  { %v1957_v35 = vpop.xlane.xlu1 %1956 }
 0x881   :  { %v11985_v54 = vpop.eup %10675  ;;  %10679 = vpow2.f32 %v2028_v51  ;;  %v1962_v15 = vsub.f32 %v11921_v49, %v1957_v35  ;;  %v2082_v10 = vpop.xlane.xlu0 %2081 }
 0x882   :  { %v2089_v53 = vsub.f32 %v11928_v29, %v2082_v10  ;;  %v1970_v14 = vsel %vm684_vm5, %v11985_v54, 0.0 }
 0x883   :  { %v1966_v55 = vmul.f32 1.442695, %v1962_v15  ;;  %1971 = vadd.xlane.f32.xlu1 %v1970_v14 }
 0x884   :  { %v2092_v16 = vmul.f32 1.442695, %v2089_v53  ;;  %v1893_v59 = vpop.xlane.xlu1 %1892 }
 0x885   :  { %10681 = vpow2.f32 %v1966_v55  ;;  %v1898_v48 = vsub.f32 %v11934_v46, %v1893_v59  ;;  %v2021_v60 = vpop.xlane.xlu0 %2020 }
 0x886   :  { %v11992_v37 = vpop.eup %10677  ;;  %10683 = vpow2.f32 %v2092_v16  ;;  %v2026_v58 = vsub.f32 %v11941_v56, %v2021_v60 }
 0x887   :  { %v1902_v49 = vmul.f32 1.442695, %v1898_v48  ;;  %v1906_v29 = vsel %vm684_vm5, %v11992_v37, 0.0 }
 0x888   :  { %v2030_v42 = vmul.f32 1.442695, %v2026_v58  ;;  %1907 = vadd.xlane.f32.xlu0 %v1906_v29 }
 0x889   :  { %10685 = vpow2.f32 %v1902_v49  ;;  %v1960_v32 = vpop.xlane.xlu0 %1959 }
 0x88a   :  { %v2085_v40 = vpop.xlane.xlu1 %2084  ;;  %v1963_v43 = vsub.f32 %v11947_v33, %v1960_v32  ;;  %10687 = vpow2.f32 %v2030_v42 }
 0x88b   :  { %v11997_v39 = vpop.eup %10679  ;;  %v2090_v46 = vsub.f32 %v11954_v47, %v2085_v40 }
 0x88c   :  { %v2034_v57 = vsel %vm684_vm5, %v11997_v39, 0.0  ;;  %v1968_v51 = vmul.f32 1.442695, %v1963_v43 }
 0x88d   :  { %v2094_v56 = vmul.f32 1.442695, %v2090_v46  ;;  %2035 = vadd.xlane.f32.xlu0 %v2034_v57 }
 0x88f   :  { %v12003_v38 = vpop.eup %10681  ;;  %v1896_v35 = vpop.xlane.xlu0 %1895  ;;  %10689 = vpow2.f32 %v2094_v56 }
 0x890   :  { %v12005_v15 = vpop.eup %10683  ;;  %v1899_v10 = vsub.f32 %v11961_v30, %v1896_v35  ;;  %v1973_v33 = vsel %vm684_vm5, %v12003_v38, 0.0  ;;  %10691 = vpow2.f32 %v1968_v51 }
 0x891   :  { %1974 = vadd.xlane.f32.xlu0 %v1973_v33  ;;  %v2098_v47 = vsel %vm684_vm5, %v12005_v15, 0.0 }
 0x892   :  { %v1904_v53 = vmul.f32 1.442695, %v1899_v10  ;;  %2099 = vadd.xlane.f32.xlu1 %v2098_v47 }
 0x893   :  { %v12012_v14 = vpop.eup %10685  ;;  %v2234_v46 = vpop.permute.xlu0 %2233 }
 0x894   :  { %10693 = vpow2.f32 %v1904_v53  ;;  %v2024_v55 = vpop.xlane.xlu1 %2023  ;;  %v1909_v16 = vsel %vm684_vm5, %v12012_v14, 0.0  ;;  %v12016_v59 = vpop.eup %10687 }
 0x895   :  { %v2037_v58 = vsel %vm684_vm5, %v12016_v59, 0.0  ;;  %v2027_v56 = vsub.f32 %v11967_v28, %v2024_v55  ;;  %v12052_v28 = vld [vmem:[#allocation20 + $0x1] ss:$0 sm:$0xff] }
 0x896   :  { %1910 = vadd.xlane.f32.xlu1 %v1909_v16 }
 0x897   :  { %v2032_v51 = vmul.f32 1.442695, %v2027_v56 }
 0x898   :  { %v10614_v30 = vpop.permute.xlu1 %10613 }
 0x899   :  { %v10616_v48 = vunpack.i.h.bf16 %v10614_v30  ;;  %v10615_v60 = vunpack.i.l.bf16 %v10614_v30  ;;  %v12020_v49 = vpop.eup %10689  ;;  %10695 = vpow2.f32 %v2032_v51 }
 0x89a   :  { %2038 = vadd.xlane.f32.xlu1 %v2037_v58  ;;  %v12022_v42 = vpop.eup %10691  ;;  %v2101_v32 = vsel %vm684_vm5, %v12020_v49, 0.0  ;;  %v2119_v58 = vld [vmem:[%s13271_s5 + $0x28] sm:$0xff] }
 0x89b   :  { %v10140_v29 = vpack.c.bf16 %v10616_v48, %v10615_v60  ;;  %v1976_v57 = vsel %vm684_vm5, %v12022_v42, 0.0 }
 0x89d   :  { %10141 = vmatpush3.bf16.msra.mxu1 %v10140_v29 }
 0x89e   :  { %v12026_v40 = vpop.eup %10693  ;;  %2102 = vadd.xlane.f32.xlu1 %v2101_v32  ;;  %9927 = vmatprep.subr.mxu1 %v11057_v1 }
 0x89f   :  { %v1912_v43 = vsel %vm684_vm5, %v12026_v40, 0.0 }
 0x8a0   :  { %1913 = vadd.xlane.f32.xlu0 %v1912_v43 }
 0x8a1   :  { %9928 = vmatpush3.msra.mxu1 %v2234_v46 }
 0x8a2   :  { %1977 = vadd.xlane.f32.xlu1 %v1976_v57  ;;  %10154 = vmatprep.subr.bf16.mxu1 %v11055_v0 }
 0x8a3   :  { %v12040_v47 = vpop.eup %10695 }
 0x8a4   :  { %v2040_v16 = vsel %vm684_vm5, %v12040_v47, 0.0 }
 0x8b3   :  { %2516 = vrot.lane.b32.xlu1 %v11864_v50, %s11054_s28 }
 0x8b6   :  { %10618 = vrot.lane.b32.xlu0 %v11860_v8, %s11054_s28 }
 0x8c4   :  { %v2088_v35 = vpop.xlane.xlu0 %2087 }
 0x8c5   :  { %v2091_v10 = vsub.f32 %v11978_v52, %v2088_v35 }
 0x8c7   :  { %v2096_v33 = vmul.f32 1.442695, %v2091_v10 }
 0x8c9   :  { %10697 = vpow2.f32 %v2096_v33 }
 0x8d3   :  { %v12042_v53 = vpop.eup %10697 }
 0x8d4   :  { %v2104_v30 = vsel %vm684_vm5, %v12042_v53, 0.0 }
 0x8d5   :  { %2041 = vadd.xlane.f32.xlu0 %v2040_v16 }
 0x8d7   :  { %2105 = vadd.xlane.f32.xlu1 %v2104_v30 }
 0x8e8   :  { %2712 = vrot.lane.b32.xlu1 %v11864_v50, %s11086_s20 }
 0x8eb   :  { %10623 = vrot.lane.b32.xlu0 %v11860_v8, %s11086_s20  ;;  %v2118_v8 = vld [vmem:[%s13271_s5 + $0x20] sm:$0xff] }
 0x8ec   :  { %2521 = vrot.lane.b32.xlu1 %v12052_v28, %s11054_s28  ;;  %v10143_v46 = vpack.c.bf16 %v2119_v58, %v2118_v8 }
 0x8ef   :  { %2239 = vrot.lane.b32.xlu0 %v12052_v28, %s11085_s27 }
 0x8f3   :  { %2717 = vrot.lane.b32.xlu0 %v12052_v28, %s11086_s20 }
 0x910   :  { %v1972_v52 = vpop.xlane.xlu1 %1971 }
 0x911   :  { %10699 = vrcp.f32 %v1972_v52 }
 0x915   :  { %v1908_v55 = vpop.xlane.xlu0 %1907 }
 0x916   :  { %10701 = vrcp.f32 %v1908_v55 }
 0x91a   :  { %v2036_v48 = vpop.xlane.xlu0 %2035 }
 0x91b   :  { %v10700_v50 = vpop.eup %10699 }
 0x91c   :  { %v1982_v60 = vmul.f32 %v10700_v50, %v11985_v54 }
 0x91e   :  { %9930 = vmatmul.mubr.msk.f32.vlgmr.msra.gmra.mrb[20].mxu1 %vm684_vm5, %v1982_v60  ;;  %v1975_v29 = vpop.xlane.xlu0 %1974 }
 0x91f   :  { %10703 = vrcp.f32 %v1975_v29  ;;  %v2100_v32 = vpop.xlane.xlu1 %2099  ;;  %9932 = vmatprep.mubr.msk.f32.mxu1 %vm11056_vm0, %v11057_v1 }
 0x920   :  { %v10702_v43 = vpop.eup %10701 }
 0x921   :  { %v1918_v54 = vmul.f32 %v10702_v43, %v11992_v37 }
 0x923   :  { %v1911_v57 = vpop.xlane.xlu1 %1910  ;;  %9915 = vmatmul.mubr.msk.f32.vlgmr.msra.gmra.mrb[32].mxu0 %vm684_vm5, %v1918_v54 }
 0x924   :  { %10705 = vrcp.f32 %v1911_v57  ;;  %9917 = vmatprep.mubr.msk.f32.mxu0 %vm11056_vm0, %v11057_v1  ;;  %10144 = vmatpush3.bf16.msra.mxu0 %v10143_v46 }
 0x925   :  { %10145 = vmatprep.subr.bf16.mxu0 %v11055_v0 }
 0x927   :  { %v2039_v56 = vpop.xlane.xlu1 %2038 }
 0x929   :  { %v10704_v51 = vpop.eup %10703 }
 0x92a   :  { %v1983_v35 = vmul.f32 %v10704_v51, %v12003_v38 }
 0x92b   :  { %v2103_v10 = vpop.xlane.xlu1 %2102 }
 0x92c   :  { %9933 = vmatmul.mubr.msk.f32.gmra.mrb[22].mxu1 %vm684_vm5, %v1983_v35 }
 0x92d   :  { %v1914_v33 = vpop.xlane.xlu0 %1913  ;;  %9935 = vmatprep.mubr.msk.f32.mxu1 %vm11056_vm0, %v11057_v1 }
 0x92e   :  { %v10706_v37 = vpop.eup %10705  ;;  %10707 = vrcp.f32 %v1914_v33 }
 0x92f   :  { %v1978_v16 = vpop.xlane.xlu1 %1977  ;;  %v1919_v30 = vmul.f32 %v10706_v37, %v12012_v14 }
 0x930   :  { %10709 = vrcp.f32 %v1978_v16 }
 0x931   :  { %9918 = vmatmul.mubr.msk.f32.gmra.mrb[34].mxu0 %vm684_vm5, %v1919_v30  ;;  %v10619_v52 = vpop.permute.xlu0 %10618  ;;  %10711 = vrcp.f32 %v2036_v48 }
 0x932   :  { %v10621_v55 = vunpack.i.h.bf16 %v10619_v52  ;;  %v10620_v50 = vunpack.i.l.bf16 %v10619_v52  ;;  %9920 = vmatprep.mubr.msk.f32.mxu0 %vm11056_vm0, %v11057_v1  ;;  %10713 = vrcp.f32 %v2039_v56 }
 0x933   :  { %v2517_v8 = vpop.permute.xlu1 %2516 }
 0x934   :  { %v10155_v38 = vpack.c.bf16 %v10621_v55, %v10620_v50 }
 0x936   :  { %10156 = vmatpush3.bf16.msra.mxu1 %v10155_v38  ;;  %v2114_v38 = vld [vmem:[%s13271_s5] sm:$0xff] }
 0x937   :  { %9976 = vmatprep.subr.mxu1 %v11057_v1 }
 0x938   :  { %v10708_v60 = vpop.eup %10707 }
 0x939   :  { %v1920_v58 = vmul.f32 %v10708_v60, %v12026_v40 }
 0x93a   :  { %v10710_v14 = vpop.eup %10709  ;;  %9977 = vmatpush3.msra.mxu1 %v2517_v8 }
 0x93b   :  { %9921 = vmatmul.mubr.msk.f32.gmra.mrb[36].mxu0 %vm684_vm5, %v1920_v58  ;;  %v1984_v48 = vmul.f32 %v10710_v14, %v12022_v42  ;;  %10163 = vmatprep.subr.bf16.mxu1 %v11055_v0  ;;  %v10712_v29 = vpop.eup %10711 }
 0x93c   :  { %9946 = vmatprep.mubr.msk.f32.mxu0 %vm11056_vm0, %v11057_v1  ;;  %v2046_v43 = vmul.f32 %v10712_v29, %v11997_v39  ;;  %v10714_v40 = vpop.eup %10713  ;;  %v2117_v29 = vld [vmem:[%s13271_s5 + $0x18] sm:$0xff] }
 0x93d   :  { %9936 = vmatmul.mubr.msk.f32.gmra.mrb[24].mxu1 %vm684_vm5, %v1984_v48  ;;  %v2047_v42 = vmul.f32 %v10714_v40, %v12016_v59 }
 0x93e   :  { %9978 = vmatprep.mubr.msk.f32.mxu1 %vm11056_vm0, %v11057_v1 }
 0x941   :  { %9979 = vmatmul.mubr.msk.f32.vlgmr.msra.gmra.mrb[26].mxu1 %vm684_vm5, %v2046_v43 }
 0x942   :  { %9981 = vmatprep.mubr.msk.f32.mxu1 %vm11056_vm0, %v11057_v1 }
 0x945   :  { %9982 = vmatmul.mubr.msk.f32.gmra.mrb[28].mxu1 %vm684_vm5, %v2047_v42 }
 0x946   :  { %9984 = vmatprep.mubr.msk.f32.mxu1 %vm11056_vm0, %v11057_v1 }
 0x962   :  { %v2042_v46 = vpop.xlane.xlu0 %2041 }
 0x963   :  { %10715 = vrcp.f32 %v2042_v46 }
 0x964   :  { %10717 = vrcp.f32 %v2100_v32  ;;  %v2106_v39 = vpop.xlane.xlu1 %2105  ;;  %v2120_v32 = vld [vmem:[%s13271_s5 + $0x30] sm:$0xff] }
 0x965   :  { %10719 = vrcp.f32 %v2103_v10  ;;  %v2121_v10 = vld [vmem:[%s13271_s5 + $0x38] sm:$0xff] }
 0x966   :  { %v10624_v54 = vpop.permute.xlu0 %10623  ;;  %10721 = vrcp.f32 %v2106_v39 }
 0x967   :  { %v10626_v57 = vunpack.i.h.bf16 %v10624_v54  ;;  %v10625_v56 = vunpack.i.l.bf16 %v10624_v54 }
 0x968   :  { %v2713_v59 = vpop.permute.xlu1 %2712 }
 0x969   :  { %v10164_v51 = vpack.c.bf16 %v10626_v57, %v10625_v56 }
 0x96a   :  { %v2240_v50 = vpop.permute.xlu0 %2239 }
 0x96b   :  { %10165 = vmatpush3.bf16.msra.mxu1 %v10164_v51 }
 0x96c   :  { %10008 = vmatprep.subr.mxu1 %v11057_v1 }
 0x96d   :  { %v10716_v35 = vpop.eup %10715 }
 0x96e   :  { %v2048_v33 = vmul.f32 %v10716_v35, %v12040_v47  ;;  %v10718_v37 = vpop.eup %10717  ;;  %v10146_v47 = vpack.c.bf16 %v2121_v10, %v2120_v32 }
 0x96f   :  { %10009 = vmatpush3.msra.mxu1 %v2713_v59  ;;  %v2110_v16 = vmul.f32 %v10718_v37, %v12005_v15  ;;  %v10720_v30 = vpop.eup %10719 }
 0x970   :  { %9985 = vmatmul.mubr.msk.f32.gmra.mrb[30].mxu1 %vm684_vm5, %v2048_v33  ;;  %10172 = vmatprep.subr.bf16.mxu1 %v11055_v0  ;;  %v2111_v52 = vmul.f32 %v10720_v30, %v12020_v49  ;;  %v10722_v55 = vpop.eup %10721  ;;  %v2115_v49 = vld [vmem:[%s13271_s5 + $0x8] sm:$0xff] }
 0x971   :  { %10010 = vmatprep.mubr.msk.f32.mxu1 %vm11056_vm0, %v11057_v1  ;;  %10147 = vmatpush3.bf16.msra.mxu0 %v10146_v47  ;;  %v2112_v15 = vmul.f32 %v10722_v55, %v12042_v53  ;;  %v10149_v14 = vpack.c.bf16 %v2115_v49, %v2114_v38  ;;  %v2116_v53 = vld [vmem:[%s13271_s5 + $0x10] sm:$0xff]  ;;  %v2122_v47 = vld [vmem:[%s13271_s5 + $0x40] sm:$0xff]  ;;  %v2123_v30 = vld [vmem:[%s13271_s5 + $0x48] sm:$0xff] }
 0x972   :  { %10148 = vmatprep.subr.bf16.mxu0 %v11055_v0  ;;  %v10152_v42 = vpack.c.bf16 %v2117_v29, %v2116_v53  ;;  %v2124_v49 = vld [vmem:[%s13271_s5 + $0x50] sm:$0xff]  ;;  %v2522_v29 = vpop.permute.xlu1 %2521 }
 0x974   :  { %10011 = vmatmul.mubr.msk.f32.vlgmr.msra.gmra.mrb[32].mxu1 %vm684_vm5, %v2110_v16 }
 0x975   :  { %10013 = vmatprep.mubr.msk.f32.mxu1 %vm11056_vm0, %v11057_v1 }
 0x978   :  { %10014 = vmatmul.mubr.msk.f32.gmra.mrb[34].mxu1 %vm684_vm5, %v2111_v52 }
 0x979   :  { %10016 = vmatprep.mubr.msk.f32.mxu1 %vm11056_vm0, %v11057_v1 }
 0x97c   :  { %10017 = vmatmul.mubr.msk.f32.gmra.mrb[36].mxu1 %vm684_vm5, %v2112_v15  ;;  %v10158_v15 = vpack.c.bf16 %v2123_v30, %v2122_v47 }
 0x97d   :  { %10042 = vmatprep.mubr.msk.f32.mxu1 %vm11056_vm0, %v11057_v1 }
 0x9f1   :  { %v2317_v60 = vpop.f32.mrb[20].mxu1 }
 0x9f2   :  { %v2318_v8 = vadd.f32 %v2317_v60, %v2240_v50  ;;  %v9931_v58 = vpop.f32.mrb[21].mxu1  ;;  %v2125_v60 = vld [vmem:[%s13271_s5 + $0x58] sm:$0xff] }
 0x9f4   :  { %v2331_v48 = vmax.f32 %v2318_v8, 0.0 }
 0x9f6   :  { %v2209_v43 = vpop.f32.mrb[32].mxu0  ;;  %9947 = vmatmul.mubr.msk.f32.vlgmr.msra.gmra.mrb[38].mxu0 %vm1131_vm7, %v2331_v48 }
 0x9f7   :  { %v9916_v40 = vpop.f32.mrb[33].mxu0  ;;  %9949 = vmatprep.mubr.msk.f32.mxu0 %vm11056_vm0, %v11057_v1  ;;  %10150 = vmatpush3.bf16.msra.mxu0 %v10149_v14  ;;  %v2210_v10 = vadd.f32 %v12052_v28, %v2209_v43  ;;  %v10161_v14 = vpack.c.bf16 %v2125_v60, %v2124_v49 }
 0x9f8   :  { %10151 = vmatprep.subr.bf16.mxu0 %v11055_v0 }
 0x9fb   :  { %10153 = vmatpush3.bf16.msra.mxu0 %v10152_v42  ;;  %v2126_v42 = vld [vmem:[%s13271_s5 + $0x60] sm:$0xff] }
 0x9fc   :  { %10157 = vmatprep.subr.bf16.mxu0 %v11055_v0 }
 0x9ff   :  { %v2322_v46 = vpop.f32.mrb[22].mxu1 }
 0xa00   :  { %v2323_v54 = vadd.f32 %v2322_v46, %v2240_v50  ;;  %v9934_v57 = vpop.f32.mrb[23].mxu1 }
 0xa02   :  { %v2332_v56 = vmax.f32 %v2323_v54, 0.0 }
 0xa04   :  { %v2214_v39 = vpop.f32.mrb[34].mxu0  ;;  %9950 = vmatmul.mubr.msk.f32.gmra.mrb[40].mxu0 %vm1131_vm7, %v2332_v56  ;;  %v2128_v56 = vld [vmem:[%s13271_s5 + $0x70] sm:$0xff] }
 0xa05   :  { %v9919_v51 = vpop.f32.mrb[35].mxu0  ;;  %9952 = vmatprep.mubr.msk.f32.mxu0 %vm11056_vm0, %v11057_v1  ;;  %v2215_v38 = vadd.f32 %v12052_v28, %v2214_v39  ;;  %v2129_v39 = vld [vmem:[%s13271_s5 + $0x78] sm:$0xff] }
 0xa06   :  { %v10170_v51 = vpack.c.bf16 %v2129_v39, %v2128_v56 }
 0xa07   :  { %v2224_v48 = vmax.f32 %v2215_v38, 0.0 }
 0xa0e   :  { %v2219_v35 = vpop.f32.mrb[36].mxu0 }
 0xa0f   :  { %v9922_v59 = vpop.f32.mrb[37].mxu0  ;;  %v2220_v53 = vadd.f32 %v12052_v28, %v2219_v35  ;;  %v2127_v28 = vld [vmem:[%s13271_s5 + $0x68] sm:$0xff] }
 0xa10   :  { %v2327_v33 = vpop.f32.mrb[24].mxu1  ;;  %v10167_v46 = vpack.c.bf16 %v2127_v28, %v2126_v42 }
 0xa11   :  { %v2328_v37 = vadd.f32 %v2327_v33, %v2240_v50  ;;  %v9937_v32 = vpop.f32.mrb[25].mxu1  ;;  %v2223_v50 = vmax.f32 %v2210_v10, 0.0  ;;  %v2225_v43 = vmax.f32 %v2220_v53, 0.0 }
 0xa12   :  { %v2718_v32 = vpop.permute.xlu0 %2717 }
 0xa13   :  { %v2333_v16 = vmax.f32 %v2328_v37, 0.0 }
 0xa14   :  { %v2599_v52 = vpop.f32.mrb[26].mxu1 }
 0xa15   :  { %9953 = vmatmul.mubr.msk.f32.gmra.mrb[42].mxu0 %vm1131_vm7, %v2333_v16  ;;  %v9980_v55 = vpop.f32.mrb[27].mxu1  ;;  %v2600_v40 = vadd.f32 %v2599_v52, %v2522_v29 }
 0xa16   :  { %9963 = vmatprep.mubr.msk.f32.mxu0 %vm11056_vm0, %v11057_v1 }
 0xa17   :  { %v2613_v54 = vmax.f32 %v2600_v40, 0.0 }
 0xa18   :  { %v2604_v8 = vpop.f32.mrb[28].mxu1 }
 0xa19   :  { %9964 = vmatmul.mubr.msk.f32.vlgmr.msra.gmra.mrb[38].mxu0 %vm1131_vm7, %v2223_v50  ;;  %v9983_v58 = vpop.f32.mrb[29].mxu1  ;;  %v2605_v57 = vadd.f32 %v2604_v8, %v2522_v29 }
 0xa1a   :  { %9966 = vmatprep.mubr.msk.f32.mxu0 %vm11056_vm0, %v11057_v1  ;;  %10159 = vmatpush3.bf16.msra.mxu0 %v10158_v15 }
 0xa1b   :  { %10160 = vmatprep.subr.bf16.mxu0 %v11055_v0  ;;  %v2614_v35 = vmax.f32 %v2605_v57, 0.0 }
 0xa1d   :  { %9967 = vmatmul.mubr.msk.f32.gmra.mrb[40].mxu0 %vm1131_vm7, %v2224_v48 }
 0xa1e   :  { %9969 = vmatprep.mubr.msk.f32.mxu0 %vm11056_vm0, %v11057_v1  ;;  %10162 = vmatpush3.bf16.msra.mxu0 %v10161_v14  ;;  %v9448_v14 = vld [vmem:[#allocation20 + $0x18] ss:$0 sm:$0xff] }
 0xa1f   :  { %10166 = vmatprep.subr.bf16.mxu0 %v11055_v0 }
 0xa21   :  { %9970 = vmatmul.mubr.msk.f32.gmra.mrb[42].mxu0 %vm1131_vm7, %v2225_v43 }
 0xa22   :  { %9995 = vmatprep.mubr.msk.f32.mxu0 %vm11056_vm0, %v11057_v1 }
 0xa25   :  { %9996 = vmatmul.mubr.msk.f32.vlgmr.msra.gmra.mrb[38].mxu0 %vm1131_vm7, %v2613_v54 }
 0xa26   :  { %9998 = vmatprep.mubr.msk.f32.mxu0 %vm11056_vm0, %v11057_v1  ;;  %10168 = vmatpush3.bf16.msra.mxu0 %v10167_v46 }
 0xa27   :  { %10169 = vmatprep.subr.bf16.mxu0 %v11055_v0 }
 0xa29   :  { %9999 = vmatmul.mubr.msk.f32.gmra.mrb[40].mxu0 %vm1131_vm7, %v2614_v35  ;;  %v2904_v35 = vld [vmem:[#allocation20 + $0x17] sm:$0x1] }
 0xa2a   :  { %10001 = vmatprep.mubr.msk.f32.mxu0 %vm11056_vm0, %v11057_v1  ;;  %10171 = vmatpush3.bf16.msra.mxu0 %v10170_v51 }
 0xa2b   :  { %10182 = vmatprep.subr.bf16.mxu0 %v11055_v0 }
 0xa43   :  { %v2609_v59 = vpop.f32.mrb[30].mxu1 }
 0xa44   :  { %v2610_v33 = vadd.f32 %v2609_v59, %v2522_v29  ;;  %v9986_v37 = vpop.f32.mrb[31].mxu1 }
 0xa46   :  { %v2615_v10 = vmax.f32 %v2610_v33, 0.0 }
 0xa47   :  { %v2795_v16 = vpop.f32.mrb[32].mxu1 }
 0xa48   :  { %v2796_v47 = vadd.f32 %v2795_v16, %v2718_v32  ;;  %10002 = vmatmul.mubr.msk.f32.gmra.mrb[42].mxu0 %vm1131_vm7, %v2615_v10  ;;  %v10012_v30 = vpop.f32.mrb[33].mxu1 }
 0xa49   :  { %10027 = vmatprep.mubr.msk.f32.mxu0 %vm11056_vm0, %v11057_v1 }
 0xa4a   :  { %v2809_v52 = vmax.f32 %v2796_v47, 0.0 }
 0xa4b   :  { %v2800_v55 = vpop.f32.mrb[34].mxu1 }
 0xa4c   :  { %v2801_v15 = vadd.f32 %v2800_v55, %v2718_v32  ;;  %v10015_v50 = vpop.f32.mrb[35].mxu1  ;;  %10028 = vmatmul.mubr.msk.f32.vlgmr.msra.gmra.mrb[38].mxu0 %vm1131_vm7, %v2809_v52 }
 0xa4d   :  { %10030 = vmatprep.mubr.msk.f32.mxu0 %vm11056_vm0, %v11057_v1 }
 0xa4e   :  { %v2810_v38 = vmax.f32 %v2801_v15, 0.0 }
 0xa4f   :  { %v2805_v49 = vpop.f32.mrb[36].mxu1 }
 0xa50   :  { %v2806_v60 = vadd.f32 %v2805_v49, %v2718_v32  ;;  %v10018_v8 = vpop.f32.mrb[37].mxu1  ;;  %10031 = vmatmul.mubr.msk.f32.gmra.mrb[40].mxu0 %vm1131_vm7, %v2810_v38 }
 0xa51   :  { %10033 = vmatprep.mubr.msk.f32.mxu0 %vm11056_vm0, %v11057_v1 }
 0xa52   :  { %v2811_v58 = vmax.f32 %v2806_v60, 0.0 }
 0xa54   :  { %10034 = vmatmul.mubr.msk.f32.gmra.mrb[42].mxu0 %vm1131_vm7, %v2811_v58 }
 0xa55   :  { %10077 = vmatprep.mubr.msk.f32.mxu0 %vm11056_vm0, %v11057_v1 }
 0xb1f   :  { %v2887_v48 = vpop.f32.mrb[38].mxu0 }
 0xb20   :  { %v2910_v53 = vmul.f32 %v9448_v14, %v2887_v48  ;;  %v10029_v29 = vpop.f32.mrb[39].mxu0 }
 0xb22   :  { %v2913_v43 = vsel %vm1131_vm7, %v2910_v53, 0.0 }
 0xb23   :  { %2914 = vadd.xlane.f32.xlu1 %v2913_v43  ;;  %v2892_v40 = vpop.f32.mrb[40].mxu0 }
 0xb24   :  { %v2911_v42 = vmul.f32 %v9448_v14, %v2892_v40  ;;  %v10173_v28 = vpack.c.bf16 %v2892_v40, %v2887_v48  ;;  %v10032_v46 = vpop.f32.mrb[41].mxu0 }
 0xb26   :  { %10175 = vmatpush3.bf16.xpose.msk.msra.mxu1 %vm10174_vm12, %v10173_v28  ;;  %v2916_v54 = vsel %vm1131_vm7, %v2911_v42, 0.0 }
 0xb27   :  { %2917 = vadd.xlane.f32.xlu0 %v2916_v54  ;;  %v2897_v57 = vpop.f32.mrb[42].mxu0  ;;  %10040 = vmatprep.subr.mxu1 %v11057_v1 }
 0xb28   :  { %v10035_v56 = vpop.f32.mrb[43].mxu0  ;;  %v2912_v39 = vmul.f32 %v9448_v14, %v2897_v57 }
 0xb2a   :  { %v2919_v51 = vsel %vm1131_vm7, %v2912_v39, 0.0 }
 0xb2b   :  { %2920 = vadd.xlane.f32.xlu0 %v2919_v51 }
 0xb2e   :  { %10041 = vmatpush3.xpose.msk.msra.mxu1 %vm1131_vm7, %v2897_v57 }
 0xb2f   :  { %10176 = vmatprep.subr.bf16.mxu1 %v11055_v0 }
 0xb31   :  { %10043 = vmatmul.mubr.msk.f32.vlgmr.msra.gmra.mrb[38].mxu1 %vm1131_vm7, %v2904_v35 }
 0xb32   :  { %10178 = vmatpush3.bf16.msra.mxu1 %v10173_v28  ;;  %10051 = vmatprep.mubr.msk.f32.mxu1 %vm11056_vm0, %v11057_v1 }
 0xb33   :  { %10049 = vmatprep.subr.mxu1 %v11057_v1 }
 0xb36   :  { %10050 = vmatpush3.msra.mxu1 %v2897_v57 }
 0xb37   :  { %10179 = vmatprep.subr.bf16.mxu1 %v11055_v0 }
 0xbb0   :  { %v2915_v10 = vpop.xlane.xlu1 %2914 }
 0xbb4   :  { %v2918_v59 = vpop.xlane.xlu0 %2917 }
 0xbb8   :  { %v2921_v16 = vpop.xlane.xlu0 %2920 }
 0xc04   :  { %v3000_v33 = vpop.f32.mrb[38].mxu1 }
 0xc05   :  { %v3007_v37 = vrot.slane %v3000_v33, %v11570_v62  ;;  %v10044_v32 = vpop.f32.mrb[39].mxu1 }
 0xc07   :  { %v3008_v47 = vadd.f32 %v3007_v37, %v2915_v10  ;;  %v3009_v30 = vadd.f32 %v3007_v37, %v2918_v59  ;;  %v3010_v52 = vadd.f32 %v3007_v37, %v2921_v16 }
 0xc09   :  { %vm3011_vm13 = vcmp.gt.f32.partialorder %v3008_v47, 0.0  ;;  %v3014_v55 = vmul.f32 0.2, %v3008_v47  ;;  %vm3012_vm14 = vcmp.gt.f32.partialorder %v3009_v30, 0.0  ;;  %v3015_v15 = vmul.f32 0.2, %v3009_v30 }
 0xc0a   :  { %vm3013_vm15 = vcmp.gt.f32.partialorder %v3010_v52, 0.0  ;;  %v3016_v50 = vmul.f32 0.2, %v3010_v52 }
 0xc0b   :  { %v3017_v38 = vsel %vm3011_vm13, %v3008_v47, %v3014_v55  ;;  %v3018_v49 = vsel %vm3012_vm14, %v3009_v30, %v3015_v15  ;;  %v3224_v15 = vld [vmem:[#allocation17] sm:$0xff] }
 0xc0c   :  { %v3020_v60 = vsel %vm400_vm2, %v3017_v38, -1e+30  ;;  %v3021_v8 = vsel %vm401_vm6, %v3018_v49, -1e+30  ;;  %v3019_v58 = vsel %vm3013_vm15, %v3010_v52, %v3016_v50  ;;  %v3225_v50 = vld [vmem:[#allocation17 + $0x8] sm:$0xff]  ;;  %v3226_v38 = vld [vmem:[#allocation17 + $0x10] sm:$0xff] }
 0xc0d   :  { %v3023_v14 = vsel %vm684_vm5, %v3020_v60, -inf  ;;  %v3026_v48 = vsel %vm684_vm5, %v3021_v8, -inf  ;;  %v3022_v53 = vsel %vm402_vm9, %v3019_v58, -1e+30  ;;  %v10183_v49 = vpack.c.bf16 %v3225_v50, %v3224_v15 }
 0xc0e   :  { %3024 = vmax.xlane.f32.xlu1 %v3023_v14  ;;  %3027 = vmax.xlane.f32.xlu0 %v3026_v48  ;;  %v3029_v29 = vsel %vm684_vm5, %v3022_v53, -inf  ;;  %v9453_v48 = vld [vmem:[#allocation20 + $0x2] ss:$0 sm:$0xff] }
 0xc0f   :  { %10184 = vmatpush3.bf16.msra.mxu0 %v10183_v49 }
 0xc10   :  { %10185 = vmatprep.subr.bf16.mxu0 %v11055_v0 }
 0xc12   :  { %3030 = vmax.xlane.f32.xlu1 %v3029_v29 }
 0xc9b   :  { %v3025_v43 = vpop.xlane.xlu1 %3024  ;;  %v3028_v40 = vpop.xlane.xlu0 %3027 }
 0xc9c   :  { %v3032_v34 = vsub.f32 %v3020_v60, %v3025_v43  ;;  %v3033_v42 = vsub.f32 %v3021_v8, %v3028_v40  ;;  %v3227_v60 = vld [vmem:[#allocation17 + $0x18] sm:$0xff] }
 0xc9d   :  { %v10186_v8 = vpack.c.bf16 %v3227_v60, %v3226_v38 }
 0xc9e   :  { %v3035_v28 = vmul.f32 1.442695, %v3032_v34  ;;  %v3037_v45 = vmul.f32 1.442695, %v3033_v42 }
 0xc9f   :  { %v3031_v46 = vpop.xlane.xlu1 %3030  ;;  %10187 = vmatpush3.bf16.msra.mxu0 %v10186_v8 }
 0xca0   :  { %10723 = vpow2.f32 %v3035_v28  ;;  %v3034_v54 = vsub.f32 %v3022_v53, %v3031_v46  ;;  %v3150_v46 = vld [vmem:[#allocation12] sm:$0x3] }
 0xca1   :  { %10725 = vpow2.f32 %v3037_v45 }
 0xca2   :  { %v3039_v57 = vmul.f32 1.442695, %v3034_v54  ;;  %v3307_v54 = vld [vmem:[#allocation18] sm:$0xff] }
 0xca4   :  { %10727 = vpow2.f32 %v3039_v57  ;;  %v3308_v57 = vld [vmem:[#allocation18 + $0x8] sm:$0xff] }
 0xcaa   :  { %v10724_v56 = vpop.eup %10723 }
 0xcab   :  { %v10726_v39 = vpop.eup %10725  ;;  %v3041_v44 = vsel %vm684_vm5, %v10724_v56, 0.0 }
 0xcac   :  { %3042 = vadd.xlane.f32.xlu0 %v3041_v44  ;;  %v3044_v51 = vsel %vm684_vm5, %v10726_v39, 0.0 }
 0xcad   :  { %3045 = vadd.xlane.f32.xlu1 %v3044_v51  ;;  %v3309_v51 = vld [vmem:[#allocation18 + $0x10] sm:$0xff] }
 0xcae   :  { %v10728_v35 = vpop.eup %10727 }
 0xcaf   :  { %v3047_v59 = vsel %vm684_vm5, %v10728_v35, 0.0 }
 0xcb0   :  { %3048 = vadd.xlane.f32.xlu0 %v3047_v59 }
 0xd39   :  { %v3043_v33 = vpop.xlane.xlu0 %3042 }
 0xd3a   :  { %v3046_v37 = vpop.xlane.xlu1 %3045  ;;  %10729 = vrcp.f32 %v3043_v33  ;;  %v9458_v33 = vld [vmem:[#allocation20 + $0x3] ss:$0 sm:$0xff] }
 0xd3b   :  { %10731 = vrcp.f32 %v3046_v37 }
 0xd3d   :  { %v3049_v32 = vpop.xlane.xlu0 %3048 }
 0xd3e   :  { %10733 = vrcp.f32 %v3049_v32 }
 0xd44   :  { %v10730_v10 = vpop.eup %10729 }
 0xd45   :  { %v3053_v16 = vmul.f32 %v10730_v10, %v10724_v56  ;;  %v10732_v47 = vpop.eup %10731  ;;  %v10189_v56 = vpack.c.bf16 %v3308_v57, %v3307_v54 }
 0xd46   :  { %v3054_v30 = vmul.f32 %v10732_v47, %v10726_v39  ;;  %v9460_v47 = vld [vmem:[#allocation20 + $0x4] ss:$0 sm:$0xff] }
 0xd47   :  { %10052 = vmatmul.mubr.msk.f32.vlgmr.msra.gmra.mrb[40].mxu1 %vm684_vm5, %v3053_v16 }
 0xd48   :  { %10054 = vmatprep.mubr.msk.f32.mxu1 %vm11056_vm0, %v11057_v1  ;;  %v10734_v52 = vpop.eup %10733 }
 0xd49   :  { %v3055_v55 = vmul.f32 %v10734_v52, %v10728_v35  ;;  %v3310_v35 = vld [vmem:[#allocation18 + $0x18] sm:$0xff] }
 0xd4a   :  { %v10192_v59 = vpack.c.bf16 %v3310_v35, %v3309_v51 }
 0xd4b   :  { %10055 = vmatmul.mubr.msk.f32.gmra.mrb[42].mxu1 %vm684_vm5, %v3054_v30 }
 0xd4c   :  { %10057 = vmatprep.mubr.msk.f32.mxu1 %vm11056_vm0, %v11057_v1 }
 0xd4f   :  { %10058 = vmatmul.mubr.msk.f32.gmra.mrb[44].mxu1 %vm684_vm5, %v3055_v55 }
 0xd50   :  { %10066 = vmatprep.mubr.msk.f32.mxu1 %vm11056_vm0, %v11057_v1 }
 0xe1a   :  { %v3136_v58 = vpop.f32.mrb[40].mxu1 }
 0xe1b   :  { %v10053_v14 = vpop.f32.mrb[41].mxu1  ;;  %v3137_v29 = vadd.f32 %v9453_v48, %v3136_v58 }
 0xe1e   :  { %v3141_v53 = vpop.f32.mrb[42].mxu1 }
 0xe1f   :  { %v3142_v43 = vadd.f32 %v9453_v48, %v3141_v53  ;;  %v10056_v40 = vpop.f32.mrb[43].mxu1  ;;  %v9462_v53 = vld [vmem:[#allocation20 + $0x5] ss:$0 sm:$0xff] }
 0xe21   :  { %v10180_v34 = vpack.c.bf16 %v3142_v43, %v3137_v29  ;;  %v9463_v43 = vld [vmem:[#allocation20 + $0x6] ss:$0 sm:$0xff] }
 0xe22   :  { %v3146_v42 = vpop.f32.mrb[44].mxu1 }
 0xe23   :  { %v10059_v28 = vpop.f32.mrb[45].mxu1  ;;  %10181 = vmatpush3.bf16.msra.mxu1 %v10180_v34  ;;  %v3147_v45 = vadd.f32 %v9453_v48, %v3146_v42 }
 0xe24   :  { %10064 = vmatprep.subr.mxu1 %v11057_v1 }
 0xe27   :  { %10065 = vmatpush3.msra.mxu1 %v3147_v45 }
 0xe28   :  { %10067 = vmatmul.mubr.msk.f32.vlgmr.msra.gmra.mrb[46].mxu1 %vm684_vm5, %v3150_v46  ;;  %10188 = vmatprep.subr.bf16.mxu1 %v11055_v0 }
 0xe29   :  { %10088 = vmatprep.mubr.msk.f32.mxu1 %vm11056_vm0, %v11057_v1  ;;  %10190 = vmatpush3.bf16.msra.mxu1 %v10189_v56  ;;  %vm3391_vm0 = vcmask 254976  }
 0xe2a   :  { %10191 = vmatprep.subr.bf16.mxu1 %v11055_v0 }
 0xe2d   :  { %10193 = vmatpush3.bf16.msra.mxu1 %v10192_v59 }
 0xefb   :  { %v3220_v39 = vpop.f32.mrb[46].mxu1 }
 0xefc   :  { %10078 = vmatmul.mubr.msk.f32.vlgmr.msra.gmra.mrb[44].mxu0 %vm1131_vm7, %v3220_v39  ;;  %v10068_v44 = vpop.f32.mrb[47].mxu1 }
 0xfcf   :  { %v3302_v37 = vpop.f32.mrb[44].mxu0 }
 0xfd0   :  { %v3303_v32 = vadd.f32 %v9458_v33, %v3302_v37  ;;  %v10079_v10 = vpop.f32.mrb[45].mxu0 }
 0xfd2   :  { %v3306_v16 = vmax.f32 %v3303_v32, 0.0 }
 0xfd4   :  { %10089 = vmatmul.mubr.msk.f32.vlgmr.msra.gmra.mrb[48].mxu1 %vm1131_vm7, %v3306_v16 }
0x10a7   :  { %v3385_v30 = vpop.f32.mrb[48].mxu1 }
0x10a8   :  { %v3386_v52 = vadd.f32 %v9460_v47, %v3385_v30  ;;  %v10090_v0 = vpop.f32.mrb[49].mxu1 }
0x10aa   :  { %v3392_v55 = vsel %vm3391_vm0, %v3386_v52, 0.0 }
0x10ab   :  { %3393 = vadd.xlane.f32.xlu1 %v3392_v55 }
0x1138   :  { %v3394_v15 = vpop.xlane.xlu1 %3393 }
0x1139   :  { %v3396_v50 = vmul.f32 0.03125, %v3394_v15 }
0x113b   :  { %v3397_v38 = vsub.f32 %v3386_v52, %v3396_v50 }
0x113d   :  { %v3398_v49 = vmul.f32 %v3397_v38, %v3397_v38 }
0x113f   :  { %v3399_v60 = vsel %vm3391_vm0, %v3398_v49, 0.0 }
0x1140   :  { %3400 = vadd.xlane.f32.xlu0 %v3399_v60 }
0x11cd   :  { %v3401_v8 = vpop.xlane.xlu0 %3400 }
0x11ce   :  { %v3402_v58 = vmul.f32 0.03125, %v3401_v8 }
0x11d0   :  { %v3403_v14 = vadd.f32 1e-05, %v3402_v58 }
0x11d2   :  { %10735 = vrsqrt.f32 %v3403_v14 }
0x11dc   :  { %v10736_v48 = vpop.eup %10735 }
0x11dd   :  { %v3405_v29 = vmul.f32 %v10736_v48, %v3397_v38 }
0x11df   :  { %v3410_v40 = vmul.f32 %v9462_v53, %v3405_v29 }
0x11e1   :  { %v3415_v34 = vadd.f32 %v9463_v43, %v3410_v40 }
0x11e3   :  { %3416 = vst.msk [vmem:[#allocation26] sm:$0x3] %vm3391_vm0, %v3415_v34 }
0x11e4   :  { %11023 = dma.done.wait [#allocation8], 36864 }
0x11e5   :  { %11024 = vsyncadd [#allocation8], 4294930432  ;;  %v3752_v42 = vunpack.c.l.b16 %v3436_v9  ;;  %v3758_v28 = vunpack.c.l.b16 %v3442_v27  ;;  %vm3764_vm2 = vcmask 1041409   ;;  %v3452_v57 = vld [vmem:[#allocation2 + $0x8] sm:$0xff]  ;;  %v3451_v56 = vld [vmem:[#allocation2] sm:$0xff] }
0x11e6   :  { %v3458_v39 = vld [vmem:[#allocation2 + $0x38] sm:$0xff]  ;;  %3788 = vmatprep.subr.bf16.mxu0 %v3452_v57  ;;  %v3457_v9 = vld [vmem:[#allocation2 + $0x30] sm:$0xff]  ;;  %v3464_v44 = vld [vmem:[#allocation2 + $0x68] sm:$0xff] }
0x11e7   :  { %v3766_v45 = vrot.slane %v3758_v28, 7  ;;  %3789 = vmatpush1.bf16.msra.mxu0 %v3451_v56  ;;  %v3463_v27 = vld [vmem:[#allocation2 + $0x60] sm:$0xff]  ;;  %v3470_v51 = vld [vmem:[#allocation2 + $0x98] sm:$0xff]  ;;  %v3469_v59 = vld [vmem:[#allocation2 + $0x90] sm:$0xff] }
0x11e8   :  { %3790 = vmatprep.subr.bf16.mxu0 %v3458_v39  ;;  %v3454_v35 = vld [vmem:[#allocation2 + $0x18] sm:$0xff]  ;;  %v3453_v33 = vld [vmem:[#allocation2 + $0x10] sm:$0xff]  ;;  %v3476_v37 = vld [vmem:[#allocation2 + $0xc8] sm:$0xff] }
0x11e9   :  { %v3767_v46 = vsel %vm3764_vm2, %v3766_v45, %v3752_v42  ;;  %3911 = vmatprep.subr.bf16.mxu1 %v3454_v35  ;;  %v3460_v32 = vld [vmem:[#allocation2 + $0x48] sm:$0xff]  ;;  %v3459_v10 = vld [vmem:[#allocation2 + $0x40] sm:$0xff]  ;;  %v3466_v16 = vld [vmem:[#allocation2 + $0x78] sm:$0xff] }
0x11ea   :  { %v12261_v54 = vpack.c.b16 %v3767_v46, %v3767_v46  ;;  %3912 = vmatpush1.bf16.msra.mxu1 %v3453_v33  ;;  %v3475_v47 = vld [vmem:[#allocation2 + $0xc0] sm:$0xff]  ;;  %v3482_v30 = vld [vmem:[#allocation2 + $0xf8] sm:$0xff]  ;;  %v3465_v52 = vld [vmem:[#allocation2 + $0x70] sm:$0xff] }
0x11eb   :  { %3791 = vmatpush1.bf16.msra.mxu0 %v3457_v9  ;;  %3913 = vmatprep.subr.bf16.mxu1 %v3460_v32  ;;  %v3472_v0 = vld [vmem:[#allocation2 + $0xa8] sm:$0xff]  ;;  %v3481_v55 = vld [vmem:[#allocation2 + $0xf0] sm:$0xff]  ;;  %v3471_v50 = vld [vmem:[#allocation2 + $0xa0] sm:$0xff] }
0x11ec   :  { %3820 = vmatprep.mubr.bf16.mxu0 %v12261_v54  ;;  %3943 = vmatprep.mubr.bf16.mxu1 %v12261_v54  ;;  %v3488_v15 = vld [vmem:[#allocation2 + $0x128] sm:$0xff]  ;;  %v3478_v38 = vld [vmem:[#allocation2 + $0xd8] sm:$0xff]  ;;  %v3487_v49 = vld [vmem:[#allocation2 + $0x120] sm:$0xff] }
0x11ed   :  { %3792 = vmatprep.subr.bf16.mxu0 %v3464_v44  ;;  %v3494_v60 = vld [vmem:[#allocation2 + $0x158] sm:$0xff]  ;;  %v3477_v8 = vld [vmem:[#allocation2 + $0xd0] sm:$0xff]  ;;  %v3484_v58 = vld [vmem:[#allocation2 + $0x108] sm:$0xff] }
0x11ee   :  { %3914 = vmatpush1.bf16.msra.mxu1 %v3459_v10  ;;  %v3493_v14 = vld [vmem:[#allocation2 + $0x150] sm:$0xff]  ;;  %v3500_v48 = vld [vmem:[#allocation2 + $0x188] sm:$0xff]  ;;  %v3483_v53 = vld [vmem:[#allocation2 + $0x100] sm:$0xff]  ;;  %v3757_v10 = vunpack.c.l.b16 %v3441_v23 }
0x11ef   :  { %3793 = vmatpush1.bf16.msra.mxu0 %v3463_v27  ;;  %3915 = vmatprep.subr.bf16.mxu1 %v3466_v16  ;;  %v3490_v29 = vld [vmem:[#allocation2 + $0x138] sm:$0xff]  ;;  %v3499_v43 = vld [vmem:[#allocation2 + $0x180] sm:$0xff]  ;;  %v3489_v34 = vld [vmem:[#allocation2 + $0x130] sm:$0xff] }
0x11f0   :  { %3794 = vmatprep.subr.bf16.mxu0 %v3470_v51  ;;  %v3506_v40 = vld [vmem:[#allocation2 + $0x1b8] sm:$0xff]  ;;  %v3496_v42 = vld [vmem:[#allocation2 + $0x168] sm:$0xff]  ;;  %v3505_v28 = vld [vmem:[#allocation2 + $0x1b0] sm:$0xff] }
0x11f1   :  { %v3512_v45 = vld [vmem:[#allocation2 + $0x1e8] sm:$0xff]  ;;  %v3495_v46 = vld [vmem:[#allocation2 + $0x160] sm:$0xff]  ;;  %v3502_v57 = vld [vmem:[#allocation2 + $0x198] sm:$0xff] }
0x11f2   :  { %3916 = vmatpush1.bf16.msra.mxu1 %v3465_v52  ;;  %v3511_v56 = vld [vmem:[#allocation2 + $0x1e0] sm:$0xff]  ;;  %v3518_v39 = vld [vmem:[#allocation2 + $0x218] sm:$0xff]  ;;  %v3501_v9 = vld [vmem:[#allocation2 + $0x190] sm:$0xff] }
0x11f3   :  { %3795 = vmatpush1.bf16.msra.mxu0 %v3469_v59  ;;  %3917 = vmatprep.subr.bf16.mxu1 %v3472_v0  ;;  %v3508_v44 = vld [vmem:[#allocation2 + $0x1c8] sm:$0xff]  ;;  %v3517_v27 = vld [vmem:[#allocation2 + $0x210] sm:$0xff]  ;;  %v3507_v35 = vld [vmem:[#allocation2 + $0x1c0] sm:$0xff] }
0x11f4   :  { %3796 = vmatprep.subr.bf16.mxu0 %v3476_v37  ;;  %v3524_v51 = vld [vmem:[#allocation2 + $0x248] sm:$0xff]  ;;  %v3514_v59 = vld [vmem:[#allocation2 + $0x1f8] sm:$0xff]  ;;  %v3523_v33 = vld [vmem:[#allocation2 + $0x240] sm:$0xff] }
0x11f5   :  { %v3530_v37 = vld [vmem:[#allocation2 + $0x278] sm:$0xff]  ;;  %v3513_v32 = vld [vmem:[#allocation2 + $0x1f0] sm:$0xff]  ;;  %v3520_v16 = vld [vmem:[#allocation2 + $0x228] sm:$0xff] }
0x11f6   :  { %3918 = vmatpush1.bf16.msra.mxu1 %v3471_v50  ;;  %v3536_v52 = vld [vmem:[#allocation2 + $0x2a8] sm:$0xff]  ;;  %v3519_v0 = vld [vmem:[#allocation2 + $0x220] sm:$0xff]  ;;  %v3763_v50 = vrot.slane %v3757_v10, 7 }
0x11f7   :  { %3797 = vmatpush1.bf16.msra.mxu0 %v3475_v47  ;;  %3919 = vmatprep.subr.bf16.mxu1 %v3478_v38  ;;  %v3529_v47 = vld [vmem:[#allocation2 + $0x270] sm:$0xff]  ;;  %v3526_v38 = vld [vmem:[#allocation2 + $0x258] sm:$0xff]  ;;  %v3535_v23 = vld [vmem:[#allocation2 + $0x2a0] sm:$0xff] }
0x11f8   :  { %3798 = vmatprep.subr.bf16.mxu0 %v3482_v30  ;;  %v3760_v30 = vunpack.c.l.b16 %v3444_v31  ;;  %v3525_v31 = vld [vmem:[#allocation2 + $0x250] sm:$0xff]  ;;  %v3555_v10 = vld [vmem:[#allocation2 + $0x340] sm:$0xff] }
0x11fa   :  { %3920 = vmatpush1.bf16.msra.mxu1 %v3477_v8  ;;  %v3770_v8 = vrot.slane %v3760_v30, 7  ;;  %v3578_v30 = vld [vmem:[#allocation2 + $0x3f8] sm:$0xff] }
0x11fb   :  { %3799 = vmatpush1.bf16.msra.mxu0 %v3481_v55  ;;  %3921 = vmatprep.subr.bf16.mxu1 %v3484_v58  ;;  %v13310_v55 = vpack.c.bf16 %v11443_v2, %v11443_v2  ;;  %v3542_v58 = vld [vmem:[#allocation2 + $0x2d8] sm:$0xff] }
0x11fc   :  { %3800 = vmatprep.subr.bf16.mxu0 %v3488_v15 }
0x11fd   :  { %v3751_v15 = vunpack.c.l.b16 %v13310_v55  ;;  %v3577_v55 = vld [vmem:[#allocation2 + $0x3f0] sm:$0xff] }
0x11fe   :  { %3922 = vmatpush1.bf16.msra.mxu1 %v3483_v53  ;;  %v3541_v53 = vld [vmem:[#allocation2 + $0x2d0] sm:$0xff] }
0x11ff   :  { %3801 = vmatpush1.bf16.msra.mxu0 %v3487_v49  ;;  %3923 = vmatprep.subr.bf16.mxu1 %v3490_v29  ;;  %v13311_v49 = vpack.c.bf16 %v11449_v5, %v11449_v5 }
0x1200   :  { %3802 = vmatprep.subr.bf16.mxu0 %v3494_v60 }
0x1201   :  { %v3754_v60 = vunpack.c.l.b16 %v13311_v49  ;;  %v3590_v49 = vld [vmem:[#allocation2 + $0x458] sm:$0xff] }
0x1202   :  { %3924 = vmatpush1.bf16.msra.mxu1 %v3489_v34  ;;  %v3531_v34 = vld [vmem:[#allocation2 + $0x280] sm:$0xff] }
0x1203   :  { %3803 = vmatpush1.bf16.msra.mxu0 %v3493_v14  ;;  %3925 = vmatprep.subr.bf16.mxu1 %v3496_v42  ;;  %v3765_v14 = vsel %vm3764_vm2, %v3763_v50, %v3751_v15  ;;  %v3771_v29 = vsel %vm3764_vm2, %v3770_v8, %v3754_v60  ;;  %v3538_v42 = vld [vmem:[#allocation2 + $0x2b8] sm:$0xff]  ;;  %v3584_v15 = vld [vmem:[#allocation2 + $0x428] sm:$0xff]  ;;  %v3567_v50 = vld [vmem:[#allocation2 + $0x3a0] sm:$0xff] }
0x1204   :  { %3804 = vmatprep.subr.bf16.mxu0 %v3500_v48  ;;  %v3532_v48 = vld [vmem:[#allocation2 + $0x288] sm:$0xff]  ;;  %v3573_v60 = vld [vmem:[#allocation2 + $0x3d0] sm:$0xff] }
0x1205   :  { %v3580_v8 = vld [vmem:[#allocation2 + $0x408] sm:$0xff] }
0x1206   :  { %3926 = vmatpush1.bf16.msra.mxu1 %v3495_v46  ;;  %v3554_v46 = vld [vmem:[#allocation2 + $0x338] sm:$0xff] }
0x1207   :  { %3805 = vmatpush1.bf16.msra.mxu0 %v3499_v43  ;;  %3927 = vmatprep.subr.bf16.mxu1 %v3502_v57  ;;  %v3548_v43 = vld [vmem:[#allocation2 + $0x308] sm:$0xff]  ;;  %v3537_v57 = vld [vmem:[#allocation2 + $0x2b0] sm:$0xff] }
0x1208   :  { %3806 = vmatprep.subr.bf16.mxu0 %v3506_v40  ;;  %v12279_v40 = vpack.c.b16 %v3765_v14, %v3765_v14  ;;  %v3579_v14 = vld [vmem:[#allocation2 + $0x400] sm:$0xff] }
0x120a   :  { %3928 = vmatpush1.bf16.msra.mxu1 %v3501_v9  ;;  %v3560_v9 = vld [vmem:[#allocation2 + $0x368] sm:$0xff] }
0x120b   :  { %3807 = vmatpush1.bf16.msra.mxu0 %v3505_v28  ;;  %3929 = vmatprep.subr.bf16.mxu1 %v3508_v44  ;;  %v12281_v28 = vpack.c.b16 %v3771_v29, %v3771_v29  ;;  %v3543_v44 = vld [vmem:[#allocation2 + $0x2e0] sm:$0xff]  ;;  %v3602_v29 = vld [vmem:[#allocation2 + $0x4b8] sm:$0xff] }
0x120c   :  { %3808 = vmatprep.subr.bf16.mxu0 %v3512_v45  ;;  %v3547_v45 = vld [vmem:[#allocation2 + $0x300] sm:$0xff] }
0x120e   :  { %3930 = vmatpush1.bf16.msra.mxu1 %v3507_v35  ;;  %v3566_v35 = vld [vmem:[#allocation2 + $0x398] sm:$0xff] }
0x120f   :  { %3809 = vmatpush1.bf16.msra.mxu0 %v3511_v56  ;;  %3931 = vmatprep.subr.bf16.mxu1 %v3514_v59  ;;  %v3544_v56 = vld [vmem:[#allocation2 + $0x2e8] sm:$0xff]  ;;  %v3549_v59 = vld [vmem:[#allocation2 + $0x310] sm:$0xff] }
0x1210   :  { %3810 = vmatprep.subr.bf16.mxu0 %v3518_v39  ;;  %v3553_v39 = vld [vmem:[#allocation2 + $0x330] sm:$0xff] }
0x1212   :  { %3932 = vmatpush1.bf16.msra.mxu1 %v3513_v32  ;;  %v3572_v32 = vld [vmem:[#allocation2 + $0x3c8] sm:$0xff] }
0x1213   :  { %3811 = vmatpush1.bf16.msra.mxu0 %v3517_v27  ;;  %3933 = vmatprep.subr.bf16.mxu1 %v3520_v16  ;;  %v3550_v27 = vld [vmem:[#allocation2 + $0x318] sm:$0xff] }
0x1214   :  { %3812 = vmatprep.subr.bf16.mxu0 %v3524_v51  ;;  %v3559_v51 = vld [vmem:[#allocation2 + $0x360] sm:$0xff]  ;;  %v3562_v16 = vld [vmem:[#allocation2 + $0x378] sm:$0xff] }
0x1216   :  { %3934 = vmatpush1.bf16.msra.mxu1 %v3519_v0  ;;  %v3568_v0 = vld [vmem:[#allocation2 + $0x3a8] sm:$0xff] }
0x1217   :  { %3813 = vmatpush1.bf16.msra.mxu0 %v3523_v33  ;;  %3935 = vmatprep.subr.bf16.mxu1 %v3526_v38  ;;  %v3556_v33 = vld [vmem:[#allocation2 + $0x348] sm:$0xff]  ;;  %v3574_v38 = vld [vmem:[#allocation2 + $0x3d8] sm:$0xff] }
0x1218   :  { %3814 = vmatprep.subr.bf16.mxu0 %v3530_v37  ;;  %v3565_v37 = vld [vmem:[#allocation2 + $0x390] sm:$0xff] }
0x121a   :  { %3936 = vmatpush1.bf16.msra.mxu1 %v3525_v31  ;;  %v3596_v31 = vld [vmem:[#allocation2 + $0x488] sm:$0xff] }
0x121b   :  { %3815 = vmatpush1.bf16.msra.mxu0 %v3529_v47  ;;  %3937 = vmatprep.subr.bf16.mxu1 %v3532_v48  ;;  %v3571_v47 = vld [vmem:[#allocation2 + $0x3c0] sm:$0xff]  ;;  %v3586_v48 = vld [vmem:[#allocation2 + $0x438] sm:$0xff] }
0x121c   :  { %3816 = vmatprep.subr.bf16.mxu0 %v3536_v52  ;;  %v3561_v52 = vld [vmem:[#allocation2 + $0x370] sm:$0xff] }
0x121e   :  { %3938 = vmatpush1.bf16.msra.mxu1 %v3531_v34  ;;  %v3592_v34 = vld [vmem:[#allocation2 + $0x468] sm:$0xff] }
0x121f   :  { %3817 = vmatpush1.bf16.msra.mxu0 %v3535_v23  ;;  %3939 = vmatprep.subr.bf16.mxu1 %v3538_v42  ;;  %v3583_v23 = vld [vmem:[#allocation2 + $0x420] sm:$0xff]  ;;  %v3601_v42 = vld [vmem:[#allocation2 + $0x4b0] sm:$0xff] }
0x1220   :  { %3818 = vmatprep.subr.bf16.mxu0 %v3542_v58  ;;  %v3589_v58 = vld [vmem:[#allocation2 + $0x450] sm:$0xff] }
0x1222   :  { %3940 = vmatpush1.bf16.msra.mxu1 %v3537_v57  ;;  %v3598_v57 = vld [vmem:[#allocation2 + $0x498] sm:$0xff] }
0x1223   :  { %3819 = vmatpush1.bf16.msra.mxu0 %v3541_v53  ;;  %3941 = vmatprep.subr.bf16.mxu1 %v3544_v56  ;;  %v3595_v53 = vld [vmem:[#allocation2 + $0x480] sm:$0xff] }
0x1224   :  { %3829 = vmatprep.subr.bf16.mxu0 %v3548_v43  ;;  %v3585_v43 = vld [vmem:[#allocation2 + $0x430] sm:$0xff]  ;;  %v3607_v56 = vld [vmem:[#allocation2 + $0x4e0] sm:$0xff] }
0x1226   :  { %3821 = vmatmul.mubr.bf16.vlgmr.msra.gmra.mrb[48].mxu0 %v12279_v40  ;;  %3942 = vmatpush1.bf16.msra.mxu1 %v3543_v44  ;;  %v3604_v44 = vld [vmem:[#allocation2 + $0x4c8] sm:$0xff] }
0x1227   :  { %3830 = vmatpush1.bf16.msra.mxu0 %v3547_v45  ;;  %3861 = vmatprep.mubr.bf16.mxu0 %v12281_v28  ;;  %v3608_v45 = vld [vmem:[#allocation2 + $0x4e8] sm:$0xff] }
0x1228   :  { %3831 = vmatprep.subr.bf16.mxu0 %v3554_v46  ;;  %3952 = vmatprep.subr.bf16.mxu1 %v3550_v27  ;;  %v3591_v46 = vld [vmem:[#allocation2 + $0x460] sm:$0xff]  ;;  %v3613_v27 = vld [vmem:[#allocation2 + $0x510] sm:$0xff] }
0x1229   :  { %3944 = vmatmul.mubr.bf16.vlgmr.msra.gmra.mrb[52].mxu1 %v12279_v40 }
0x122a   :  { %3953 = vmatpush1.bf16.msra.mxu1 %v3549_v59  ;;  %3984 = vmatprep.mubr.bf16.mxu1 %v12281_v28  ;;  %v3610_v59 = vld [vmem:[#allocation2 + $0x4f8] sm:$0xff] }
0x122b   :  { %3832 = vmatpush1.bf16.msra.mxu0 %v3553_v39  ;;  %3954 = vmatprep.subr.bf16.mxu1 %v3556_v33  ;;  %v3614_v39 = vld [vmem:[#allocation2 + $0x518] sm:$0xff]  ;;  %v3619_v33 = vld [vmem:[#allocation2 + $0x540] sm:$0xff] }
0x122c   :  { %3833 = vmatprep.subr.bf16.mxu0 %v3560_v9  ;;  %v3597_v9 = vld [vmem:[#allocation2 + $0x490] sm:$0xff] }
0x122e   :  { %3955 = vmatpush1.bf16.msra.mxu1 %v3555_v10  ;;  %v13312_v10 = vpack.c.bf16 %v11465_v13, %v11465_v13 }
0x122f   :  { %3834 = vmatpush1.bf16.msra.mxu0 %v3559_v51  ;;  %3956 = vmatprep.subr.bf16.mxu1 %v3562_v16  ;;  %v3620_v51 = vld [vmem:[#allocation2 + $0x548] sm:$0xff] }
0x1230   :  { %3835 = vmatprep.subr.bf16.mxu0 %v3566_v35  ;;  %v3603_v35 = vld [vmem:[#allocation2 + $0x4c0] sm:$0xff]  ;;  %v3759_v16 = vunpack.c.l.b16 %v13312_v10  ;;  %v3645_v10 = vld [vmem:[#allocation2 + $0x610] sm:$0xff] }
0x1232   :  { %3957 = vmatpush1.bf16.msra.mxu1 %v3561_v52  ;;  %v13313_v52 = vpack.c.bf16 %v11477_v19, %v11477_v19 }
0x1233   :  { %3836 = vmatpush1.bf16.msra.mxu0 %v3565_v37  ;;  %3958 = vmatprep.subr.bf16.mxu1 %v3568_v0  ;;  %v3626_v37 = vld [vmem:[#allocation2 + $0x578] sm:$0xff] }
0x1234   :  { %3837 = vmatprep.subr.bf16.mxu0 %v3572_v32  ;;  %v3609_v32 = vld [vmem:[#allocation2 + $0x4f0] sm:$0xff]  ;;  %v3762_v0 = vunpack.c.l.b16 %v13313_v52  ;;  %v3651_v52 = vld [vmem:[#allocation2 + $0x640] sm:$0xff] }
0x1236   :  { %3959 = vmatpush1.bf16.msra.mxu1 %v3567_v50  ;;  %v13314_v50 = vpack.c.bf16 %v11447_v4, %v11447_v4 }
0x1237   :  { %3838 = vmatpush1.bf16.msra.mxu0 %v3571_v47  ;;  %3960 = vmatprep.subr.bf16.mxu1 %v3574_v38  ;;  %v3616_v47 = vld [vmem:[#allocation2 + $0x528] sm:$0xff] }
0x1238   :  { %3839 = vmatprep.subr.bf16.mxu0 %v3578_v30  ;;  %v3625_v30 = vld [vmem:[#allocation2 + $0x570] sm:$0xff]  ;;  %v3753_v38 = vunpack.c.l.b16 %v13314_v50 }
0x1239   :  { %v3657_v50 = vld [vmem:[#allocation2 + $0x670] sm:$0xff] }
0x123a   :  { %3961 = vmatpush1.bf16.msra.mxu1 %v3573_v60  ;;  %v3631_v60 = vld [vmem:[#allocation2 + $0x5a0] sm:$0xff] }
0x123b   :  { %3840 = vmatpush1.bf16.msra.mxu0 %v3577_v55  ;;  %3962 = vmatprep.subr.bf16.mxu1 %v3580_v8  ;;  %v3632_v55 = vld [vmem:[#allocation2 + $0x5a8] sm:$0xff]  ;;  %v13315_v8 = vpack.c.bf16 %v11453_v7, %v11453_v7 }
0x123c   :  { %3841 = vmatprep.subr.bf16.mxu0 %v3584_v15  ;;  %v3615_v15 = vld [vmem:[#allocation2 + $0x520] sm:$0xff] }
0x123e   :  { %3963 = vmatpush1.bf16.msra.mxu1 %v3579_v14  ;;  %v3638_v14 = vld [vmem:[#allocation2 + $0x5d8] sm:$0xff] }
0x123f   :  { %3842 = vmatpush1.bf16.msra.mxu0 %v3583_v23  ;;  %3964 = vmatprep.subr.bf16.mxu1 %v3586_v48  ;;  %v3768_v23 = vrot.slane %v3759_v16, 7  ;;  %v3621_v48 = vld [vmem:[#allocation2 + $0x550] sm:$0xff]  ;;  %v3652_v16 = vld [vmem:[#allocation2 + $0x648] sm:$0xff] }
0x1240   :  { %3843 = vmatprep.subr.bf16.mxu0 %v3590_v49  ;;  %v3622_v49 = vld [vmem:[#allocation2 + $0x558] sm:$0xff] }
0x1242   :  { %3965 = vmatpush1.bf16.msra.mxu1 %v3585_v43  ;;  %v3637_v43 = vld [vmem:[#allocation2 + $0x5d0] sm:$0xff] }
0x1243   :  { %3844 = vmatpush1.bf16.msra.mxu0 %v3589_v58  ;;  %3966 = vmatprep.subr.bf16.mxu1 %v3592_v34  ;;  %v3756_v58 = vunpack.c.l.b16 %v13315_v8  ;;  %v3670_v8 = vld [vmem:[#allocation2 + $0x6d8] sm:$0xff] }
0x1244   :  { %3845 = vmatprep.subr.bf16.mxu0 %v3596_v31  ;;  %v3774_v31 = vrot.slane %v3762_v0, 7  ;;  %v3658_v0 = vld [vmem:[#allocation2 + $0x678] sm:$0xff] }
0x1246   :  { %3967 = vmatpush1.bf16.msra.mxu1 %v3591_v46  ;;  %v3775_v34 = vsel %vm3764_vm2, %v3774_v31, %v3756_v58  ;;  %v3627_v46 = vld [vmem:[#allocation2 + $0x580] sm:$0xff]  ;;  %v3686_v31 = vld [vmem:[#allocation2 + $0x758] sm:$0xff] }
0x1247   :  { %3846 = vmatpush1.bf16.msra.mxu0 %v3595_v53  ;;  %3968 = vmatprep.subr.bf16.mxu1 %v3598_v57  ;;  %v3769_v53 = vsel %vm3764_vm2, %v3768_v23, %v3753_v38  ;;  %v3634_v57 = vld [vmem:[#allocation2 + $0x5b8] sm:$0xff]  ;;  %v3664_v38 = vld [vmem:[#allocation2 + $0x6a8] sm:$0xff]  ;;  %v3673_v23 = vld [vmem:[#allocation2 + $0x6f0] sm:$0xff] }
0x1248   :  { %3847 = vmatprep.subr.bf16.mxu0 %v3602_v29  ;;  %v3628_v29 = vld [vmem:[#allocation2 + $0x588] sm:$0xff]  ;;  %v3679_v58 = vld [vmem:[#allocation2 + $0x720] sm:$0xff] }
0x124a   :  { %3969 = vmatpush1.bf16.msra.mxu1 %v3597_v9  ;;  %v3650_v9 = vld [vmem:[#allocation2 + $0x638] sm:$0xff] }
0x124b   :  { %3848 = vmatpush1.bf16.msra.mxu0 %v3601_v42  ;;  %3970 = vmatprep.subr.bf16.mxu1 %v3604_v44  ;;  %v3644_v42 = vld [vmem:[#allocation2 + $0x608] sm:$0xff]  ;;  %v3633_v44 = vld [vmem:[#allocation2 + $0x5b0] sm:$0xff] }
0x124c   :  { %3849 = vmatprep.subr.bf16.mxu0 %v3608_v45  ;;  %v12301_v45 = vpack.c.b16 %v3769_v53, %v3769_v53  ;;  %v3685_v53 = vld [vmem:[#allocation2 + $0x750] sm:$0xff] }
0x124e   :  { %3971 = vmatpush1.bf16.msra.mxu1 %v3603_v35  ;;  %v3656_v35 = vld [vmem:[#allocation2 + $0x668] sm:$0xff] }
0x124f   :  { %3850 = vmatpush1.bf16.msra.mxu0 %v3607_v56  ;;  %3972 = vmatprep.subr.bf16.mxu1 %v3610_v59  ;;  %v12303_v56 = vpack.c.b16 %v3775_v34, %v3775_v34  ;;  %v3639_v59 = vld [vmem:[#allocation2 + $0x5e0] sm:$0xff]  ;;  %v3682_v34 = vld [vmem:[#allocation2 + $0x738] sm:$0xff] }
0x1250   :  { %3851 = vmatprep.subr.bf16.mxu0 %v3614_v39  ;;  %v3643_v39 = vld [vmem:[#allocation2 + $0x600] sm:$0xff] }
0x1252   :  { %3973 = vmatpush1.bf16.msra.mxu1 %v3609_v32  ;;  %v3662_v32 = vld [vmem:[#allocation2 + $0x698] sm:$0xff] }
0x1253   :  { %3852 = vmatpush1.bf16.msra.mxu0 %v3613_v27  ;;  %3974 = vmatprep.subr.bf16.mxu1 %v3616_v47  ;;  %v3640_v27 = vld [vmem:[#allocation2 + $0x5e8] sm:$0xff]  ;;  %v3661_v47 = vld [vmem:[#allocation2 + $0x690] sm:$0xff] }
0x1254   :  { %3853 = vmatprep.subr.bf16.mxu0 %v3620_v51  ;;  %v3649_v51 = vld [vmem:[#allocation2 + $0x630] sm:$0xff] }
0x1256   :  { %3975 = vmatpush1.bf16.msra.mxu1 %v3615_v15  ;;  %v3674_v15 = vld [vmem:[#allocation2 + $0x6f8] sm:$0xff] }
0x1257   :  { %3854 = vmatpush1.bf16.msra.mxu0 %v3619_v33  ;;  %3976 = vmatprep.subr.bf16.mxu1 %v3622_v49  ;;  %v3646_v33 = vld [vmem:[#allocation2 + $0x618] sm:$0xff]  ;;  %v3680_v49 = vld [vmem:[#allocation2 + $0x728] sm:$0xff] }
0x1258   :  { %3855 = vmatprep.subr.bf16.mxu0 %v3626_v37  ;;  %v3655_v37 = vld [vmem:[#allocation2 + $0x660] sm:$0xff] }
0x125a   :  { %3977 = vmatpush1.bf16.msra.mxu1 %v3621_v48  ;;  %v3676_v48 = vld [vmem:[#allocation2 + $0x708] sm:$0xff] }
0x125b   :  { %3856 = vmatpush1.bf16.msra.mxu0 %v3625_v30  ;;  %3978 = vmatprep.subr.bf16.mxu1 %v3628_v29  ;;  %v3668_v30 = vld [vmem:[#allocation2 + $0x6c8] sm:$0xff] }
0x125c   :  { %3857 = vmatprep.subr.bf16.mxu0 %v3632_v55  ;;  %v3667_v55 = vld [vmem:[#allocation2 + $0x6c0] sm:$0xff]  ;;  %v3692_v29 = vld [vmem:[#allocation2 + $0x788] sm:$0xff] }
0x125e   :  { %3979 = vmatpush1.bf16.msra.mxu1 %v3627_v46  ;;  %v3698_v46 = vld [vmem:[#allocation2 + $0x7b8] sm:$0xff] }
0x125f   :  { %3858 = vmatpush1.bf16.msra.mxu0 %v3631_v60  ;;  %3980 = vmatprep.subr.bf16.mxu1 %v3634_v57  ;;  %v3663_v60 = vld [vmem:[#allocation2 + $0x6a0] sm:$0xff]  ;;  %v3681_v57 = vld [vmem:[#allocation2 + $0x730] sm:$0xff] }
0x1260   :  { %3859 = vmatprep.subr.bf16.mxu0 %v3638_v14  ;;  %v3669_v14 = vld [vmem:[#allocation2 + $0x6d0] sm:$0xff] }
0x1262   :  { %3981 = vmatpush1.bf16.msra.mxu1 %v3633_v44  ;;  %v3704_v44 = vld [vmem:[#allocation2 + $0x7e8] sm:$0xff] }
0x1263   :  { %3860 = vmatpush1.bf16.msra.mxu0 %v3637_v43  ;;  %3982 = vmatprep.subr.bf16.mxu1 %v3640_v27  ;;  %v3675_v43 = vld [vmem:[#allocation2 + $0x700] sm:$0xff] }
0x1264   :  { %3870 = vmatprep.subr.bf16.mxu0 %v3644_v42  ;;  %v3691_v42 = vld [vmem:[#allocation2 + $0x780] sm:$0xff] }
0x1265   :  { %v3687_v27 = vld [vmem:[#allocation2 + $0x760] sm:$0xff] }
0x1266   :  { %3862 = vmatmul.mubr.bf16.vlgmr.msra.gmra.mrb[48].mxu0 %v12301_v45  ;;  %3983 = vmatpush1.bf16.msra.mxu1 %v3639_v59  ;;  %v3710_v59 = vld [vmem:[#allocation2 + $0x818] sm:$0xff] }
0x1267   :  { %3871 = vmatpush1.bf16.msra.mxu0 %v3643_v39  ;;  %3902 = vmatprep.mubr.bf16.mxu0 %v12303_v56  ;;  %v3688_v39 = vld [vmem:[#allocation2 + $0x768] sm:$0xff] }
0x1268   :  { %3872 = vmatprep.subr.bf16.mxu0 %v3650_v9  ;;  %3993 = vmatprep.subr.bf16.mxu1 %v3646_v33  ;;  %v3697_v9 = vld [vmem:[#allocation2 + $0x7b0] sm:$0xff] }
0x1269   :  { %3985 = vmatmul.mubr.bf16.vlgmr.msra.gmra.mrb[52].mxu1 %v12301_v45  ;;  %v3693_v33 = vld [vmem:[#allocation2 + $0x790] sm:$0xff] }
0x126a   :  { %3994 = vmatpush1.bf16.msra.mxu1 %v3645_v10  ;;  %4025 = vmatprep.mubr.bf16.mxu1 %v12303_v56  ;;  %v3716_v10 = vld [vmem:[#allocation2 + $0x848] sm:$0xff] }
0x126b   :  { %3873 = vmatpush1.bf16.msra.mxu0 %v3649_v51  ;;  %3995 = vmatprep.subr.bf16.mxu1 %v3652_v16  ;;  %v3694_v51 = vld [vmem:[#allocation2 + $0x798] sm:$0xff]  ;;  %v3699_v16 = vld [vmem:[#allocation2 + $0x7c0] sm:$0xff] }
0x126c   :  { %3874 = vmatprep.subr.bf16.mxu0 %v3656_v35  ;;  %v3703_v35 = vld [vmem:[#allocation2 + $0x7e0] sm:$0xff] }
0x126e   :  { %3996 = vmatpush1.bf16.msra.mxu1 %v3651_v52  ;;  %v3722_v52 = vld [vmem:[#allocation2 + $0x878] sm:$0xff] }
0x126f   :  { %3875 = vmatpush1.bf16.msra.mxu0 %v3655_v37  ;;  %3997 = vmatprep.subr.bf16.mxu1 %v3658_v0  ;;  %v3700_v37 = vld [vmem:[#allocation2 + $0x7c8] sm:$0xff]  ;;  %v3705_v0 = vld [vmem:[#allocation2 + $0x7f0] sm:$0xff] }
0x1270   :  { %3876 = vmatprep.subr.bf16.mxu0 %v3662_v32  ;;  %v3709_v32 = vld [vmem:[#allocation2 + $0x810] sm:$0xff] }
0x1272   :  { %3998 = vmatpush1.bf16.msra.mxu1 %v3657_v50  ;;  %v3712_v50 = vld [vmem:[#allocation2 + $0x828] sm:$0xff] }
0x1273   :  { %3877 = vmatpush1.bf16.msra.mxu0 %v3661_v47  ;;  %3999 = vmatprep.subr.bf16.mxu1 %v3664_v38  ;;  %v3706_v47 = vld [vmem:[#allocation2 + $0x7f8] sm:$0xff]  ;;  %v3721_v38 = vld [vmem:[#allocation2 + $0x870] sm:$0xff] }
0x1274   :  { %3878 = vmatprep.subr.bf16.mxu0 %v3668_v30  ;;  %v3715_v30 = vld [vmem:[#allocation2 + $0x840] sm:$0xff] }
0x1276   :  { %4000 = vmatpush1.bf16.msra.mxu1 %v3663_v60  ;;  %v13317_v60 = vpack.c.bf16 %v11451_v6, %v11451_v6 }
0x1277   :  { %3879 = vmatpush1.bf16.msra.mxu0 %v3667_v55  ;;  %4001 = vmatprep.subr.bf16.mxu1 %v3670_v8  ;;  %v13316_v55 = vpack.c.bf16 %v11475_v18, %v11475_v18 }
0x1278   :  { %3880 = vmatprep.subr.bf16.mxu0 %v3674_v15  ;;  %v3755_v8 = vunpack.c.l.b16 %v13317_v60  ;;  %v3516_v60 = vld [vmem:[#allocation2 + $0x208] sm:$0xff] }
0x1279   :  { %v3761_v15 = vunpack.c.l.b16 %v13316_v55  ;;  %v3498_v55 = vld [vmem:[#allocation2 + $0x178] sm:$0xff] }
0x127a   :  { %4002 = vmatpush1.bf16.msra.mxu1 %v3669_v14  ;;  %v3727_v14 = vld [vmem:[#allocation2 + $0x8a0] sm:$0xff] }
0x127b   :  { %3881 = vmatpush1.bf16.msra.mxu0 %v3673_v23  ;;  %4003 = vmatprep.subr.bf16.mxu1 %v3676_v48  ;;  %v3728_v23 = vld [vmem:[#allocation2 + $0x8a8] sm:$0xff]  ;;  %v3734_v48 = vld [vmem:[#allocation2 + $0x8d8] sm:$0xff] }
0x127c   :  { %3882 = vmatprep.subr.bf16.mxu0 %v3680_v49  ;;  %v3711_v49 = vld [vmem:[#allocation2 + $0x820] sm:$0xff] }
0x127e   :  { %4004 = vmatpush1.bf16.msra.mxu1 %v3675_v43  ;;  %v3724_v43 = vld [vmem:[#allocation2 + $0x888] sm:$0xff] }
0x127f   :  { %3883 = vmatpush1.bf16.msra.mxu0 %v3679_v58  ;;  %4005 = vmatprep.subr.bf16.mxu1 %v3682_v34  ;;  %v3772_v58 = vrot.slane %v3761_v15, 7  ;;  %v3733_v34 = vld [vmem:[#allocation2 + $0x8d0] sm:$0xff] }
0x1280   :  { %3884 = vmatprep.subr.bf16.mxu0 %v3686_v31  ;;  %v3718_v31 = vld [vmem:[#allocation2 + $0x858] sm:$0xff]  ;;  %v3497_v15 = vld [vmem:[#allocation2 + $0x170] sm:$0xff] }
0x1282   :  { %4006 = vmatpush1.bf16.msra.mxu1 %v3681_v57  ;;  %v3723_v57 = vld [vmem:[#allocation2 + $0x880] sm:$0xff] }
0x1283   :  { %3885 = vmatpush1.bf16.msra.mxu0 %v3685_v53  ;;  %4007 = vmatprep.subr.bf16.mxu1 %v3688_v39  ;;  %v3717_v53 = vld [vmem:[#allocation2 + $0x850] sm:$0xff]  ;;  %v3730_v39 = vld [vmem:[#allocation2 + $0x8b8] sm:$0xff] }
0x1284   :  { %3886 = vmatprep.subr.bf16.mxu0 %v3692_v29  ;;  %v3773_v29 = vsel %vm3764_vm2, %v3772_v58, %v3755_v8  ;;  %v3515_v8 = vld [vmem:[#allocation2 + $0x200] sm:$0xff]  ;;  %v3522_v58 = vld [vmem:[#allocation2 + $0x238] sm:$0xff] }
0x1286   :  { %4008 = vmatpush1.bf16.msra.mxu1 %v3687_v27  ;;  %v3729_v27 = vld [vmem:[#allocation2 + $0x8b0] sm:$0xff] }
0x1287   :  { %3887 = vmatpush1.bf16.msra.mxu0 %v3691_v42  ;;  %4009 = vmatprep.subr.bf16.mxu1 %v3694_v51  ;;  %v3456_v42 = vld [vmem:[#allocation2 + $0x28] sm:$0xff] }
0x1288   :  { %3888 = vmatprep.subr.bf16.mxu0 %v3698_v46  ;;  %v12316_v46 = vpack.c.b16 %v3773_v29, %v3773_v29  ;;  %v3736_v51 = vld [vmem:[#allocation2 + $0x8e8] sm:$0xff]  ;;  %v3533_v29 = vld [vmem:[#allocation2 + $0x290] sm:$0xff] }
0x128a   :  { %4010 = vmatpush1.bf16.msra.mxu1 %v3693_v33  ;;  %v3735_v33 = vld [vmem:[#allocation2 + $0x8e0] sm:$0xff] }
0x128b   :  { %3889 = vmatpush1.bf16.msra.mxu0 %v3697_v9  ;;  %4011 = vmatprep.subr.bf16.mxu1 %v3700_v37  ;;  %v3455_v9 = vld [vmem:[#allocation2 + $0x20] sm:$0xff] }
0x128c   :  { %3890 = vmatprep.subr.bf16.mxu0 %v3704_v44  ;;  %v3462_v44 = vld [vmem:[#allocation2 + $0x58] sm:$0xff]  ;;  %v3467_v37 = vld [vmem:[#allocation2 + $0x80] sm:$0xff] }
0x128e   :  { %4012 = vmatpush1.bf16.msra.mxu1 %v3699_v16  ;;  %v3480_v16 = vld [vmem:[#allocation2 + $0xe8] sm:$0xff] }
0x128f   :  { %3891 = vmatpush1.bf16.msra.mxu0 %v3703_v35  ;;  %4013 = vmatprep.subr.bf16.mxu1 %v3706_v47  ;;  %v3461_v35 = vld [vmem:[#allocation2 + $0x50] sm:$0xff]  ;;  %v3486_v47 = vld [vmem:[#allocation2 + $0x118] sm:$0xff] }
0x1290   :  { %3892 = vmatprep.subr.bf16.mxu0 %v3710_v59  ;;  %v3468_v59 = vld [vmem:[#allocation2 + $0x88] sm:$0xff] }
0x1292   :  { %4014 = vmatpush1.bf16.msra.mxu1 %v3705_v0  ;;  %v3491_v0 = vld [vmem:[#allocation2 + $0x140] sm:$0xff] }
0x1293   :  { %3893 = vmatpush1.bf16.msra.mxu0 %v3709_v32  ;;  %4015 = vmatprep.subr.bf16.mxu1 %v3712_v50  ;;  %v3474_v32 = vld [vmem:[#allocation2 + $0xb8] sm:$0xff]  ;;  %v3504_v50 = vld [vmem:[#allocation2 + $0x1a8] sm:$0xff] }
0x1294   :  { %3894 = vmatprep.subr.bf16.mxu0 %v3716_v10  ;;  %v3473_v10 = vld [vmem:[#allocation2 + $0xb0] sm:$0xff] }
0x1296   :  { %4016 = vmatpush1.bf16.msra.mxu1 %v3711_v49  ;;  %v3509_v49 = vld [vmem:[#allocation2 + $0x1d0] sm:$0xff] }
0x1297   :  { %3895 = vmatpush1.bf16.msra.mxu0 %v3715_v30  ;;  %4017 = vmatprep.subr.bf16.mxu1 %v3718_v31  ;;  %v3485_v30 = vld [vmem:[#allocation2 + $0x110] sm:$0xff] }
0x1298   :  { %3896 = vmatprep.subr.bf16.mxu0 %v3722_v52  ;;  %v3492_v52 = vld [vmem:[#allocation2 + $0x148] sm:$0xff]  ;;  %v3521_v31 = vld [vmem:[#allocation2 + $0x230] sm:$0xff] }
0x129a   :  { %4018 = vmatpush1.bf16.msra.mxu1 %v3717_v53  ;;  %v3534_v53 = vld [vmem:[#allocation2 + $0x298] sm:$0xff] }
0x129b   :  { %3897 = vmatpush1.bf16.msra.mxu0 %v3721_v38  ;;  %4019 = vmatprep.subr.bf16.mxu1 %v3724_v43  ;;  %v3503_v38 = vld [vmem:[#allocation2 + $0x1a0] sm:$0xff]  ;;  %v3540_v43 = vld [vmem:[#allocation2 + $0x2c8] sm:$0xff] }
0x129c   :  { %3898 = vmatprep.subr.bf16.mxu0 %v3728_v23  ;;  %v3510_v23 = vld [vmem:[#allocation2 + $0x1d8] sm:$0xff] }
0x129e   :  { %4020 = vmatpush1.bf16.msra.mxu1 %v3723_v57  ;;  %v3545_v57 = vld [vmem:[#allocation2 + $0x2f0] sm:$0xff] }
0x129f   :  { %3899 = vmatpush1.bf16.msra.mxu0 %v3727_v14  ;;  %4021 = vmatprep.subr.bf16.mxu1 %v3730_v39  ;;  %v3528_v14 = vld [vmem:[#allocation2 + $0x268] sm:$0xff] }
0x12a0   :  { %3900 = vmatprep.subr.bf16.mxu0 %v3734_v48  ;;  %v3527_v48 = vld [vmem:[#allocation2 + $0x260] sm:$0xff]  ;;  %v3552_v39 = vld [vmem:[#allocation2 + $0x328] sm:$0xff] }
0x12a2   :  { %4022 = vmatpush1.bf16.msra.mxu1 %v3729_v27  ;;  %v3557_v27 = vld [vmem:[#allocation2 + $0x350] sm:$0xff] }
0x12a3   :  { %3901 = vmatpush1.bf16.msra.mxu0 %v3733_v34  ;;  %4023 = vmatprep.subr.bf16.mxu1 %v3736_v51  ;;  %v3539_v34 = vld [vmem:[#allocation2 + $0x2c0] sm:$0xff]  ;;  %v3564_v51 = vld [vmem:[#allocation2 + $0x388] sm:$0xff] }
0x12a4   :  { %4034 = vmatprep.subr.bf16.mxu0 %v3456_v42  ;;  %v3546_v42 = vld [vmem:[#allocation2 + $0x2f8] sm:$0xff] }
0x12a6   :  { %3903 = vmatmul.mubr.bf16.vlgmr.msra.gmra.mrb[48].mxu0 %v12316_v46  ;;  %4024 = vmatpush1.bf16.msra.mxu1 %v3735_v33  ;;  %v3569_v33 = vld [vmem:[#allocation2 + $0x3b0] sm:$0xff] }
0x12a7   :  { %4035 = vmatpush1.bf16.msra.mxu0 %v3455_v9  ;;  %4066 = vmatprep.mubr.bf16.mxu0 %v12261_v54  ;;  %v3479_v54 = vld [vmem:[#allocation2 + $0xe0] sm:$0xff] }
0x12a8   :  { %4036 = vmatprep.subr.bf16.mxu0 %v3462_v44  ;;  %v3551_v9 = vld [vmem:[#allocation2 + $0x320] sm:$0xff]  ;;  %v3558_v44 = vld [vmem:[#allocation2 + $0x358] sm:$0xff] }
0x12a9   :  { %4026 = vmatmul.mubr.bf16.vlgmr.msra.gmra.mrb[52].mxu1 %v12316_v46 }
0x12ab   :  { %4037 = vmatpush1.bf16.msra.mxu0 %v3461_v35  ;;  %v3563_v35 = vld [vmem:[#allocation2 + $0x380] sm:$0xff] }
0x12ac   :  { %4038 = vmatprep.subr.bf16.mxu0 %v3468_v59  ;;  %v3570_v59 = vld [vmem:[#allocation2 + $0x3b8] sm:$0xff] }
0x12af   :  { %4039 = vmatpush1.bf16.msra.mxu0 %v3467_v37  ;;  %v3576_v37 = vld [vmem:[#allocation2 + $0x3e8] sm:$0xff] }
0x12b0   :  { %4040 = vmatprep.subr.bf16.mxu0 %v3474_v32  ;;  %v3575_v32 = vld [vmem:[#allocation2 + $0x3e0] sm:$0xff] }
0x12b3   :  { %4041 = vmatpush1.bf16.msra.mxu0 %v3473_v10  ;;  %v3582_v10 = vld [vmem:[#allocation2 + $0x418] sm:$0xff] }
0x12b4   :  { %4042 = vmatprep.subr.bf16.mxu0 %v3480_v16  ;;  %v3588_v16 = vld [vmem:[#allocation2 + $0x448] sm:$0xff] }
0x12b7   :  { %4043 = vmatpush1.bf16.msra.mxu0 %v3479_v54  ;;  %v3594_v54 = vld [vmem:[#allocation2 + $0x478] sm:$0xff] }
0x12b8   :  { %4044 = vmatprep.subr.bf16.mxu0 %v3486_v47  ;;  %v3593_v47 = vld [vmem:[#allocation2 + $0x470] sm:$0xff] }
0x12bb   :  { %4045 = vmatpush1.bf16.msra.mxu0 %v3485_v30  ;;  %v3600_v30 = vld [vmem:[#allocation2 + $0x4a8] sm:$0xff] }
0x12bc   :  { %4046 = vmatprep.subr.bf16.mxu0 %v3492_v52  ;;  %v3599_v52 = vld [vmem:[#allocation2 + $0x4a0] sm:$0xff] }
0x12bf   :  { %4047 = vmatpush1.bf16.msra.mxu0 %v3491_v0  ;;  %v3606_v0 = vld [vmem:[#allocation2 + $0x4d8] sm:$0xff] }
0x12c0   :  { %4048 = vmatprep.subr.bf16.mxu0 %v3498_v55  ;;  %v3605_v55 = vld [vmem:[#allocation2 + $0x4d0] sm:$0xff] }
0x12c3   :  { %4049 = vmatpush1.bf16.msra.mxu0 %v3497_v15  ;;  %v3612_v15 = vld [vmem:[#allocation2 + $0x508] sm:$0xff] }
0x12c4   :  { %4050 = vmatprep.subr.bf16.mxu0 %v3504_v50  ;;  %v3611_v50 = vld [vmem:[#allocation2 + $0x500] sm:$0xff] }
0x12c7   :  { %4051 = vmatpush1.bf16.msra.mxu0 %v3503_v38  ;;  %v3618_v38 = vld [vmem:[#allocation2 + $0x538] sm:$0xff] }
0x12c8   :  { %4052 = vmatprep.subr.bf16.mxu0 %v3510_v23  ;;  %v3617_v23 = vld [vmem:[#allocation2 + $0x530] sm:$0xff] }
0x12cb   :  { %4053 = vmatpush1.bf16.msra.mxu0 %v3509_v49  ;;  %v3624_v49 = vld [vmem:[#allocation2 + $0x568] sm:$0xff] }
0x12cc   :  { %4054 = vmatprep.subr.bf16.mxu0 %v3516_v60  ;;  %v3623_v60 = vld [vmem:[#allocation2 + $0x560] sm:$0xff] }
0x12cf   :  { %4055 = vmatpush1.bf16.msra.mxu0 %v3515_v8  ;;  %v3630_v8 = vld [vmem:[#allocation2 + $0x598] sm:$0xff] }
0x12d0   :  { %4056 = vmatprep.subr.bf16.mxu0 %v3522_v58  ;;  %v3629_v58 = vld [vmem:[#allocation2 + $0x590] sm:$0xff] }
0x12d3   :  { %4057 = vmatpush1.bf16.msra.mxu0 %v3521_v31  ;;  %v3636_v31 = vld [vmem:[#allocation2 + $0x5c8] sm:$0xff] }
0x12d4   :  { %4058 = vmatprep.subr.bf16.mxu0 %v3528_v14  ;;  %v3635_v14 = vld [vmem:[#allocation2 + $0x5c0] sm:$0xff] }
0x12d7   :  { %4059 = vmatpush1.bf16.msra.mxu0 %v3527_v48  ;;  %v3642_v48 = vld [vmem:[#allocation2 + $0x5f8] sm:$0xff] }
0x12d8   :  { %4060 = vmatprep.subr.bf16.mxu0 %v3534_v53  ;;  %v3641_v53 = vld [vmem:[#allocation2 + $0x5f0] sm:$0xff] }
0x12db   :  { %4061 = vmatpush1.bf16.msra.mxu0 %v3533_v29  ;;  %v3648_v29 = vld [vmem:[#allocation2 + $0x628] sm:$0xff] }
0x12dc   :  { %4062 = vmatprep.subr.bf16.mxu0 %v3540_v43  ;;  %v3647_v43 = vld [vmem:[#allocation2 + $0x620] sm:$0xff] }
0x12df   :  { %4063 = vmatpush1.bf16.msra.mxu0 %v3539_v34  ;;  %v3654_v34 = vld [vmem:[#allocation2 + $0x658] sm:$0xff] }
0x12e0   :  { %4064 = vmatprep.subr.bf16.mxu0 %v3546_v42  ;;  %v3653_v42 = vld [vmem:[#allocation2 + $0x650] sm:$0xff] }
0x12e3   :  { %4065 = vmatpush1.bf16.msra.mxu0 %v3545_v57  ;;  %v3660_v57 = vld [vmem:[#allocation2 + $0x688] sm:$0xff] }
0x12e4   :  { %4075 = vmatprep.subr.bf16.mxu0 %v3552_v39  ;;  %v3659_v39 = vld [vmem:[#allocation2 + $0x680] sm:$0xff] }
0x12e6   :  { %4067 = vmatmul.mubr.bf16.vlgmr.msra.gmra.mrb[52].mxu0 %v12279_v40  ;;  %v3581_v40 = vld [vmem:[#allocation2 + $0x410] sm:$0xff] }
0x12e7   :  { %4076 = vmatpush1.bf16.msra.mxu0 %v3551_v9  ;;  %4107 = vmatprep.mubr.bf16.mxu0 %v12281_v28  ;;  %v3587_v28 = vld [vmem:[#allocation2 + $0x440] sm:$0xff]  ;;  %v3666_v9 = vld [vmem:[#allocation2 + $0x6b8] sm:$0xff] }
0x12e8   :  { %4077 = vmatprep.subr.bf16.mxu0 %v3558_v44  ;;  %v3665_v44 = vld [vmem:[#allocation2 + $0x6b0] sm:$0xff] }
0x12eb   :  { %4078 = vmatpush1.bf16.msra.mxu0 %v3557_v27  ;;  %v3672_v27 = vld [vmem:[#allocation2 + $0x6e8] sm:$0xff] }
0x12ec   :  { %4079 = vmatprep.subr.bf16.mxu0 %v3564_v51  ;;  %v3671_v51 = vld [vmem:[#allocation2 + $0x6e0] sm:$0xff] }
0x12ef   :  { %4080 = vmatpush1.bf16.msra.mxu0 %v3563_v35  ;;  %v3678_v35 = vld [vmem:[#allocation2 + $0x718] sm:$0xff] }
0x12f0   :  { %4081 = vmatprep.subr.bf16.mxu0 %v3570_v59  ;;  %v3684_v59 = vld [vmem:[#allocation2 + $0x748] sm:$0xff] }
0x12f3   :  { %4082 = vmatpush1.bf16.msra.mxu0 %v3569_v33  ;;  %v3690_v33 = vld [vmem:[#allocation2 + $0x778] sm:$0xff] }
0x12f4   :  { %4083 = vmatprep.subr.bf16.mxu0 %v3576_v37  ;;  %v3689_v37 = vld [vmem:[#allocation2 + $0x770] sm:$0xff] }
0x12f7   :  { %4084 = vmatpush1.bf16.msra.mxu0 %v3575_v32  ;;  %v3696_v32 = vld [vmem:[#allocation2 + $0x7a8] sm:$0xff] }
0x12f8   :  { %4085 = vmatprep.subr.bf16.mxu0 %v3582_v10  ;;  %v3695_v10 = vld [vmem:[#allocation2 + $0x7a0] sm:$0xff] }
0x12fb   :  { %4086 = vmatpush1.bf16.msra.mxu0 %v3581_v40  ;;  %v3702_v40 = vld [vmem:[#allocation2 + $0x7d8] sm:$0xff] }
0x12fc   :  { %4087 = vmatprep.subr.bf16.mxu0 %v3588_v16  ;;  %v3701_v16 = vld [vmem:[#allocation2 + $0x7d0] sm:$0xff] }
0x12ff   :  { %4088 = vmatpush1.bf16.msra.mxu0 %v3587_v28  ;;  %v3708_v28 = vld [vmem:[#allocation2 + $0x808] sm:$0xff] }
0x1300   :  { %4089 = vmatprep.subr.bf16.mxu0 %v3594_v54  ;;  %v3707_v54 = vld [vmem:[#allocation2 + $0x800] sm:$0xff] }
0x1303   :  { %4090 = vmatpush1.bf16.msra.mxu0 %v3593_v47  ;;  %v3714_v47 = vld [vmem:[#allocation2 + $0x838] sm:$0xff] }
0x1304   :  { %4091 = vmatprep.subr.bf16.mxu0 %v3600_v30  ;;  %v3713_v30 = vld [vmem:[#allocation2 + $0x830] sm:$0xff] }
0x1307   :  { %4092 = vmatpush1.bf16.msra.mxu0 %v3599_v52  ;;  %v3720_v52 = vld [vmem:[#allocation2 + $0x868] sm:$0xff] }
0x1308   :  { %4093 = vmatprep.subr.bf16.mxu0 %v3606_v0  ;;  %v3719_v0 = vld [vmem:[#allocation2 + $0x860] sm:$0xff] }
0x130b   :  { %4094 = vmatpush1.bf16.msra.mxu0 %v3605_v55  ;;  %v3726_v55 = vld [vmem:[#allocation2 + $0x898] sm:$0xff] }
0x130c   :  { %4095 = vmatprep.subr.bf16.mxu0 %v3612_v15  ;;  %v3725_v15 = vld [vmem:[#allocation2 + $0x890] sm:$0xff] }
0x130f   :  { %4096 = vmatpush1.bf16.msra.mxu0 %v3611_v50  ;;  %v3732_v50 = vld [vmem:[#allocation2 + $0x8c8] sm:$0xff] }
0x1310   :  { %4097 = vmatprep.subr.bf16.mxu0 %v3618_v38  ;;  %v3731_v38 = vld [vmem:[#allocation2 + $0x8c0] sm:$0xff] }
0x1313   :  { %4098 = vmatpush1.bf16.msra.mxu0 %v3617_v23  ;;  %v3738_v23 = vld [vmem:[#allocation2 + $0x8f8] sm:$0xff] }
0x1314   :  { %4099 = vmatprep.subr.bf16.mxu0 %v3624_v49  ;;  %v3737_v49 = vld [vmem:[#allocation2 + $0x8f0] sm:$0xff] }
0x1317   :  { %4100 = vmatpush1.bf16.msra.mxu0 %v3623_v60 }
0x1318   :  { %4101 = vmatprep.subr.bf16.mxu0 %v3630_v8 }
0x131b   :  { %4102 = vmatpush1.bf16.msra.mxu0 %v3629_v58 }
0x131c   :  { %4103 = vmatprep.subr.bf16.mxu0 %v3636_v31 }
0x131f   :  { %4104 = vmatpush1.bf16.msra.mxu0 %v3635_v14 }
0x1320   :  { %4105 = vmatprep.subr.bf16.mxu0 %v3642_v48 }
0x1323   :  { %4106 = vmatpush1.bf16.msra.mxu0 %v3641_v53 }
0x1324   :  { %4116 = vmatprep.subr.bf16.mxu0 %v3648_v29 }
0x1326   :  { %4108 = vmatmul.mubr.bf16.vlgmr.msra.gmra.mrb[52].mxu0 %v12301_v45  ;;  %v3677_v45 = vld [vmem:[#allocation2 + $0x710] sm:$0xff] }
0x1327   :  { %4117 = vmatpush1.bf16.msra.mxu0 %v3647_v43  ;;  %4148 = vmatprep.mubr.bf16.mxu0 %v12303_v56  ;;  %v3683_v56 = vld [vmem:[#allocation2 + $0x740] sm:$0xff] }
0x1328   :  { %4118 = vmatprep.subr.bf16.mxu0 %v3654_v34 }
0x132b   :  { %4119 = vmatpush1.bf16.msra.mxu0 %v3653_v42 }
0x132c   :  { %4120 = vmatprep.subr.bf16.mxu0 %v3660_v57 }
0x132f   :  { %4121 = vmatpush1.bf16.msra.mxu0 %v3659_v39 }
0x1330   :  { %4122 = vmatprep.subr.bf16.mxu0 %v3666_v9 }
0x1333   :  { %4123 = vmatpush1.bf16.msra.mxu0 %v3665_v44 }
0x1334   :  { %4124 = vmatprep.subr.bf16.mxu0 %v3672_v27 }
0x1337   :  { %4125 = vmatpush1.bf16.msra.mxu0 %v3671_v51 }
0x1338   :  { %4126 = vmatprep.subr.bf16.mxu0 %v3678_v35 }
0x133b   :  { %4127 = vmatpush1.bf16.msra.mxu0 %v3677_v45 }
0x133c   :  { %4128 = vmatprep.subr.bf16.mxu0 %v3684_v59 }
0x133f   :  { %4129 = vmatpush1.bf16.msra.mxu0 %v3683_v56 }
0x1340   :  { %4130 = vmatprep.subr.bf16.mxu0 %v3690_v33 }
0x1343   :  { %4131 = vmatpush1.bf16.msra.mxu0 %v3689_v37 }
0x1344   :  { %4132 = vmatprep.subr.bf16.mxu0 %v3696_v32 }
0x1347   :  { %4133 = vmatpush1.bf16.msra.mxu0 %v3695_v10 }
0x1348   :  { %4134 = vmatprep.subr.bf16.mxu0 %v3702_v40 }
0x134b   :  { %4135 = vmatpush1.bf16.msra.mxu0 %v3701_v16 }
0x134c   :  { %4136 = vmatprep.subr.bf16.mxu0 %v3708_v28 }
0x134f   :  { %4137 = vmatpush1.bf16.msra.mxu0 %v3707_v54 }
0x1350   :  { %4138 = vmatprep.subr.bf16.mxu0 %v3714_v47 }
0x1353   :  { %4139 = vmatpush1.bf16.msra.mxu0 %v3713_v30 }
0x1354   :  { %4140 = vmatprep.subr.bf16.mxu0 %v3720_v52 }
0x1357   :  { %4141 = vmatpush1.bf16.msra.mxu0 %v3719_v0 }
0x1358   :  { %4142 = vmatprep.subr.bf16.mxu0 %v3726_v55 }
0x135b   :  { %4143 = vmatpush1.bf16.msra.mxu0 %v3725_v15 }
0x135c   :  { %4144 = vmatprep.subr.bf16.mxu0 %v3732_v50 }
0x135f   :  { %4145 = vmatpush1.bf16.msra.mxu0 %v3731_v38 }
0x1360   :  { %4146 = vmatprep.subr.bf16.mxu0 %v3738_v23 }
0x1363   :  { %4147 = vmatpush1.bf16.msra.mxu0 %v3737_v49 }
0x1366   :  { %4149 = vmatmul.mubr.bf16.vlgmr.msra.gmra.mrb[52].mxu0 %v12316_v46 }
0x1379   :  { %v12326_v60 = vpop.f32.mrb[48].mxu0 }
0x137a   :  { %v3906_v8 = vpop.f32.mrb[49].mxu0 }
0x137b   :  { %v3908_v58 = vpop.f32.mrb[50].mxu0 }
0x137c   :  { %v3909_v31 = vpop.f32.mrb[51].mxu0  ;;  %v12328_v14 = vpop.f32.mrb[52].mxu1 }
0x137d   :  { %v12330_v48 = vpop.f32.mrb[53].mxu1 }
0x137e   :  { %v4031_v53 = vpop.f32.mrb[54].mxu1 }
0x137f   :  { %v4032_v29 = vpop.f32.mrb[55].mxu1 }
0x1439   :  { %v12332_v43 = vpop.f32.mrb[52].mxu0 }
0x143a   :  { %v12334_v34 = vpop.f32.mrb[53].mxu0 }
0x143b   :  { %v4154_v42 = vpop.f32.mrb[54].mxu0 }
0x143c   :  { %v4155_v57 = vpop.f32.mrb[55].mxu0 }
0x143d   :  { %11025 = dma.done.wait [#allocation8 + $0x1], 36864 }
0x143e   :  { %11026 = vsyncadd [#allocation8 + $0x1], 4294930432  ;;  %v12336_v46 = vpack.c.bf16 %v3906_v8, %v3906_v8  ;;  %v4166_v39 = vld [vmem:[#allocation3 + $0x8] sm:$0xff]  ;;  %v4165_v9 = vld [vmem:[#allocation3] sm:$0xff]  ;;  %vm4951_vm5 = vcmask 123904  }
0x143f   :  { %v4172_v44 = vld [vmem:[#allocation3 + $0x38] sm:$0xff]  ;;  %4453 = vmatprep.subr.bf16.mxu1 %v4166_v39  ;;  %v4171_v27 = vld [vmem:[#allocation3 + $0x30] sm:$0xff]  ;;  %v4178_v51 = vld [vmem:[#allocation3 + $0x68] sm:$0xff] }
0x1440   :  { %4485 = vmatprep.mubr.bf16.mxu1 %v12336_v46  ;;  %4608 = vmatprep.mubr.bf16.mxu0 %v12336_v46  ;;  %v4262_v35 = vld [vmem:[#allocation3 + $0x308] sm:$0xff]  ;;  %v4261_v45 = vld [vmem:[#allocation3 + $0x300] sm:$0xff]  ;;  %v4268_v59 = vld [vmem:[#allocation3 + $0x338] sm:$0xff] }
0x1441   :  { %4454 = vmatpush1.bf16.xpose.msra.mxu1 %v4165_v9  ;;  %4576 = vmatprep.subr.bf16.mxu0 %v4262_v35  ;;  %v4177_v56 = vld [vmem:[#allocation3 + $0x60] sm:$0xff]  ;;  %v4184_v33 = vld [vmem:[#allocation3 + $0x98] sm:$0xff]  ;;  %v4267_v37 = vld [vmem:[#allocation3 + $0x330] sm:$0xff] }
0x1442   :  { %4455 = vmatprep.subr.bf16.mxu1 %v4172_v44  ;;  %4577 = vmatpush1.bf16.xpose.msra.mxu0 %v4261_v45  ;;  %v4274_v32 = vld [vmem:[#allocation3 + $0x368] sm:$0xff]  ;;  %v4183_v10 = vld [vmem:[#allocation3 + $0x90] sm:$0xff]  ;;  %v4273_v16 = vld [vmem:[#allocation3 + $0x360] sm:$0xff] }
0x1443   :  { %4578 = vmatprep.subr.bf16.mxu0 %v4268_v59  ;;  %v4190_v40 = vld [vmem:[#allocation3 + $0xc8] sm:$0xff]  ;;  %v4280_v28 = vld [vmem:[#allocation3 + $0x398] sm:$0xff]  ;;  %v4189_v54 = vld [vmem:[#allocation3 + $0xc0] sm:$0xff] }
0x1444   :  { %v4196_v47 = vld [vmem:[#allocation3 + $0xf8] sm:$0xff]  ;;  %v4279_v30 = vld [vmem:[#allocation3 + $0x390] sm:$0xff]  ;;  %v4286_v52 = vld [vmem:[#allocation3 + $0x3c8] sm:$0xff] }
0x1445   :  { %v4195_v0 = vld [vmem:[#allocation3 + $0xf0] sm:$0xff]  ;;  %v4202_v55 = vld [vmem:[#allocation3 + $0x128] sm:$0xff]  ;;  %v4285_v15 = vld [vmem:[#allocation3 + $0x3c0] sm:$0xff] }
0x1446   :  { %v4292_v50 = vld [vmem:[#allocation3 + $0x3f8] sm:$0xff]  ;;  %v4201_v38 = vld [vmem:[#allocation3 + $0x120] sm:$0xff]  ;;  %v4291_v49 = vld [vmem:[#allocation3 + $0x3f0] sm:$0xff] }
0x1447   :  { %v4208_v23 = vld [vmem:[#allocation3 + $0x158] sm:$0xff]  ;;  %v4298_v8 = vld [vmem:[#allocation3 + $0x428] sm:$0xff]  ;;  %v4207_v58 = vld [vmem:[#allocation3 + $0x150] sm:$0xff] }
0x1448   :  { %v4214_v31 = vld [vmem:[#allocation3 + $0x188] sm:$0xff]  ;;  %v4297_v53 = vld [vmem:[#allocation3 + $0x420] sm:$0xff]  ;;  %v4304_v29 = vld [vmem:[#allocation3 + $0x458] sm:$0xff] }
0x1449   :  { %4456 = vmatpush1.bf16.xpose.msra.mxu1 %v4171_v27  ;;  %v4213_v42 = vld [vmem:[#allocation3 + $0x180] sm:$0xff]  ;;  %v4220_v57 = vld [vmem:[#allocation3 + $0x1b8] sm:$0xff]  ;;  %v4303_v39 = vld [vmem:[#allocation3 + $0x450] sm:$0xff] }
0x144a   :  { %4457 = vmatprep.subr.bf16.mxu1 %v4178_v51  ;;  %4579 = vmatpush1.bf16.xpose.msra.mxu0 %v4267_v37  ;;  %v4310_v9 = vld [vmem:[#allocation3 + $0x488] sm:$0xff]  ;;  %v4219_v44 = vld [vmem:[#allocation3 + $0x1b0] sm:$0xff]  ;;  %v4309_v51 = vld [vmem:[#allocation3 + $0x480] sm:$0xff] }
0x144b   :  { %4580 = vmatprep.subr.bf16.mxu0 %v4274_v32  ;;  %v4226_v27 = vld [vmem:[#allocation3 + $0x1e8] sm:$0xff]  ;;  %v4316_v35 = vld [vmem:[#allocation3 + $0x4b8] sm:$0xff]  ;;  %v4225_v45 = vld [vmem:[#allocation3 + $0x1e0] sm:$0xff] }
0x144c   :  { %v4232_v59 = vld [vmem:[#allocation3 + $0x218] sm:$0xff]  ;;  %v4231_v37 = vld [vmem:[#allocation3 + $0x210] sm:$0xff]  ;;  %v4238_v32 = vld [vmem:[#allocation3 + $0x248] sm:$0xff] }
0x1451   :  { %4458 = vmatpush1.bf16.xpose.msra.mxu1 %v4177_v56  ;;  %v4315_v56 = vld [vmem:[#allocation3 + $0x4b0] sm:$0xff] }
0x1452   :  { %4459 = vmatprep.subr.bf16.mxu1 %v4184_v33  ;;  %4581 = vmatpush1.bf16.xpose.msra.mxu0 %v4273_v16  ;;  %v4322_v33 = vld [vmem:[#allocation3 + $0x4e8] sm:$0xff]  ;;  %v4237_v16 = vld [vmem:[#allocation3 + $0x240] sm:$0xff] }
0x1453   :  { %4582 = vmatprep.subr.bf16.mxu0 %v4280_v28  ;;  %v4244_v28 = vld [vmem:[#allocation3 + $0x278] sm:$0xff] }
0x1459   :  { %4460 = vmatpush1.bf16.xpose.msra.mxu1 %v4183_v10  ;;  %v4321_v10 = vld [vmem:[#allocation3 + $0x4e0] sm:$0xff] }
0x145a   :  { %4461 = vmatprep.subr.bf16.mxu1 %v4190_v40  ;;  %4583 = vmatpush1.bf16.xpose.msra.mxu0 %v4279_v30  ;;  %v4328_v40 = vld [vmem:[#allocation3 + $0x518] sm:$0xff]  ;;  %v4243_v30 = vld [vmem:[#allocation3 + $0x270] sm:$0xff] }
0x145b   :  { %4584 = vmatprep.subr.bf16.mxu0 %v4286_v52  ;;  %v4250_v52 = vld [vmem:[#allocation3 + $0x2a8] sm:$0xff] }
0x1461   :  { %4462 = vmatpush1.bf16.xpose.msra.mxu1 %v4189_v54  ;;  %v4327_v54 = vld [vmem:[#allocation3 + $0x510] sm:$0xff] }
0x1462   :  { %4463 = vmatprep.subr.bf16.mxu1 %v4196_v47  ;;  %4585 = vmatpush1.bf16.xpose.msra.mxu0 %v4285_v15  ;;  %v4334_v47 = vld [vmem:[#allocation3 + $0x548] sm:$0xff]  ;;  %v4249_v15 = vld [vmem:[#allocation3 + $0x2a0] sm:$0xff] }
0x1463   :  { %4586 = vmatprep.subr.bf16.mxu0 %v4292_v50  ;;  %v4256_v50 = vld [vmem:[#allocation3 + $0x2d8] sm:$0xff] }
0x1469   :  { %4464 = vmatpush1.bf16.xpose.msra.mxu1 %v4195_v0  ;;  %v4333_v0 = vld [vmem:[#allocation3 + $0x540] sm:$0xff] }
0x146a   :  { %4465 = vmatprep.subr.bf16.mxu1 %v4202_v55  ;;  %4587 = vmatpush1.bf16.xpose.msra.mxu0 %v4291_v49  ;;  %v4340_v55 = vld [vmem:[#allocation3 + $0x578] sm:$0xff]  ;;  %v4255_v49 = vld [vmem:[#allocation3 + $0x2d0] sm:$0xff] }
0x146b   :  { %4588 = vmatprep.subr.bf16.mxu0 %v4298_v8  ;;  %v4168_v8 = vld [vmem:[#allocation3 + $0x18] sm:$0xff] }
0x1471   :  { %4466 = vmatpush1.bf16.xpose.msra.mxu1 %v4201_v38  ;;  %v4339_v38 = vld [vmem:[#allocation3 + $0x570] sm:$0xff] }
0x1472   :  { %4467 = vmatprep.subr.bf16.mxu1 %v4208_v23  ;;  %4589 = vmatpush1.bf16.xpose.msra.mxu0 %v4297_v53  ;;  %v4346_v23 = vld [vmem:[#allocation3 + $0x5a8] sm:$0xff]  ;;  %v12342_v53 = vpack.c.bf16 %v12326_v60, %v12326_v60  ;;  %v4180_v60 = vld [vmem:[#allocation3 + $0x78] sm:$0xff] }
0x1473   :  { %4590 = vmatprep.subr.bf16.mxu0 %v4304_v29  ;;  %v12346_v29 = vpack.c.bf16 %v12330_v48, %v12330_v48  ;;  %v4179_v48 = vld [vmem:[#allocation3 + $0x70] sm:$0xff] }
0x1479   :  { %4468 = vmatpush1.bf16.xpose.msra.mxu1 %v4207_v58  ;;  %v4345_v58 = vld [vmem:[#allocation3 + $0x5a0] sm:$0xff] }
0x147a   :  { %4469 = vmatprep.subr.bf16.mxu1 %v4214_v31  ;;  %4591 = vmatpush1.bf16.xpose.msra.mxu0 %v4303_v39  ;;  %v4352_v31 = vld [vmem:[#allocation3 + $0x5d8] sm:$0xff]  ;;  %v4351_v39 = vld [vmem:[#allocation3 + $0x5d0] sm:$0xff] }
0x147b   :  { %4592 = vmatprep.subr.bf16.mxu0 %v4310_v9  ;;  %v4264_v9 = vld [vmem:[#allocation3 + $0x318] sm:$0xff] }
0x1481   :  { %4470 = vmatpush1.bf16.xpose.msra.mxu1 %v4213_v42  ;;  %v4167_v42 = vld [vmem:[#allocation3 + $0x10] sm:$0xff] }
0x1482   :  { %4471 = vmatprep.subr.bf16.mxu1 %v4220_v57  ;;  %4593 = vmatpush1.bf16.xpose.msra.mxu0 %v4309_v51  ;;  %v4174_v57 = vld [vmem:[#allocation3 + $0x48] sm:$0xff] }
0x1483   :  { %4594 = vmatprep.subr.bf16.mxu0 %v4316_v35  ;;  %v4270_v51 = vld [vmem:[#allocation3 + $0x348] sm:$0xff] }
0x1484   :  { %v4186_v35 = vld [vmem:[#allocation3 + $0xa8] sm:$0xff] }
0x1489   :  { %4472 = vmatpush1.bf16.xpose.msra.mxu1 %v4219_v44  ;;  %v4173_v44 = vld [vmem:[#allocation3 + $0x40] sm:$0xff] }
0x148a   :  { %4473 = vmatprep.subr.bf16.mxu1 %v4226_v27  ;;  %4595 = vmatpush1.bf16.xpose.msra.mxu0 %v4315_v56  ;;  %v4263_v27 = vld [vmem:[#allocation3 + $0x310] sm:$0xff]  ;;  %v4185_v56 = vld [vmem:[#allocation3 + $0xa0] sm:$0xff] }
0x148b   :  { %4596 = vmatprep.subr.bf16.mxu0 %v4322_v33  ;;  %v4192_v33 = vld [vmem:[#allocation3 + $0xd8] sm:$0xff] }
0x1491   :  { %4474 = vmatpush1.bf16.xpose.msra.mxu1 %v4225_v45  ;;  %v4269_v45 = vld [vmem:[#allocation3 + $0x340] sm:$0xff] }
0x1492   :  { %4475 = vmatprep.subr.bf16.mxu1 %v4232_v59  ;;  %4597 = vmatpush1.bf16.xpose.msra.mxu0 %v4321_v10  ;;  %v4276_v59 = vld [vmem:[#allocation3 + $0x378] sm:$0xff]  ;;  %v4191_v10 = vld [vmem:[#allocation3 + $0xd0] sm:$0xff] }
0x1493   :  { %4598 = vmatprep.subr.bf16.mxu0 %v4328_v40  ;;  %v4198_v40 = vld [vmem:[#allocation3 + $0x108] sm:$0xff] }
0x1499   :  { %4476 = vmatpush1.bf16.xpose.msra.mxu1 %v4231_v37  ;;  %v4275_v37 = vld [vmem:[#allocation3 + $0x370] sm:$0xff] }
0x149a   :  { %4477 = vmatprep.subr.bf16.mxu1 %v4238_v32  ;;  %4599 = vmatpush1.bf16.xpose.msra.mxu0 %v4327_v54  ;;  %v4282_v32 = vld [vmem:[#allocation3 + $0x3a8] sm:$0xff]  ;;  %v4197_v54 = vld [vmem:[#allocation3 + $0x100] sm:$0xff] }
0x149b   :  { %4600 = vmatprep.subr.bf16.mxu0 %v4334_v47  ;;  %v4204_v47 = vld [vmem:[#allocation3 + $0x138] sm:$0xff] }
0x14a1   :  { %4478 = vmatpush1.bf16.xpose.msra.mxu1 %v4237_v16  ;;  %v4281_v16 = vld [vmem:[#allocation3 + $0x3a0] sm:$0xff] }
0x14a2   :  { %4479 = vmatprep.subr.bf16.mxu1 %v4244_v28  ;;  %4601 = vmatpush1.bf16.xpose.msra.mxu0 %v4333_v0  ;;  %v4288_v28 = vld [vmem:[#allocation3 + $0x3d8] sm:$0xff]  ;;  %v4203_v0 = vld [vmem:[#allocation3 + $0x130] sm:$0xff] }
0x14a3   :  { %4602 = vmatprep.subr.bf16.mxu0 %v4340_v55  ;;  %v4210_v55 = vld [vmem:[#allocation3 + $0x168] sm:$0xff] }
0x14a9   :  { %4480 = vmatpush1.bf16.xpose.msra.mxu1 %v4243_v30  ;;  %v4287_v30 = vld [vmem:[#allocation3 + $0x3d0] sm:$0xff] }
0x14aa   :  { %4481 = vmatprep.subr.bf16.mxu1 %v4250_v52  ;;  %4603 = vmatpush1.bf16.xpose.msra.mxu0 %v4339_v38  ;;  %v4294_v52 = vld [vmem:[#allocation3 + $0x408] sm:$0xff]  ;;  %v4209_v38 = vld [vmem:[#allocation3 + $0x160] sm:$0xff] }
0x14ab   :  { %4604 = vmatprep.subr.bf16.mxu0 %v4346_v23  ;;  %v4216_v23 = vld [vmem:[#allocation3 + $0x198] sm:$0xff] }
0x14b1   :  { %4482 = vmatpush1.bf16.xpose.msra.mxu1 %v4249_v15  ;;  %v4293_v15 = vld [vmem:[#allocation3 + $0x400] sm:$0xff] }
0x14b2   :  { %4483 = vmatprep.subr.bf16.mxu1 %v4256_v50  ;;  %4605 = vmatpush1.bf16.xpose.msra.mxu0 %v4345_v58  ;;  %v4300_v50 = vld [vmem:[#allocation3 + $0x438] sm:$0xff]  ;;  %v4215_v58 = vld [vmem:[#allocation3 + $0x190] sm:$0xff] }
0x14b3   :  { %4606 = vmatprep.subr.bf16.mxu0 %v4352_v31  ;;  %v4222_v31 = vld [vmem:[#allocation3 + $0x1c8] sm:$0xff] }
0x14b9   :  { %4484 = vmatpush1.bf16.xpose.msra.mxu1 %v4255_v49  ;;  %v4299_v49 = vld [vmem:[#allocation3 + $0x430] sm:$0xff] }
0x14ba   :  { %4494 = vmatprep.subr.bf16.mxu1 %v4168_v8  ;;  %4607 = vmatpush1.bf16.xpose.msra.mxu0 %v4351_v39  ;;  %v4306_v8 = vld [vmem:[#allocation3 + $0x468] sm:$0xff]  ;;  %v4221_v39 = vld [vmem:[#allocation3 + $0x1c0] sm:$0xff] }
0x14bb   :  { %4617 = vmatprep.subr.bf16.mxu0 %v4264_v9  ;;  %v4228_v9 = vld [vmem:[#allocation3 + $0x1f8] sm:$0xff] }
0x14c0   :  { %4486 = vmatmul.mubr.bf16.vlgmr.msra.gmra.mrb[56].mxu1 %v12342_v53 }
0x14c1   :  { %4495 = vmatpush1.bf16.xpose.msra.mxu1 %v4167_v42  ;;  %4526 = vmatprep.mubr.bf16.mxu1 %v12346_v29  ;;  %v4305_v42 = vld [vmem:[#allocation3 + $0x460] sm:$0xff] }
0x14c2   :  { %4496 = vmatprep.subr.bf16.mxu1 %v4174_v57  ;;  %4609 = vmatmul.mubr.bf16.vlgmr.msra.gmra.mrb[56].mxu0 %v12342_v53  ;;  %v4312_v57 = vld [vmem:[#allocation3 + $0x498] sm:$0xff] }
0x14c3   :  { %4618 = vmatpush1.bf16.xpose.msra.mxu0 %v4263_v27  ;;  %4649 = vmatprep.mubr.bf16.mxu0 %v12346_v29  ;;  %v4227_v27 = vld [vmem:[#allocation3 + $0x1f0] sm:$0xff] }
0x14c4   :  { %4619 = vmatprep.subr.bf16.mxu0 %v4270_v51  ;;  %v4234_v51 = vld [vmem:[#allocation3 + $0x228] sm:$0xff] }
0x14c9   :  { %4497 = vmatpush1.bf16.xpose.msra.mxu1 %v4173_v44  ;;  %v4311_v44 = vld [vmem:[#allocation3 + $0x490] sm:$0xff] }
0x14ca   :  { %4498 = vmatprep.subr.bf16.mxu1 %v4180_v60  ;;  %v4318_v60 = vld [vmem:[#allocation3 + $0x4c8] sm:$0xff] }
0x14cb   :  { %4620 = vmatpush1.bf16.xpose.msra.mxu0 %v4269_v45  ;;  %v4233_v45 = vld [vmem:[#allocation3 + $0x220] sm:$0xff] }
0x14cc   :  { %4621 = vmatprep.subr.bf16.mxu0 %v4276_v59  ;;  %v4240_v59 = vld [vmem:[#allocation3 + $0x258] sm:$0xff] }
0x14d1   :  { %4499 = vmatpush1.bf16.xpose.msra.mxu1 %v4179_v48  ;;  %v4317_v48 = vld [vmem:[#allocation3 + $0x4c0] sm:$0xff] }
0x14d2   :  { %4500 = vmatprep.subr.bf16.mxu1 %v4186_v35  ;;  %v4324_v35 = vld [vmem:[#allocation3 + $0x4f8] sm:$0xff] }
0x14d3   :  { %4622 = vmatpush1.bf16.xpose.msra.mxu0 %v4275_v37  ;;  %v4239_v37 = vld [vmem:[#allocation3 + $0x250] sm:$0xff] }
0x14d4   :  { %4623 = vmatprep.subr.bf16.mxu0 %v4282_v32  ;;  %v4246_v32 = vld [vmem:[#allocation3 + $0x288] sm:$0xff] }
0x14d9   :  { %4501 = vmatpush1.bf16.xpose.msra.mxu1 %v4185_v56  ;;  %v4323_v56 = vld [vmem:[#allocation3 + $0x4f0] sm:$0xff] }
0x14da   :  { %4502 = vmatprep.subr.bf16.mxu1 %v4192_v33  ;;  %v4330_v33 = vld [vmem:[#allocation3 + $0x528] sm:$0xff] }
0x14db   :  { %4624 = vmatpush1.bf16.xpose.msra.mxu0 %v4281_v16  ;;  %v4245_v16 = vld [vmem:[#allocation3 + $0x280] sm:$0xff] }
0x14dc   :  { %4625 = vmatprep.subr.bf16.mxu0 %v4288_v28  ;;  %v4252_v28 = vld [vmem:[#allocation3 + $0x2b8] sm:$0xff] }
0x14e1   :  { %4503 = vmatpush1.bf16.xpose.msra.mxu1 %v4191_v10  ;;  %v4329_v10 = vld [vmem:[#allocation3 + $0x520] sm:$0xff] }
0x14e2   :  { %4504 = vmatprep.subr.bf16.mxu1 %v4198_v40  ;;  %v4336_v40 = vld [vmem:[#allocation3 + $0x558] sm:$0xff] }
0x14e3   :  { %4626 = vmatpush1.bf16.xpose.msra.mxu0 %v4287_v30  ;;  %v4251_v30 = vld [vmem:[#allocation3 + $0x2b0] sm:$0xff] }
0x14e4   :  { %4627 = vmatprep.subr.bf16.mxu0 %v4294_v52  ;;  %v4258_v52 = vld [vmem:[#allocation3 + $0x2e8] sm:$0xff] }
0x14e9   :  { %4505 = vmatpush1.bf16.xpose.msra.mxu1 %v4197_v54  ;;  %v4335_v54 = vld [vmem:[#allocation3 + $0x550] sm:$0xff] }
0x14ea   :  { %4506 = vmatprep.subr.bf16.mxu1 %v4204_v47  ;;  %v4342_v47 = vld [vmem:[#allocation3 + $0x588] sm:$0xff] }
0x14eb   :  { %4628 = vmatpush1.bf16.xpose.msra.mxu0 %v4293_v15  ;;  %v4257_v15 = vld [vmem:[#allocation3 + $0x2e0] sm:$0xff] }
0x14ec   :  { %4629 = vmatprep.subr.bf16.mxu0 %v4300_v50  ;;  %v4170_v50 = vld [vmem:[#allocation3 + $0x28] sm:$0xff] }
0x14f1   :  { %4507 = vmatpush1.bf16.xpose.msra.mxu1 %v4203_v0  ;;  %v4341_v0 = vld [vmem:[#allocation3 + $0x580] sm:$0xff] }
0x14f2   :  { %4508 = vmatprep.subr.bf16.mxu1 %v4210_v55  ;;  %v4348_v55 = vld [vmem:[#allocation3 + $0x5b8] sm:$0xff] }
0x14f3   :  { %4630 = vmatpush1.bf16.xpose.msra.mxu0 %v4299_v49  ;;  %v12354_v49 = vpack.c.bf16 %v12328_v14, %v12328_v14  ;;  %v4182_v14 = vld [vmem:[#allocation3 + $0x88] sm:$0xff] }
0x14f4   :  { %4631 = vmatprep.subr.bf16.mxu0 %v4306_v8  ;;  %v12358_v8 = vpack.c.bf16 %v12334_v34, %v12334_v34  ;;  %v4181_v34 = vld [vmem:[#allocation3 + $0x80] sm:$0xff] }
0x14f9   :  { %4509 = vmatpush1.bf16.xpose.msra.mxu1 %v4209_v38  ;;  %v4347_v38 = vld [vmem:[#allocation3 + $0x5b0] sm:$0xff] }
0x14fa   :  { %4510 = vmatprep.subr.bf16.mxu1 %v4216_v23  ;;  %v4354_v23 = vld [vmem:[#allocation3 + $0x5e8] sm:$0xff] }
0x14fb   :  { %4632 = vmatpush1.bf16.xpose.msra.mxu0 %v4305_v42  ;;  %v4353_v42 = vld [vmem:[#allocation3 + $0x5e0] sm:$0xff] }
0x14fc   :  { %4633 = vmatprep.subr.bf16.mxu0 %v4312_v57  ;;  %v4266_v57 = vld [vmem:[#allocation3 + $0x328] sm:$0xff] }
0x1501   :  { %4511 = vmatpush1.bf16.xpose.msra.mxu1 %v4215_v58  ;;  %v4169_v58 = vld [vmem:[#allocation3 + $0x20] sm:$0xff] }
0x1502   :  { %4512 = vmatprep.subr.bf16.mxu1 %v4222_v31  ;;  %v4176_v31 = vld [vmem:[#allocation3 + $0x58] sm:$0xff] }
0x1503   :  { %4634 = vmatpush1.bf16.xpose.msra.mxu0 %v4311_v44  ;;  %v4272_v44 = vld [vmem:[#allocation3 + $0x358] sm:$0xff] }
0x1504   :  { %4635 = vmatprep.subr.bf16.mxu0 %v4318_v60  ;;  %v4188_v60 = vld [vmem:[#allocation3 + $0xb8] sm:$0xff] }
0x1509   :  { %4513 = vmatpush1.bf16.xpose.msra.mxu1 %v4221_v39  ;;  %v4175_v39 = vld [vmem:[#allocation3 + $0x50] sm:$0xff] }
0x150a   :  { %4514 = vmatprep.subr.bf16.mxu1 %v4228_v9  ;;  %v4265_v9 = vld [vmem:[#allocation3 + $0x320] sm:$0xff] }
0x150b   :  { %4636 = vmatpush1.bf16.xpose.msra.mxu0 %v4317_v48  ;;  %v4187_v48 = vld [vmem:[#allocation3 + $0xb0] sm:$0xff] }
0x150c   :  { %4637 = vmatprep.subr.bf16.mxu0 %v4324_v35  ;;  %v4194_v35 = vld [vmem:[#allocation3 + $0xe8] sm:$0xff] }
0x1511   :  { %4515 = vmatpush1.bf16.xpose.msra.mxu1 %v4227_v27  ;;  %v4271_v27 = vld [vmem:[#allocation3 + $0x350] sm:$0xff] }
0x1512   :  { %4516 = vmatprep.subr.bf16.mxu1 %v4234_v51  ;;  %v4278_v51 = vld [vmem:[#allocation3 + $0x388] sm:$0xff] }
0x1513   :  { %4638 = vmatpush1.bf16.xpose.msra.mxu0 %v4323_v56  ;;  %v4193_v56 = vld [vmem:[#allocation3 + $0xe0] sm:$0xff] }
0x1514   :  { %4639 = vmatprep.subr.bf16.mxu0 %v4330_v33  ;;  %v4200_v33 = vld [vmem:[#allocation3 + $0x118] sm:$0xff] }
0x1519   :  { %4517 = vmatpush1.bf16.xpose.msra.mxu1 %v4233_v45  ;;  %v4277_v45 = vld [vmem:[#allocation3 + $0x380] sm:$0xff] }
0x151a   :  { %4518 = vmatprep.subr.bf16.mxu1 %v4240_v59  ;;  %v4284_v59 = vld [vmem:[#allocation3 + $0x3b8] sm:$0xff] }
0x151b   :  { %4640 = vmatpush1.bf16.xpose.msra.mxu0 %v4329_v10  ;;  %v4199_v10 = vld [vmem:[#allocation3 + $0x110] sm:$0xff] }
0x151c   :  { %4641 = vmatprep.subr.bf16.mxu0 %v4336_v40  ;;  %v4206_v40 = vld [vmem:[#allocation3 + $0x148] sm:$0xff] }
0x1521   :  { %4519 = vmatpush1.bf16.xpose.msra.mxu1 %v4239_v37  ;;  %v4283_v37 = vld [vmem:[#allocation3 + $0x3b0] sm:$0xff] }
0x1522   :  { %4520 = vmatprep.subr.bf16.mxu1 %v4246_v32  ;;  %v4290_v32 = vld [vmem:[#allocation3 + $0x3e8] sm:$0xff] }
0x1523   :  { %4642 = vmatpush1.bf16.xpose.msra.mxu0 %v4335_v54  ;;  %v4205_v54 = vld [vmem:[#allocation3 + $0x140] sm:$0xff] }
0x1524   :  { %4643 = vmatprep.subr.bf16.mxu0 %v4342_v47  ;;  %v4212_v47 = vld [vmem:[#allocation3 + $0x178] sm:$0xff] }
0x1529   :  { %4521 = vmatpush1.bf16.xpose.msra.mxu1 %v4245_v16  ;;  %v4289_v16 = vld [vmem:[#allocation3 + $0x3e0] sm:$0xff] }
0x152a   :  { %4522 = vmatprep.subr.bf16.mxu1 %v4252_v28  ;;  %v4296_v28 = vld [vmem:[#allocation3 + $0x418] sm:$0xff] }
0x152b   :  { %4644 = vmatpush1.bf16.xpose.msra.mxu0 %v4341_v0  ;;  %v4211_v0 = vld [vmem:[#allocation3 + $0x170] sm:$0xff] }
0x152c   :  { %4645 = vmatprep.subr.bf16.mxu0 %v4348_v55  ;;  %v4218_v55 = vld [vmem:[#allocation3 + $0x1a8] sm:$0xff] }
0x1531   :  { %4523 = vmatpush1.bf16.xpose.msra.mxu1 %v4251_v30  ;;  %v4295_v30 = vld [vmem:[#allocation3 + $0x410] sm:$0xff] }
0x1532   :  { %4524 = vmatprep.subr.bf16.mxu1 %v4258_v52  ;;  %v4302_v52 = vld [vmem:[#allocation3 + $0x448] sm:$0xff] }
0x1533   :  { %4646 = vmatpush1.bf16.xpose.msra.mxu0 %v4347_v38  ;;  %v4217_v38 = vld [vmem:[#allocation3 + $0x1a0] sm:$0xff] }
0x1534   :  { %4647 = vmatprep.subr.bf16.mxu0 %v4354_v23  ;;  %v4224_v23 = vld [vmem:[#allocation3 + $0x1d8] sm:$0xff] }
0x1539   :  { %4525 = vmatpush1.bf16.xpose.msra.mxu1 %v4257_v15  ;;  %v4301_v15 = vld [vmem:[#allocation3 + $0x440] sm:$0xff] }
0x153a   :  { %4535 = vmatprep.subr.bf16.mxu1 %v4170_v50  ;;  %v4308_v50 = vld [vmem:[#allocation3 + $0x478] sm:$0xff] }
0x153b   :  { %4648 = vmatpush1.bf16.xpose.msra.mxu0 %v4353_v42  ;;  %v4223_v42 = vld [vmem:[#allocation3 + $0x1d0] sm:$0xff] }
0x153c   :  { %4658 = vmatprep.subr.bf16.mxu0 %v4266_v57  ;;  %v4230_v57 = vld [vmem:[#allocation3 + $0x208] sm:$0xff] }
0x1540   :  { %4527 = vmatmul.mubr.bf16.vlgmr.msra.gmra.mrb[56].mxu1 %v12354_v49 }
0x1541   :  { %4536 = vmatpush1.bf16.xpose.msra.mxu1 %v4169_v58  ;;  %4567 = vmatprep.mubr.bf16.mxu1 %v12358_v8  ;;  %v4307_v58 = vld [vmem:[#allocation3 + $0x470] sm:$0xff] }
0x1542   :  { %4537 = vmatprep.subr.bf16.mxu1 %v4176_v31  ;;  %4650 = vmatmul.mubr.bf16.vlgmr.msra.gmra.mrb[56].mxu0 %v12354_v49  ;;  %v4314_v31 = vld [vmem:[#allocation3 + $0x4a8] sm:$0xff] }
0x1543   :  { %4659 = vmatpush1.bf16.xpose.msra.mxu0 %v4265_v9  ;;  %4690 = vmatprep.mubr.bf16.mxu0 %v12358_v8  ;;  %v4229_v9 = vld [vmem:[#allocation3 + $0x200] sm:$0xff] }
0x1544   :  { %4660 = vmatprep.subr.bf16.mxu0 %v4272_v44  ;;  %v4236_v44 = vld [vmem:[#allocation3 + $0x238] sm:$0xff] }
0x1549   :  { %4538 = vmatpush1.bf16.xpose.msra.mxu1 %v4175_v39  ;;  %v4313_v39 = vld [vmem:[#allocation3 + $0x4a0] sm:$0xff] }
0x154a   :  { %4539 = vmatprep.subr.bf16.mxu1 %v4182_v14  ;;  %v4320_v14 = vld [vmem:[#allocation3 + $0x4d8] sm:$0xff] }
0x154b   :  { %4661 = vmatpush1.bf16.xpose.msra.mxu0 %v4271_v27  ;;  %v4235_v27 = vld [vmem:[#allocation3 + $0x230] sm:$0xff] }
0x154c   :  { %4662 = vmatprep.subr.bf16.mxu0 %v4278_v51  ;;  %v4242_v51 = vld [vmem:[#allocation3 + $0x268] sm:$0xff] }
0x1551   :  { %4540 = vmatpush1.bf16.xpose.msra.mxu1 %v4181_v34  ;;  %v4319_v34 = vld [vmem:[#allocation3 + $0x4d0] sm:$0xff] }
0x1552   :  { %4541 = vmatprep.subr.bf16.mxu1 %v4188_v60  ;;  %v4326_v60 = vld [vmem:[#allocation3 + $0x508] sm:$0xff] }
0x1553   :  { %4663 = vmatpush1.bf16.xpose.msra.mxu0 %v4277_v45  ;;  %v4241_v45 = vld [vmem:[#allocation3 + $0x260] sm:$0xff] }
0x1554   :  { %4664 = vmatprep.subr.bf16.mxu0 %v4284_v59  ;;  %v4248_v59 = vld [vmem:[#allocation3 + $0x298] sm:$0xff] }
0x1559   :  { %4542 = vmatpush1.bf16.xpose.msra.mxu1 %v4187_v48  ;;  %v4325_v48 = vld [vmem:[#allocation3 + $0x500] sm:$0xff] }
0x155a   :  { %4543 = vmatprep.subr.bf16.mxu1 %v4194_v35  ;;  %v4332_v35 = vld [vmem:[#allocation3 + $0x538] sm:$0xff] }
0x155b   :  { %4665 = vmatpush1.bf16.xpose.msra.mxu0 %v4283_v37  ;;  %v4247_v37 = vld [vmem:[#allocation3 + $0x290] sm:$0xff] }
0x155c   :  { %4666 = vmatprep.subr.bf16.mxu0 %v4290_v32  ;;  %v4254_v32 = vld [vmem:[#allocation3 + $0x2c8] sm:$0xff] }
0x1561   :  { %4544 = vmatpush1.bf16.xpose.msra.mxu1 %v4193_v56  ;;  %v4331_v56 = vld [vmem:[#allocation3 + $0x530] sm:$0xff] }
0x1562   :  { %4545 = vmatprep.subr.bf16.mxu1 %v4200_v33  ;;  %v4338_v33 = vld [vmem:[#allocation3 + $0x568] sm:$0xff] }
0x1563   :  { %4667 = vmatpush1.bf16.xpose.msra.mxu0 %v4289_v16  ;;  %v4253_v16 = vld [vmem:[#allocation3 + $0x2c0] sm:$0xff] }
0x1564   :  { %4668 = vmatprep.subr.bf16.mxu0 %v4296_v28  ;;  %v4260_v28 = vld [vmem:[#allocation3 + $0x2f8] sm:$0xff] }
0x1569   :  { %4546 = vmatpush1.bf16.xpose.msra.mxu1 %v4199_v10  ;;  %v4337_v10 = vld [vmem:[#allocation3 + $0x560] sm:$0xff] }
0x156a   :  { %4547 = vmatprep.subr.bf16.mxu1 %v4206_v40  ;;  %v4344_v40 = vld [vmem:[#allocation3 + $0x598] sm:$0xff] }
0x156b   :  { %4669 = vmatpush1.bf16.xpose.msra.mxu0 %v4295_v30  ;;  %v4259_v30 = vld [vmem:[#allocation3 + $0x2f0] sm:$0xff] }
0x156c   :  { %4670 = vmatprep.subr.bf16.mxu0 %v4302_v52  ;;  %v4358_v52 = vld [vmem:[#allocation3 + $0x608] sm:$0xff] }
0x1571   :  { %4548 = vmatpush1.bf16.xpose.msra.mxu1 %v4205_v54  ;;  %v4343_v54 = vld [vmem:[#allocation3 + $0x590] sm:$0xff] }
0x1572   :  { %4549 = vmatprep.subr.bf16.mxu1 %v4212_v47  ;;  %v4350_v47 = vld [vmem:[#allocation3 + $0x5c8] sm:$0xff] }
0x1573   :  { %4671 = vmatpush1.bf16.xpose.msra.mxu0 %v4301_v15  ;;  %v12366_v15 = vpack.c.bf16 %v12332_v43, %v12332_v43  ;;  %v4369_v43 = vld [vmem:[#allocation3 + $0x660] sm:$0xff] }
0x1574   :  { %4672 = vmatprep.subr.bf16.mxu0 %v4308_v50  ;;  %v4357_v50 = vld [vmem:[#allocation3 + $0x600] sm:$0xff] }
0x1579   :  { %4550 = vmatpush1.bf16.xpose.msra.mxu1 %v4211_v0  ;;  %v4349_v0 = vld [vmem:[#allocation3 + $0x5c0] sm:$0xff] }
0x157a   :  { %4551 = vmatprep.subr.bf16.mxu1 %v4218_v55  ;;  %v4356_v55 = vld [vmem:[#allocation3 + $0x5f8] sm:$0xff] }
0x157b   :  { %4673 = vmatpush1.bf16.xpose.msra.mxu0 %v4307_v58  ;;  %v4363_v58 = vld [vmem:[#allocation3 + $0x630] sm:$0xff] }
0x157c   :  { %4674 = vmatprep.subr.bf16.mxu0 %v4314_v31  ;;  %v4370_v31 = vld [vmem:[#allocation3 + $0x668] sm:$0xff] }
0x1581   :  { %4552 = vmatpush1.bf16.xpose.msra.mxu1 %v4217_v38  ;;  %v4364_v38 = vld [vmem:[#allocation3 + $0x638] sm:$0xff] }
0x1582   :  { %4553 = vmatprep.subr.bf16.mxu1 %v4224_v23  ;;  %v4355_v23 = vld [vmem:[#allocation3 + $0x5f0] sm:$0xff] }
0x1583   :  { %4675 = vmatpush1.bf16.xpose.msra.mxu0 %v4313_v39  ;;  %v4381_v39 = vld [vmem:[#allocation3 + $0x6c0] sm:$0xff] }
0x1584   :  { %4676 = vmatprep.subr.bf16.mxu0 %v4320_v14  ;;  %v4388_v14 = vld [vmem:[#allocation3 + $0x6f8] sm:$0xff] }
0x1589   :  { %4554 = vmatpush1.bf16.xpose.msra.mxu1 %v4223_v42  ;;  %v4376_v42 = vld [vmem:[#allocation3 + $0x698] sm:$0xff] }
0x158a   :  { %4555 = vmatprep.subr.bf16.mxu1 %v4230_v57  ;;  %v4375_v57 = vld [vmem:[#allocation3 + $0x690] sm:$0xff] }
0x158b   :  { %4677 = vmatpush1.bf16.xpose.msra.mxu0 %v4319_v34  ;;  %v4393_v34 = vld [vmem:[#allocation3 + $0x720] sm:$0xff] }
0x158c   :  { %4678 = vmatprep.subr.bf16.mxu0 %v4326_v60  ;;  %v4400_v60 = vld [vmem:[#allocation3 + $0x758] sm:$0xff] }
0x1591   :  { %4556 = vmatpush1.bf16.xpose.msra.mxu1 %v4229_v9  ;;  %v4387_v9 = vld [vmem:[#allocation3 + $0x6f0] sm:$0xff] }
0x1592   :  { %4557 = vmatprep.subr.bf16.mxu1 %v4236_v44  ;;  %v4394_v44 = vld [vmem:[#allocation3 + $0x728] sm:$0xff] }
0x1593   :  { %4679 = vmatpush1.bf16.xpose.msra.mxu0 %v4325_v48  ;;  %v4405_v48 = vld [vmem:[#allocation3 + $0x780] sm:$0xff] }
0x1594   :  { %4680 = vmatprep.subr.bf16.mxu0 %v4332_v35  ;;  %v4412_v35 = vld [vmem:[#allocation3 + $0x7b8] sm:$0xff] }
0x1599   :  { %4558 = vmatpush1.bf16.xpose.msra.mxu1 %v4235_v27  ;;  %v4399_v27 = vld [vmem:[#allocation3 + $0x750] sm:$0xff] }
0x159a   :  { %4559 = vmatprep.subr.bf16.mxu1 %v4242_v51  ;;  %v4406_v51 = vld [vmem:[#allocation3 + $0x788] sm:$0xff] }
0x159b   :  { %4681 = vmatpush1.bf16.xpose.msra.mxu0 %v4331_v56  ;;  %v4417_v56 = vld [vmem:[#allocation3 + $0x7e0] sm:$0xff] }
0x159c   :  { %4682 = vmatprep.subr.bf16.mxu0 %v4338_v33  ;;  %v4424_v33 = vld [vmem:[#allocation3 + $0x818] sm:$0xff] }
0x15a1   :  { %4560 = vmatpush1.bf16.xpose.msra.mxu1 %v4241_v45  ;;  %v4411_v45 = vld [vmem:[#allocation3 + $0x7b0] sm:$0xff] }
0x15a2   :  { %4561 = vmatprep.subr.bf16.mxu1 %v4248_v59  ;;  %v4418_v59 = vld [vmem:[#allocation3 + $0x7e8] sm:$0xff] }
0x15a3   :  { %4683 = vmatpush1.bf16.xpose.msra.mxu0 %v4337_v10  ;;  %v4429_v10 = vld [vmem:[#allocation3 + $0x840] sm:$0xff] }
0x15a4   :  { %4684 = vmatprep.subr.bf16.mxu0 %v4344_v40  ;;  %v4436_v40 = vld [vmem:[#allocation3 + $0x878] sm:$0xff] }
0x15a9   :  { %4562 = vmatpush1.bf16.xpose.msra.mxu1 %v4247_v37  ;;  %v4423_v37 = vld [vmem:[#allocation3 + $0x810] sm:$0xff] }
0x15aa   :  { %4563 = vmatprep.subr.bf16.mxu1 %v4254_v32  ;;  %v4430_v32 = vld [vmem:[#allocation3 + $0x848] sm:$0xff] }
0x15ab   :  { %4685 = vmatpush1.bf16.xpose.msra.mxu0 %v4343_v54  ;;  %v4441_v54 = vld [vmem:[#allocation3 + $0x8a0] sm:$0xff] }
0x15ac   :  { %4686 = vmatprep.subr.bf16.mxu0 %v4350_v47  ;;  %v4448_v47 = vld [vmem:[#allocation3 + $0x8d8] sm:$0xff] }
0x15b1   :  { %4564 = vmatpush1.bf16.xpose.msra.mxu1 %v4253_v16  ;;  %v4435_v16 = vld [vmem:[#allocation3 + $0x870] sm:$0xff] }
0x15b2   :  { %4565 = vmatprep.subr.bf16.mxu1 %v4260_v28  ;;  %v4442_v28 = vld [vmem:[#allocation3 + $0x8a8] sm:$0xff] }
0x15b3   :  { %4687 = vmatpush1.bf16.xpose.msra.mxu0 %v4349_v0  ;;  %v4359_v0 = vld [vmem:[#allocation3 + $0x610] sm:$0xff] }
0x15b4   :  { %4688 = vmatprep.subr.bf16.mxu0 %v4356_v55  ;;  %v4366_v55 = vld [vmem:[#allocation3 + $0x648] sm:$0xff] }
0x15b9   :  { %4566 = vmatpush1.bf16.xpose.msra.mxu1 %v4259_v30  ;;  %v4447_v30 = vld [vmem:[#allocation3 + $0x8d0] sm:$0xff] }
0x15ba   :  { %4699 = vmatprep.subr.bf16.mxu1 %v4358_v52  ;;  %v4360_v52 = vld [vmem:[#allocation3 + $0x618] sm:$0xff] }
0x15bb   :  { %4689 = vmatpush1.bf16.xpose.msra.mxu0 %v4355_v23  ;;  %v4371_v23 = vld [vmem:[#allocation3 + $0x670] sm:$0xff] }
0x15bc   :  { %4828 = vmatprep.subr.bf16.mxu0 %v11485_v21 }
0x15c0   :  { %4568 = vmatmul.mubr.bf16.vlgmr.msra.gmra.mrb[56].mxu1 %v12366_v15 }
0x15c1   :  { %4700 = vmatpush1.bf16.xpose.msra.mxu1 %v4357_v50  ;;  %4731 = vmatprep.mubr.bf16.mxu1 %v12336_v46  ;;  %v4382_v46 = vld [vmem:[#allocation3 + $0x6c8] sm:$0xff]  ;;  %v4365_v50 = vld [vmem:[#allocation3 + $0x640] sm:$0xff] }
0x15c2   :  { %4701 = vmatprep.subr.bf16.mxu1 %v4364_v38  ;;  %4691 = vmatmul.mubr.bf16.vlgmr.msra.gmra.mrb[56].mxu0 %v12366_v15  ;;  %v4372_v38 = vld [vmem:[#allocation3 + $0x678] sm:$0xff] }
0x15c3   :  { %4829 = vmatpush1.bf16.xpose.msra.mxu0 %v11481_v20 }
0x15c4   :  { %4868 = vmatprep.subr.bf16.mxu0 %v11495_v24 }
0x15c9   :  { %4702 = vmatpush1.bf16.xpose.msra.mxu1 %v4363_v58  ;;  %v4378_v58 = vld [vmem:[#allocation3 + $0x6a8] sm:$0xff] }
0x15ca   :  { %4703 = vmatprep.subr.bf16.mxu1 %v4370_v31  ;;  %v4377_v31 = vld [vmem:[#allocation3 + $0x6a0] sm:$0xff] }
0x15d1   :  { %4704 = vmatpush1.bf16.xpose.msra.mxu1 %v4369_v43  ;;  %v4384_v43 = vld [vmem:[#allocation3 + $0x6d8] sm:$0xff] }
0x15d2   :  { %4705 = vmatprep.subr.bf16.mxu1 %v4376_v42  ;;  %v4383_v42 = vld [vmem:[#allocation3 + $0x6d0] sm:$0xff] }
0x15d9   :  { %4706 = vmatpush1.bf16.xpose.msra.mxu1 %v4375_v57  ;;  %v4390_v57 = vld [vmem:[#allocation3 + $0x708] sm:$0xff] }
0x15da   :  { %4707 = vmatprep.subr.bf16.mxu1 %v4382_v46  ;;  %v4396_v46 = vld [vmem:[#allocation3 + $0x738] sm:$0xff] }
0x15e1   :  { %4708 = vmatpush1.bf16.xpose.msra.mxu1 %v4381_v39  ;;  %v4402_v39 = vld [vmem:[#allocation3 + $0x768] sm:$0xff] }
0x15e2   :  { %4709 = vmatprep.subr.bf16.mxu1 %v4388_v14  ;;  %v4401_v14 = vld [vmem:[#allocation3 + $0x760] sm:$0xff] }
0x15e9   :  { %4710 = vmatpush1.bf16.xpose.msra.mxu1 %v4387_v9  ;;  %v4408_v9 = vld [vmem:[#allocation3 + $0x798] sm:$0xff] }
0x15ea   :  { %4711 = vmatprep.subr.bf16.mxu1 %v4394_v44  ;;  %v4407_v44 = vld [vmem:[#allocation3 + $0x790] sm:$0xff] }
0x15f1   :  { %4712 = vmatpush1.bf16.xpose.msra.mxu1 %v4393_v34  ;;  %v4414_v34 = vld [vmem:[#allocation3 + $0x7c8] sm:$0xff] }
0x15f2   :  { %4713 = vmatprep.subr.bf16.mxu1 %v4400_v60  ;;  %v4413_v60 = vld [vmem:[#allocation3 + $0x7c0] sm:$0xff] }
0x15f9   :  { %4714 = vmatpush1.bf16.xpose.msra.mxu1 %v4399_v27  ;;  %v4420_v27 = vld [vmem:[#allocation3 + $0x7f8] sm:$0xff] }
0x15fa   :  { %4715 = vmatprep.subr.bf16.mxu1 %v4406_v51  ;;  %v4419_v51 = vld [vmem:[#allocation3 + $0x7f0] sm:$0xff] }
0x1601   :  { %4716 = vmatpush1.bf16.xpose.msra.mxu1 %v4405_v48  ;;  %v4426_v48 = vld [vmem:[#allocation3 + $0x828] sm:$0xff] }
0x1602   :  { %4717 = vmatprep.subr.bf16.mxu1 %v4412_v35 }
0x1609   :  { %4718 = vmatpush1.bf16.xpose.msra.mxu1 %v4411_v45 }
0x160a   :  { %4719 = vmatprep.subr.bf16.mxu1 %v4418_v59 }
0x1611   :  { %4720 = vmatpush1.bf16.xpose.msra.mxu1 %v4417_v56 }
0x1612   :  { %4721 = vmatprep.subr.bf16.mxu1 %v4424_v33 }
0x1619   :  { %4722 = vmatpush1.bf16.xpose.msra.mxu1 %v4423_v37 }
0x161a   :  { %4723 = vmatprep.subr.bf16.mxu1 %v4430_v32  ;;  %v4425_v32 = vld [vmem:[#allocation3 + $0x820] sm:$0xff] }
0x1621   :  { %4724 = vmatpush1.bf16.xpose.msra.mxu1 %v4429_v10  ;;  %v4432_v10 = vld [vmem:[#allocation3 + $0x858] sm:$0xff] }
0x1622   :  { %4725 = vmatprep.subr.bf16.mxu1 %v4436_v40 }
0x1629   :  { %4726 = vmatpush1.bf16.xpose.msra.mxu1 %v4435_v16  ;;  %v4431_v16 = vld [vmem:[#allocation3 + $0x850] sm:$0xff] }
0x162a   :  { %4727 = vmatprep.subr.bf16.mxu1 %v4442_v28 }
0x1631   :  { %4728 = vmatpush1.bf16.xpose.msra.mxu1 %v4441_v54  ;;  %v4438_v54 = vld [vmem:[#allocation3 + $0x888] sm:$0xff] }
0x1632   :  { %4729 = vmatprep.subr.bf16.mxu1 %v4448_v47 }
0x1639   :  { %4730 = vmatpush1.bf16.xpose.msra.mxu1 %v4447_v30 }
0x163a   :  { %4740 = vmatprep.subr.bf16.mxu1 %v4360_v52 }
0x1640   :  { %4732 = vmatmul.mubr.bf16.vlgmr.msra.gmra.mrb[60].mxu1 %v12342_v53  ;;  %v4389_v53 = vld [vmem:[#allocation3 + $0x700] sm:$0xff] }
0x1641   :  { %4741 = vmatpush1.bf16.xpose.msra.mxu1 %v4359_v0  ;;  %4772 = vmatprep.mubr.bf16.mxu1 %v12346_v29  ;;  %v4395_v29 = vld [vmem:[#allocation3 + $0x730] sm:$0xff] }
0x1642   :  { %4742 = vmatprep.subr.bf16.mxu1 %v4366_v55  ;;  %v4437_v55 = vld [vmem:[#allocation3 + $0x880] sm:$0xff] }
0x1649   :  { %4743 = vmatpush1.bf16.xpose.msra.mxu1 %v4365_v50  ;;  %v4444_v50 = vld [vmem:[#allocation3 + $0x8b8] sm:$0xff] }
0x164a   :  { %4744 = vmatprep.subr.bf16.mxu1 %v4372_v38  ;;  %v4443_v38 = vld [vmem:[#allocation3 + $0x8b0] sm:$0xff] }
0x1651   :  { %4745 = vmatpush1.bf16.xpose.msra.mxu1 %v4371_v23  ;;  %v4450_v23 = vld [vmem:[#allocation3 + $0x8e8] sm:$0xff] }
0x1652   :  { %4746 = vmatprep.subr.bf16.mxu1 %v4378_v58  ;;  %v4449_v58 = vld [vmem:[#allocation3 + $0x8e0] sm:$0xff] }
0x1659   :  { %4747 = vmatpush1.bf16.xpose.msra.mxu1 %v4377_v31  ;;  %v4362_v31 = vld [vmem:[#allocation3 + $0x628] sm:$0xff] }
0x165a   :  { %4748 = vmatprep.subr.bf16.mxu1 %v4384_v43  ;;  %v4361_v43 = vld [vmem:[#allocation3 + $0x620] sm:$0xff] }
0x1661   :  { %4749 = vmatpush1.bf16.xpose.msra.mxu1 %v4383_v42  ;;  %v4368_v42 = vld [vmem:[#allocation3 + $0x658] sm:$0xff] }
0x1662   :  { %4750 = vmatprep.subr.bf16.mxu1 %v4390_v57  ;;  %v4374_v57 = vld [vmem:[#allocation3 + $0x688] sm:$0xff] }
0x1669   :  { %4751 = vmatpush1.bf16.xpose.msra.mxu1 %v4389_v53  ;;  %v4373_v53 = vld [vmem:[#allocation3 + $0x680] sm:$0xff] }
0x166a   :  { %4752 = vmatprep.subr.bf16.mxu1 %v4396_v46  ;;  %v4380_v46 = vld [vmem:[#allocation3 + $0x6b8] sm:$0xff] }
0x1671   :  { %4753 = vmatpush1.bf16.xpose.msra.mxu1 %v4395_v29  ;;  %v4379_v29 = vld [vmem:[#allocation3 + $0x6b0] sm:$0xff] }
0x1672   :  { %4754 = vmatprep.subr.bf16.mxu1 %v4402_v39  ;;  %v4386_v39 = vld [vmem:[#allocation3 + $0x6e8] sm:$0xff] }
0x1679   :  { %4755 = vmatpush1.bf16.xpose.msra.mxu1 %v4401_v14  ;;  %v4385_v14 = vld [vmem:[#allocation3 + $0x6e0] sm:$0xff] }
0x167a   :  { %4756 = vmatprep.subr.bf16.mxu1 %v4408_v9  ;;  %v4392_v9 = vld [vmem:[#allocation3 + $0x718] sm:$0xff] }
0x1681   :  { %4757 = vmatpush1.bf16.xpose.msra.mxu1 %v4407_v44  ;;  %v4398_v44 = vld [vmem:[#allocation3 + $0x748] sm:$0xff] }
0x1682   :  { %4758 = vmatprep.subr.bf16.mxu1 %v4414_v34  ;;  %v4404_v34 = vld [vmem:[#allocation3 + $0x778] sm:$0xff] }
0x1689   :  { %4759 = vmatpush1.bf16.xpose.msra.mxu1 %v4413_v60  ;;  %v4403_v60 = vld [vmem:[#allocation3 + $0x770] sm:$0xff] }
0x168a   :  { %4760 = vmatprep.subr.bf16.mxu1 %v4420_v27  ;;  %v4410_v27 = vld [vmem:[#allocation3 + $0x7a8] sm:$0xff] }
0x1691   :  { %4761 = vmatpush1.bf16.xpose.msra.mxu1 %v4419_v51  ;;  %v4409_v51 = vld [vmem:[#allocation3 + $0x7a0] sm:$0xff] }
0x1692   :  { %4762 = vmatprep.subr.bf16.mxu1 %v4426_v48  ;;  %v4416_v48 = vld [vmem:[#allocation3 + $0x7d8] sm:$0xff] }
0x1693   :  { %v4569_v35 = vpop.f32.mrb[56].mxu1 }
0x1694   :  { %v4571_v45 = vpop.f32.mrb[57].mxu1  ;;  %v4822_v33 = vpack.c.bf16 %v4569_v35, %v4569_v35  ;;  %v4415_v35 = vld [vmem:[#allocation3 + $0x7d0] sm:$0xff] }
0x1695   :  { %v4823_v59 = vpack.c.bf16 %v4571_v45, %v4571_v45  ;;  %v4573_v56 = vpop.f32.mrb[58].mxu1  ;;  %v4692_v40 = vpop.f32.mrb[56].mxu0  ;;  %v4422_v45 = vld [vmem:[#allocation3 + $0x808] sm:$0xff] }
0x1696   :  { %v4574_v37 = vpop.f32.mrb[59].mxu1  ;;  %v4694_v28 = vpop.f32.mrb[57].mxu0  ;;  %v4824_v52 = vpack.c.bf16 %v4692_v40, %v4692_v40  ;;  %v4428_v56 = vld [vmem:[#allocation3 + $0x838] sm:$0xff]  ;;  %v4439_v40 = vld [vmem:[#allocation3 + $0x890] sm:$0xff] }
0x1697   :  { %4860 = vmatprep.mubr.bf16.mxu0 %v4823_v59  ;;  %v4825_v47 = vpack.c.bf16 %v4694_v28, %v4694_v28  ;;  %v4696_v30 = vpop.f32.mrb[58].mxu0  ;;  %v4421_v59 = vld [vmem:[#allocation3 + $0x800] sm:$0xff]  ;;  %v4434_v37 = vld [vmem:[#allocation3 + $0x868] sm:$0xff] }
0x1698   :  { %4861 = vmatmul.mubr.bf16.vlgmr.msra.gmra.mrb[60].mxu0 %v4822_v33  ;;  %v4697_v0 = vpop.f32.mrb[59].mxu0  ;;  %v4427_v33 = vld [vmem:[#allocation3 + $0x830] sm:$0xff]  ;;  %v4445_v28 = vld [vmem:[#allocation3 + $0x8c0] sm:$0xff] }
0x1699   :  { %4763 = vmatpush1.bf16.xpose.msra.mxu1 %v4425_v32  ;;  %4869 = vmatpush1.bf16.xpose.msra.mxu0 %v11489_v22  ;;  %v4433_v32 = vld [vmem:[#allocation3 + $0x860] sm:$0xff] }
0x169a   :  { %4764 = vmatprep.subr.bf16.mxu1 %v4432_v10  ;;  %4908 = vmatprep.subr.bf16.mxu0 %v11503_v26  ;;  %v4440_v10 = vld [vmem:[#allocation3 + $0x898] sm:$0xff] }
0x169b   :  { %4900 = vmatprep.mubr.bf16.mxu0 %v4825_v47  ;;  %v4451_v47 = vld [vmem:[#allocation3 + $0x8f0] sm:$0xff] }
0x16a1   :  { %4765 = vmatpush1.bf16.xpose.msra.mxu1 %v4431_v16  ;;  %v4446_v16 = vld [vmem:[#allocation3 + $0x8c8] sm:$0xff] }
0x16a2   :  { %4766 = vmatprep.subr.bf16.mxu1 %v4438_v54  ;;  %v4452_v54 = vld [vmem:[#allocation3 + $0x8f8] sm:$0xff] }
0x16a4   :  { %4901 = vmatmul.mubr.bf16.vlgmr.msra.gmra.mrb[60].mxu0 %v4824_v52 }
0x16a5   :  { %4909 = vmatpush1.bf16.xpose.msra.mxu0 %v11499_v25 }
0x16a6   :  { %10195 = vmatprep.subr.bf16.mxu0 %v11485_v21  ;;  %v4367_v21 = vld [vmem:[#allocation3 + $0x650] sm:$0xff] }
0x16a9   :  { %4767 = vmatpush1.bf16.xpose.msra.mxu1 %v4437_v55 }
0x16aa   :  { %4768 = vmatprep.subr.bf16.mxu1 %v4444_v50 }
0x16b1   :  { %4769 = vmatpush1.bf16.xpose.msra.mxu1 %v4443_v38 }
0x16b2   :  { %4770 = vmatprep.subr.bf16.mxu1 %v4450_v23 }
0x16b9   :  { %4771 = vmatpush1.bf16.xpose.msra.mxu1 %v4449_v58  ;;  %v4949_v58 = vld [vmem:[#allocation23] sm:$0x3] }
0x16ba   :  { %4781 = vmatprep.subr.bf16.mxu1 %v4362_v31 }
0x16c0   :  { %4773 = vmatmul.mubr.bf16.vlgmr.msra.gmra.mrb[60].mxu1 %v12354_v49  ;;  %v4391_v49 = vld [vmem:[#allocation3 + $0x710] sm:$0xff] }
0x16c1   :  { %4782 = vmatpush1.bf16.xpose.msra.mxu1 %v4361_v43  ;;  %4813 = vmatprep.mubr.bf16.mxu1 %v12358_v8  ;;  %v4397_v8 = vld [vmem:[#allocation3 + $0x740] sm:$0xff] }
0x16c2   :  { %4783 = vmatprep.subr.bf16.mxu1 %v4368_v42 }
0x16c9   :  { %4784 = vmatpush1.bf16.xpose.msra.mxu1 %v4367_v21 }
0x16ca   :  { %4785 = vmatprep.subr.bf16.mxu1 %v4374_v57 }
0x16d1   :  { %4786 = vmatpush1.bf16.xpose.msra.mxu1 %v4373_v53 }
0x16d2   :  { %4787 = vmatprep.subr.bf16.mxu1 %v4380_v46 }
0x16d9   :  { %4788 = vmatpush1.bf16.xpose.msra.mxu1 %v4379_v29 }
0x16da   :  { %4789 = vmatprep.subr.bf16.mxu1 %v4386_v39 }
0x16e1   :  { %4790 = vmatpush1.bf16.xpose.msra.mxu1 %v4385_v14 }
0x16e2   :  { %4791 = vmatprep.subr.bf16.mxu1 %v4392_v9 }
0x16e9   :  { %4792 = vmatpush1.bf16.xpose.msra.mxu1 %v4391_v49 }
0x16ea   :  { %4793 = vmatprep.subr.bf16.mxu1 %v4398_v44 }
0x16f1   :  { %4794 = vmatpush1.bf16.xpose.msra.mxu1 %v4397_v8 }
0x16f2   :  { %4795 = vmatprep.subr.bf16.mxu1 %v4404_v34 }
0x16f9   :  { %4796 = vmatpush1.bf16.xpose.msra.mxu1 %v4403_v60 }
0x16fa   :  { %4797 = vmatprep.subr.bf16.mxu1 %v4410_v27 }
0x1701   :  { %4798 = vmatpush1.bf16.xpose.msra.mxu1 %v4409_v51 }
0x1702   :  { %4799 = vmatprep.subr.bf16.mxu1 %v4416_v48 }
0x1709   :  { %4800 = vmatpush1.bf16.xpose.msra.mxu1 %v4415_v35 }
0x170a   :  { %4801 = vmatprep.subr.bf16.mxu1 %v4422_v45 }
0x1711   :  { %4802 = vmatpush1.bf16.xpose.msra.mxu1 %v4421_v59 }
0x1712   :  { %4803 = vmatprep.subr.bf16.mxu1 %v4428_v56 }
0x1719   :  { %4804 = vmatpush1.bf16.xpose.msra.mxu1 %v4427_v33 }
0x171a   :  { %4805 = vmatprep.subr.bf16.mxu1 %v4434_v37 }
0x1721   :  { %4806 = vmatpush1.bf16.xpose.msra.mxu1 %v4433_v32 }
0x1722   :  { %4807 = vmatprep.subr.bf16.mxu1 %v4440_v10 }
0x1729   :  { %4808 = vmatpush1.bf16.xpose.msra.mxu1 %v4439_v40 }
0x172a   :  { %4809 = vmatprep.subr.bf16.mxu1 %v4446_v16 }
0x1731   :  { %4810 = vmatpush1.bf16.xpose.msra.mxu1 %v4445_v28 }
0x1732   :  { %4811 = vmatprep.subr.bf16.mxu1 %v4452_v54 }
0x1739   :  { %4812 = vmatpush1.bf16.xpose.msra.mxu1 %v4451_v47 }
0x1740   :  { %4814 = vmatmul.mubr.bf16.vlgmr.msra.gmra.mrb[60].mxu1 %v12366_v15 }
0x1813   :  { %v4815_v30 = vpop.f32.mrb[60].mxu1 }
0x1814   :  { %v4817_v52 = vpop.f32.mrb[61].mxu1  ;;  %v4826_v50 = vpack.c.bf16 %v4815_v30, %v4815_v30 }
0x1815   :  { %v4827_v0 = vpack.c.bf16 %v4817_v52, %v4817_v52  ;;  %v4819_v55 = vpop.f32.mrb[62].mxu1 }
0x1816   :  { %v4820_v38 = vpop.f32.mrb[63].mxu1 }
0x1817   :  { %4940 = vmatprep.mubr.bf16.mxu0 %v4827_v0 }
0x1818   :  { %4941 = vmatmul.mubr.bf16.vlgmr.msra.gmra.mrb[60].mxu0 %v4826_v50 }
0x1819   :  { %10197 = vmatpush1.bf16.msra.mxu0 %v11481_v20  ;;  %5030 = vmatprep.mubr.f32.mxu0 %v11057_v1 }
0x181a   :  { %10199 = vmatprep.subr.bf16.mxu0 %v11495_v24 }
0x18eb   :  { %v4942_v23 = vpop.f32.mrb[60].mxu0 }
0x18ec   :  { %v4948_v31 = vmul.f32 0.03608439, %v4942_v23  ;;  %v4944_v43 = vpop.f32.mrb[61].mxu0 }
0x18ed   :  { %v4945_v42 = vpop.f32.mrb[62].mxu0 }
0x18ee   :  { %v4946_v15 = vpop.f32.mrb[63].mxu0  ;;  %v4950_v21 = vadd.f32 %v4949_v58, %v4948_v31 }
0x18f0   :  { %v4952_v57 = vsel %vm4951_vm5, %v4950_v21, -inf }
0x18f1   :  { %4953 = vmax.xlane.f32.xlu0 %v4952_v57 }
0x197e   :  { %v4954_v53 = vpop.xlane.xlu0 %4953 }
0x197f   :  { %v4955_v46 = vsub.f32 %v4950_v21, %v4954_v53 }
0x1981   :  { %v4956_v29 = vmul.f32 1.442695, %v4955_v46 }
0x1983   :  { %10737 = vpow2.f32 %v4956_v29 }
0x198d   :  { %v10738_v39 = vpop.eup %10737 }
0x198e   :  { %v4958_v20 = vsel %vm4951_vm5, %v10738_v39, 0.0 }
0x198f   :  { %4959 = vadd.xlane.f32.xlu0 %v4958_v20 }
0x1a1c   :  { %v4960_v14 = vpop.xlane.xlu0 %4959 }
0x1a1d   :  { %10739 = vrcp.f32 %v4960_v14 }
0x1a27   :  { %v10740_v24 = vpop.eup %10739 }
0x1a28   :  { %v4962_v9 = vmul.f32 %v10740_v24, %v10738_v39 }
0x1a2a   :  { %9464 = vmatmul.mubr.msk.f32.vlgmr.msra.gmra.mrb[46].mxu0 %vm408_vm1, %v4962_v9 }
0x1a2b   :  { %10201 = vmatpush1.bf16.msra.mxu0 %v11489_v22  ;;  %5101 = vmatprep.mubr.f32.mxu0 %v11057_v1 }
0x1a2c   :  { %10203 = vmatprep.subr.bf16.mxu0 %v11503_v26 }
0x1a2e   :  { %9465 = vmatmul.mubr.msk.f32.vlgmr.msra.gmra.mrb[64].mxu0 %vm408_vm1, %v4962_v9 }
0x1a2f   :  { %10205 = vmatpush1.bf16.msra.mxu0 %v11499_v25  ;;  %5172 = vmatprep.mubr.f32.mxu0 %v11057_v1 }
0x1a32   :  { %9466 = vmatmul.mubr.msk.f32.vlgmr.msra.gmra.mrb[66].mxu0 %vm408_vm1, %v4962_v9 }
0x1afd   :  { %v12394_v49 = vpop.f32.mrb[46].mxu0 }
0x1afe   :  { %v5034_v44 = vpop.f32.mrb[47].mxu0 }
0x1b01   :  { %v12396_v8 = vpop.f32.mrb[64].mxu0 }
0x1b02   :  { %v12398_v34 = vpop.f32.mrb[65].mxu0 }
0x1b05   :  { %v12400_v22 = vpop.f32.mrb[66].mxu0 }
0x1b06   :  { %v12402_v60 = vpop.f32.mrb[67].mxu0 }
0x1b07   :  { %11027 = dma.done.wait [#allocation8 + $0x2], 36864 }
0x1b08   :  { %11028 = vsyncadd [#allocation8 + $0x2], 4294930432  ;;  %v12404_v26 = vpack.c.bf16 %v5034_v44, %v5034_v44  ;;  %v5188_v1 = vld [vmem:[#allocation4 + $0x8] sm:$0xff]  ;;  %v5187_v25 = vld [vmem:[#allocation4] sm:$0xff] }
0x1b09   :  { %v5194_v27 = vld [vmem:[#allocation4 + $0x38] sm:$0xff]  ;;  %5475 = vmatprep.subr.bf16.mxu0 %v5188_v1  ;;  %v5193_v51 = vld [vmem:[#allocation4 + $0x30] sm:$0xff]  ;;  %v5200_v48 = vld [vmem:[#allocation4 + $0x68] sm:$0xff] }
0x1b0a   :  { %5507 = vmatprep.mubr.bf16.mxu0 %v12404_v26  ;;  %5630 = vmatprep.mubr.bf16.mxu1 %v12404_v26  ;;  %v5199_v35 = vld [vmem:[#allocation4 + $0x60] sm:$0xff]  ;;  %v5206_v45 = vld [vmem:[#allocation4 + $0x98] sm:$0xff]  ;;  %v5205_v56 = vld [vmem:[#allocation4 + $0x90] sm:$0xff] }
0x1b0b   :  { %5476 = vmatpush1.bf16.msra.mxu0 %v5187_v25  ;;  %v5190_v59 = vld [vmem:[#allocation4 + $0x18] sm:$0xff]  ;;  %v5189_v33 = vld [vmem:[#allocation4 + $0x10] sm:$0xff]  ;;  %v5212_v37 = vld [vmem:[#allocation4 + $0xc8] sm:$0xff] }
0x1b0c   :  { %5477 = vmatprep.subr.bf16.mxu0 %v5194_v27  ;;  %5598 = vmatprep.subr.bf16.mxu1 %v5190_v59  ;;  %v5196_v32 = vld [vmem:[#allocation4 + $0x48] sm:$0xff]  ;;  %v5195_v10 = vld [vmem:[#allocation4 + $0x40] sm:$0xff]  ;;  %v5202_v40 = vld [vmem:[#allocation4 + $0x78] sm:$0xff] }
0x1b0d   :  { %5599 = vmatpush1.bf16.msra.mxu1 %v5189_v33  ;;  %v5211_v16 = vld [vmem:[#allocation4 + $0xc0] sm:$0xff]  ;;  %v5218_v28 = vld [vmem:[#allocation4 + $0xf8] sm:$0xff]  ;;  %v5201_v54 = vld [vmem:[#allocation4 + $0x70] sm:$0xff] }
0x1b0e   :  { %5600 = vmatprep.subr.bf16.mxu1 %v5196_v32  ;;  %v5208_v47 = vld [vmem:[#allocation4 + $0xa8] sm:$0xff]  ;;  %v5217_v30 = vld [vmem:[#allocation4 + $0xf0] sm:$0xff]  ;;  %v5207_v0 = vld [vmem:[#allocation4 + $0xa0] sm:$0xff] }
0x1b0f   :  { %5478 = vmatpush1.bf16.msra.mxu0 %v5193_v51  ;;  %v5224_v52 = vld [vmem:[#allocation4 + $0x128] sm:$0xff]  ;;  %v5214_v55 = vld [vmem:[#allocation4 + $0xd8] sm:$0xff]  ;;  %v5223_v50 = vld [vmem:[#allocation4 + $0x120] sm:$0xff] }
0x1b10   :  { %5479 = vmatprep.subr.bf16.mxu0 %v5200_v48  ;;  %v5230_v38 = vld [vmem:[#allocation4 + $0x158] sm:$0xff]  ;;  %v5213_v23 = vld [vmem:[#allocation4 + $0xd0] sm:$0xff]  ;;  %v5220_v58 = vld [vmem:[#allocation4 + $0x108] sm:$0xff] }
0x1b11   :  { %5601 = vmatpush1.bf16.msra.mxu1 %v5195_v10  ;;  %v5229_v31 = vld [vmem:[#allocation4 + $0x150] sm:$0xff]  ;;  %v5236_v43 = vld [vmem:[#allocation4 + $0x188] sm:$0xff]  ;;  %v5219_v42 = vld [vmem:[#allocation4 + $0x100] sm:$0xff] }
0x1b12   :  { %5602 = vmatprep.subr.bf16.mxu1 %v5202_v40  ;;  %v5226_v15 = vld [vmem:[#allocation4 + $0x138] sm:$0xff]  ;;  %v5235_v21 = vld [vmem:[#allocation4 + $0x180] sm:$0xff]  ;;  %v5225_v53 = vld [vmem:[#allocation4 + $0x130] sm:$0xff] }
0x1b13   :  { %5480 = vmatpush1.bf16.msra.mxu0 %v5199_v35  ;;  %v5242_v57 = vld [vmem:[#allocation4 + $0x1b8] sm:$0xff]  ;;  %v5232_v46 = vld [vmem:[#allocation4 + $0x168] sm:$0xff]  ;;  %v5241_v29 = vld [vmem:[#allocation4 + $0x1b0] sm:$0xff] }
0x1b14   :  { %5481 = vmatprep.subr.bf16.mxu0 %v5206_v45  ;;  %v5248_v39 = vld [vmem:[#allocation4 + $0x1e8] sm:$0xff]  ;;  %v5231_v20 = vld [vmem:[#allocation4 + $0x160] sm:$0xff]  ;;  %v5238_v14 = vld [vmem:[#allocation4 + $0x198] sm:$0xff] }
0x1b15   :  { %5603 = vmatpush1.bf16.msra.mxu1 %v5201_v54  ;;  %v5247_v24 = vld [vmem:[#allocation4 + $0x1e0] sm:$0xff]  ;;  %v5254_v9 = vld [vmem:[#allocation4 + $0x218] sm:$0xff]  ;;  %v5237_v44 = vld [vmem:[#allocation4 + $0x190] sm:$0xff] }
0x1b16   :  { %5604 = vmatprep.subr.bf16.mxu1 %v5208_v47  ;;  %v5244_v1 = vld [vmem:[#allocation4 + $0x1c8] sm:$0xff]  ;;  %v5253_v25 = vld [vmem:[#allocation4 + $0x210] sm:$0xff]  ;;  %v5243_v51 = vld [vmem:[#allocation4 + $0x1c0] sm:$0xff] }
0x1b17   :  { %5482 = vmatpush1.bf16.msra.mxu0 %v5205_v56  ;;  %v5260_v27 = vld [vmem:[#allocation4 + $0x248] sm:$0xff]  ;;  %v5250_v48 = vld [vmem:[#allocation4 + $0x1f8] sm:$0xff]  ;;  %v5259_v35 = vld [vmem:[#allocation4 + $0x240] sm:$0xff] }
0x1b18   :  { %5483 = vmatprep.subr.bf16.mxu0 %v5212_v37  ;;  %v5266_v45 = vld [vmem:[#allocation4 + $0x278] sm:$0xff]  ;;  %v5249_v59 = vld [vmem:[#allocation4 + $0x1f0] sm:$0xff]  ;;  %v5256_v56 = vld [vmem:[#allocation4 + $0x228] sm:$0xff] }
0x1b19   :  { %5605 = vmatpush1.bf16.msra.mxu1 %v5207_v0  ;;  %v5265_v33 = vld [vmem:[#allocation4 + $0x270] sm:$0xff]  ;;  %v5272_v37 = vld [vmem:[#allocation4 + $0x2a8] sm:$0xff]  ;;  %v5255_v32 = vld [vmem:[#allocation4 + $0x220] sm:$0xff] }
0x1b1a   :  { %5606 = vmatprep.subr.bf16.mxu1 %v5214_v55  ;;  %v5262_v10 = vld [vmem:[#allocation4 + $0x258] sm:$0xff]  ;;  %v5271_v40 = vld [vmem:[#allocation4 + $0x2a0] sm:$0xff]  ;;  %v5268_v54 = vld [vmem:[#allocation4 + $0x288] sm:$0xff] }
0x1b1b   :  { %5484 = vmatpush1.bf16.msra.mxu0 %v5211_v16  ;;  %v5278_v16 = vld [vmem:[#allocation4 + $0x2d8] sm:$0xff]  ;;  %v5277_v47 = vld [vmem:[#allocation4 + $0x2d0] sm:$0xff]  ;;  %v5267_v0 = vld [vmem:[#allocation4 + $0x280] sm:$0xff] }
0x1b1c   :  { %5485 = vmatprep.subr.bf16.mxu0 %v5218_v28  ;;  %v5261_v28 = vld [vmem:[#allocation4 + $0x250] sm:$0xff]  ;;  %v5274_v55 = vld [vmem:[#allocation4 + $0x2b8] sm:$0xff] }
0x1b1d   :  { %5607 = vmatpush1.bf16.msra.mxu1 %v5213_v23  ;;  %v5290_v23 = vld [vmem:[#allocation4 + $0x338] sm:$0xff] }
0x1b1e   :  { %5608 = vmatprep.subr.bf16.mxu1 %v5220_v58  ;;  %v5273_v58 = vld [vmem:[#allocation4 + $0x2b0] sm:$0xff] }
0x1b1f   :  { %5486 = vmatpush1.bf16.msra.mxu0 %v5217_v30  ;;  %v5284_v30 = vld [vmem:[#allocation4 + $0x308] sm:$0xff] }
0x1b20   :  { %5487 = vmatprep.subr.bf16.mxu0 %v5224_v52  ;;  %v12410_v52 = vpack.c.bf16 %v12394_v49, %v12394_v49  ;;  %v5289_v49 = vld [vmem:[#allocation4 + $0x330] sm:$0xff] }
0x1b21   :  { %5609 = vmatpush1.bf16.msra.mxu1 %v5219_v42  ;;  %v5279_v42 = vld [vmem:[#allocation4 + $0x2e0] sm:$0xff] }
0x1b22   :  { %5610 = vmatprep.subr.bf16.mxu1 %v5226_v15  ;;  %v5295_v15 = vld [vmem:[#allocation4 + $0x360] sm:$0xff] }
0x1b23   :  { %5488 = vmatpush1.bf16.msra.mxu0 %v5223_v50  ;;  %v12414_v50 = vpack.c.bf16 %v12398_v34, %v12398_v34  ;;  %v5286_v34 = vld [vmem:[#allocation4 + $0x318] sm:$0xff] }
0x1b24   :  { %5489 = vmatprep.subr.bf16.mxu0 %v5230_v38  ;;  %v5283_v38 = vld [vmem:[#allocation4 + $0x300] sm:$0xff] }
0x1b25   :  { %5611 = vmatpush1.bf16.msra.mxu1 %v5225_v53  ;;  %v5292_v53 = vld [vmem:[#allocation4 + $0x348] sm:$0xff] }
0x1b26   :  { %5612 = vmatprep.subr.bf16.mxu1 %v5232_v46  ;;  %v5301_v46 = vld [vmem:[#allocation4 + $0x390] sm:$0xff] }
0x1b27   :  { %5490 = vmatpush1.bf16.msra.mxu0 %v5229_v31  ;;  %v5280_v31 = vld [vmem:[#allocation4 + $0x2e8] sm:$0xff] }
0x1b28   :  { %5491 = vmatprep.subr.bf16.mxu0 %v5236_v43  ;;  %v5296_v43 = vld [vmem:[#allocation4 + $0x368] sm:$0xff] }
0x1b29   :  { %5613 = vmatpush1.bf16.msra.mxu1 %v5231_v20  ;;  %v5298_v20 = vld [vmem:[#allocation4 + $0x378] sm:$0xff] }
0x1b2a   :  { %5614 = vmatprep.subr.bf16.mxu1 %v5238_v14  ;;  %v5307_v14 = vld [vmem:[#allocation4 + $0x3c0] sm:$0xff] }
0x1b2b   :  { %5492 = vmatpush1.bf16.msra.mxu0 %v5235_v21  ;;  %v5302_v21 = vld [vmem:[#allocation4 + $0x398] sm:$0xff] }
0x1b2c   :  { %5493 = vmatprep.subr.bf16.mxu0 %v5242_v57  ;;  %v5285_v57 = vld [vmem:[#allocation4 + $0x310] sm:$0xff] }
0x1b2d   :  { %5615 = vmatpush1.bf16.msra.mxu1 %v5237_v44  ;;  %v5304_v44 = vld [vmem:[#allocation4 + $0x3a8] sm:$0xff] }
0x1b2e   :  { %5616 = vmatprep.subr.bf16.mxu1 %v5244_v1  ;;  %v5313_v1 = vld [vmem:[#allocation4 + $0x3f0] sm:$0xff] }
0x1b2f   :  { %5494 = vmatpush1.bf16.msra.mxu0 %v5241_v29  ;;  %v5308_v29 = vld [vmem:[#allocation4 + $0x3c8] sm:$0xff] }
0x1b30   :  { %5495 = vmatprep.subr.bf16.mxu0 %v5248_v39  ;;  %v5291_v39 = vld [vmem:[#allocation4 + $0x340] sm:$0xff] }
0x1b31   :  { %5617 = vmatpush1.bf16.msra.mxu1 %v5243_v51  ;;  %v5310_v51 = vld [vmem:[#allocation4 + $0x3d8] sm:$0xff] }
0x1b32   :  { %5618 = vmatprep.subr.bf16.mxu1 %v5250_v48  ;;  %v5319_v48 = vld [vmem:[#allocation4 + $0x420] sm:$0xff] }
0x1b33   :  { %5496 = vmatpush1.bf16.msra.mxu0 %v5247_v24  ;;  %v5314_v24 = vld [vmem:[#allocation4 + $0x3f8] sm:$0xff] }
0x1b34   :  { %5497 = vmatprep.subr.bf16.mxu0 %v5254_v9  ;;  %v5297_v9 = vld [vmem:[#allocation4 + $0x370] sm:$0xff] }
0x1b35   :  { %5619 = vmatpush1.bf16.msra.mxu1 %v5249_v59  ;;  %v5316_v59 = vld [vmem:[#allocation4 + $0x408] sm:$0xff] }
0x1b36   :  { %5620 = vmatprep.subr.bf16.mxu1 %v5256_v56  ;;  %v5325_v56 = vld [vmem:[#allocation4 + $0x450] sm:$0xff] }
0x1b37   :  { %5498 = vmatpush1.bf16.msra.mxu0 %v5253_v25  ;;  %v5320_v25 = vld [vmem:[#allocation4 + $0x428] sm:$0xff] }
0x1b38   :  { %5499 = vmatprep.subr.bf16.mxu0 %v5260_v27  ;;  %v5303_v27 = vld [vmem:[#allocation4 + $0x3a0] sm:$0xff] }
0x1b39   :  { %5621 = vmatpush1.bf16.msra.mxu1 %v5255_v32  ;;  %v5322_v32 = vld [vmem:[#allocation4 + $0x438] sm:$0xff] }
0x1b3a   :  { %5622 = vmatprep.subr.bf16.mxu1 %v5262_v10  ;;  %v5331_v10 = vld [vmem:[#allocation4 + $0x480] sm:$0xff] }
0x1b3b   :  { %5500 = vmatpush1.bf16.msra.mxu0 %v5259_v35  ;;  %v5326_v35 = vld [vmem:[#allocation4 + $0x458] sm:$0xff] }
0x1b3c   :  { %5501 = vmatprep.subr.bf16.mxu0 %v5266_v45  ;;  %v5309_v45 = vld [vmem:[#allocation4 + $0x3d0] sm:$0xff] }
0x1b3d   :  { %5623 = vmatpush1.bf16.msra.mxu1 %v5261_v28  ;;  %v5328_v28 = vld [vmem:[#allocation4 + $0x468] sm:$0xff] }
0x1b3e   :  { %5624 = vmatprep.subr.bf16.mxu1 %v5268_v54  ;;  %v5337_v54 = vld [vmem:[#allocation4 + $0x4b0] sm:$0xff] }
0x1b3f   :  { %5502 = vmatpush1.bf16.msra.mxu0 %v5265_v33  ;;  %v5332_v33 = vld [vmem:[#allocation4 + $0x488] sm:$0xff] }
0x1b40   :  { %5503 = vmatprep.subr.bf16.mxu0 %v5272_v37  ;;  %v5315_v37 = vld [vmem:[#allocation4 + $0x400] sm:$0xff] }
0x1b41   :  { %5625 = vmatpush1.bf16.msra.mxu1 %v5267_v0  ;;  %v5334_v0 = vld [vmem:[#allocation4 + $0x498] sm:$0xff] }
0x1b42   :  { %5626 = vmatprep.subr.bf16.mxu1 %v5274_v55  ;;  %v5343_v55 = vld [vmem:[#allocation4 + $0x4e0] sm:$0xff] }
0x1b43   :  { %5504 = vmatpush1.bf16.msra.mxu0 %v5271_v40  ;;  %v5338_v40 = vld [vmem:[#allocation4 + $0x4b8] sm:$0xff] }
0x1b44   :  { %5505 = vmatprep.subr.bf16.mxu0 %v5278_v16  ;;  %v5321_v16 = vld [vmem:[#allocation4 + $0x430] sm:$0xff] }
0x1b45   :  { %5627 = vmatpush1.bf16.msra.mxu1 %v5273_v58  ;;  %v5340_v58 = vld [vmem:[#allocation4 + $0x4c8] sm:$0xff] }
0x1b46   :  { %5628 = vmatprep.subr.bf16.mxu1 %v5280_v31  ;;  %v5349_v31 = vld [vmem:[#allocation4 + $0x510] sm:$0xff] }
0x1b47   :  { %5506 = vmatpush1.bf16.msra.mxu0 %v5277_v47  ;;  %v5344_v47 = vld [vmem:[#allocation4 + $0x4e8] sm:$0xff] }
0x1b48   :  { %5516 = vmatprep.subr.bf16.mxu0 %v5284_v30  ;;  %v5327_v30 = vld [vmem:[#allocation4 + $0x460] sm:$0xff] }
0x1b49   :  { %5629 = vmatpush1.bf16.msra.mxu1 %v5279_v42  ;;  %v5346_v42 = vld [vmem:[#allocation4 + $0x4f8] sm:$0xff] }
0x1b4a   :  { %5508 = vmatmul.mubr.bf16.vlgmr.msra.gmra.mrb[68].mxu0 %v12410_v52  ;;  %5639 = vmatprep.subr.bf16.mxu1 %v5286_v34  ;;  %v5355_v34 = vld [vmem:[#allocation4 + $0x540] sm:$0xff] }
0x1b4b   :  { %5517 = vmatpush1.bf16.msra.mxu0 %v5283_v38  ;;  %5548 = vmatprep.mubr.bf16.mxu0 %v12414_v50  ;;  %v5350_v38 = vld [vmem:[#allocation4 + $0x518] sm:$0xff] }
0x1b4c   :  { %5518 = vmatprep.subr.bf16.mxu0 %v5290_v23  ;;  %5631 = vmatmul.mubr.bf16.vlgmr.msra.gmra.mrb[64].mxu1 %v12410_v52  ;;  %v5333_v23 = vld [vmem:[#allocation4 + $0x490] sm:$0xff] }
0x1b4d   :  { %5640 = vmatpush1.bf16.msra.mxu1 %v5285_v57  ;;  %5671 = vmatprep.mubr.bf16.mxu1 %v12414_v50  ;;  %v5352_v57 = vld [vmem:[#allocation4 + $0x528] sm:$0xff] }
0x1b4e   :  { %5641 = vmatprep.subr.bf16.mxu1 %v5292_v53  ;;  %v5361_v53 = vld [vmem:[#allocation4 + $0x570] sm:$0xff] }
0x1b4f   :  { %5519 = vmatpush1.bf16.msra.mxu0 %v5289_v49  ;;  %v5356_v49 = vld [vmem:[#allocation4 + $0x548] sm:$0xff] }
0x1b50   :  { %5520 = vmatprep.subr.bf16.mxu0 %v5296_v43  ;;  %v5339_v43 = vld [vmem:[#allocation4 + $0x4c0] sm:$0xff] }
0x1b51   :  { %5642 = vmatpush1.bf16.msra.mxu1 %v5291_v39  ;;  %v5358_v39 = vld [vmem:[#allocation4 + $0x558] sm:$0xff] }
0x1b52   :  { %5643 = vmatprep.subr.bf16.mxu1 %v5298_v20  ;;  %v5367_v20 = vld [vmem:[#allocation4 + $0x5a0] sm:$0xff] }
0x1b53   :  { %5521 = vmatpush1.bf16.msra.mxu0 %v5295_v15  ;;  %v5362_v15 = vld [vmem:[#allocation4 + $0x578] sm:$0xff] }
0x1b54   :  { %5522 = vmatprep.subr.bf16.mxu0 %v5302_v21  ;;  %v5345_v21 = vld [vmem:[#allocation4 + $0x4f0] sm:$0xff] }
0x1b55   :  { %5644 = vmatpush1.bf16.msra.mxu1 %v5297_v9  ;;  %v5364_v9 = vld [vmem:[#allocation4 + $0x588] sm:$0xff] }
0x1b56   :  { %5645 = vmatprep.subr.bf16.mxu1 %v5304_v44  ;;  %v5373_v44 = vld [vmem:[#allocation4 + $0x5d0] sm:$0xff] }
0x1b57   :  { %5523 = vmatpush1.bf16.msra.mxu0 %v5301_v46  ;;  %v5368_v46 = vld [vmem:[#allocation4 + $0x5a8] sm:$0xff] }
0x1b58   :  { %5524 = vmatprep.subr.bf16.mxu0 %v5308_v29  ;;  %v5351_v29 = vld [vmem:[#allocation4 + $0x520] sm:$0xff] }
0x1b59   :  { %5646 = vmatpush1.bf16.msra.mxu1 %v5303_v27  ;;  %v5363_v27 = vld [vmem:[#allocation4 + $0x580] sm:$0xff] }
0x1b5a   :  { %5647 = vmatprep.subr.bf16.mxu1 %v5310_v51  ;;  %v5370_v51 = vld [vmem:[#allocation4 + $0x5b8] sm:$0xff] }
0x1b5b   :  { %5525 = vmatpush1.bf16.msra.mxu0 %v5307_v14  ;;  %v5374_v14 = vld [vmem:[#allocation4 + $0x5d8] sm:$0xff] }
0x1b5c   :  { %5526 = vmatprep.subr.bf16.mxu0 %v5314_v24  ;;  %v5357_v24 = vld [vmem:[#allocation4 + $0x550] sm:$0xff] }
0x1b5d   :  { %5648 = vmatpush1.bf16.msra.mxu1 %v5309_v45  ;;  %v5386_v45 = vld [vmem:[#allocation4 + $0x638] sm:$0xff] }
0x1b5e   :  { %5649 = vmatprep.subr.bf16.mxu1 %v5316_v59  ;;  %v5369_v59 = vld [vmem:[#allocation4 + $0x5b0] sm:$0xff] }
0x1b5f   :  { %5527 = vmatpush1.bf16.msra.mxu0 %v5313_v1  ;;  %v5380_v1 = vld [vmem:[#allocation4 + $0x608] sm:$0xff] }
0x1b60   :  { %5528 = vmatprep.subr.bf16.mxu0 %v5320_v25  ;;  %v12422_v25 = vpack.c.bf16 %v12396_v8, %v12396_v8  ;;  %v5385_v8 = vld [vmem:[#allocation4 + $0x630] sm:$0xff] }
0x1b61   :  { %5650 = vmatpush1.bf16.msra.mxu1 %v5315_v37  ;;  %v5375_v37 = vld [vmem:[#allocation4 + $0x5e0] sm:$0xff] }
0x1b62   :  { %5651 = vmatprep.subr.bf16.mxu1 %v5322_v32  ;;  %v5391_v32 = vld [vmem:[#allocation4 + $0x660] sm:$0xff] }
0x1b63   :  { %5529 = vmatpush1.bf16.msra.mxu0 %v5319_v48  ;;  %v12426_v48 = vpack.c.bf16 %v12402_v60, %v12402_v60  ;;  %v5382_v60 = vld [vmem:[#allocation4 + $0x618] sm:$0xff] }
0x1b64   :  { %5530 = vmatprep.subr.bf16.mxu0 %v5326_v35  ;;  %v5379_v35 = vld [vmem:[#allocation4 + $0x600] sm:$0xff] }
0x1b65   :  { %5652 = vmatpush1.bf16.msra.mxu1 %v5321_v16  ;;  %v5388_v16 = vld [vmem:[#allocation4 + $0x648] sm:$0xff] }
0x1b66   :  { %5653 = vmatprep.subr.bf16.mxu1 %v5328_v28  ;;  %v5397_v28 = vld [vmem:[#allocation4 + $0x690] sm:$0xff] }
0x1b67   :  { %5531 = vmatpush1.bf16.msra.mxu0 %v5325_v56  ;;  %v5376_v56 = vld [vmem:[#allocation4 + $0x5e8] sm:$0xff] }
0x1b68   :  { %5532 = vmatprep.subr.bf16.mxu0 %v5332_v33  ;;  %v5392_v33 = vld [vmem:[#allocation4 + $0x668] sm:$0xff] }
0x1b69   :  { %5654 = vmatpush1.bf16.msra.mxu1 %v5327_v30  ;;  %v5394_v30 = vld [vmem:[#allocation4 + $0x678] sm:$0xff] }
0x1b6a   :  { %5655 = vmatprep.subr.bf16.mxu1 %v5334_v0  ;;  %v5403_v0 = vld [vmem:[#allocation4 + $0x6c0] sm:$0xff] }
0x1b6b   :  { %5533 = vmatpush1.bf16.msra.mxu0 %v5331_v10  ;;  %v5398_v10 = vld [vmem:[#allocation4 + $0x698] sm:$0xff] }
0x1b6c   :  { %5534 = vmatprep.subr.bf16.mxu0 %v5338_v40  ;;  %v5381_v40 = vld [vmem:[#allocation4 + $0x610] sm:$0xff] }
0x1b6d   :  { %5656 = vmatpush1.bf16.msra.mxu1 %v5333_v23  ;;  %v5400_v23 = vld [vmem:[#allocation4 + $0x6a8] sm:$0xff] }
0x1b6e   :  { %5657 = vmatprep.subr.bf16.mxu1 %v5340_v58  ;;  %v5409_v58 = vld [vmem:[#allocation4 + $0x6f0] sm:$0xff] }
0x1b6f   :  { %5535 = vmatpush1.bf16.msra.mxu0 %v5337_v54  ;;  %v5404_v54 = vld [vmem:[#allocation4 + $0x6c8] sm:$0xff] }
0x1b70   :  { %5536 = vmatprep.subr.bf16.mxu0 %v5344_v47  ;;  %v5387_v47 = vld [vmem:[#allocation4 + $0x640] sm:$0xff] }
0x1b71   :  { %5658 = vmatpush1.bf16.msra.mxu1 %v5339_v43  ;;  %v5406_v43 = vld [vmem:[#allocation4 + $0x6d8] sm:$0xff] }
0x1b72   :  { %5659 = vmatprep.subr.bf16.mxu1 %v5346_v42  ;;  %v5415_v42 = vld [vmem:[#allocation4 + $0x720] sm:$0xff] }
0x1b73   :  { %5537 = vmatpush1.bf16.msra.mxu0 %v5343_v55  ;;  %v5410_v55 = vld [vmem:[#allocation4 + $0x6f8] sm:$0xff] }
0x1b74   :  { %5538 = vmatprep.subr.bf16.mxu0 %v5350_v38  ;;  %v5393_v38 = vld [vmem:[#allocation4 + $0x670] sm:$0xff] }
0x1b75   :  { %5660 = vmatpush1.bf16.msra.mxu1 %v5345_v21  ;;  %v5412_v21 = vld [vmem:[#allocation4 + $0x708] sm:$0xff] }
0x1b76   :  { %5661 = vmatprep.subr.bf16.mxu1 %v5352_v57  ;;  %v5421_v57 = vld [vmem:[#allocation4 + $0x750] sm:$0xff] }
0x1b77   :  { %5539 = vmatpush1.bf16.msra.mxu0 %v5349_v31  ;;  %v5416_v31 = vld [vmem:[#allocation4 + $0x728] sm:$0xff] }
0x1b78   :  { %5540 = vmatprep.subr.bf16.mxu0 %v5356_v49  ;;  %v5399_v49 = vld [vmem:[#allocation4 + $0x6a0] sm:$0xff] }
0x1b79   :  { %5662 = vmatpush1.bf16.msra.mxu1 %v5351_v29  ;;  %v5418_v29 = vld [vmem:[#allocation4 + $0x738] sm:$0xff] }
0x1b7a   :  { %5663 = vmatprep.subr.bf16.mxu1 %v5358_v39  ;;  %v5427_v39 = vld [vmem:[#allocation4 + $0x780] sm:$0xff] }
0x1b7b   :  { %5541 = vmatpush1.bf16.msra.mxu0 %v5355_v34  ;;  %v5422_v34 = vld [vmem:[#allocation4 + $0x758] sm:$0xff] }
0x1b7c   :  { %5542 = vmatprep.subr.bf16.mxu0 %v5362_v15  ;;  %v5405_v15 = vld [vmem:[#allocation4 + $0x6d0] sm:$0xff] }
0x1b7d   :  { %5664 = vmatpush1.bf16.msra.mxu1 %v5357_v24  ;;  %v5424_v24 = vld [vmem:[#allocation4 + $0x768] sm:$0xff] }
0x1b7e   :  { %5665 = vmatprep.subr.bf16.mxu1 %v5364_v9  ;;  %v5433_v9 = vld [vmem:[#allocation4 + $0x7b0] sm:$0xff] }
0x1b7f   :  { %5543 = vmatpush1.bf16.msra.mxu0 %v5361_v53  ;;  %v5428_v53 = vld [vmem:[#allocation4 + $0x788] sm:$0xff] }
0x1b80   :  { %5544 = vmatprep.subr.bf16.mxu0 %v5368_v46  ;;  %v5411_v46 = vld [vmem:[#allocation4 + $0x700] sm:$0xff] }
0x1b81   :  { %5666 = vmatpush1.bf16.msra.mxu1 %v5363_v27  ;;  %v5430_v27 = vld [vmem:[#allocation4 + $0x798] sm:$0xff] }
0x1b82   :  { %5667 = vmatprep.subr.bf16.mxu1 %v5370_v51  ;;  %v5439_v51 = vld [vmem:[#allocation4 + $0x7e0] sm:$0xff] }
0x1b83   :  { %5545 = vmatpush1.bf16.msra.mxu0 %v5367_v20  ;;  %v5434_v20 = vld [vmem:[#allocation4 + $0x7b8] sm:$0xff] }
0x1b84   :  { %5546 = vmatprep.subr.bf16.mxu0 %v5374_v14  ;;  %v5417_v14 = vld [vmem:[#allocation4 + $0x730] sm:$0xff] }
0x1b85   :  { %5668 = vmatpush1.bf16.msra.mxu1 %v5369_v59  ;;  %v5436_v59 = vld [vmem:[#allocation4 + $0x7c8] sm:$0xff] }
0x1b86   :  { %5669 = vmatprep.subr.bf16.mxu1 %v5376_v56  ;;  %v5445_v56 = vld [vmem:[#allocation4 + $0x810] sm:$0xff] }
0x1b87   :  { %5547 = vmatpush1.bf16.msra.mxu0 %v5373_v44  ;;  %v5440_v44 = vld [vmem:[#allocation4 + $0x7e8] sm:$0xff] }
0x1b88   :  { %5557 = vmatprep.subr.bf16.mxu0 %v5380_v1  ;;  %v5423_v1 = vld [vmem:[#allocation4 + $0x760] sm:$0xff] }
0x1b89   :  { %5670 = vmatpush1.bf16.msra.mxu1 %v5375_v37  ;;  %v5442_v37 = vld [vmem:[#allocation4 + $0x7f8] sm:$0xff] }
0x1b8a   :  { %5549 = vmatmul.mubr.bf16.vlgmr.msra.gmra.mrb[68].mxu0 %v12422_v25  ;;  %5680 = vmatprep.subr.bf16.mxu1 %v5382_v60  ;;  %v5451_v60 = vld [vmem:[#allocation4 + $0x840] sm:$0xff] }
0x1b8b   :  { %5558 = vmatpush1.bf16.msra.mxu0 %v5379_v35  ;;  %5589 = vmatprep.mubr.bf16.mxu0 %v12426_v48  ;;  %v5446_v35 = vld [vmem:[#allocation4 + $0x818] sm:$0xff] }
0x1b8c   :  { %5559 = vmatprep.subr.bf16.mxu0 %v5386_v45  ;;  %5672 = vmatmul.mubr.bf16.vlgmr.msra.gmra.mrb[64].mxu1 %v12422_v25  ;;  %v5429_v45 = vld [vmem:[#allocation4 + $0x790] sm:$0xff] }
0x1b8d   :  { %5681 = vmatpush1.bf16.msra.mxu1 %v5381_v40  ;;  %5712 = vmatprep.mubr.bf16.mxu1 %v12426_v48  ;;  %v5448_v40 = vld [vmem:[#allocation4 + $0x828] sm:$0xff] }
0x1b8e   :  { %5682 = vmatprep.subr.bf16.mxu1 %v5388_v16  ;;  %v5457_v16 = vld [vmem:[#allocation4 + $0x870] sm:$0xff] }
0x1b8f   :  { %5560 = vmatpush1.bf16.msra.mxu0 %v5385_v8  ;;  %v5452_v8 = vld [vmem:[#allocation4 + $0x848] sm:$0xff] }
0x1b90   :  { %5561 = vmatprep.subr.bf16.mxu0 %v5392_v33  ;;  %v5435_v33 = vld [vmem:[#allocation4 + $0x7c0] sm:$0xff] }
0x1b91   :  { %5683 = vmatpush1.bf16.msra.mxu1 %v5387_v47  ;;  %v5454_v47 = vld [vmem:[#allocation4 + $0x858] sm:$0xff] }
0x1b92   :  { %5684 = vmatprep.subr.bf16.mxu1 %v5394_v30  ;;  %v5463_v30 = vld [vmem:[#allocation4 + $0x8a0] sm:$0xff] }
0x1b93   :  { %5562 = vmatpush1.bf16.msra.mxu0 %v5391_v32  ;;  %v5458_v32 = vld [vmem:[#allocation4 + $0x878] sm:$0xff] }
0x1b94   :  { %5563 = vmatprep.subr.bf16.mxu0 %v5398_v10  ;;  %v5441_v10 = vld [vmem:[#allocation4 + $0x7f0] sm:$0xff] }
0x1b95   :  { %5685 = vmatpush1.bf16.msra.mxu1 %v5393_v38  ;;  %v5460_v38 = vld [vmem:[#allocation4 + $0x888] sm:$0xff] }
0x1b96   :  { %5686 = vmatprep.subr.bf16.mxu1 %v5400_v23  ;;  %v5469_v23 = vld [vmem:[#allocation4 + $0x8d0] sm:$0xff] }
0x1b97   :  { %5564 = vmatpush1.bf16.msra.mxu0 %v5397_v28  ;;  %v5464_v28 = vld [vmem:[#allocation4 + $0x8a8] sm:$0xff] }
0x1b98   :  { %5565 = vmatprep.subr.bf16.mxu0 %v5404_v54  ;;  %v5447_v54 = vld [vmem:[#allocation4 + $0x820] sm:$0xff] }
0x1b99   :  { %5687 = vmatpush1.bf16.msra.mxu1 %v5399_v49  ;;  %v5459_v49 = vld [vmem:[#allocation4 + $0x880] sm:$0xff] }
0x1b9a   :  { %5688 = vmatprep.subr.bf16.mxu1 %v5406_v43  ;;  %v5466_v43 = vld [vmem:[#allocation4 + $0x8b8] sm:$0xff] }
0x1b9b   :  { %5566 = vmatpush1.bf16.msra.mxu0 %v5403_v0  ;;  %v5470_v0 = vld [vmem:[#allocation4 + $0x8d8] sm:$0xff] }
0x1b9c   :  { %5567 = vmatprep.subr.bf16.mxu0 %v5410_v55  ;;  %v5453_v55 = vld [vmem:[#allocation4 + $0x850] sm:$0xff] }
0x1b9d   :  { %5689 = vmatpush1.bf16.msra.mxu1 %v5405_v15  ;;  %v5465_v15 = vld [vmem:[#allocation4 + $0x8b0] sm:$0xff] }
0x1b9e   :  { %5690 = vmatprep.subr.bf16.mxu1 %v5412_v21  ;;  %v5472_v21 = vld [vmem:[#allocation4 + $0x8e8] sm:$0xff] }
0x1b9f   :  { %5568 = vmatpush1.bf16.msra.mxu0 %v5409_v58  ;;  %v5192_v58 = vld [vmem:[#allocation4 + $0x28] sm:$0xff] }
0x1ba0   :  { %5569 = vmatprep.subr.bf16.mxu0 %v5416_v31  ;;  %v12434_v31 = vpack.c.bf16 %v12400_v22, %v12400_v22  ;;  %v5204_v22 = vld [vmem:[#allocation4 + $0x88] sm:$0xff] }
0x1ba1   :  { %5691 = vmatpush1.bf16.msra.mxu1 %v5411_v46  ;;  %v5203_v46 = vld [vmem:[#allocation4 + $0x80] sm:$0xff] }
0x1ba2   :  { %5692 = vmatprep.subr.bf16.mxu1 %v5418_v29  ;;  %v5210_v29 = vld [vmem:[#allocation4 + $0xb8] sm:$0xff] }
0x1ba3   :  { %5570 = vmatpush1.bf16.msra.mxu0 %v5415_v42  ;;  %v5191_v42 = vld [vmem:[#allocation4 + $0x20] sm:$0xff] }
0x1ba4   :  { %5571 = vmatprep.subr.bf16.mxu0 %v5422_v34  ;;  %v5198_v34 = vld [vmem:[#allocation4 + $0x58] sm:$0xff] }
0x1ba5   :  { %5693 = vmatpush1.bf16.msra.mxu1 %v5417_v14  ;;  %v5222_v14 = vld [vmem:[#allocation4 + $0x118] sm:$0xff] }
0x1ba6   :  { %5694 = vmatprep.subr.bf16.mxu1 %v5424_v24  ;;  %v5221_v24 = vld [vmem:[#allocation4 + $0x110] sm:$0xff] }
0x1ba7   :  { %5572 = vmatpush1.bf16.msra.mxu0 %v5421_v57  ;;  %v5197_v57 = vld [vmem:[#allocation4 + $0x50] sm:$0xff] }
0x1ba8   :  { %5573 = vmatprep.subr.bf16.mxu0 %v5428_v53  ;;  %v5471_v53 = vld [vmem:[#allocation4 + $0x8e0] sm:$0xff] }
0x1ba9   :  { %5695 = vmatpush1.bf16.msra.mxu1 %v5423_v1  ;;  %v5234_v1 = vld [vmem:[#allocation4 + $0x178] sm:$0xff] }
0x1baa   :  { %5696 = vmatprep.subr.bf16.mxu1 %v5430_v27  ;;  %v5233_v27 = vld [vmem:[#allocation4 + $0x170] sm:$0xff] }
0x1bab   :  { %5574 = vmatpush1.bf16.msra.mxu0 %v5427_v39  ;;  %v5209_v39 = vld [vmem:[#allocation4 + $0xb0] sm:$0xff] }
0x1bac   :  { %5575 = vmatprep.subr.bf16.mxu0 %v5434_v20  ;;  %v5216_v20 = vld [vmem:[#allocation4 + $0xe8] sm:$0xff] }
0x1bad   :  { %5697 = vmatpush1.bf16.msra.mxu1 %v5429_v45  ;;  %v5246_v45 = vld [vmem:[#allocation4 + $0x1d8] sm:$0xff] }
0x1bae   :  { %5698 = vmatprep.subr.bf16.mxu1 %v5436_v59  ;;  %v5245_v59 = vld [vmem:[#allocation4 + $0x1d0] sm:$0xff] }
0x1baf   :  { %5576 = vmatpush1.bf16.msra.mxu0 %v5433_v9  ;;  %v5228_v9 = vld [vmem:[#allocation4 + $0x148] sm:$0xff] }
0x1bb0   :  { %5577 = vmatprep.subr.bf16.mxu0 %v5440_v44  ;;  %v5227_v44 = vld [vmem:[#allocation4 + $0x140] sm:$0xff] }
0x1bb1   :  { %5699 = vmatpush1.bf16.msra.mxu1 %v5435_v33  ;;  %v5258_v33 = vld [vmem:[#allocation4 + $0x238] sm:$0xff] }
0x1bb2   :  { %5700 = vmatprep.subr.bf16.mxu1 %v5442_v37  ;;  %v5257_v37 = vld [vmem:[#allocation4 + $0x230] sm:$0xff] }
0x1bb3   :  { %5578 = vmatpush1.bf16.msra.mxu0 %v5439_v51  ;;  %v5240_v51 = vld [vmem:[#allocation4 + $0x1a8] sm:$0xff] }
0x1bb4   :  { %5579 = vmatprep.subr.bf16.mxu0 %v5446_v35  ;;  %v5239_v35 = vld [vmem:[#allocation4 + $0x1a0] sm:$0xff] }
0x1bb5   :  { %5701 = vmatpush1.bf16.msra.mxu1 %v5441_v10  ;;  %v5270_v10 = vld [vmem:[#allocation4 + $0x298] sm:$0xff] }
0x1bb6   :  { %5702 = vmatprep.subr.bf16.mxu1 %v5448_v40  ;;  %v5269_v40 = vld [vmem:[#allocation4 + $0x290] sm:$0xff] }
0x1bb7   :  { %5580 = vmatpush1.bf16.msra.mxu0 %v5445_v56  ;;  %v5252_v56 = vld [vmem:[#allocation4 + $0x208] sm:$0xff] }
0x1bb8   :  { %5581 = vmatprep.subr.bf16.mxu0 %v5452_v8  ;;  %v5251_v8 = vld [vmem:[#allocation4 + $0x200] sm:$0xff] }
0x1bb9   :  { %5703 = vmatpush1.bf16.msra.mxu1 %v5447_v54  ;;  %v5282_v54 = vld [vmem:[#allocation4 + $0x2f8] sm:$0xff] }
0x1bba   :  { %5704 = vmatprep.subr.bf16.mxu1 %v5454_v47  ;;  %v5281_v47 = vld [vmem:[#allocation4 + $0x2f0] sm:$0xff] }
0x1bbb   :  { %5582 = vmatpush1.bf16.msra.mxu0 %v5451_v60  ;;  %v5264_v60 = vld [vmem:[#allocation4 + $0x268] sm:$0xff] }
0x1bbc   :  { %5583 = vmatprep.subr.bf16.mxu0 %v5458_v32  ;;  %v5263_v32 = vld [vmem:[#allocation4 + $0x260] sm:$0xff] }
0x1bbd   :  { %5705 = vmatpush1.bf16.msra.mxu1 %v5453_v55  ;;  %v5294_v55 = vld [vmem:[#allocation4 + $0x358] sm:$0xff] }
0x1bbe   :  { %5706 = vmatprep.subr.bf16.mxu1 %v5460_v38  ;;  %v5293_v38 = vld [vmem:[#allocation4 + $0x350] sm:$0xff] }
0x1bbf   :  { %5584 = vmatpush1.bf16.msra.mxu0 %v5457_v16  ;;  %v5276_v16 = vld [vmem:[#allocation4 + $0x2c8] sm:$0xff] }
0x1bc0   :  { %5585 = vmatprep.subr.bf16.mxu0 %v5464_v28  ;;  %v5275_v28 = vld [vmem:[#allocation4 + $0x2c0] sm:$0xff] }
0x1bc1   :  { %5707 = vmatpush1.bf16.msra.mxu1 %v5459_v49  ;;  %v5306_v49 = vld [vmem:[#allocation4 + $0x3b8] sm:$0xff] }
0x1bc2   :  { %5708 = vmatprep.subr.bf16.mxu1 %v5466_v43  ;;  %v5305_v43 = vld [vmem:[#allocation4 + $0x3b0] sm:$0xff] }
0x1bc3   :  { %5586 = vmatpush1.bf16.msra.mxu0 %v5463_v30  ;;  %v5288_v30 = vld [vmem:[#allocation4 + $0x328] sm:$0xff] }
0x1bc4   :  { %5587 = vmatprep.subr.bf16.mxu0 %v5470_v0  ;;  %v5287_v0 = vld [vmem:[#allocation4 + $0x320] sm:$0xff] }
0x1bc5   :  { %5709 = vmatpush1.bf16.msra.mxu1 %v5465_v15  ;;  %v5318_v15 = vld [vmem:[#allocation4 + $0x418] sm:$0xff] }
0x1bc6   :  { %5710 = vmatprep.subr.bf16.mxu1 %v5472_v21  ;;  %v5324_v21 = vld [vmem:[#allocation4 + $0x448] sm:$0xff] }
0x1bc7   :  { %5588 = vmatpush1.bf16.msra.mxu0 %v5469_v23  ;;  %v5300_v23 = vld [vmem:[#allocation4 + $0x388] sm:$0xff] }
0x1bc8   :  { %5721 = vmatprep.subr.bf16.mxu0 %v5192_v58  ;;  %v5299_v58 = vld [vmem:[#allocation4 + $0x380] sm:$0xff] }
0x1bc9   :  { %5711 = vmatpush1.bf16.msra.mxu1 %v5471_v53  ;;  %v5336_v53 = vld [vmem:[#allocation4 + $0x4a8] sm:$0xff] }
0x1bca   :  { %5590 = vmatmul.mubr.bf16.vlgmr.msra.gmra.mrb[68].mxu0 %v12434_v31 }
0x1bcb   :  { %5722 = vmatpush1.bf16.msra.mxu0 %v5191_v42  ;;  %5753 = vmatprep.mubr.bf16.mxu0 %v12404_v26  ;;  %v5215_v26 = vld [vmem:[#allocation4 + $0xe0] sm:$0xff]  ;;  %v5312_v42 = vld [vmem:[#allocation4 + $0x3e8] sm:$0xff] }
0x1bcc   :  { %5723 = vmatprep.subr.bf16.mxu0 %v5198_v34  ;;  %5713 = vmatmul.mubr.bf16.vlgmr.msra.gmra.mrb[64].mxu1 %v12434_v31  ;;  %v5311_v34 = vld [vmem:[#allocation4 + $0x3e0] sm:$0xff] }
0x1bcf   :  { %5724 = vmatpush1.bf16.msra.mxu0 %v5197_v57  ;;  %v5330_v57 = vld [vmem:[#allocation4 + $0x478] sm:$0xff] }
0x1bd0   :  { %5725 = vmatprep.subr.bf16.mxu0 %v5204_v22  ;;  %v5329_v22 = vld [vmem:[#allocation4 + $0x470] sm:$0xff] }
0x1bd3   :  { %5726 = vmatpush1.bf16.msra.mxu0 %v5203_v46  ;;  %v5335_v46 = vld [vmem:[#allocation4 + $0x4a0] sm:$0xff] }
0x1bd4   :  { %5727 = vmatprep.subr.bf16.mxu0 %v5210_v29  ;;  %v5342_v29 = vld [vmem:[#allocation4 + $0x4d8] sm:$0xff] }
0x1bd7   :  { %5728 = vmatpush1.bf16.msra.mxu0 %v5209_v39  ;;  %v5341_v39 = vld [vmem:[#allocation4 + $0x4d0] sm:$0xff] }
0x1bd8   :  { %5729 = vmatprep.subr.bf16.mxu0 %v5216_v20  ;;  %v5348_v20 = vld [vmem:[#allocation4 + $0x508] sm:$0xff] }
0x1bdb   :  { %5730 = vmatpush1.bf16.msra.mxu0 %v5215_v26  ;;  %v5347_v26 = vld [vmem:[#allocation4 + $0x500] sm:$0xff] }
0x1bdc   :  { %5731 = vmatprep.subr.bf16.mxu0 %v5222_v14  ;;  %v5354_v14 = vld [vmem:[#allocation4 + $0x538] sm:$0xff] }
0x1bdf   :  { %5732 = vmatpush1.bf16.msra.mxu0 %v5221_v24  ;;  %v5353_v24 = vld [vmem:[#allocation4 + $0x530] sm:$0xff] }
0x1be0   :  { %5733 = vmatprep.subr.bf16.mxu0 %v5228_v9  ;;  %v5360_v9 = vld [vmem:[#allocation4 + $0x568] sm:$0xff] }
0x1be3   :  { %5734 = vmatpush1.bf16.msra.mxu0 %v5227_v44  ;;  %v5359_v44 = vld [vmem:[#allocation4 + $0x560] sm:$0xff] }
0x1be4   :  { %5735 = vmatprep.subr.bf16.mxu0 %v5234_v1  ;;  %v5366_v1 = vld [vmem:[#allocation4 + $0x598] sm:$0xff] }
0x1be7   :  { %5736 = vmatpush1.bf16.msra.mxu0 %v5233_v27  ;;  %v5365_v27 = vld [vmem:[#allocation4 + $0x590] sm:$0xff] }
0x1be8   :  { %5737 = vmatprep.subr.bf16.mxu0 %v5240_v51  ;;  %v5372_v51 = vld [vmem:[#allocation4 + $0x5c8] sm:$0xff] }
0x1beb   :  { %5738 = vmatpush1.bf16.msra.mxu0 %v5239_v35  ;;  %v5371_v35 = vld [vmem:[#allocation4 + $0x5c0] sm:$0xff] }
0x1bec   :  { %5739 = vmatprep.subr.bf16.mxu0 %v5246_v45  ;;  %v5378_v45 = vld [vmem:[#allocation4 + $0x5f8] sm:$0xff] }
0x1bef   :  { %5740 = vmatpush1.bf16.msra.mxu0 %v5245_v59  ;;  %v5377_v59 = vld [vmem:[#allocation4 + $0x5f0] sm:$0xff] }
0x1bf0   :  { %5741 = vmatprep.subr.bf16.mxu0 %v5252_v56  ;;  %v5384_v56 = vld [vmem:[#allocation4 + $0x628] sm:$0xff] }
0x1bf3   :  { %5742 = vmatpush1.bf16.msra.mxu0 %v5251_v8  ;;  %v5383_v8 = vld [vmem:[#allocation4 + $0x620] sm:$0xff] }
0x1bf4   :  { %5743 = vmatprep.subr.bf16.mxu0 %v5258_v33  ;;  %v5390_v33 = vld [vmem:[#allocation4 + $0x658] sm:$0xff] }
0x1bf7   :  { %5744 = vmatpush1.bf16.msra.mxu0 %v5257_v37  ;;  %v5389_v37 = vld [vmem:[#allocation4 + $0x650] sm:$0xff] }
0x1bf8   :  { %5745 = vmatprep.subr.bf16.mxu0 %v5264_v60  ;;  %v5396_v60 = vld [vmem:[#allocation4 + $0x688] sm:$0xff] }
0x1bfb   :  { %5746 = vmatpush1.bf16.msra.mxu0 %v5263_v32  ;;  %v5395_v32 = vld [vmem:[#allocation4 + $0x680] sm:$0xff] }
0x1bfc   :  { %5747 = vmatprep.subr.bf16.mxu0 %v5270_v10  ;;  %v5402_v10 = vld [vmem:[#allocation4 + $0x6b8] sm:$0xff] }
0x1bff   :  { %5748 = vmatpush1.bf16.msra.mxu0 %v5269_v40  ;;  %v5401_v40 = vld [vmem:[#allocation4 + $0x6b0] sm:$0xff] }
0x1c00   :  { %5749 = vmatprep.subr.bf16.mxu0 %v5276_v16  ;;  %v5408_v16 = vld [vmem:[#allocation4 + $0x6e8] sm:$0xff] }
0x1c03   :  { %5750 = vmatpush1.bf16.msra.mxu0 %v5275_v28  ;;  %v5407_v28 = vld [vmem:[#allocation4 + $0x6e0] sm:$0xff] }
0x1c04   :  { %5751 = vmatprep.subr.bf16.mxu0 %v5282_v54  ;;  %v5414_v54 = vld [vmem:[#allocation4 + $0x718] sm:$0xff] }
0x1c07   :  { %5752 = vmatpush1.bf16.msra.mxu0 %v5281_v47  ;;  %v5420_v47 = vld [vmem:[#allocation4 + $0x748] sm:$0xff] }
0x1c08   :  { %5762 = vmatprep.subr.bf16.mxu0 %v5288_v30  ;;  %v5426_v30 = vld [vmem:[#allocation4 + $0x778] sm:$0xff] }
0x1c0a   :  { %5754 = vmatmul.mubr.bf16.vlgmr.msra.gmra.mrb[72].mxu0 %v12410_v52  ;;  %v5317_v52 = vld [vmem:[#allocation4 + $0x410] sm:$0xff] }
0x1c0b   :  { %5763 = vmatpush1.bf16.msra.mxu0 %v5287_v0  ;;  %5794 = vmatprep.mubr.bf16.mxu0 %v12414_v50  ;;  %v5323_v50 = vld [vmem:[#allocation4 + $0x440] sm:$0xff]  ;;  %v5425_v0 = vld [vmem:[#allocation4 + $0x770] sm:$0xff] }
0x1c0c   :  { %5764 = vmatprep.subr.bf16.mxu0 %v5294_v55  ;;  %v5432_v55 = vld [vmem:[#allocation4 + $0x7a8] sm:$0xff] }
0x1c0f   :  { %5765 = vmatpush1.bf16.msra.mxu0 %v5293_v38  ;;  %v5431_v38 = vld [vmem:[#allocation4 + $0x7a0] sm:$0xff] }
0x1c10   :  { %5766 = vmatprep.subr.bf16.mxu0 %v5300_v23  ;;  %v5438_v23 = vld [vmem:[#allocation4 + $0x7d8] sm:$0xff] }
0x1c13   :  { %5767 = vmatpush1.bf16.msra.mxu0 %v5299_v58  ;;  %v5437_v58 = vld [vmem:[#allocation4 + $0x7d0] sm:$0xff] }
0x1c14   :  { %5768 = vmatprep.subr.bf16.mxu0 %v5306_v49  ;;  %v5444_v49 = vld [vmem:[#allocation4 + $0x808] sm:$0xff] }
0x1c17   :  { %5769 = vmatpush1.bf16.msra.mxu0 %v5305_v43  ;;  %v5443_v43 = vld [vmem:[#allocation4 + $0x800] sm:$0xff] }
0x1c18   :  { %5770 = vmatprep.subr.bf16.mxu0 %v5312_v42  ;;  %v5450_v42 = vld [vmem:[#allocation4 + $0x838] sm:$0xff] }
0x1c1b   :  { %5771 = vmatpush1.bf16.msra.mxu0 %v5311_v34  ;;  %v5449_v34 = vld [vmem:[#allocation4 + $0x830] sm:$0xff] }
0x1c1c   :  { %5772 = vmatprep.subr.bf16.mxu0 %v5318_v15  ;;  %v5456_v15 = vld [vmem:[#allocation4 + $0x868] sm:$0xff] }
0x1c1f   :  { %5773 = vmatpush1.bf16.msra.mxu0 %v5317_v52  ;;  %v5455_v52 = vld [vmem:[#allocation4 + $0x860] sm:$0xff] }
0x1c20   :  { %5774 = vmatprep.subr.bf16.mxu0 %v5324_v21  ;;  %v5462_v21 = vld [vmem:[#allocation4 + $0x898] sm:$0xff] }
0x1c23   :  { %5775 = vmatpush1.bf16.msra.mxu0 %v5323_v50  ;;  %v5461_v50 = vld [vmem:[#allocation4 + $0x890] sm:$0xff] }
0x1c24   :  { %5776 = vmatprep.subr.bf16.mxu0 %v5330_v57  ;;  %v5468_v57 = vld [vmem:[#allocation4 + $0x8c8] sm:$0xff] }
0x1c27   :  { %5777 = vmatpush1.bf16.msra.mxu0 %v5329_v22  ;;  %v5467_v22 = vld [vmem:[#allocation4 + $0x8c0] sm:$0xff] }
0x1c28   :  { %5778 = vmatprep.subr.bf16.mxu0 %v5336_v53  ;;  %v5474_v53 = vld [vmem:[#allocation4 + $0x8f8] sm:$0xff] }
0x1c2b   :  { %5779 = vmatpush1.bf16.msra.mxu0 %v5335_v46  ;;  %v5473_v46 = vld [vmem:[#allocation4 + $0x8f0] sm:$0xff] }
0x1c2c   :  { %5780 = vmatprep.subr.bf16.mxu0 %v5342_v29 }
0x1c2f   :  { %5781 = vmatpush1.bf16.msra.mxu0 %v5341_v39 }
0x1c30   :  { %5782 = vmatprep.subr.bf16.mxu0 %v5348_v20 }
0x1c33   :  { %5783 = vmatpush1.bf16.msra.mxu0 %v5347_v26 }
0x1c34   :  { %5784 = vmatprep.subr.bf16.mxu0 %v5354_v14 }
0x1c37   :  { %5785 = vmatpush1.bf16.msra.mxu0 %v5353_v24 }
0x1c38   :  { %5786 = vmatprep.subr.bf16.mxu0 %v5360_v9 }
0x1c3b   :  { %5787 = vmatpush1.bf16.msra.mxu0 %v5359_v44 }
0x1c3c   :  { %5788 = vmatprep.subr.bf16.mxu0 %v5366_v1 }
0x1c3f   :  { %5789 = vmatpush1.bf16.msra.mxu0 %v5365_v27 }
0x1c40   :  { %5790 = vmatprep.subr.bf16.mxu0 %v5372_v51 }
0x1c43   :  { %5791 = vmatpush1.bf16.msra.mxu0 %v5371_v35 }
0x1c44   :  { %5792 = vmatprep.subr.bf16.mxu0 %v5378_v45 }
0x1c47   :  { %5793 = vmatpush1.bf16.msra.mxu0 %v5377_v59 }
0x1c48   :  { %5803 = vmatprep.subr.bf16.mxu0 %v5384_v56 }
0x1c4a   :  { %5795 = vmatmul.mubr.bf16.vlgmr.msra.gmra.mrb[72].mxu0 %v12422_v25  ;;  %v5413_v25 = vld [vmem:[#allocation4 + $0x710] sm:$0xff] }
0x1c4b   :  { %5804 = vmatpush1.bf16.msra.mxu0 %v5383_v8  ;;  %5835 = vmatprep.mubr.bf16.mxu0 %v12426_v48  ;;  %v5419_v48 = vld [vmem:[#allocation4 + $0x740] sm:$0xff] }
0x1c4c   :  { %5805 = vmatprep.subr.bf16.mxu0 %v5390_v33 }
0x1c4f   :  { %5806 = vmatpush1.bf16.msra.mxu0 %v5389_v37 }
0x1c50   :  { %5807 = vmatprep.subr.bf16.mxu0 %v5396_v60 }
0x1c53   :  { %5808 = vmatpush1.bf16.msra.mxu0 %v5395_v32 }
0x1c54   :  { %5809 = vmatprep.subr.bf16.mxu0 %v5402_v10 }
0x1c57   :  { %5810 = vmatpush1.bf16.msra.mxu0 %v5401_v40 }
0x1c58   :  { %5811 = vmatprep.subr.bf16.mxu0 %v5408_v16 }
0x1c5b   :  { %5812 = vmatpush1.bf16.msra.mxu0 %v5407_v28 }
0x1c5c   :  { %5813 = vmatprep.subr.bf16.mxu0 %v5414_v54 }
0x1c5f   :  { %5814 = vmatpush1.bf16.msra.mxu0 %v5413_v25 }
0x1c60   :  { %5815 = vmatprep.subr.bf16.mxu0 %v5420_v47 }
0x1c63   :  { %5816 = vmatpush1.bf16.msra.mxu0 %v5419_v48 }
0x1c64   :  { %5817 = vmatprep.subr.bf16.mxu0 %v5426_v30 }
0x1c67   :  { %5818 = vmatpush1.bf16.msra.mxu0 %v5425_v0 }
0x1c68   :  { %5819 = vmatprep.subr.bf16.mxu0 %v5432_v55 }
0x1c6b   :  { %5820 = vmatpush1.bf16.msra.mxu0 %v5431_v38 }
0x1c6c   :  { %5821 = vmatprep.subr.bf16.mxu0 %v5438_v23 }
0x1c6f   :  { %5822 = vmatpush1.bf16.msra.mxu0 %v5437_v58 }
0x1c70   :  { %5823 = vmatprep.subr.bf16.mxu0 %v5444_v49 }
0x1c73   :  { %5824 = vmatpush1.bf16.msra.mxu0 %v5443_v43 }
0x1c74   :  { %5825 = vmatprep.subr.bf16.mxu0 %v5450_v42 }
0x1c77   :  { %5826 = vmatpush1.bf16.msra.mxu0 %v5449_v34 }
0x1c78   :  { %5827 = vmatprep.subr.bf16.mxu0 %v5456_v15 }
0x1c7b   :  { %5828 = vmatpush1.bf16.msra.mxu0 %v5455_v52 }
0x1c7c   :  { %5829 = vmatprep.subr.bf16.mxu0 %v5462_v21 }
0x1c7f   :  { %5830 = vmatpush1.bf16.msra.mxu0 %v5461_v50 }
0x1c80   :  { %5831 = vmatprep.subr.bf16.mxu0 %v5468_v57 }
0x1c83   :  { %5832 = vmatpush1.bf16.msra.mxu0 %v5467_v22 }
0x1c84   :  { %5833 = vmatprep.subr.bf16.mxu0 %v5474_v53 }
0x1c87   :  { %5834 = vmatpush1.bf16.msra.mxu0 %v5473_v46 }
0x1c8a   :  { %5836 = vmatmul.mubr.bf16.vlgmr.msra.gmra.mrb[72].mxu0 %v12434_v31 }
0x1c9d   :  { %v12444_v29 = vpop.f32.mrb[68].mxu0 }
0x1c9e   :  { %v5593_v39 = vpop.f32.mrb[69].mxu0 }
0x1c9f   :  { %v5595_v20 = vpop.f32.mrb[70].mxu0  ;;  %v12446_v14 = vpop.f32.mrb[64].mxu1 }
0x1ca0   :  { %v5596_v26 = vpop.f32.mrb[71].mxu0  ;;  %v12448_v24 = vpop.f32.mrb[65].mxu1 }
0x1ca1   :  { %v5718_v9 = vpop.f32.mrb[66].mxu1 }
0x1ca2   :  { %v5719_v44 = vpop.f32.mrb[67].mxu1 }
0x1d5d   :  { %v12450_v1 = vpop.f32.mrb[72].mxu0 }
0x1d5e   :  { %v12452_v27 = vpop.f32.mrb[73].mxu0 }
0x1d5f   :  { %v5841_v51 = vpop.f32.mrb[74].mxu0 }
0x1d60   :  { %v5842_v35 = vpop.f32.mrb[75].mxu0 }
0x1d61   :  { %11029 = dma.done.wait [#allocation8 + $0x3], 36864 }
0x1d62   :  { %11030 = vsyncadd [#allocation8 + $0x3], 4294930432  ;;  %v12454_v31 = vpack.c.bf16 %v5593_v39, %v5593_v39  ;;  %v5853_v45 = vld [vmem:[#allocation5 + $0x8] sm:$0xff]  ;;  %v5852_v59 = vld [vmem:[#allocation5] sm:$0xff]  ;;  %vm6582_vm1 = vcmask 1041408  }
0x1d63   :  { %v5855_v56 = vld [vmem:[#allocation5 + $0x18] sm:$0xff]  ;;  %6140 = vmatprep.subr.bf16.mxu1 %v5853_v45  ;;  %v5854_v33 = vld [vmem:[#allocation5 + $0x10] sm:$0xff]  ;;  %v5861_v37 = vld [vmem:[#allocation5 + $0x48] sm:$0xff] }
0x1d64   :  { %6172 = vmatprep.mubr.bf16.mxu1 %v12454_v31  ;;  %6295 = vmatprep.mubr.bf16.mxu0 %v12454_v31  ;;  %v5859_v8 = vld [vmem:[#allocation5 + $0x38] sm:$0xff]  ;;  %v5858_v60 = vld [vmem:[#allocation5 + $0x30] sm:$0xff]  ;;  %v5860_v32 = vld [vmem:[#allocation5 + $0x40] sm:$0xff] }
0x1d65   :  { %6263 = vmatprep.subr.bf16.mxu0 %v5855_v56  ;;  %6141 = vmatpush1.bf16.msra.mxu1 %v5852_v59  ;;  %v5865_v10 = vld [vmem:[#allocation5 + $0x68] sm:$0xff]  ;;  %v5867_v40 = vld [vmem:[#allocation5 + $0x78] sm:$0xff]  ;;  %v5864_v16 = vld [vmem:[#allocation5 + $0x60] sm:$0xff] }
0x1d66   :  { %6264 = vmatpush1.bf16.msra.mxu0 %v5854_v33  ;;  %6142 = vmatprep.subr.bf16.mxu1 %v5859_v8  ;;  %v5866_v28 = vld [vmem:[#allocation5 + $0x70] sm:$0xff]  ;;  %v5871_v54 = vld [vmem:[#allocation5 + $0x98] sm:$0xff]  ;;  %v5873_v25 = vld [vmem:[#allocation5 + $0xa8] sm:$0xff] }
0x1d67   :  { %6265 = vmatprep.subr.bf16.mxu0 %v5861_v37  ;;  %v5870_v47 = vld [vmem:[#allocation5 + $0x90] sm:$0xff]  ;;  %v5872_v48 = vld [vmem:[#allocation5 + $0xa0] sm:$0xff]  ;;  %v5877_v30 = vld [vmem:[#allocation5 + $0xc8] sm:$0xff] }
0x1d68   :  { %v5879_v0 = vld [vmem:[#allocation5 + $0xd8] sm:$0xff]  ;;  %v5876_v55 = vld [vmem:[#allocation5 + $0xc0] sm:$0xff]  ;;  %v5878_v38 = vld [vmem:[#allocation5 + $0xd0] sm:$0xff] }
0x1d69   :  { %6143 = vmatpush1.bf16.msra.mxu1 %v5858_v60  ;;  %v5883_v23 = vld [vmem:[#allocation5 + $0xf8] sm:$0xff]  ;;  %v5885_v58 = vld [vmem:[#allocation5 + $0x108] sm:$0xff]  ;;  %v5882_v49 = vld [vmem:[#allocation5 + $0xf0] sm:$0xff] }
0x1d6a   :  { %6266 = vmatpush1.bf16.msra.mxu0 %v5860_v32  ;;  %6144 = vmatprep.subr.bf16.mxu1 %v5865_v10  ;;  %v5884_v43 = vld [vmem:[#allocation5 + $0x100] sm:$0xff]  ;;  %v5889_v42 = vld [vmem:[#allocation5 + $0x128] sm:$0xff]  ;;  %v5891_v34 = vld [vmem:[#allocation5 + $0x138] sm:$0xff] }
0x1d6b   :  { %6267 = vmatprep.subr.bf16.mxu0 %v5867_v40  ;;  %v5888_v15 = vld [vmem:[#allocation5 + $0x120] sm:$0xff]  ;;  %v5890_v52 = vld [vmem:[#allocation5 + $0x130] sm:$0xff]  ;;  %v5895_v21 = vld [vmem:[#allocation5 + $0x158] sm:$0xff] }
0x1d6c   :  { %v5897_v50 = vld [vmem:[#allocation5 + $0x168] sm:$0xff]  ;;  %v5894_v57 = vld [vmem:[#allocation5 + $0x150] sm:$0xff]  ;;  %v5896_v22 = vld [vmem:[#allocation5 + $0x160] sm:$0xff] }
0x1d6d   :  { %6145 = vmatpush1.bf16.msra.mxu1 %v5864_v16  ;;  %v5901_v53 = vld [vmem:[#allocation5 + $0x188] sm:$0xff]  ;;  %v5903_v46 = vld [vmem:[#allocation5 + $0x198] sm:$0xff]  ;;  %v5900_v39 = vld [vmem:[#allocation5 + $0x180] sm:$0xff] }
0x1d6e   :  { %6268 = vmatpush1.bf16.msra.mxu0 %v5866_v28  ;;  %6146 = vmatprep.subr.bf16.mxu1 %v5871_v54  ;;  %v5902_v20 = vld [vmem:[#allocation5 + $0x190] sm:$0xff]  ;;  %v5907_v26 = vld [vmem:[#allocation5 + $0x1b8] sm:$0xff]  ;;  %v5909_v9 = vld [vmem:[#allocation5 + $0x1c8] sm:$0xff] }
0x1d6f   :  { %6269 = vmatprep.subr.bf16.mxu0 %v5873_v25  ;;  %v5906_v44 = vld [vmem:[#allocation5 + $0x1b0] sm:$0xff]  ;;  %v5908_v51 = vld [vmem:[#allocation5 + $0x1c0] sm:$0xff]  ;;  %v5913_v35 = vld [vmem:[#allocation5 + $0x1e8] sm:$0xff] }
0x1d70   :  { %v5915_v45 = vld [vmem:[#allocation5 + $0x1f8] sm:$0xff]  ;;  %v5912_v59 = vld [vmem:[#allocation5 + $0x1e0] sm:$0xff]  ;;  %v5914_v56 = vld [vmem:[#allocation5 + $0x1f0] sm:$0xff] }
0x1d71   :  { %6147 = vmatpush1.bf16.msra.mxu1 %v5870_v47  ;;  %v5919_v8 = vld [vmem:[#allocation5 + $0x218] sm:$0xff]  ;;  %v5921_v33 = vld [vmem:[#allocation5 + $0x228] sm:$0xff]  ;;  %v5918_v37 = vld [vmem:[#allocation5 + $0x210] sm:$0xff] }
0x1d72   :  { %6270 = vmatpush1.bf16.msra.mxu0 %v5872_v48  ;;  %6148 = vmatprep.subr.bf16.mxu1 %v5877_v30  ;;  %v5920_v60 = vld [vmem:[#allocation5 + $0x220] sm:$0xff]  ;;  %v5925_v32 = vld [vmem:[#allocation5 + $0x248] sm:$0xff]  ;;  %v5927_v10 = vld [vmem:[#allocation5 + $0x258] sm:$0xff] }
0x1d73   :  { %6271 = vmatprep.subr.bf16.mxu0 %v5879_v0  ;;  %v5924_v40 = vld [vmem:[#allocation5 + $0x240] sm:$0xff]  ;;  %v5926_v16 = vld [vmem:[#allocation5 + $0x250] sm:$0xff]  ;;  %v5931_v28 = vld [vmem:[#allocation5 + $0x278] sm:$0xff] }
0x1d74   :  { %v5933_v54 = vld [vmem:[#allocation5 + $0x288] sm:$0xff]  ;;  %v5930_v25 = vld [vmem:[#allocation5 + $0x270] sm:$0xff]  ;;  %v5932_v47 = vld [vmem:[#allocation5 + $0x280] sm:$0xff] }
0x1d75   :  { %6149 = vmatpush1.bf16.msra.mxu1 %v5876_v55  ;;  %v5937_v48 = vld [vmem:[#allocation5 + $0x2a8] sm:$0xff]  ;;  %v5939_v30 = vld [vmem:[#allocation5 + $0x2b8] sm:$0xff]  ;;  %v5936_v0 = vld [vmem:[#allocation5 + $0x2a0] sm:$0xff] }
0x1d76   :  { %6272 = vmatpush1.bf16.msra.mxu0 %v5878_v38  ;;  %6150 = vmatprep.subr.bf16.mxu1 %v5883_v23  ;;  %v5938_v55 = vld [vmem:[#allocation5 + $0x2b0] sm:$0xff]  ;;  %v5943_v38 = vld [vmem:[#allocation5 + $0x2d8] sm:$0xff]  ;;  %v5945_v23 = vld [vmem:[#allocation5 + $0x2e8] sm:$0xff] }
0x1d77   :  { %6273 = vmatprep.subr.bf16.mxu0 %v5885_v58  ;;  %v5942_v58 = vld [vmem:[#allocation5 + $0x2d0] sm:$0xff] }
0x1d79   :  { %6151 = vmatpush1.bf16.msra.mxu1 %v5882_v49  ;;  %v5944_v49 = vld [vmem:[#allocation5 + $0x2e0] sm:$0xff] }
0x1d7a   :  { %6274 = vmatpush1.bf16.msra.mxu0 %v5884_v43  ;;  %6152 = vmatprep.subr.bf16.mxu1 %v5889_v42  ;;  %v5949_v43 = vld [vmem:[#allocation5 + $0x308] sm:$0xff]  ;;  %v5951_v42 = vld [vmem:[#allocation5 + $0x318] sm:$0xff] }
0x1d7b   :  { %6275 = vmatprep.subr.bf16.mxu0 %v5891_v34  ;;  %v12460_v34 = vpack.c.bf16 %v12444_v29, %v12444_v29  ;;  %v5954_v29 = vld [vmem:[#allocation5 + $0x330] sm:$0xff] }
0x1d7d   :  { %6153 = vmatpush1.bf16.msra.mxu1 %v5888_v15  ;;  %v5948_v15 = vld [vmem:[#allocation5 + $0x300] sm:$0xff] }
0x1d7e   :  { %6276 = vmatpush1.bf16.msra.mxu0 %v5890_v52  ;;  %6154 = vmatprep.subr.bf16.mxu1 %v5895_v21  ;;  %v5950_v52 = vld [vmem:[#allocation5 + $0x310] sm:$0xff]  ;;  %v5955_v21 = vld [vmem:[#allocation5 + $0x338] sm:$0xff] }
0x1d7f   :  { %6277 = vmatprep.subr.bf16.mxu0 %v5897_v50  ;;  %v5957_v50 = vld [vmem:[#allocation5 + $0x348] sm:$0xff] }
0x1d81   :  { %6155 = vmatpush1.bf16.msra.mxu1 %v5894_v57  ;;  %v12464_v57 = vpack.c.bf16 %v12448_v24, %v12448_v24  ;;  %v5960_v24 = vld [vmem:[#allocation5 + $0x360] sm:$0xff] }
0x1d82   :  { %6278 = vmatpush1.bf16.msra.mxu0 %v5896_v22  ;;  %6156 = vmatprep.subr.bf16.mxu1 %v5901_v53  ;;  %v5956_v22 = vld [vmem:[#allocation5 + $0x340] sm:$0xff]  ;;  %v5961_v53 = vld [vmem:[#allocation5 + $0x368] sm:$0xff] }
0x1d83   :  { %6279 = vmatprep.subr.bf16.mxu0 %v5903_v46  ;;  %v5963_v46 = vld [vmem:[#allocation5 + $0x378] sm:$0xff] }
0x1d85   :  { %6157 = vmatpush1.bf16.msra.mxu1 %v5900_v39  ;;  %v5962_v39 = vld [vmem:[#allocation5 + $0x370] sm:$0xff] }
0x1d86   :  { %6280 = vmatpush1.bf16.msra.mxu0 %v5902_v20  ;;  %6158 = vmatprep.subr.bf16.mxu1 %v5907_v26  ;;  %v5967_v20 = vld [vmem:[#allocation5 + $0x398] sm:$0xff]  ;;  %v5969_v26 = vld [vmem:[#allocation5 + $0x3a8] sm:$0xff] }
0x1d87   :  { %6281 = vmatprep.subr.bf16.mxu0 %v5909_v9  ;;  %v5966_v9 = vld [vmem:[#allocation5 + $0x390] sm:$0xff] }
0x1d89   :  { %6159 = vmatpush1.bf16.msra.mxu1 %v5906_v44  ;;  %v5968_v44 = vld [vmem:[#allocation5 + $0x3a0] sm:$0xff] }
0x1d8a   :  { %6282 = vmatpush1.bf16.msra.mxu0 %v5908_v51  ;;  %6160 = vmatprep.subr.bf16.mxu1 %v5913_v35  ;;  %v5973_v51 = vld [vmem:[#allocation5 + $0x3c8] sm:$0xff]  ;;  %v5975_v35 = vld [vmem:[#allocation5 + $0x3d8] sm:$0xff] }
0x1d8b   :  { %6283 = vmatprep.subr.bf16.mxu0 %v5915_v45  ;;  %v5972_v45 = vld [vmem:[#allocation5 + $0x3c0] sm:$0xff] }
0x1d8d   :  { %6161 = vmatpush1.bf16.msra.mxu1 %v5912_v59  ;;  %v5974_v59 = vld [vmem:[#allocation5 + $0x3d0] sm:$0xff] }
0x1d8e   :  { %6284 = vmatpush1.bf16.msra.mxu0 %v5914_v56  ;;  %6162 = vmatprep.subr.bf16.mxu1 %v5919_v8  ;;  %v5979_v56 = vld [vmem:[#allocation5 + $0x3f8] sm:$0xff]  ;;  %v5981_v8 = vld [vmem:[#allocation5 + $0x408] sm:$0xff] }
0x1d8f   :  { %6285 = vmatprep.subr.bf16.mxu0 %v5921_v33  ;;  %v5978_v33 = vld [vmem:[#allocation5 + $0x3f0] sm:$0xff] }
0x1d91   :  { %6163 = vmatpush1.bf16.msra.mxu1 %v5918_v37  ;;  %v5980_v37 = vld [vmem:[#allocation5 + $0x400] sm:$0xff] }
0x1d92   :  { %6286 = vmatpush1.bf16.msra.mxu0 %v5920_v60  ;;  %6164 = vmatprep.subr.bf16.mxu1 %v5925_v32  ;;  %v5985_v60 = vld [vmem:[#allocation5 + $0x428] sm:$0xff]  ;;  %v5987_v32 = vld [vmem:[#allocation5 + $0x438] sm:$0xff] }
0x1d93   :  { %6287 = vmatprep.subr.bf16.mxu0 %v5927_v10  ;;  %v5984_v10 = vld [vmem:[#allocation5 + $0x420] sm:$0xff] }
0x1d95   :  { %6165 = vmatpush1.bf16.msra.mxu1 %v5924_v40  ;;  %v5986_v40 = vld [vmem:[#allocation5 + $0x430] sm:$0xff] }
0x1d96   :  { %6288 = vmatpush1.bf16.msra.mxu0 %v5926_v16  ;;  %6166 = vmatprep.subr.bf16.mxu1 %v5931_v28  ;;  %v5991_v16 = vld [vmem:[#allocation5 + $0x458] sm:$0xff]  ;;  %v5993_v28 = vld [vmem:[#allocation5 + $0x468] sm:$0xff] }
0x1d97   :  { %6289 = vmatprep.subr.bf16.mxu0 %v5933_v54  ;;  %v5990_v54 = vld [vmem:[#allocation5 + $0x450] sm:$0xff] }
0x1d99   :  { %6167 = vmatpush1.bf16.msra.mxu1 %v5930_v25  ;;  %v5992_v25 = vld [vmem:[#allocation5 + $0x460] sm:$0xff] }
0x1d9a   :  { %6290 = vmatpush1.bf16.msra.mxu0 %v5932_v47  ;;  %6168 = vmatprep.subr.bf16.mxu1 %v5937_v48  ;;  %v5997_v47 = vld [vmem:[#allocation5 + $0x488] sm:$0xff]  ;;  %v5999_v48 = vld [vmem:[#allocation5 + $0x498] sm:$0xff] }
0x1d9b   :  { %6291 = vmatprep.subr.bf16.mxu0 %v5939_v30  ;;  %v5996_v30 = vld [vmem:[#allocation5 + $0x480] sm:$0xff] }
0x1d9d   :  { %6169 = vmatpush1.bf16.msra.mxu1 %v5936_v0  ;;  %v5998_v0 = vld [vmem:[#allocation5 + $0x490] sm:$0xff] }
0x1d9e   :  { %6292 = vmatpush1.bf16.msra.mxu0 %v5938_v55  ;;  %6170 = vmatprep.subr.bf16.mxu1 %v5943_v38  ;;  %v6003_v55 = vld [vmem:[#allocation5 + $0x4b8] sm:$0xff]  ;;  %v6005_v38 = vld [vmem:[#allocation5 + $0x4c8] sm:$0xff] }
0x1d9f   :  { %6293 = vmatprep.subr.bf16.mxu0 %v5945_v23  ;;  %v6002_v23 = vld [vmem:[#allocation5 + $0x4b0] sm:$0xff] }
0x1da1   :  { %6171 = vmatpush1.bf16.msra.mxu1 %v5942_v58  ;;  %v6004_v58 = vld [vmem:[#allocation5 + $0x4c0] sm:$0xff] }
0x1da2   :  { %6294 = vmatpush1.bf16.msra.mxu0 %v5944_v49  ;;  %6181 = vmatprep.subr.bf16.mxu1 %v5949_v43  ;;  %v6009_v49 = vld [vmem:[#allocation5 + $0x4e8] sm:$0xff]  ;;  %v6011_v43 = vld [vmem:[#allocation5 + $0x4f8] sm:$0xff] }
0x1da3   :  { %6304 = vmatprep.subr.bf16.mxu0 %v5951_v42  ;;  %v6008_v42 = vld [vmem:[#allocation5 + $0x4e0] sm:$0xff] }
0x1da4   :  { %6173 = vmatmul.mubr.bf16.vlgmr.msra.gmra.mrb[68].mxu1 %v12460_v34 }
0x1da5   :  { %6296 = vmatmul.mubr.bf16.vlgmr.msra.gmra.mrb[76].mxu0 %v12460_v34  ;;  %6182 = vmatpush1.bf16.msra.mxu1 %v5948_v15  ;;  %v6010_v15 = vld [vmem:[#allocation5 + $0x4f0] sm:$0xff] }
0x1da6   :  { %6305 = vmatpush1.bf16.msra.mxu0 %v5950_v52  ;;  %6183 = vmatprep.subr.bf16.mxu1 %v5955_v21  ;;  %v6015_v52 = vld [vmem:[#allocation5 + $0x518] sm:$0xff]  ;;  %v6017_v21 = vld [vmem:[#allocation5 + $0x528] sm:$0xff] }
0x1da7   :  { %6306 = vmatprep.subr.bf16.mxu0 %v5957_v50  ;;  %6213 = vmatprep.mubr.bf16.mxu1 %v12464_v57  ;;  %v6014_v50 = vld [vmem:[#allocation5 + $0x510] sm:$0xff] }
0x1da8   :  { %6336 = vmatprep.mubr.bf16.mxu0 %v12464_v57 }
0x1da9   :  { %6184 = vmatpush1.bf16.msra.mxu1 %v5954_v29  ;;  %v6016_v29 = vld [vmem:[#allocation5 + $0x520] sm:$0xff] }
0x1daa   :  { %6307 = vmatpush1.bf16.msra.mxu0 %v5956_v22  ;;  %6185 = vmatprep.subr.bf16.mxu1 %v5961_v53  ;;  %v6021_v22 = vld [vmem:[#allocation5 + $0x548] sm:$0xff]  ;;  %v6023_v53 = vld [vmem:[#allocation5 + $0x558] sm:$0xff] }
0x1dab   :  { %6308 = vmatprep.subr.bf16.mxu0 %v5963_v46  ;;  %v6020_v46 = vld [vmem:[#allocation5 + $0x540] sm:$0xff] }
0x1dad   :  { %6186 = vmatpush1.bf16.msra.mxu1 %v5960_v24  ;;  %v6022_v24 = vld [vmem:[#allocation5 + $0x550] sm:$0xff] }
0x1dae   :  { %6309 = vmatpush1.bf16.msra.mxu0 %v5962_v39  ;;  %6187 = vmatprep.subr.bf16.mxu1 %v5967_v20  ;;  %v6027_v39 = vld [vmem:[#allocation5 + $0x578] sm:$0xff]  ;;  %v6029_v20 = vld [vmem:[#allocation5 + $0x588] sm:$0xff] }
0x1daf   :  { %6310 = vmatprep.subr.bf16.mxu0 %v5969_v26  ;;  %v6026_v26 = vld [vmem:[#allocation5 + $0x570] sm:$0xff] }
0x1db1   :  { %6188 = vmatpush1.bf16.msra.mxu1 %v5966_v9  ;;  %v6028_v9 = vld [vmem:[#allocation5 + $0x580] sm:$0xff] }
0x1db2   :  { %6311 = vmatpush1.bf16.msra.mxu0 %v5968_v44  ;;  %6189 = vmatprep.subr.bf16.mxu1 %v5973_v51  ;;  %v6033_v44 = vld [vmem:[#allocation5 + $0x5a8] sm:$0xff]  ;;  %v6035_v51 = vld [vmem:[#allocation5 + $0x5b8] sm:$0xff] }
0x1db3   :  { %6312 = vmatprep.subr.bf16.mxu0 %v5975_v35  ;;  %v6032_v35 = vld [vmem:[#allocation5 + $0x5a0] sm:$0xff] }
0x1db5   :  { %6190 = vmatpush1.bf16.msra.mxu1 %v5972_v45  ;;  %v6034_v45 = vld [vmem:[#allocation5 + $0x5b0] sm:$0xff] }
0x1db6   :  { %6313 = vmatpush1.bf16.msra.mxu0 %v5974_v59  ;;  %6191 = vmatprep.subr.bf16.mxu1 %v5979_v56  ;;  %v6039_v59 = vld [vmem:[#allocation5 + $0x5d8] sm:$0xff]  ;;  %v6041_v56 = vld [vmem:[#allocation5 + $0x5e8] sm:$0xff] }
0x1db7   :  { %6314 = vmatprep.subr.bf16.mxu0 %v5981_v8  ;;  %v6038_v8 = vld [vmem:[#allocation5 + $0x5d0] sm:$0xff] }
0x1db9   :  { %6192 = vmatpush1.bf16.msra.mxu1 %v5978_v33  ;;  %v6040_v33 = vld [vmem:[#allocation5 + $0x5e0] sm:$0xff] }
0x1dba   :  { %6315 = vmatpush1.bf16.msra.mxu0 %v5980_v37  ;;  %6193 = vmatprep.subr.bf16.mxu1 %v5985_v60  ;;  %v6045_v37 = vld [vmem:[#allocation5 + $0x608] sm:$0xff]  ;;  %v6047_v60 = vld [vmem:[#allocation5 + $0x618] sm:$0xff] }
0x1dbb   :  { %6316 = vmatprep.subr.bf16.mxu0 %v5987_v32  ;;  %v12472_v32 = vpack.c.bf16 %v12446_v14, %v12446_v14  ;;  %v6050_v14 = vld [vmem:[#allocation5 + $0x630] sm:$0xff] }
0x1dbd   :  { %6194 = vmatpush1.bf16.msra.mxu1 %v5984_v10  ;;  %v6044_v10 = vld [vmem:[#allocation5 + $0x600] sm:$0xff] }
0x1dbe   :  { %6317 = vmatpush1.bf16.msra.mxu0 %v5986_v40  ;;  %6195 = vmatprep.subr.bf16.mxu1 %v5991_v16  ;;  %v6046_v40 = vld [vmem:[#allocation5 + $0x610] sm:$0xff]  ;;  %v6051_v16 = vld [vmem:[#allocation5 + $0x638] sm:$0xff] }
0x1dbf   :  { %6318 = vmatprep.subr.bf16.mxu0 %v5993_v28  ;;  %v6053_v28 = vld [vmem:[#allocation5 + $0x648] sm:$0xff] }
0x1dc1   :  { %6196 = vmatpush1.bf16.msra.mxu1 %v5990_v54  ;;  %v12476_v54 = vpack.c.bf16 %v12452_v27, %v12452_v27  ;;  %v6056_v27 = vld [vmem:[#allocation5 + $0x660] sm:$0xff] }
0x1dc2   :  { %6319 = vmatpush1.bf16.msra.mxu0 %v5992_v25  ;;  %6197 = vmatprep.subr.bf16.mxu1 %v5997_v47  ;;  %v6052_v25 = vld [vmem:[#allocation5 + $0x640] sm:$0xff]  ;;  %v6057_v47 = vld [vmem:[#allocation5 + $0x668] sm:$0xff] }
0x1dc3   :  { %6320 = vmatprep.subr.bf16.mxu0 %v5999_v48  ;;  %v6059_v48 = vld [vmem:[#allocation5 + $0x678] sm:$0xff] }
0x1dc5   :  { %6198 = vmatpush1.bf16.msra.mxu1 %v5996_v30  ;;  %v6058_v30 = vld [vmem:[#allocation5 + $0x670] sm:$0xff] }
0x1dc6   :  { %6321 = vmatpush1.bf16.msra.mxu0 %v5998_v0  ;;  %6199 = vmatprep.subr.bf16.mxu1 %v6003_v55  ;;  %v6063_v0 = vld [vmem:[#allocation5 + $0x698] sm:$0xff]  ;;  %v6065_v55 = vld [vmem:[#allocation5 + $0x6a8] sm:$0xff] }
0x1dc7   :  { %6322 = vmatprep.subr.bf16.mxu0 %v6005_v38  ;;  %v6062_v38 = vld [vmem:[#allocation5 + $0x690] sm:$0xff] }
0x1dc9   :  { %6200 = vmatpush1.bf16.msra.mxu1 %v6002_v23  ;;  %v6064_v23 = vld [vmem:[#allocation5 + $0x6a0] sm:$0xff] }
0x1dca   :  { %6323 = vmatpush1.bf16.msra.mxu0 %v6004_v58  ;;  %6201 = vmatprep.subr.bf16.mxu1 %v6009_v49  ;;  %v6069_v58 = vld [vmem:[#allocation5 + $0x6c8] sm:$0xff]  ;;  %v6071_v49 = vld [vmem:[#allocation5 + $0x6d8] sm:$0xff] }
0x1dcb   :  { %6324 = vmatprep.subr.bf16.mxu0 %v6011_v43  ;;  %v6068_v43 = vld [vmem:[#allocation5 + $0x6c0] sm:$0xff] }
0x1dcd   :  { %6202 = vmatpush1.bf16.msra.mxu1 %v6008_v42  ;;  %v6070_v42 = vld [vmem:[#allocation5 + $0x6d0] sm:$0xff] }
0x1dce   :  { %6325 = vmatpush1.bf16.msra.mxu0 %v6010_v15  ;;  %6203 = vmatprep.subr.bf16.mxu1 %v6015_v52  ;;  %v6075_v15 = vld [vmem:[#allocation5 + $0x6f8] sm:$0xff]  ;;  %v6077_v52 = vld [vmem:[#allocation5 + $0x708] sm:$0xff] }
0x1dcf   :  { %6326 = vmatprep.subr.bf16.mxu0 %v6017_v21  ;;  %v6074_v21 = vld [vmem:[#allocation5 + $0x6f0] sm:$0xff] }
0x1dd1   :  { %6204 = vmatpush1.bf16.msra.mxu1 %v6014_v50  ;;  %v6076_v50 = vld [vmem:[#allocation5 + $0x700] sm:$0xff] }
0x1dd2   :  { %6327 = vmatpush1.bf16.msra.mxu0 %v6016_v29  ;;  %6205 = vmatprep.subr.bf16.mxu1 %v6021_v22  ;;  %v6081_v29 = vld [vmem:[#allocation5 + $0x728] sm:$0xff]  ;;  %v6083_v22 = vld [vmem:[#allocation5 + $0x738] sm:$0xff] }
0x1dd3   :  { %6328 = vmatprep.subr.bf16.mxu0 %v6023_v53  ;;  %v6080_v53 = vld [vmem:[#allocation5 + $0x720] sm:$0xff] }
0x1dd5   :  { %6206 = vmatpush1.bf16.msra.mxu1 %v6020_v46  ;;  %v6082_v46 = vld [vmem:[#allocation5 + $0x730] sm:$0xff] }
0x1dd6   :  { %6329 = vmatpush1.bf16.msra.mxu0 %v6022_v24  ;;  %6207 = vmatprep.subr.bf16.mxu1 %v6027_v39  ;;  %v6087_v24 = vld [vmem:[#allocation5 + $0x758] sm:$0xff]  ;;  %v6089_v39 = vld [vmem:[#allocation5 + $0x768] sm:$0xff] }
0x1dd7   :  { %6330 = vmatprep.subr.bf16.mxu0 %v6029_v20  ;;  %v6086_v20 = vld [vmem:[#allocation5 + $0x750] sm:$0xff] }
0x1dd9   :  { %6208 = vmatpush1.bf16.msra.mxu1 %v6026_v26  ;;  %v6088_v26 = vld [vmem:[#allocation5 + $0x760] sm:$0xff] }
0x1dda   :  { %6331 = vmatpush1.bf16.msra.mxu0 %v6028_v9  ;;  %6209 = vmatprep.subr.bf16.mxu1 %v6033_v44  ;;  %v6093_v9 = vld [vmem:[#allocation5 + $0x788] sm:$0xff]  ;;  %v6095_v44 = vld [vmem:[#allocation5 + $0x798] sm:$0xff] }
0x1ddb   :  { %6332 = vmatprep.subr.bf16.mxu0 %v6035_v51  ;;  %v6092_v51 = vld [vmem:[#allocation5 + $0x780] sm:$0xff] }
0x1ddd   :  { %6210 = vmatpush1.bf16.msra.mxu1 %v6032_v35  ;;  %v6094_v35 = vld [vmem:[#allocation5 + $0x790] sm:$0xff] }
0x1dde   :  { %6333 = vmatpush1.bf16.msra.mxu0 %v6034_v45  ;;  %6211 = vmatprep.subr.bf16.mxu1 %v6039_v59  ;;  %v6099_v45 = vld [vmem:[#allocation5 + $0x7b8] sm:$0xff]  ;;  %v6101_v59 = vld [vmem:[#allocation5 + $0x7c8] sm:$0xff] }
0x1ddf   :  { %6334 = vmatprep.subr.bf16.mxu0 %v6041_v56  ;;  %v6098_v56 = vld [vmem:[#allocation5 + $0x7b0] sm:$0xff] }
0x1de1   :  { %6212 = vmatpush1.bf16.msra.mxu1 %v6038_v8  ;;  %v6100_v8 = vld [vmem:[#allocation5 + $0x7c0] sm:$0xff] }
0x1de2   :  { %6335 = vmatpush1.bf16.msra.mxu0 %v6040_v33  ;;  %6222 = vmatprep.subr.bf16.mxu1 %v6045_v37  ;;  %v6105_v33 = vld [vmem:[#allocation5 + $0x7e8] sm:$0xff]  ;;  %v6107_v37 = vld [vmem:[#allocation5 + $0x7f8] sm:$0xff] }
0x1de3   :  { %6345 = vmatprep.subr.bf16.mxu0 %v6047_v60  ;;  %v6104_v60 = vld [vmem:[#allocation5 + $0x7e0] sm:$0xff] }
0x1de4   :  { %6214 = vmatmul.mubr.bf16.vlgmr.msra.gmra.mrb[68].mxu1 %v12472_v32 }
0x1de5   :  { %6337 = vmatmul.mubr.bf16.vlgmr.msra.gmra.mrb[76].mxu0 %v12472_v32  ;;  %6223 = vmatpush1.bf16.msra.mxu1 %v6044_v10  ;;  %v6106_v10 = vld [vmem:[#allocation5 + $0x7f0] sm:$0xff] }
0x1de6   :  { %6346 = vmatpush1.bf16.msra.mxu0 %v6046_v40  ;;  %6224 = vmatprep.subr.bf16.mxu1 %v6051_v16  ;;  %v6111_v40 = vld [vmem:[#allocation5 + $0x818] sm:$0xff]  ;;  %v6113_v16 = vld [vmem:[#allocation5 + $0x828] sm:$0xff] }
0x1de7   :  { %6347 = vmatprep.subr.bf16.mxu0 %v6053_v28  ;;  %6254 = vmatprep.mubr.bf16.mxu1 %v12476_v54  ;;  %v6110_v28 = vld [vmem:[#allocation5 + $0x810] sm:$0xff] }
0x1de8   :  { %6377 = vmatprep.mubr.bf16.mxu0 %v12476_v54 }
0x1de9   :  { %6225 = vmatpush1.bf16.msra.mxu1 %v6050_v14  ;;  %v6112_v14 = vld [vmem:[#allocation5 + $0x820] sm:$0xff] }
0x1dea   :  { %6348 = vmatpush1.bf16.msra.mxu0 %v6052_v25  ;;  %6226 = vmatprep.subr.bf16.mxu1 %v6057_v47  ;;  %v6117_v25 = vld [vmem:[#allocation5 + $0x848] sm:$0xff]  ;;  %v6119_v47 = vld [vmem:[#allocation5 + $0x858] sm:$0xff] }
0x1deb   :  { %6349 = vmatprep.subr.bf16.mxu0 %v6059_v48  ;;  %v6116_v48 = vld [vmem:[#allocation5 + $0x840] sm:$0xff] }
0x1ded   :  { %6227 = vmatpush1.bf16.msra.mxu1 %v6056_v27  ;;  %v6118_v27 = vld [vmem:[#allocation5 + $0x850] sm:$0xff] }
0x1dee   :  { %6350 = vmatpush1.bf16.msra.mxu0 %v6058_v30  ;;  %6228 = vmatprep.subr.bf16.mxu1 %v6063_v0  ;;  %v6123_v30 = vld [vmem:[#allocation5 + $0x878] sm:$0xff]  ;;  %v6125_v0 = vld [vmem:[#allocation5 + $0x888] sm:$0xff] }
0x1def   :  { %6351 = vmatprep.subr.bf16.mxu0 %v6065_v55  ;;  %v6122_v55 = vld [vmem:[#allocation5 + $0x870] sm:$0xff] }
0x1df1   :  { %6229 = vmatpush1.bf16.msra.mxu1 %v6062_v38  ;;  %v6124_v38 = vld [vmem:[#allocation5 + $0x880] sm:$0xff] }
0x1df2   :  { %6352 = vmatpush1.bf16.msra.mxu0 %v6064_v23  ;;  %6230 = vmatprep.subr.bf16.mxu1 %v6069_v58  ;;  %v6129_v23 = vld [vmem:[#allocation5 + $0x8a8] sm:$0xff]  ;;  %v6131_v58 = vld [vmem:[#allocation5 + $0x8b8] sm:$0xff] }
0x1df3   :  { %6353 = vmatprep.subr.bf16.mxu0 %v6071_v49  ;;  %v6128_v49 = vld [vmem:[#allocation5 + $0x8a0] sm:$0xff] }
0x1df5   :  { %6231 = vmatpush1.bf16.msra.mxu1 %v6068_v43  ;;  %v6130_v43 = vld [vmem:[#allocation5 + $0x8b0] sm:$0xff] }
0x1df6   :  { %6354 = vmatpush1.bf16.msra.mxu0 %v6070_v42  ;;  %6232 = vmatprep.subr.bf16.mxu1 %v6075_v15  ;;  %v6135_v42 = vld [vmem:[#allocation5 + $0x8d8] sm:$0xff]  ;;  %v6137_v15 = vld [vmem:[#allocation5 + $0x8e8] sm:$0xff] }
0x1df7   :  { %6355 = vmatprep.subr.bf16.mxu0 %v6077_v52  ;;  %v6134_v52 = vld [vmem:[#allocation5 + $0x8d0] sm:$0xff] }
0x1df9   :  { %6233 = vmatpush1.bf16.msra.mxu1 %v6074_v21  ;;  %v6136_v21 = vld [vmem:[#allocation5 + $0x8e0] sm:$0xff] }
0x1dfa   :  { %6356 = vmatpush1.bf16.msra.mxu0 %v6076_v50  ;;  %6234 = vmatprep.subr.bf16.mxu1 %v6081_v29  ;;  %v5857_v50 = vld [vmem:[#allocation5 + $0x28] sm:$0xff]  ;;  %v12484_v29 = vpack.c.bf16 %v12450_v1, %v12450_v1  ;;  %v5875_v1 = vld [vmem:[#allocation5 + $0xb8] sm:$0xff] }
0x1dfb   :  { %6357 = vmatprep.subr.bf16.mxu0 %v6083_v22  ;;  %v5856_v22 = vld [vmem:[#allocation5 + $0x20] sm:$0xff] }
0x1dfd   :  { %6235 = vmatpush1.bf16.msra.mxu1 %v6080_v53  ;;  %v5863_v53 = vld [vmem:[#allocation5 + $0x58] sm:$0xff] }
0x1dfe   :  { %6358 = vmatpush1.bf16.msra.mxu0 %v6082_v46  ;;  %6236 = vmatprep.subr.bf16.mxu1 %v6087_v24  ;;  %v5862_v46 = vld [vmem:[#allocation5 + $0x50] sm:$0xff]  ;;  %v5869_v24 = vld [vmem:[#allocation5 + $0x88] sm:$0xff] }
0x1dff   :  { %6359 = vmatprep.subr.bf16.mxu0 %v6089_v39  ;;  %v5868_v39 = vld [vmem:[#allocation5 + $0x80] sm:$0xff] }
0x1e01   :  { %6237 = vmatpush1.bf16.msra.mxu1 %v6086_v20  ;;  %v5874_v20 = vld [vmem:[#allocation5 + $0xb0] sm:$0xff] }
0x1e02   :  { %6360 = vmatpush1.bf16.msra.mxu0 %v6088_v26  ;;  %6238 = vmatprep.subr.bf16.mxu1 %v6093_v9  ;;  %v5881_v26 = vld [vmem:[#allocation5 + $0xe8] sm:$0xff]  ;;  %v5880_v9 = vld [vmem:[#allocation5 + $0xe0] sm:$0xff] }
0x1e03   :  { %6361 = vmatprep.subr.bf16.mxu0 %v6095_v44  ;;  %v5887_v44 = vld [vmem:[#allocation5 + $0x118] sm:$0xff] }
0x1e05   :  { %6239 = vmatpush1.bf16.msra.mxu1 %v6092_v51  ;;  %v5886_v51 = vld [vmem:[#allocation5 + $0x110] sm:$0xff] }
0x1e06   :  { %6362 = vmatpush1.bf16.msra.mxu0 %v6094_v35  ;;  %6240 = vmatprep.subr.bf16.mxu1 %v6099_v45  ;;  %v5893_v35 = vld [vmem:[#allocation5 + $0x148] sm:$0xff]  ;;  %v5899_v45 = vld [vmem:[#allocation5 + $0x178] sm:$0xff] }
0x1e07   :  { %6363 = vmatprep.subr.bf16.mxu0 %v6101_v59  ;;  %v5898_v59 = vld [vmem:[#allocation5 + $0x170] sm:$0xff] }
0x1e09   :  { %6241 = vmatpush1.bf16.msra.mxu1 %v6098_v56  ;;  %v5905_v56 = vld [vmem:[#allocation5 + $0x1a8] sm:$0xff] }
0x1e0a   :  { %6364 = vmatpush1.bf16.msra.mxu0 %v6100_v8  ;;  %6242 = vmatprep.subr.bf16.mxu1 %v6105_v33  ;;  %v5904_v8 = vld [vmem:[#allocation5 + $0x1a0] sm:$0xff]  ;;  %v5911_v33 = vld [vmem:[#allocation5 + $0x1d8] sm:$0xff] }
0x1e0b   :  { %6365 = vmatprep.subr.bf16.mxu0 %v6107_v37  ;;  %v5910_v37 = vld [vmem:[#allocation5 + $0x1d0] sm:$0xff] }
0x1e0d   :  { %6243 = vmatpush1.bf16.msra.mxu1 %v6104_v60  ;;  %v5917_v60 = vld [vmem:[#allocation5 + $0x208] sm:$0xff] }
0x1e0e   :  { %6366 = vmatpush1.bf16.msra.mxu0 %v6106_v10  ;;  %6244 = vmatprep.subr.bf16.mxu1 %v6111_v40  ;;  %v5916_v10 = vld [vmem:[#allocation5 + $0x200] sm:$0xff]  ;;  %v5923_v40 = vld [vmem:[#allocation5 + $0x238] sm:$0xff] }
0x1e0f   :  { %6367 = vmatprep.subr.bf16.mxu0 %v6113_v16  ;;  %v5922_v16 = vld [vmem:[#allocation5 + $0x230] sm:$0xff] }
0x1e11   :  { %6245 = vmatpush1.bf16.msra.mxu1 %v6110_v28  ;;  %v5929_v28 = vld [vmem:[#allocation5 + $0x268] sm:$0xff] }
0x1e12   :  { %6368 = vmatpush1.bf16.msra.mxu0 %v6112_v14  ;;  %6246 = vmatprep.subr.bf16.mxu1 %v6117_v25  ;;  %v5928_v14 = vld [vmem:[#allocation5 + $0x260] sm:$0xff]  ;;  %v5935_v25 = vld [vmem:[#allocation5 + $0x298] sm:$0xff] }
0x1e13   :  { %6369 = vmatprep.subr.bf16.mxu0 %v6119_v47  ;;  %v5934_v47 = vld [vmem:[#allocation5 + $0x290] sm:$0xff] }
0x1e15   :  { %6247 = vmatpush1.bf16.msra.mxu1 %v6116_v48  ;;  %v5941_v48 = vld [vmem:[#allocation5 + $0x2c8] sm:$0xff] }
0x1e16   :  { %6370 = vmatpush1.bf16.msra.mxu0 %v6118_v27  ;;  %6248 = vmatprep.subr.bf16.mxu1 %v6123_v30  ;;  %v5940_v27 = vld [vmem:[#allocation5 + $0x2c0] sm:$0xff]  ;;  %v5947_v30 = vld [vmem:[#allocation5 + $0x2f8] sm:$0xff] }
0x1e17   :  { %6371 = vmatprep.subr.bf16.mxu0 %v6125_v0  ;;  %v5946_v0 = vld [vmem:[#allocation5 + $0x2f0] sm:$0xff] }
0x1e19   :  { %6249 = vmatpush1.bf16.msra.mxu1 %v6122_v55  ;;  %v5953_v55 = vld [vmem:[#allocation5 + $0x328] sm:$0xff] }
0x1e1a   :  { %6372 = vmatpush1.bf16.msra.mxu0 %v6124_v38  ;;  %6250 = vmatprep.subr.bf16.mxu1 %v6129_v23  ;;  %v5952_v38 = vld [vmem:[#allocation5 + $0x320] sm:$0xff]  ;;  %v5959_v23 = vld [vmem:[#allocation5 + $0x358] sm:$0xff] }
0x1e1b   :  { %6373 = vmatprep.subr.bf16.mxu0 %v6131_v58  ;;  %v5958_v58 = vld [vmem:[#allocation5 + $0x350] sm:$0xff] }
0x1e1d   :  { %6251 = vmatpush1.bf16.msra.mxu1 %v6128_v49  ;;  %v5965_v49 = vld [vmem:[#allocation5 + $0x388] sm:$0xff] }
0x1e1e   :  { %6374 = vmatpush1.bf16.msra.mxu0 %v6130_v43  ;;  %6252 = vmatprep.subr.bf16.mxu1 %v6135_v42  ;;  %v5964_v43 = vld [vmem:[#allocation5 + $0x380] sm:$0xff]  ;;  %v5971_v42 = vld [vmem:[#allocation5 + $0x3b8] sm:$0xff] }
0x1e1f   :  { %6375 = vmatprep.subr.bf16.mxu0 %v6137_v15  ;;  %v5970_v15 = vld [vmem:[#allocation5 + $0x3b0] sm:$0xff] }
0x1e21   :  { %6253 = vmatpush1.bf16.msra.mxu1 %v6134_v52  ;;  %v5977_v52 = vld [vmem:[#allocation5 + $0x3e8] sm:$0xff] }
0x1e22   :  { %6376 = vmatpush1.bf16.msra.mxu0 %v6136_v21  ;;  %6386 = vmatprep.subr.bf16.mxu1 %v5857_v50  ;;  %v5976_v21 = vld [vmem:[#allocation5 + $0x3e0] sm:$0xff]  ;;  %v5983_v50 = vld [vmem:[#allocation5 + $0x418] sm:$0xff] }
0x1e24   :  { %6255 = vmatmul.mubr.bf16.vlgmr.msra.gmra.mrb[68].mxu1 %v12484_v29 }
0x1e25   :  { %6378 = vmatmul.mubr.bf16.vlgmr.msra.gmra.mrb[76].mxu0 %v12484_v29  ;;  %6387 = vmatpush1.bf16.msra.mxu1 %v5856_v22  ;;  %v5989_v22 = vld [vmem:[#allocation5 + $0x448] sm:$0xff] }
0x1e26   :  { %6418 = vmatprep.mubr.bf16.mxu1 %v12454_v31  ;;  %6388 = vmatprep.subr.bf16.mxu1 %v5863_v53  ;;  %v5892_v31 = vld [vmem:[#allocation5 + $0x140] sm:$0xff]  ;;  %v5995_v53 = vld [vmem:[#allocation5 + $0x478] sm:$0xff] }
0x1e29   :  { %6389 = vmatpush1.bf16.msra.mxu1 %v5862_v46  ;;  %v5994_v46 = vld [vmem:[#allocation5 + $0x470] sm:$0xff] }
0x1e2a   :  { %6390 = vmatprep.subr.bf16.mxu1 %v5869_v24  ;;  %v6001_v24 = vld [vmem:[#allocation5 + $0x4a8] sm:$0xff] }
0x1e2d   :  { %6391 = vmatpush1.bf16.msra.mxu1 %v5868_v39  ;;  %v6000_v39 = vld [vmem:[#allocation5 + $0x4a0] sm:$0xff] }
0x1e2e   :  { %6392 = vmatprep.subr.bf16.mxu1 %v5875_v1  ;;  %v6007_v1 = vld [vmem:[#allocation5 + $0x4d8] sm:$0xff] }
0x1e31   :  { %6393 = vmatpush1.bf16.msra.mxu1 %v5874_v20  ;;  %v6006_v20 = vld [vmem:[#allocation5 + $0x4d0] sm:$0xff] }
0x1e32   :  { %6394 = vmatprep.subr.bf16.mxu1 %v5881_v26  ;;  %v6013_v26 = vld [vmem:[#allocation5 + $0x508] sm:$0xff] }
0x1e35   :  { %6395 = vmatpush1.bf16.msra.mxu1 %v5880_v9  ;;  %v6012_v9 = vld [vmem:[#allocation5 + $0x500] sm:$0xff] }
0x1e36   :  { %6396 = vmatprep.subr.bf16.mxu1 %v5887_v44  ;;  %v6019_v44 = vld [vmem:[#allocation5 + $0x538] sm:$0xff] }
0x1e39   :  { %6397 = vmatpush1.bf16.msra.mxu1 %v5886_v51  ;;  %v6018_v51 = vld [vmem:[#allocation5 + $0x530] sm:$0xff] }
0x1e3a   :  { %6398 = vmatprep.subr.bf16.mxu1 %v5893_v35  ;;  %v6025_v35 = vld [vmem:[#allocation5 + $0x568] sm:$0xff] }
0x1e3d   :  { %6399 = vmatpush1.bf16.msra.mxu1 %v5892_v31  ;;  %v6024_v31 = vld [vmem:[#allocation5 + $0x560] sm:$0xff] }
0x1e3e   :  { %6400 = vmatprep.subr.bf16.mxu1 %v5899_v45  ;;  %v6031_v45 = vld [vmem:[#allocation5 + $0x598] sm:$0xff] }
0x1e41   :  { %6401 = vmatpush1.bf16.msra.mxu1 %v5898_v59  ;;  %v6030_v59 = vld [vmem:[#allocation5 + $0x590] sm:$0xff] }
0x1e42   :  { %6402 = vmatprep.subr.bf16.mxu1 %v5905_v56  ;;  %v6037_v56 = vld [vmem:[#allocation5 + $0x5c8] sm:$0xff] }
0x1e45   :  { %6403 = vmatpush1.bf16.msra.mxu1 %v5904_v8  ;;  %v6036_v8 = vld [vmem:[#allocation5 + $0x5c0] sm:$0xff] }
0x1e46   :  { %6404 = vmatprep.subr.bf16.mxu1 %v5911_v33  ;;  %v6043_v33 = vld [vmem:[#allocation5 + $0x5f8] sm:$0xff] }
0x1e49   :  { %6405 = vmatpush1.bf16.msra.mxu1 %v5910_v37  ;;  %v6042_v37 = vld [vmem:[#allocation5 + $0x5f0] sm:$0xff] }
0x1e4a   :  { %6406 = vmatprep.subr.bf16.mxu1 %v5917_v60  ;;  %v6049_v60 = vld [vmem:[#allocation5 + $0x628] sm:$0xff] }
0x1e4d   :  { %6407 = vmatpush1.bf16.msra.mxu1 %v5916_v10  ;;  %v6048_v10 = vld [vmem:[#allocation5 + $0x620] sm:$0xff] }
0x1e4e   :  { %6408 = vmatprep.subr.bf16.mxu1 %v5923_v40  ;;  %v6055_v40 = vld [vmem:[#allocation5 + $0x658] sm:$0xff] }
0x1e51   :  { %6409 = vmatpush1.bf16.msra.mxu1 %v5922_v16  ;;  %v6054_v16 = vld [vmem:[#allocation5 + $0x650] sm:$0xff] }
0x1e52   :  { %6410 = vmatprep.subr.bf16.mxu1 %v5929_v28  ;;  %v6061_v28 = vld [vmem:[#allocation5 + $0x688] sm:$0xff] }
0x1e55   :  { %6411 = vmatpush1.bf16.msra.mxu1 %v5928_v14  ;;  %v6060_v14 = vld [vmem:[#allocation5 + $0x680] sm:$0xff] }
0x1e56   :  { %6412 = vmatprep.subr.bf16.mxu1 %v5935_v25  ;;  %v6067_v25 = vld [vmem:[#allocation5 + $0x6b8] sm:$0xff] }
0x1e59   :  { %6413 = vmatpush1.bf16.msra.mxu1 %v5934_v47  ;;  %v6066_v47 = vld [vmem:[#allocation5 + $0x6b0] sm:$0xff] }
0x1e5a   :  { %6414 = vmatprep.subr.bf16.mxu1 %v5941_v48  ;;  %v6073_v48 = vld [vmem:[#allocation5 + $0x6e8] sm:$0xff] }
0x1e5d   :  { %6415 = vmatpush1.bf16.msra.mxu1 %v5940_v27  ;;  %v6072_v27 = vld [vmem:[#allocation5 + $0x6e0] sm:$0xff] }
0x1e5e   :  { %6416 = vmatprep.subr.bf16.mxu1 %v5947_v30  ;;  %v6079_v30 = vld [vmem:[#allocation5 + $0x718] sm:$0xff] }
0x1e61   :  { %6417 = vmatpush1.bf16.msra.mxu1 %v5946_v0  ;;  %v6085_v0 = vld [vmem:[#allocation5 + $0x748] sm:$0xff] }
0x1e62   :  { %6427 = vmatprep.subr.bf16.mxu1 %v5953_v55  ;;  %v6091_v55 = vld [vmem:[#allocation5 + $0x778] sm:$0xff] }
0x1e64   :  { %6419 = vmatmul.mubr.bf16.vlgmr.msra.gmra.mrb[72].mxu1 %v12460_v34  ;;  %v5982_v34 = vld [vmem:[#allocation5 + $0x410] sm:$0xff] }
0x1e65   :  { %6428 = vmatpush1.bf16.msra.mxu1 %v5952_v38  ;;  %6459 = vmatprep.mubr.bf16.mxu1 %v12464_v57  ;;  %v5988_v57 = vld [vmem:[#allocation5 + $0x440] sm:$0xff]  ;;  %v6090_v38 = vld [vmem:[#allocation5 + $0x770] sm:$0xff] }
0x1e66   :  { %6429 = vmatprep.subr.bf16.mxu1 %v5959_v23  ;;  %v6097_v23 = vld [vmem:[#allocation5 + $0x7a8] sm:$0xff] }
0x1e69   :  { %6430 = vmatpush1.bf16.msra.mxu1 %v5958_v58  ;;  %v6096_v58 = vld [vmem:[#allocation5 + $0x7a0] sm:$0xff] }
0x1e6a   :  { %6431 = vmatprep.subr.bf16.mxu1 %v5965_v49  ;;  %v6103_v49 = vld [vmem:[#allocation5 + $0x7d8] sm:$0xff] }
0x1e6d   :  { %6432 = vmatpush1.bf16.msra.mxu1 %v5964_v43  ;;  %v6102_v43 = vld [vmem:[#allocation5 + $0x7d0] sm:$0xff] }
0x1e6e   :  { %6433 = vmatprep.subr.bf16.mxu1 %v5971_v42  ;;  %v6109_v42 = vld [vmem:[#allocation5 + $0x808] sm:$0xff] }
0x1e71   :  { %6434 = vmatpush1.bf16.msra.mxu1 %v5970_v15  ;;  %v6108_v15 = vld [vmem:[#allocation5 + $0x800] sm:$0xff] }
0x1e72   :  { %6435 = vmatprep.subr.bf16.mxu1 %v5977_v52  ;;  %v6115_v52 = vld [vmem:[#allocation5 + $0x838] sm:$0xff] }
0x1e75   :  { %6436 = vmatpush1.bf16.msra.mxu1 %v5976_v21  ;;  %v6114_v21 = vld [vmem:[#allocation5 + $0x830] sm:$0xff] }
0x1e76   :  { %6437 = vmatprep.subr.bf16.mxu1 %v5983_v50  ;;  %v6121_v50 = vld [vmem:[#allocation5 + $0x868] sm:$0xff] }
0x1e79   :  { %6438 = vmatpush1.bf16.msra.mxu1 %v5982_v34  ;;  %v6120_v34 = vld [vmem:[#allocation5 + $0x860] sm:$0xff] }
0x1e7a   :  { %6439 = vmatprep.subr.bf16.mxu1 %v5989_v22  ;;  %v6127_v22 = vld [vmem:[#allocation5 + $0x898] sm:$0xff] }
0x1e7d   :  { %6440 = vmatpush1.bf16.msra.mxu1 %v5988_v57  ;;  %v6126_v57 = vld [vmem:[#allocation5 + $0x890] sm:$0xff] }
0x1e7e   :  { %6441 = vmatprep.subr.bf16.mxu1 %v5995_v53  ;;  %v6133_v53 = vld [vmem:[#allocation5 + $0x8c8] sm:$0xff] }
0x1e81   :  { %6442 = vmatpush1.bf16.msra.mxu1 %v5994_v46  ;;  %v6132_v46 = vld [vmem:[#allocation5 + $0x8c0] sm:$0xff] }
0x1e82   :  { %6443 = vmatprep.subr.bf16.mxu1 %v6001_v24  ;;  %v6139_v24 = vld [vmem:[#allocation5 + $0x8f8] sm:$0xff] }
0x1e85   :  { %6444 = vmatpush1.bf16.msra.mxu1 %v6000_v39  ;;  %v6138_v39 = vld [vmem:[#allocation5 + $0x8f0] sm:$0xff] }
0x1e86   :  { %6445 = vmatprep.subr.bf16.mxu1 %v6007_v1 }
0x1e89   :  { %6446 = vmatpush1.bf16.msra.mxu1 %v6006_v20 }
0x1e8a   :  { %6447 = vmatprep.subr.bf16.mxu1 %v6013_v26 }
0x1e8d   :  { %6448 = vmatpush1.bf16.msra.mxu1 %v6012_v9 }
0x1e8e   :  { %6449 = vmatprep.subr.bf16.mxu1 %v6019_v44 }
0x1e91   :  { %6450 = vmatpush1.bf16.msra.mxu1 %v6018_v51 }
0x1e92   :  { %6451 = vmatprep.subr.bf16.mxu1 %v6025_v35 }
0x1e95   :  { %6452 = vmatpush1.bf16.msra.mxu1 %v6024_v31 }
0x1e96   :  { %6453 = vmatprep.subr.bf16.mxu1 %v6031_v45 }
0x1e99   :  { %6454 = vmatpush1.bf16.msra.mxu1 %v6030_v59 }
0x1e9a   :  { %6455 = vmatprep.subr.bf16.mxu1 %v6037_v56 }
0x1e9d   :  { %6456 = vmatpush1.bf16.msra.mxu1 %v6036_v8 }
0x1e9e   :  { %6457 = vmatprep.subr.bf16.mxu1 %v6043_v33 }
0x1ea1   :  { %6458 = vmatpush1.bf16.msra.mxu1 %v6042_v37 }
0x1ea2   :  { %6468 = vmatprep.subr.bf16.mxu1 %v6049_v60 }
0x1ea4   :  { %6460 = vmatmul.mubr.bf16.vlgmr.msra.gmra.mrb[72].mxu1 %v12472_v32  ;;  %v6078_v32 = vld [vmem:[#allocation5 + $0x710] sm:$0xff] }
0x1ea5   :  { %6469 = vmatpush1.bf16.msra.mxu1 %v6048_v10  ;;  %6500 = vmatprep.mubr.bf16.mxu1 %v12476_v54  ;;  %v6084_v54 = vld [vmem:[#allocation5 + $0x740] sm:$0xff] }
0x1ea6   :  { %6470 = vmatprep.subr.bf16.mxu1 %v6055_v40 }
0x1ea9   :  { %6471 = vmatpush1.bf16.msra.mxu1 %v6054_v16 }
0x1eaa   :  { %6472 = vmatprep.subr.bf16.mxu1 %v6061_v28 }
0x1ead   :  { %6473 = vmatpush1.bf16.msra.mxu1 %v6060_v14 }
0x1eae   :  { %6474 = vmatprep.subr.bf16.mxu1 %v6067_v25 }
0x1eb1   :  { %6475 = vmatpush1.bf16.msra.mxu1 %v6066_v47 }
0x1eb2   :  { %6476 = vmatprep.subr.bf16.mxu1 %v6073_v48 }
0x1eb5   :  { %6477 = vmatpush1.bf16.msra.mxu1 %v6072_v27 }
0x1eb6   :  { %6478 = vmatprep.subr.bf16.mxu1 %v6079_v30 }
0x1eb9   :  { %6479 = vmatpush1.bf16.msra.mxu1 %v6078_v32 }
0x1eba   :  { %6480 = vmatprep.subr.bf16.mxu1 %v6085_v0 }
0x1ebd   :  { %6481 = vmatpush1.bf16.msra.mxu1 %v6084_v54 }
0x1ebe   :  { %6482 = vmatprep.subr.bf16.mxu1 %v6091_v55 }
0x1ec1   :  { %6483 = vmatpush1.bf16.msra.mxu1 %v6090_v38 }
0x1ec2   :  { %6484 = vmatprep.subr.bf16.mxu1 %v6097_v23 }
0x1ec5   :  { %6485 = vmatpush1.bf16.msra.mxu1 %v6096_v58 }
0x1ec6   :  { %6486 = vmatprep.subr.bf16.mxu1 %v6103_v49 }
0x1ec9   :  { %6487 = vmatpush1.bf16.msra.mxu1 %v6102_v43 }
0x1eca   :  { %6488 = vmatprep.subr.bf16.mxu1 %v6109_v42 }
0x1ecd   :  { %6489 = vmatpush1.bf16.msra.mxu1 %v6108_v15 }
0x1ece   :  { %6490 = vmatprep.subr.bf16.mxu1 %v6115_v52 }
0x1ed1   :  { %6491 = vmatpush1.bf16.msra.mxu1 %v6114_v21 }
0x1ed2   :  { %6492 = vmatprep.subr.bf16.mxu1 %v6121_v50 }
0x1ed5   :  { %6493 = vmatpush1.bf16.msra.mxu1 %v6120_v34 }
0x1ed6   :  { %6494 = vmatprep.subr.bf16.mxu1 %v6127_v22 }
0x1ed9   :  { %6495 = vmatpush1.bf16.msra.mxu1 %v6126_v57 }
0x1eda   :  { %6496 = vmatprep.subr.bf16.mxu1 %v6133_v53 }
0x1edd   :  { %6497 = vmatpush1.bf16.msra.mxu1 %v6132_v46 }
0x1ede   :  { %6498 = vmatprep.subr.bf16.mxu1 %v6139_v24 }
0x1ee1   :  { %6499 = vmatpush1.bf16.msra.mxu1 %v6138_v39 }
0x1ee4   :  { %6501 = vmatmul.mubr.bf16.vlgmr.msra.gmra.mrb[72].mxu1 %v12484_v29 }
0x1ef7   :  { %v6256_v1 = vpop.f32.mrb[68].mxu1 }
0x1ef8   :  { %v6379_v20 = vpop.f32.mrb[76].mxu0  ;;  %v6258_v26 = vpop.f32.mrb[69].mxu1  ;;  %v6515_v45 = vrot.slane %v6256_v1, 1  ;;  %v6533_v40 = vadd.f32 %v6256_v1, %v11443_v2 }
0x1ef9   :  { %v6381_v9 = vpop.f32.mrb[77].mxu0  ;;  %v6260_v44 = vpop.f32.mrb[70].mxu1  ;;  %v6516_v59 = vrot.slane %v6258_v26, 1  ;;  %v6517_v33 = vrot.slane %v6379_v20, 1  ;;  %v6534_v16 = vadd.f32 %v6258_v26, %v11445_v3  ;;  %v6535_v28 = vadd.f32 %v6379_v20, %v11447_v4 }
0x1efa   :  { %v6383_v51 = vpop.f32.mrb[78].mxu0  ;;  %v6261_v35 = vpop.f32.mrb[71].mxu1  ;;  %v6539_v56 = vadd.f32 %v6515_v45, %v11461_v11  ;;  %v6518_v29 = vrot.slane %v6381_v9, 1  ;;  %v6536_v2 = vadd.f32 %v6381_v9, %v11449_v5 }
0x1efb   :  { %v6384_v31 = vpop.f32.mrb[79].mxu0  ;;  %v6540_v8 = vadd.f32 %v6516_v59, %v11463_v12  ;;  %v6541_v10 = vadd.f32 %v6517_v33, %v11465_v13 }
0x1efc   :  { %v6564_v37 = vrot.slane %v6539_v56, 7  ;;  %v6542_v12 = vadd.f32 %v6518_v29, %v11473_v17 }
0x1efd   :  { %v6566_v60 = vrot.slane %v6540_v8, 7  ;;  %v6568_v11 = vrot.slane %v6541_v10, 7 }
0x1efe   :  { %v6565_v14 = vsel %vm3764_vm2, %v6564_v37, %v6533_v40  ;;  %v6570_v27 = vrot.slane %v6542_v12, 7 }
0x1eff   :  { %v6567_v25 = vsel %vm3764_vm2, %v6566_v60, %v6534_v16  ;;  %v6583_v47 = vsel %vm6582_vm1, %v6565_v14, 0.0  ;;  %v6569_v13 = vsel %vm3764_vm2, %v6568_v11, %v6535_v28 }
0x1f00   :  { %v6584_v48 = vsel %vm6582_vm1, %v6567_v25, 0.0  ;;  %v6586_v30 = vsel %vm6582_vm1, %v6569_v13, 0.0  ;;  %v6571_v32 = vsel %vm3764_vm2, %v6570_v27, %v6536_v2 }
0x1f01   :  { %v6585_v3 = vadd.f32 %v6584_v48, %v6583_v47  ;;  %v6588_v49 = vsel %vm6582_vm1, %v6571_v32, 0.0 }
0x1f03   :  { %v6587_v17 = vadd.f32 %v6586_v30, %v6585_v3 }
0x1f05   :  { %v6589_v50 = vadd.f32 %v6588_v49, %v6587_v17 }
0x1fb7   :  { %v6502_v4 = vpop.f32.mrb[72].mxu1 }
0x1fb8   :  { %v6519_v0 = vrot.slane %v6502_v4, 1  ;;  %v6504_v54 = vpop.f32.mrb[73].mxu1  ;;  %v6537_v5 = vadd.f32 %v6502_v4, %v11451_v6 }
0x1fb9   :  { %v6520_v55 = vrot.slane %v6504_v54, 1  ;;  %v6506_v38 = vpop.f32.mrb[74].mxu1  ;;  %v6538_v15 = vadd.f32 %v6504_v54, %v11453_v7 }
0x1fba   :  { %v6543_v23 = vadd.f32 %v6519_v0, %v11475_v18  ;;  %v6507_v58 = vpop.f32.mrb[75].mxu1 }
0x1fbb   :  { %v6544_v43 = vadd.f32 %v6520_v55, %v11477_v19 }
0x1fbc   :  { %v6572_v42 = vrot.slane %v6543_v23, 7 }
0x1fbd   :  { %v6574_v52 = vrot.slane %v6544_v43, 7 }
0x1fbe   :  { %v6573_v21 = vsel %vm3764_vm2, %v6572_v42, %v6537_v5 }
0x1fbf   :  { %v6575_v34 = vsel %vm3764_vm2, %v6574_v52, %v6538_v15  ;;  %v6590_v22 = vsel %vm6582_vm1, %v6573_v21, 0.0 }
0x1fc0   :  { %v6591_v57 = vadd.f32 %v6590_v22, %v6589_v50  ;;  %v6592_v18 = vsel %vm6582_vm1, %v6575_v34, 0.0  ;;  %v6545_v50 = vld [vmem:[#allocation24] ss:$8 sm:$0xf] }
0x1fc1   :  { %v6546_v34 = vld [vmem:[#allocation24] ss:$8 sm:$0x30]  ;;  %v6549_v22 = vld [vmem:[#allocation24 + $0x1] ss:$8 sm:$0xf] }
0x1fc2   :  { %v6593_v53 = vadd.f32 %v6592_v18, %v6591_v57  ;;  %v6550_v57 = vld [vmem:[#allocation24 + $0x1] ss:$8 sm:$0x30]  ;;  %v6547_v18 = vor.u32 %v6546_v34, %v6545_v50 }
0x1fc4   :  { %6594 = vadd.xlane.f32.xlu0 %v6593_v53  ;;  %v6551_v53 = vor.u32 %v6550_v57, %v6549_v22 }
0x2051   :  { %v6595_v46 = vpop.xlane.xlu0 %6594 }
0x2052   :  { %v6597_v19 = vmul.f32 0.0013020834, %v6595_v46  ;;  %v12575_v46 = vsub.s32 4, %v11567_v61 }
0x2054   :  { %v6599_v24 = vrot.slane %v6597_v19, 1  ;;  %v12518_v6 = vsub.f32 %v6533_v40, %v6597_v19  ;;  %v12520_v39 = vsub.f32 %v6534_v16, %v6597_v19  ;;  %v12522_v7 = vsub.f32 %v6535_v28, %v6597_v19 }
0x2055   :  { %v12536_v35 = vsub.f32 %v6536_v2, %v6597_v19  ;;  %v12538_v31 = vsub.f32 %v6537_v5, %v6597_v19  ;;  %v6607_v25 = vsub.f32 %v6538_v15, %v6597_v19  ;;  %v12578_v19 = vsub.s32 5, %v11567_v61 }
0x2056   :  { %v12524_v1 = vsub.f32 %v6539_v56, %v6599_v24  ;;  %v12526_v20 = vsub.f32 %v6540_v8, %v6599_v24  ;;  %v12528_v26 = vsub.f32 %v6541_v10, %v6599_v24  ;;  %v12530_v9 = vsub.f32 %v6542_v12, %v6599_v24 }
0x2057   :  { %v12532_v44 = vsub.f32 %v6543_v23, %v6599_v24  ;;  %v12534_v51 = vsub.f32 %v6544_v43, %v6599_v24  ;;  %v6614_v45 = vmul.f32 %v12518_v6, %v12518_v6  ;;  %v6615_v37 = vmul.f32 %v12520_v39, %v12520_v39 }
0x2058   :  { %v6620_v59 = vmul.f32 %v12524_v1, %v12524_v1  ;;  %v6621_v56 = vmul.f32 %v12526_v20, %v12526_v20  ;;  %v6622_v8 = vmul.f32 %v12528_v26, %v12528_v26  ;;  %v6623_v33 = vmul.f32 %v12530_v9, %v12530_v9 }
0x2059   :  { %v6616_v60 = vmul.f32 %v12522_v7, %v12522_v7  ;;  %v6624_v10 = vmul.f32 %v12532_v44, %v12532_v44  ;;  %v6625_v29 = vmul.f32 %v12534_v51, %v12534_v51  ;;  %v6617_v11 = vmul.f32 %v12536_v35, %v12536_v35 }
0x205a   :  { %v6638_v40 = vrot.slane %v6620_v59, 7  ;;  %v6640_v16 = vrot.slane %v6621_v56, 7  ;;  %v6642_v28 = vrot.slane %v6622_v8, 7  ;;  %v6644_v14 = vrot.slane %v6623_v33, 7 }
0x205b   :  { %v6646_v13 = vrot.slane %v6624_v10, 7  ;;  %v6618_v3 = vmul.f32 %v12538_v31, %v12538_v31  ;;  %v6648_v4 = vrot.slane %v6625_v29, 7  ;;  %v6619_v54 = vmul.f32 %v6607_v25, %v6607_v25 }
0x205c   :  { %v6639_v12 = vsel %vm3764_vm2, %v6638_v40, %v6614_v45  ;;  %v6641_v47 = vsel %vm3764_vm2, %v6640_v16, %v6615_v37  ;;  %v6643_v48 = vsel %vm3764_vm2, %v6642_v28, %v6616_v60  ;;  %v6645_v30 = vsel %vm3764_vm2, %v6644_v14, %v6617_v11 }
0x205d   :  { %v6656_v2 = vsel %vm6582_vm1, %v6639_v12, 0.0  ;;  %v6657_v27 = vsel %vm6582_vm1, %v6641_v47, 0.0  ;;  %v6659_v0 = vsel %vm6582_vm1, %v6643_v48, 0.0  ;;  %v6647_v55 = vsel %vm3764_vm2, %v6646_v13, %v6618_v3 }
0x205e   :  { %v6658_v32 = vadd.f32 %v6657_v27, %v6656_v2  ;;  %v6661_v17 = vsel %vm6582_vm1, %v6645_v30, 0.0  ;;  %v6649_v23 = vsel %vm3764_vm2, %v6648_v4, %v6619_v54  ;;  %v6663_v49 = vsel %vm6582_vm1, %v6647_v55, 0.0 }
0x205f   :  { %v6665_v5 = vsel %vm6582_vm1, %v6649_v23, 0.0  ;;  %v6692_v24 = vrot.slane %v6547_v18, %v11570_v62  ;;  %v6696_v45 = vrot.slane %v6547_v18, %v11573_v63  ;;  %v6700_v59 = vrot.slane %v6547_v18, %v11583_v41 }
0x2060   :  { %v6660_v38 = vadd.f32 %v6659_v0, %v6658_v32  ;;  %v6704_v56 = vrot.slane %v6547_v18, %v11603_v36  ;;  %v6708_v8 = vrot.slane %v6547_v18, %v12575_v46  ;;  %v6712_v33 = vrot.slane %v6547_v18, %v12578_v19 }
0x2061   :  { %v6735_v37 = vrot.slane %v6551_v53, %v11570_v62  ;;  %v6739_v10 = vrot.slane %v6551_v53, %v11573_v63  ;;  %v6743_v29 = vrot.slane %v6551_v53, %v11583_v41  ;;  %v6747_v40 = vrot.slane %v6551_v53, %v11603_v36 }
0x2062   :  { %v6662_v58 = vadd.f32 %v6661_v17, %v6660_v38  ;;  %v6751_v16 = vrot.slane %v6551_v53, %v12575_v46  ;;  %v6755_v47 = vrot.slane %v6551_v53, %v12578_v19 }
0x2064   :  { %v6664_v43 = vadd.f32 %v6663_v49, %v6662_v58 }
0x2066   :  { %v6666_v42 = vadd.f32 %v6665_v5, %v6664_v43 }
0x2068   :  { %6667 = vadd.xlane.f32.xlu0 %v6666_v42 }
0x20f5   :  { %v6668_v15 = vpop.xlane.xlu0 %6667 }
0x20f6   :  { %v6669_v52 = vmul.f32 0.0013020834, %v6668_v15 }
0x20f8   :  { %v6670_v21 = vadd.f32 1e-05, %v6669_v52 }
0x20fa   :  { %10741 = vrsqrt.f32 %v6670_v21 }
0x2104   :  { %v10742_v60 = vpop.eup %10741 }
0x2105   :  { %v6673_v28 = vrot.slane %v10742_v60, 1  ;;  %v6676_v14 = vmul.f32 %v10742_v60, %v12518_v6  ;;  %v6677_v11 = vmul.f32 %v10742_v60, %v12520_v39  ;;  %v6678_v12 = vmul.f32 %v10742_v60, %v12522_v7 }
0x2106   :  { %v6679_v48 = vmul.f32 %v10742_v60, %v12536_v35  ;;  %v6680_v13 = vmul.f32 %v10742_v60, %v12538_v31  ;;  %v6681_v2 = vmul.f32 %v10742_v60, %v6607_v25 }
0x2107   :  { %v6682_v27 = vmul.f32 %v6673_v28, %v12524_v1  ;;  %v6683_v3 = vmul.f32 %v6673_v28, %v12526_v20  ;;  %v6684_v30 = vmul.f32 %v6673_v28, %v12528_v26  ;;  %v6685_v4 = vmul.f32 %v6673_v28, %v12530_v9 }
0x2108   :  { %v6686_v6 = vmul.f32 %v6673_v28, %v12532_v44  ;;  %v6687_v39 = vmul.f32 %v6673_v28, %v12534_v51  ;;  %v6719_v7 = vmul.f32 %v6692_v24, %v6676_v14  ;;  %v6720_v32 = vmul.f32 %v6696_v45, %v6677_v11 }
0x2109   :  { %v6721_v0 = vmul.f32 %v6700_v59, %v6678_v12  ;;  %v6722_v54 = vmul.f32 %v6704_v56, %v6679_v48  ;;  %v6723_v35 = vmul.f32 %v6708_v8, %v6680_v13  ;;  %v6724_v55 = vmul.f32 %v6712_v33, %v6681_v2 }
0x210a   :  { %v6725_v31 = vmul.f32 %v6692_v24, %v6682_v27  ;;  %v6726_v25 = vmul.f32 %v6696_v45, %v6683_v3  ;;  %v6727_v38 = vmul.f32 %v6700_v59, %v6684_v30  ;;  %v6728_v1 = vmul.f32 %v6704_v56, %v6685_v4 }
0x210b   :  { %v6729_v17 = vmul.f32 %v6708_v8, %v6686_v6  ;;  %v6730_v20 = vmul.f32 %v6712_v33, %v6687_v39  ;;  %v12603_v23 = vadd.f32 %v6735_v37, %v6719_v7  ;;  %v12605_v26 = vadd.f32 %v6739_v10, %v6720_v32 }
0x210c   :  { %v12607_v9 = vadd.f32 %v6743_v29, %v6721_v0  ;;  %v12609_v44 = vadd.f32 %v6747_v40, %v6722_v54  ;;  %v12611_v51 = vadd.f32 %v6751_v16, %v6723_v35  ;;  %v12613_v58 = vadd.f32 %v6755_v47, %v6724_v55 }
0x210d   :  { %v12615_v49 = vadd.f32 %v6735_v37, %v6725_v31  ;;  %v12617_v43 = vadd.f32 %v6739_v10, %v6726_v25  ;;  %v12619_v5 = vadd.f32 %v6743_v29, %v6727_v38  ;;  %v12621_v42 = vadd.f32 %v6747_v40, %v6728_v1 }
0x210e   :  { %v12623_v15 = vadd.f32 %v6751_v16, %v6729_v17  ;;  %v12625_v52 = vadd.f32 %v6755_v47, %v6730_v20 }
0x210f   :  { %11031 = dma.done.wait [#allocation8 + $0x4], 49152 }
0x2110   :  { %11032 = vsyncadd [#allocation8 + $0x4], 4294918144  ;;  %v6778_v21 = vpack.c.bf16 %v12605_v26, %v12605_v26  ;;  %v6784_v50 = vpack.c.bf16 %v12617_v43, %v12617_v43  ;;  %v6790_v53 = vld [vmem:[#allocation6 + $0x8] sm:$0xff]  ;;  %v6792_v24 = vld [vmem:[#allocation6 + $0x18] sm:$0xff] }
0x2111   :  { %v6789_v45 = vld [vmem:[#allocation6] sm:$0xff]  ;;  %7266 = vmatprep.subr.bf16.mxu0 %v6790_v53  ;;  %7389 = vmatprep.subr.bf16.mxu1 %v6792_v24  ;;  %v6791_v56 = vld [vmem:[#allocation6 + $0x10] sm:$0xff]  ;;  %v6798_v8 = vld [vmem:[#allocation6 + $0x48] sm:$0xff] }
0x2112   :  { %v7231_v34 = vunpack.c.l.b16 %v6778_v21  ;;  %v7237_v22 = vunpack.c.l.b16 %v6784_v50  ;;  %v6800_v33 = vld [vmem:[#allocation6 + $0x58] sm:$0xff]  ;;  %7267 = vmatpush1.bf16.msra.mxu0 %v6789_v45  ;;  %7390 = vmatpush1.bf16.msra.mxu1 %v6791_v56  ;;  %v6797_v37 = vld [vmem:[#allocation6 + $0x40] sm:$0xff]  ;;  %v6799_v60 = vld [vmem:[#allocation6 + $0x50] sm:$0xff] }
0x2113   :  { %7268 = vmatprep.subr.bf16.mxu0 %v6798_v8  ;;  %7391 = vmatprep.subr.bf16.mxu1 %v6800_v33  ;;  %v6806_v10 = vld [vmem:[#allocation6 + $0x88] sm:$0xff]  ;;  %v6808_v29 = vld [vmem:[#allocation6 + $0x98] sm:$0xff]  ;;  %v6805_v40 = vld [vmem:[#allocation6 + $0x80] sm:$0xff] }
0x2114   :  { %v7244_v57 = vrot.slane %v7237_v22, 7  ;;  %v6807_v16 = vld [vmem:[#allocation6 + $0x90] sm:$0xff]  ;;  %v6814_v28 = vld [vmem:[#allocation6 + $0xc8] sm:$0xff]  ;;  %v6816_v14 = vld [vmem:[#allocation6 + $0xd8] sm:$0xff] }
0x2115   :  { %v6813_v11 = vld [vmem:[#allocation6 + $0xc0] sm:$0xff]  ;;  %v6815_v12 = vld [vmem:[#allocation6 + $0xd0] sm:$0xff]  ;;  %v6822_v47 = vld [vmem:[#allocation6 + $0x108] sm:$0xff] }
0x2116   :  { %v7245_v18 = vsel %vm3764_vm2, %v7244_v57, %v7231_v34  ;;  %7269 = vmatpush1.bf16.msra.mxu0 %v6797_v37  ;;  %7392 = vmatpush1.bf16.msra.mxu1 %v6799_v60  ;;  %v6824_v48 = vld [vmem:[#allocation6 + $0x118] sm:$0xff]  ;;  %v6821_v13 = vld [vmem:[#allocation6 + $0x100] sm:$0xff]  ;;  %v6823_v2 = vld [vmem:[#allocation6 + $0x110] sm:$0xff]  ;;  %v6783_v37 = vpack.c.bf16 %v12615_v49, %v12615_v49 }
0x2117   :  { %v12632_v59 = vpack.c.b16 %v7245_v18, %v7245_v18  ;;  %7270 = vmatprep.subr.bf16.mxu0 %v6806_v10  ;;  %7393 = vmatprep.subr.bf16.mxu1 %v6808_v29  ;;  %v6830_v27 = vld [vmem:[#allocation6 + $0x148] sm:$0xff]  ;;  %v6832_v3 = vld [vmem:[#allocation6 + $0x158] sm:$0xff]  ;;  %v6829_v30 = vld [vmem:[#allocation6 + $0x140] sm:$0xff] }
0x2118   :  { %v6831_v4 = vld [vmem:[#allocation6 + $0x150] sm:$0xff]  ;;  %v6838_v6 = vld [vmem:[#allocation6 + $0x188] sm:$0xff]  ;;  %v6840_v39 = vld [vmem:[#allocation6 + $0x198] sm:$0xff] }
0x2119   :  { %7298 = vmatprep.mubr.bf16.mxu0 %v12632_v59  ;;  %7421 = vmatprep.mubr.bf16.mxu1 %v12632_v59  ;;  %v6837_v7 = vld [vmem:[#allocation6 + $0x180] sm:$0xff]  ;;  %v6839_v32 = vld [vmem:[#allocation6 + $0x190] sm:$0xff]  ;;  %v6846_v0 = vld [vmem:[#allocation6 + $0x1c8] sm:$0xff] }
0x211a   :  { %7271 = vmatpush1.bf16.msra.mxu0 %v6805_v40  ;;  %7394 = vmatpush1.bf16.msra.mxu1 %v6807_v16  ;;  %v6848_v54 = vld [vmem:[#allocation6 + $0x1d8] sm:$0xff]  ;;  %v6845_v35 = vld [vmem:[#allocation6 + $0x1c0] sm:$0xff]  ;;  %v6847_v55 = vld [vmem:[#allocation6 + $0x1d0] sm:$0xff]  ;;  %v6786_v16 = vpack.c.bf16 %v12621_v42, %v12621_v42 }
0x211b   :  { %7272 = vmatprep.subr.bf16.mxu0 %v6814_v28  ;;  %7395 = vmatprep.subr.bf16.mxu1 %v6816_v14  ;;  %v6854_v31 = vld [vmem:[#allocation6 + $0x208] sm:$0xff]  ;;  %v6856_v25 = vld [vmem:[#allocation6 + $0x218] sm:$0xff]  ;;  %v6853_v38 = vld [vmem:[#allocation6 + $0x200] sm:$0xff]  ;;  %v6777_v28 = vpack.c.bf16 %v12603_v23, %v12603_v23  ;;  %v7236_v14 = vunpack.c.l.b16 %v6783_v37 }
0x211c   :  { %v6855_v1 = vld [vmem:[#allocation6 + $0x210] sm:$0xff]  ;;  %v6862_v17 = vld [vmem:[#allocation6 + $0x248] sm:$0xff]  ;;  %v6864_v20 = vld [vmem:[#allocation6 + $0x258] sm:$0xff] }
0x211d   :  { %v6861_v21 = vld [vmem:[#allocation6 + $0x240] sm:$0xff]  ;;  %v6863_v50 = vld [vmem:[#allocation6 + $0x250] sm:$0xff]  ;;  %v6870_v34 = vld [vmem:[#allocation6 + $0x288] sm:$0xff] }
0x211e   :  { %7273 = vmatpush1.bf16.msra.mxu0 %v6813_v11  ;;  %7396 = vmatpush1.bf16.msra.mxu1 %v6815_v12  ;;  %v6872_v22 = vld [vmem:[#allocation6 + $0x298] sm:$0xff]  ;;  %v6869_v57 = vld [vmem:[#allocation6 + $0x280] sm:$0xff]  ;;  %v6871_v18 = vld [vmem:[#allocation6 + $0x290] sm:$0xff] }
0x211f   :  { %7274 = vmatprep.subr.bf16.mxu0 %v6822_v47  ;;  %7397 = vmatprep.subr.bf16.mxu1 %v6824_v48  ;;  %v6878_v53 = vld [vmem:[#allocation6 + $0x2c8] sm:$0xff]  ;;  %v6880_v24 = vld [vmem:[#allocation6 + $0x2d8] sm:$0xff]  ;;  %v6877_v45 = vld [vmem:[#allocation6 + $0x2c0] sm:$0xff] }
0x2120   :  { %v6879_v56 = vld [vmem:[#allocation6 + $0x2d0] sm:$0xff]  ;;  %v6886_v8 = vld [vmem:[#allocation6 + $0x308] sm:$0xff]  ;;  %v6888_v33 = vld [vmem:[#allocation6 + $0x318] sm:$0xff] }
0x2121   :  { %v6885_v60 = vld [vmem:[#allocation6 + $0x300] sm:$0xff]  ;;  %v6887_v10 = vld [vmem:[#allocation6 + $0x310] sm:$0xff]  ;;  %v6894_v29 = vld [vmem:[#allocation6 + $0x348] sm:$0xff] }
0x2122   :  { %7275 = vmatpush1.bf16.msra.mxu0 %v6821_v13  ;;  %7398 = vmatpush1.bf16.msra.mxu1 %v6823_v2  ;;  %v6896_v40 = vld [vmem:[#allocation6 + $0x358] sm:$0xff]  ;;  %v6893_v11 = vld [vmem:[#allocation6 + $0x340] sm:$0xff]  ;;  %v6895_v12 = vld [vmem:[#allocation6 + $0x350] sm:$0xff]  ;;  %v6780_v13 = vpack.c.bf16 %v12609_v44, %v12609_v44  ;;  %v7239_v2 = vunpack.c.l.b16 %v6786_v16 }
0x2123   :  { %7276 = vmatprep.subr.bf16.mxu0 %v6830_v27  ;;  %7399 = vmatprep.subr.bf16.mxu1 %v6832_v3  ;;  %v6902_v47 = vld [vmem:[#allocation6 + $0x388] sm:$0xff]  ;;  %v6904_v48 = vld [vmem:[#allocation6 + $0x398] sm:$0xff]  ;;  %v7230_v27 = vunpack.c.l.b16 %v6777_v28  ;;  %v7242_v3 = vrot.slane %v7236_v14, 7  ;;  %v6957_v28 = vld [vmem:[#allocation6 + $0x540] sm:$0xff] }
0x2124   :  { %v6950_v37 = vld [vmem:[#allocation6 + $0x508] sm:$0xff]  ;;  %v6960_v16 = vld [vmem:[#allocation6 + $0x558] sm:$0xff]  ;;  %v6959_v14 = vld [vmem:[#allocation6 + $0x550] sm:$0xff] }
0x2126   :  { %7277 = vmatpush1.bf16.msra.mxu0 %v6829_v30  ;;  %7400 = vmatpush1.bf16.msra.mxu1 %v6831_v4  ;;  %v6901_v30 = vld [vmem:[#allocation6 + $0x380] sm:$0xff]  ;;  %v6903_v4 = vld [vmem:[#allocation6 + $0x390] sm:$0xff] }
0x2127   :  { %7278 = vmatprep.subr.bf16.mxu0 %v6838_v6  ;;  %7401 = vmatprep.subr.bf16.mxu1 %v6840_v39  ;;  %v6910_v6 = vld [vmem:[#allocation6 + $0x3c8] sm:$0xff]  ;;  %v6912_v39 = vld [vmem:[#allocation6 + $0x3d8] sm:$0xff] }
0x212a   :  { %7279 = vmatpush1.bf16.msra.mxu0 %v6837_v7  ;;  %7402 = vmatpush1.bf16.msra.mxu1 %v6839_v32  ;;  %v7233_v7 = vunpack.c.l.b16 %v6780_v13  ;;  %v7248_v32 = vrot.slane %v7239_v2, 7  ;;  %v6974_v13 = vld [vmem:[#allocation6 + $0x5c8] sm:$0xff]  ;;  %v6976_v2 = vld [vmem:[#allocation6 + $0x5d8] sm:$0xff] }
0x212b   :  { %7280 = vmatprep.subr.bf16.mxu0 %v6846_v0  ;;  %7403 = vmatprep.subr.bf16.mxu1 %v6848_v54  ;;  %v7243_v0 = vsel %vm3764_vm2, %v7242_v3, %v7230_v27  ;;  %v6909_v54 = vld [vmem:[#allocation6 + $0x3c0] sm:$0xff]  ;;  %v6975_v3 = vld [vmem:[#allocation6 + $0x5d0] sm:$0xff] }
0x212c   :  { %v6973_v27 = vld [vmem:[#allocation6 + $0x5c0] sm:$0xff] }
0x212e   :  { %7281 = vmatpush1.bf16.msra.mxu0 %v6845_v35  ;;  %7404 = vmatpush1.bf16.msra.mxu1 %v6847_v55  ;;  %v6911_v35 = vld [vmem:[#allocation6 + $0x3d0] sm:$0xff]  ;;  %v6918_v55 = vld [vmem:[#allocation6 + $0x408] sm:$0xff] }
0x212f   :  { %7282 = vmatprep.subr.bf16.mxu0 %v6854_v31  ;;  %7405 = vmatprep.subr.bf16.mxu1 %v6856_v25  ;;  %v6920_v31 = vld [vmem:[#allocation6 + $0x418] sm:$0xff]  ;;  %v12645_v25 = vpack.c.b16 %v7243_v0, %v7243_v0  ;;  %v6989_v0 = vld [vmem:[#allocation6 + $0x640] sm:$0xff] }
0x2132   :  { %7283 = vmatpush1.bf16.msra.mxu0 %v6853_v38  ;;  %7406 = vmatpush1.bf16.msra.mxu1 %v6855_v1  ;;  %v7249_v38 = vsel %vm3764_vm2, %v7248_v32, %v7233_v7  ;;  %v6917_v1 = vld [vmem:[#allocation6 + $0x400] sm:$0xff]  ;;  %v6990_v7 = vld [vmem:[#allocation6 + $0x648] sm:$0xff]  ;;  %v6992_v32 = vld [vmem:[#allocation6 + $0x658] sm:$0xff] }
0x2133   :  { %7284 = vmatprep.subr.bf16.mxu0 %v6862_v17  ;;  %7407 = vmatprep.subr.bf16.mxu1 %v6864_v20  ;;  %v6919_v17 = vld [vmem:[#allocation6 + $0x410] sm:$0xff]  ;;  %v6926_v20 = vld [vmem:[#allocation6 + $0x448] sm:$0xff] }
0x2136   :  { %7285 = vmatpush1.bf16.msra.mxu0 %v6861_v21  ;;  %7408 = vmatpush1.bf16.msra.mxu1 %v6863_v50  ;;  %v6928_v21 = vld [vmem:[#allocation6 + $0x458] sm:$0xff]  ;;  %v12648_v50 = vpack.c.b16 %v7249_v38, %v7249_v38  ;;  %v6999_v38 = vld [vmem:[#allocation6 + $0x690] sm:$0xff] }
0x2137   :  { %7286 = vmatprep.subr.bf16.mxu0 %v6870_v34  ;;  %7409 = vmatprep.subr.bf16.mxu1 %v6872_v22  ;;  %v6925_v34 = vld [vmem:[#allocation6 + $0x440] sm:$0xff]  ;;  %v6927_v22 = vld [vmem:[#allocation6 + $0x450] sm:$0xff] }
0x213a   :  { %7287 = vmatpush1.bf16.msra.mxu0 %v6869_v57  ;;  %7410 = vmatpush1.bf16.msra.mxu1 %v6871_v18  ;;  %v6934_v57 = vld [vmem:[#allocation6 + $0x488] sm:$0xff]  ;;  %v6936_v18 = vld [vmem:[#allocation6 + $0x498] sm:$0xff] }
0x213b   :  { %7288 = vmatprep.subr.bf16.mxu0 %v6878_v53  ;;  %7411 = vmatprep.subr.bf16.mxu1 %v6880_v24  ;;  %v6933_v53 = vld [vmem:[#allocation6 + $0x480] sm:$0xff]  ;;  %v6935_v24 = vld [vmem:[#allocation6 + $0x490] sm:$0xff] }
0x213e   :  { %7289 = vmatpush1.bf16.msra.mxu0 %v6877_v45  ;;  %7412 = vmatpush1.bf16.msra.mxu1 %v6879_v56  ;;  %v6942_v45 = vld [vmem:[#allocation6 + $0x4c8] sm:$0xff]  ;;  %v6944_v56 = vld [vmem:[#allocation6 + $0x4d8] sm:$0xff] }
0x213f   :  { %7290 = vmatprep.subr.bf16.mxu0 %v6886_v8  ;;  %7413 = vmatprep.subr.bf16.mxu1 %v6888_v33  ;;  %v6941_v8 = vld [vmem:[#allocation6 + $0x4c0] sm:$0xff]  ;;  %v6943_v33 = vld [vmem:[#allocation6 + $0x4d0] sm:$0xff] }
0x2142   :  { %7291 = vmatpush1.bf16.msra.mxu0 %v6885_v60  ;;  %7414 = vmatpush1.bf16.msra.mxu1 %v6887_v10  ;;  %v6952_v60 = vld [vmem:[#allocation6 + $0x518] sm:$0xff]  ;;  %v6949_v10 = vld [vmem:[#allocation6 + $0x500] sm:$0xff] }
0x2143   :  { %7292 = vmatprep.subr.bf16.mxu0 %v6894_v29  ;;  %7415 = vmatprep.subr.bf16.mxu1 %v6896_v40  ;;  %v6951_v29 = vld [vmem:[#allocation6 + $0x510] sm:$0xff]  ;;  %v6958_v40 = vld [vmem:[#allocation6 + $0x548] sm:$0xff] }
0x2146   :  { %7293 = vmatpush1.bf16.msra.mxu0 %v6893_v11  ;;  %7416 = vmatpush1.bf16.msra.mxu1 %v6895_v12  ;;  %v6966_v11 = vld [vmem:[#allocation6 + $0x588] sm:$0xff]  ;;  %v6968_v12 = vld [vmem:[#allocation6 + $0x598] sm:$0xff] }
0x2147   :  { %7294 = vmatprep.subr.bf16.mxu0 %v6902_v47  ;;  %7417 = vmatprep.subr.bf16.mxu1 %v6904_v48  ;;  %v6965_v47 = vld [vmem:[#allocation6 + $0x580] sm:$0xff]  ;;  %v6967_v48 = vld [vmem:[#allocation6 + $0x590] sm:$0xff] }
0x214a   :  { %7295 = vmatpush1.bf16.msra.mxu0 %v6901_v30  ;;  %7418 = vmatpush1.bf16.msra.mxu1 %v6903_v4  ;;  %v6982_v30 = vld [vmem:[#allocation6 + $0x608] sm:$0xff]  ;;  %v6984_v4 = vld [vmem:[#allocation6 + $0x618] sm:$0xff] }
0x214b   :  { %7296 = vmatprep.subr.bf16.mxu0 %v6910_v6  ;;  %7419 = vmatprep.subr.bf16.mxu1 %v6912_v39  ;;  %v6981_v6 = vld [vmem:[#allocation6 + $0x600] sm:$0xff]  ;;  %v6983_v39 = vld [vmem:[#allocation6 + $0x610] sm:$0xff] }
0x214e   :  { %7297 = vmatpush1.bf16.msra.mxu0 %v6909_v54  ;;  %7420 = vmatpush1.bf16.msra.mxu1 %v6911_v35  ;;  %v6991_v54 = vld [vmem:[#allocation6 + $0x650] sm:$0xff]  ;;  %v6998_v35 = vld [vmem:[#allocation6 + $0x688] sm:$0xff] }
0x214f   :  { %7307 = vmatprep.subr.bf16.mxu0 %v6918_v55  ;;  %7430 = vmatprep.subr.bf16.mxu1 %v6920_v31  ;;  %v7000_v55 = vld [vmem:[#allocation6 + $0x698] sm:$0xff]  ;;  %v6997_v31 = vld [vmem:[#allocation6 + $0x680] sm:$0xff] }
0x2151   :  { %7299 = vmatmul.mubr.bf16.vlgmr.msra.gmra.mrb[80].mxu0 %v12645_v25  ;;  %7422 = vmatmul.mubr.bf16.vlgmr.msra.gmra.mrb[76].mxu1 %v12645_v25 }
0x2152   :  { %7308 = vmatpush1.bf16.msra.mxu0 %v6917_v1  ;;  %7431 = vmatpush1.bf16.msra.mxu1 %v6919_v17  ;;  %v7006_v1 = vld [vmem:[#allocation6 + $0x6c8] sm:$0xff]  ;;  %v7008_v17 = vld [vmem:[#allocation6 + $0x6d8] sm:$0xff] }
0x2153   :  { %7309 = vmatprep.subr.bf16.mxu0 %v6926_v20  ;;  %7432 = vmatprep.subr.bf16.mxu1 %v6928_v21  ;;  %v7005_v20 = vld [vmem:[#allocation6 + $0x6c0] sm:$0xff]  ;;  %v7007_v21 = vld [vmem:[#allocation6 + $0x6d0] sm:$0xff] }
0x2154   :  { %7339 = vmatprep.mubr.bf16.mxu0 %v12648_v50  ;;  %7462 = vmatprep.mubr.bf16.mxu1 %v12648_v50 }
0x2156   :  { %7310 = vmatpush1.bf16.msra.mxu0 %v6925_v34  ;;  %7433 = vmatpush1.bf16.msra.mxu1 %v6927_v22  ;;  %v7014_v34 = vld [vmem:[#allocation6 + $0x708] sm:$0xff]  ;;  %v7016_v22 = vld [vmem:[#allocation6 + $0x718] sm:$0xff] }
0x2157   :  { %7311 = vmatprep.subr.bf16.mxu0 %v6934_v57  ;;  %7434 = vmatprep.subr.bf16.mxu1 %v6936_v18  ;;  %v6785_v57 = vpack.c.bf16 %v12619_v5, %v12619_v5  ;;  %v7013_v18 = vld [vmem:[#allocation6 + $0x700] sm:$0xff] }
0x215a   :  { %7312 = vmatpush1.bf16.msra.mxu0 %v6933_v53  ;;  %7435 = vmatpush1.bf16.msra.mxu1 %v6935_v24  ;;  %v7015_v53 = vld [vmem:[#allocation6 + $0x710] sm:$0xff]  ;;  %v7022_v24 = vld [vmem:[#allocation6 + $0x748] sm:$0xff] }
0x215b   :  { %7313 = vmatprep.subr.bf16.mxu0 %v6942_v45  ;;  %7436 = vmatprep.subr.bf16.mxu1 %v6944_v56  ;;  %v7024_v45 = vld [vmem:[#allocation6 + $0x758] sm:$0xff]  ;;  %v6788_v56 = vpack.c.bf16 %v12625_v52, %v12625_v52 }
0x215e   :  { %7314 = vmatpush1.bf16.msra.mxu0 %v6941_v8  ;;  %7437 = vmatpush1.bf16.msra.mxu1 %v6943_v33  ;;  %v6779_v8 = vpack.c.bf16 %v12607_v9, %v12607_v9  ;;  %v7238_v33 = vunpack.c.l.b16 %v6785_v57  ;;  %v7069_v57 = vld [vmem:[#allocation6 + $0x8c0] sm:$0xff] }
0x215f   :  { %7315 = vmatprep.subr.bf16.mxu0 %v6950_v37  ;;  %7438 = vmatprep.subr.bf16.mxu1 %v6952_v60  ;;  %v7021_v37 = vld [vmem:[#allocation6 + $0x740] sm:$0xff]  ;;  %v7023_v60 = vld [vmem:[#allocation6 + $0x750] sm:$0xff] }
0x2162   :  { %7316 = vmatpush1.bf16.msra.mxu0 %v6949_v10  ;;  %7439 = vmatpush1.bf16.msra.mxu1 %v6951_v29  ;;  %v7030_v10 = vld [vmem:[#allocation6 + $0x788] sm:$0xff]  ;;  %v7032_v29 = vld [vmem:[#allocation6 + $0x798] sm:$0xff] }
0x2163   :  { %7317 = vmatprep.subr.bf16.mxu0 %v6958_v40  ;;  %7440 = vmatprep.subr.bf16.mxu1 %v6960_v16  ;;  %v6782_v40 = vpack.c.bf16 %v12613_v58, %v12613_v58  ;;  %v7241_v16 = vunpack.c.l.b16 %v6788_v56  ;;  %v7079_v56 = vld [vmem:[#allocation6 + $0x910] sm:$0xff] }
0x2166   :  { %7318 = vmatpush1.bf16.msra.mxu0 %v6957_v28  ;;  %7441 = vmatpush1.bf16.msra.mxu1 %v6959_v14  ;;  %v7232_v28 = vunpack.c.l.b16 %v6779_v8  ;;  %v7246_v14 = vrot.slane %v7238_v33, 7  ;;  %v7086_v8 = vld [vmem:[#allocation6 + $0x948] sm:$0xff]  ;;  %v7088_v33 = vld [vmem:[#allocation6 + $0x958] sm:$0xff] }
0x2167   :  { %7319 = vmatprep.subr.bf16.mxu0 %v6966_v11  ;;  %7442 = vmatprep.subr.bf16.mxu1 %v6968_v12  ;;  %v7029_v11 = vld [vmem:[#allocation6 + $0x780] sm:$0xff]  ;;  %v7031_v12 = vld [vmem:[#allocation6 + $0x790] sm:$0xff] }
0x216a   :  { %7320 = vmatpush1.bf16.msra.mxu0 %v6965_v47  ;;  %7443 = vmatpush1.bf16.msra.mxu1 %v6967_v48  ;;  %v7038_v47 = vld [vmem:[#allocation6 + $0x7c8] sm:$0xff]  ;;  %v7040_v48 = vld [vmem:[#allocation6 + $0x7d8] sm:$0xff] }
0x216b   :  { %7321 = vmatprep.subr.bf16.mxu0 %v6974_v13  ;;  %7444 = vmatprep.subr.bf16.mxu1 %v6976_v2  ;;  %v7235_v13 = vunpack.c.l.b16 %v6782_v40  ;;  %v7252_v2 = vrot.slane %v7241_v16, 7  ;;  %v7093_v40 = vld [vmem:[#allocation6 + $0x980] sm:$0xff]  ;;  %v7095_v16 = vld [vmem:[#allocation6 + $0x990] sm:$0xff] }
0x216e   :  { %7322 = vmatpush1.bf16.msra.mxu0 %v6973_v27  ;;  %7445 = vmatpush1.bf16.msra.mxu1 %v6975_v3  ;;  %v7247_v27 = vsel %vm3764_vm2, %v7246_v14, %v7232_v28  ;;  %v7037_v3 = vld [vmem:[#allocation6 + $0x7c0] sm:$0xff]  ;;  %v7102_v28 = vld [vmem:[#allocation6 + $0x9c8] sm:$0xff]  ;;  %v7104_v14 = vld [vmem:[#allocation6 + $0x9d8] sm:$0xff] }
0x216f   :  { %7323 = vmatprep.subr.bf16.mxu0 %v6982_v30  ;;  %7446 = vmatprep.subr.bf16.mxu1 %v6984_v4  ;;  %v7039_v30 = vld [vmem:[#allocation6 + $0x7d0] sm:$0xff]  ;;  %v7046_v4 = vld [vmem:[#allocation6 + $0x808] sm:$0xff] }
0x2172   :  { %7324 = vmatpush1.bf16.msra.mxu0 %v6981_v6  ;;  %7447 = vmatpush1.bf16.msra.mxu1 %v6983_v39  ;;  %v7048_v6 = vld [vmem:[#allocation6 + $0x818] sm:$0xff]  ;;  %v12663_v39 = vpack.c.b16 %v7247_v27, %v7247_v27  ;;  %v7118_v27 = vld [vmem:[#allocation6 + $0xa48] sm:$0xff] }
0x2173   :  { %7325 = vmatprep.subr.bf16.mxu0 %v6990_v7  ;;  %7448 = vmatprep.subr.bf16.mxu1 %v6992_v32  ;;  %v7253_v7 = vsel %vm3764_vm2, %v7252_v2, %v7235_v13  ;;  %v7045_v32 = vld [vmem:[#allocation6 + $0x800] sm:$0xff]  ;;  %v7111_v2 = vld [vmem:[#allocation6 + $0xa10] sm:$0xff] }
0x2174   :  { %v7109_v13 = vld [vmem:[#allocation6 + $0xa00] sm:$0xff] }
0x2176   :  { %7326 = vmatpush1.bf16.msra.mxu0 %v6989_v0  ;;  %7449 = vmatpush1.bf16.msra.mxu1 %v6991_v54  ;;  %v7047_v0 = vld [vmem:[#allocation6 + $0x810] sm:$0xff]  ;;  %v7054_v54 = vld [vmem:[#allocation6 + $0x848] sm:$0xff] }
0x2177   :  { %7327 = vmatprep.subr.bf16.mxu0 %v6998_v35  ;;  %7450 = vmatprep.subr.bf16.mxu1 %v7000_v55  ;;  %v7056_v35 = vld [vmem:[#allocation6 + $0x858] sm:$0xff]  ;;  %v12666_v55 = vpack.c.b16 %v7253_v7, %v7253_v7 }
0x2178   :  { %v7128_v7 = vld [vmem:[#allocation6 + $0xa98] sm:$0xff] }
0x217a   :  { %7328 = vmatpush1.bf16.msra.mxu0 %v6997_v31  ;;  %7451 = vmatpush1.bf16.msra.mxu1 %v6999_v38  ;;  %v7053_v31 = vld [vmem:[#allocation6 + $0x840] sm:$0xff]  ;;  %v7055_v38 = vld [vmem:[#allocation6 + $0x850] sm:$0xff] }
0x217b   :  { %7329 = vmatprep.subr.bf16.mxu0 %v7006_v1  ;;  %7452 = vmatprep.subr.bf16.mxu1 %v7008_v17  ;;  %v7062_v1 = vld [vmem:[#allocation6 + $0x888] sm:$0xff]  ;;  %v7064_v17 = vld [vmem:[#allocation6 + $0x898] sm:$0xff] }
0x217e   :  { %7330 = vmatpush1.bf16.msra.mxu0 %v7005_v20  ;;  %7453 = vmatpush1.bf16.msra.mxu1 %v7007_v21  ;;  %v7061_v20 = vld [vmem:[#allocation6 + $0x880] sm:$0xff]  ;;  %v7063_v21 = vld [vmem:[#allocation6 + $0x890] sm:$0xff] }
0x217f   :  { %7331 = vmatprep.subr.bf16.mxu0 %v7014_v34  ;;  %7454 = vmatprep.subr.bf16.mxu1 %v7016_v22  ;;  %v7070_v34 = vld [vmem:[#allocation6 + $0x8c8] sm:$0xff]  ;;  %v7072_v22 = vld [vmem:[#allocation6 + $0x8d8] sm:$0xff] }
0x2182   :  { %7332 = vmatpush1.bf16.msra.mxu0 %v7013_v18  ;;  %7455 = vmatpush1.bf16.msra.mxu1 %v7015_v53  ;;  %v7071_v18 = vld [vmem:[#allocation6 + $0x8d0] sm:$0xff]  ;;  %v7078_v53 = vld [vmem:[#allocation6 + $0x908] sm:$0xff] }
0x2183   :  { %7333 = vmatprep.subr.bf16.mxu0 %v7022_v24  ;;  %7456 = vmatprep.subr.bf16.mxu1 %v7024_v45  ;;  %v7080_v24 = vld [vmem:[#allocation6 + $0x918] sm:$0xff]  ;;  %v7077_v45 = vld [vmem:[#allocation6 + $0x900] sm:$0xff] }
0x2186   :  { %7334 = vmatpush1.bf16.msra.mxu0 %v7021_v37  ;;  %7457 = vmatpush1.bf16.msra.mxu1 %v7023_v60  ;;  %v7085_v37 = vld [vmem:[#allocation6 + $0x940] sm:$0xff]  ;;  %v7087_v60 = vld [vmem:[#allocation6 + $0x950] sm:$0xff] }
0x2187   :  { %7335 = vmatprep.subr.bf16.mxu0 %v7030_v10  ;;  %7458 = vmatprep.subr.bf16.mxu1 %v7032_v29  ;;  %v7094_v10 = vld [vmem:[#allocation6 + $0x988] sm:$0xff]  ;;  %v7096_v29 = vld [vmem:[#allocation6 + $0x998] sm:$0xff] }
0x218a   :  { %7336 = vmatpush1.bf16.msra.mxu0 %v7029_v11  ;;  %7459 = vmatpush1.bf16.msra.mxu1 %v7031_v12  ;;  %v7101_v11 = vld [vmem:[#allocation6 + $0x9c0] sm:$0xff]  ;;  %v7103_v12 = vld [vmem:[#allocation6 + $0x9d0] sm:$0xff] }
0x218b   :  { %7337 = vmatprep.subr.bf16.mxu0 %v7038_v47  ;;  %7460 = vmatprep.subr.bf16.mxu1 %v7040_v48  ;;  %v7110_v47 = vld [vmem:[#allocation6 + $0xa08] sm:$0xff]  ;;  %v7112_v48 = vld [vmem:[#allocation6 + $0xa18] sm:$0xff] }
0x218e   :  { %7338 = vmatpush1.bf16.msra.mxu0 %v7037_v3  ;;  %7461 = vmatpush1.bf16.msra.mxu1 %v7039_v30  ;;  %v7120_v3 = vld [vmem:[#allocation6 + $0xa58] sm:$0xff]  ;;  %v7117_v30 = vld [vmem:[#allocation6 + $0xa40] sm:$0xff] }
0x218f   :  { %7348 = vmatprep.subr.bf16.mxu0 %v7046_v4  ;;  %7471 = vmatprep.subr.bf16.mxu1 %v7048_v6  ;;  %v7119_v4 = vld [vmem:[#allocation6 + $0xa50] sm:$0xff]  ;;  %v7126_v6 = vld [vmem:[#allocation6 + $0xa88] sm:$0xff] }
0x2191   :  { %7340 = vmatmul.mubr.bf16.vlgmr.msra.gmra.mrb[80].mxu0 %v12663_v39  ;;  %7463 = vmatmul.mubr.bf16.vlgmr.msra.gmra.mrb[76].mxu1 %v12663_v39 }
0x2192   :  { %7349 = vmatpush1.bf16.msra.mxu0 %v7045_v32  ;;  %7472 = vmatpush1.bf16.msra.mxu1 %v7047_v0  ;;  %v7125_v32 = vld [vmem:[#allocation6 + $0xa80] sm:$0xff]  ;;  %v7127_v0 = vld [vmem:[#allocation6 + $0xa90] sm:$0xff] }
0x2193   :  { %7350 = vmatprep.subr.bf16.mxu0 %v7054_v54  ;;  %7473 = vmatprep.subr.bf16.mxu1 %v7056_v35  ;;  %v7134_v54 = vld [vmem:[#allocation6 + $0xac8] sm:$0xff]  ;;  %v7136_v35 = vld [vmem:[#allocation6 + $0xad8] sm:$0xff] }
0x2194   :  { %7380 = vmatprep.mubr.bf16.mxu0 %v12666_v55  ;;  %7503 = vmatprep.mubr.bf16.mxu1 %v12666_v55 }
0x2196   :  { %7351 = vmatpush1.bf16.msra.mxu0 %v7053_v31  ;;  %7474 = vmatpush1.bf16.msra.mxu1 %v7055_v38  ;;  %v7133_v31 = vld [vmem:[#allocation6 + $0xac0] sm:$0xff]  ;;  %v7135_v38 = vld [vmem:[#allocation6 + $0xad0] sm:$0xff] }
0x2197   :  { %7352 = vmatprep.subr.bf16.mxu0 %v7062_v1  ;;  %7475 = vmatprep.subr.bf16.mxu1 %v7064_v17  ;;  %v7142_v1 = vld [vmem:[#allocation6 + $0xb08] sm:$0xff]  ;;  %v7144_v17 = vld [vmem:[#allocation6 + $0xb18] sm:$0xff] }
0x219a   :  { %7353 = vmatpush1.bf16.msra.mxu0 %v7061_v20  ;;  %7476 = vmatpush1.bf16.msra.mxu1 %v7063_v21  ;;  %v6787_v20 = vpack.c.bf16 %v12623_v15, %v12623_v15  ;;  %v7141_v21 = vld [vmem:[#allocation6 + $0xb00] sm:$0xff] }
0x219b   :  { %7354 = vmatprep.subr.bf16.mxu0 %v7070_v34  ;;  %7477 = vmatprep.subr.bf16.mxu1 %v7072_v22  ;;  %v7143_v34 = vld [vmem:[#allocation6 + $0xb10] sm:$0xff]  ;;  %v7150_v22 = vld [vmem:[#allocation6 + $0xb48] sm:$0xff] }
0x219e   :  { %7355 = vmatpush1.bf16.msra.mxu0 %v7069_v57  ;;  %7478 = vmatpush1.bf16.msra.mxu1 %v7071_v18  ;;  %v7152_v57 = vld [vmem:[#allocation6 + $0xb58] sm:$0xff]  ;;  %v6781_v18 = vpack.c.bf16 %v12611_v51, %v12611_v51 }
0x219f   :  { %7356 = vmatprep.subr.bf16.mxu0 %v7078_v53  ;;  %7479 = vmatprep.subr.bf16.mxu1 %v7080_v24  ;;  %v7240_v53 = vunpack.c.l.b16 %v6787_v20  ;;  %v7149_v24 = vld [vmem:[#allocation6 + $0xb40] sm:$0xff]  ;;  %v6834_v20 = vld [vmem:[#allocation6 + $0x168] sm:$0xff] }
0x21a2   :  { %7357 = vmatpush1.bf16.msra.mxu0 %v7077_v45  ;;  %7480 = vmatpush1.bf16.msra.mxu1 %v7079_v56  ;;  %v7151_v45 = vld [vmem:[#allocation6 + $0xb50] sm:$0xff]  ;;  %v7158_v56 = vld [vmem:[#allocation6 + $0xb88] sm:$0xff] }
0x21a3   :  { %7358 = vmatprep.subr.bf16.mxu0 %v7086_v8  ;;  %7481 = vmatprep.subr.bf16.mxu1 %v7088_v33  ;;  %v7160_v8 = vld [vmem:[#allocation6 + $0xb98] sm:$0xff]  ;;  %v7234_v33 = vunpack.c.l.b16 %v6781_v18 }
0x21a4   :  { %v6844_v18 = vld [vmem:[#allocation6 + $0x1b8] sm:$0xff] }
0x21a6   :  { %7359 = vmatpush1.bf16.msra.mxu0 %v7085_v37  ;;  %7482 = vmatpush1.bf16.msra.mxu1 %v7087_v60  ;;  %v7250_v37 = vrot.slane %v7240_v53, 7  ;;  %v7157_v60 = vld [vmem:[#allocation6 + $0xb80] sm:$0xff] }
0x21a7   :  { %7360 = vmatprep.subr.bf16.mxu0 %v7094_v10  ;;  %7483 = vmatprep.subr.bf16.mxu1 %v7096_v29  ;;  %v7159_v10 = vld [vmem:[#allocation6 + $0xb90] sm:$0xff]  ;;  %v7166_v29 = vld [vmem:[#allocation6 + $0xbc8] sm:$0xff]  ;;  %v6841_v53 = vld [vmem:[#allocation6 + $0x1a0] sm:$0xff] }
0x21aa   :  { %7361 = vmatpush1.bf16.msra.mxu0 %v7093_v40  ;;  %7484 = vmatpush1.bf16.msra.mxu1 %v7095_v16  ;;  %v7168_v40 = vld [vmem:[#allocation6 + $0xbd8] sm:$0xff]  ;;  %v7251_v16 = vsel %vm3764_vm2, %v7250_v37, %v7234_v33  ;;  %v6851_v33 = vld [vmem:[#allocation6 + $0x1f0] sm:$0xff]  ;;  %v6858_v37 = vld [vmem:[#allocation6 + $0x228] sm:$0xff] }
0x21ab   :  { %7362 = vmatprep.subr.bf16.mxu0 %v7102_v28  ;;  %7485 = vmatprep.subr.bf16.mxu1 %v7104_v14  ;;  %v7165_v28 = vld [vmem:[#allocation6 + $0xbc0] sm:$0xff]  ;;  %v7167_v14 = vld [vmem:[#allocation6 + $0xbd0] sm:$0xff] }
0x21ae   :  { %7363 = vmatpush1.bf16.msra.mxu0 %v7101_v11  ;;  %7486 = vmatpush1.bf16.msra.mxu1 %v7103_v12  ;;  %v6794_v11 = vld [vmem:[#allocation6 + $0x28] sm:$0xff]  ;;  %v6796_v12 = vld [vmem:[#allocation6 + $0x38] sm:$0xff] }
0x21af   :  { %7364 = vmatprep.subr.bf16.mxu0 %v7110_v47  ;;  %7487 = vmatprep.subr.bf16.mxu1 %v7112_v48  ;;  %v12677_v47 = vpack.c.b16 %v7251_v16, %v7251_v16  ;;  %v6793_v48 = vld [vmem:[#allocation6 + $0x20] sm:$0xff]  ;;  %v6868_v16 = vld [vmem:[#allocation6 + $0x278] sm:$0xff] }
0x21b2   :  { %7365 = vmatpush1.bf16.msra.mxu0 %v7109_v13  ;;  %7488 = vmatpush1.bf16.msra.mxu1 %v7111_v2  ;;  %v6795_v13 = vld [vmem:[#allocation6 + $0x30] sm:$0xff]  ;;  %v6802_v2 = vld [vmem:[#allocation6 + $0x68] sm:$0xff] }
0x21b3   :  { %7366 = vmatprep.subr.bf16.mxu0 %v7118_v27  ;;  %7489 = vmatprep.subr.bf16.mxu1 %v7120_v3  ;;  %v6804_v27 = vld [vmem:[#allocation6 + $0x78] sm:$0xff]  ;;  %v6801_v3 = vld [vmem:[#allocation6 + $0x60] sm:$0xff] }
0x21b6   :  { %7367 = vmatpush1.bf16.msra.mxu0 %v7117_v30  ;;  %7490 = vmatpush1.bf16.msra.mxu1 %v7119_v4  ;;  %v6803_v30 = vld [vmem:[#allocation6 + $0x70] sm:$0xff]  ;;  %v6810_v4 = vld [vmem:[#allocation6 + $0xa8] sm:$0xff] }
0x21b7   :  { %7368 = vmatprep.subr.bf16.mxu0 %v7126_v6  ;;  %7491 = vmatprep.subr.bf16.mxu1 %v7128_v7  ;;  %v6812_v6 = vld [vmem:[#allocation6 + $0xb8] sm:$0xff]  ;;  %v6809_v7 = vld [vmem:[#allocation6 + $0xa0] sm:$0xff] }
0x21ba   :  { %7369 = vmatpush1.bf16.msra.mxu0 %v7125_v32  ;;  %7492 = vmatpush1.bf16.msra.mxu1 %v7127_v0  ;;  %v6811_v32 = vld [vmem:[#allocation6 + $0xb0] sm:$0xff]  ;;  %v6818_v0 = vld [vmem:[#allocation6 + $0xe8] sm:$0xff] }
0x21bb   :  { %7370 = vmatprep.subr.bf16.mxu0 %v7134_v54  ;;  %7493 = vmatprep.subr.bf16.mxu1 %v7136_v35  ;;  %v6820_v54 = vld [vmem:[#allocation6 + $0xf8] sm:$0xff]  ;;  %v6817_v35 = vld [vmem:[#allocation6 + $0xe0] sm:$0xff] }
0x21be   :  { %7371 = vmatpush1.bf16.msra.mxu0 %v7133_v31  ;;  %7494 = vmatpush1.bf16.msra.mxu1 %v7135_v38  ;;  %v6819_v31 = vld [vmem:[#allocation6 + $0xf0] sm:$0xff]  ;;  %v6826_v38 = vld [vmem:[#allocation6 + $0x128] sm:$0xff] }
0x21bf   :  { %7372 = vmatprep.subr.bf16.mxu0 %v7142_v1  ;;  %7495 = vmatprep.subr.bf16.mxu1 %v7144_v17  ;;  %v6828_v1 = vld [vmem:[#allocation6 + $0x138] sm:$0xff]  ;;  %v6827_v17 = vld [vmem:[#allocation6 + $0x130] sm:$0xff] }
0x21c2   :  { %7373 = vmatpush1.bf16.msra.mxu0 %v7141_v21  ;;  %7496 = vmatpush1.bf16.msra.mxu1 %v7143_v34  ;;  %v6836_v21 = vld [vmem:[#allocation6 + $0x178] sm:$0xff]  ;;  %v6833_v34 = vld [vmem:[#allocation6 + $0x160] sm:$0xff] }
0x21c3   :  { %7374 = vmatprep.subr.bf16.mxu0 %v7150_v22  ;;  %7497 = vmatprep.subr.bf16.mxu1 %v7152_v57  ;;  %v6835_v22 = vld [vmem:[#allocation6 + $0x170] sm:$0xff]  ;;  %v6842_v57 = vld [vmem:[#allocation6 + $0x1a8] sm:$0xff] }
0x21c6   :  { %7375 = vmatpush1.bf16.msra.mxu0 %v7149_v24  ;;  %7498 = vmatpush1.bf16.msra.mxu1 %v7151_v45  ;;  %v6843_v24 = vld [vmem:[#allocation6 + $0x1b0] sm:$0xff]  ;;  %v6850_v45 = vld [vmem:[#allocation6 + $0x1e8] sm:$0xff] }
0x21c7   :  { %7376 = vmatprep.subr.bf16.mxu0 %v7158_v56  ;;  %7499 = vmatprep.subr.bf16.mxu1 %v7160_v8  ;;  %v6852_v56 = vld [vmem:[#allocation6 + $0x1f8] sm:$0xff]  ;;  %v6849_v8 = vld [vmem:[#allocation6 + $0x1e0] sm:$0xff] }
0x21ca   :  { %7377 = vmatpush1.bf16.msra.mxu0 %v7157_v60  ;;  %7500 = vmatpush1.bf16.msra.mxu1 %v7159_v10  ;;  %v6860_v60 = vld [vmem:[#allocation6 + $0x238] sm:$0xff]  ;;  %v6857_v10 = vld [vmem:[#allocation6 + $0x220] sm:$0xff] }
0x21cb   :  { %7378 = vmatprep.subr.bf16.mxu0 %v7166_v29  ;;  %7501 = vmatprep.subr.bf16.mxu1 %v7168_v40  ;;  %v6859_v29 = vld [vmem:[#allocation6 + $0x230] sm:$0xff]  ;;  %v6866_v40 = vld [vmem:[#allocation6 + $0x268] sm:$0xff] }
0x21ce   :  { %7379 = vmatpush1.bf16.msra.mxu0 %v7165_v28  ;;  %7502 = vmatpush1.bf16.msra.mxu1 %v7167_v14  ;;  %v6865_v28 = vld [vmem:[#allocation6 + $0x260] sm:$0xff]  ;;  %v6867_v14 = vld [vmem:[#allocation6 + $0x270] sm:$0xff] }
0x21cf   :  { %7512 = vmatprep.subr.bf16.mxu0 %v6794_v11  ;;  %7635 = vmatprep.subr.bf16.mxu1 %v6796_v12  ;;  %v6874_v11 = vld [vmem:[#allocation6 + $0x2a8] sm:$0xff]  ;;  %v6876_v12 = vld [vmem:[#allocation6 + $0x2b8] sm:$0xff] }
0x21d1   :  { %7381 = vmatmul.mubr.bf16.vlgmr.msra.gmra.mrb[80].mxu0 %v12677_v47  ;;  %7504 = vmatmul.mubr.bf16.vlgmr.msra.gmra.mrb[76].mxu1 %v12677_v47 }
0x21d2   :  { %7513 = vmatpush1.bf16.msra.mxu0 %v6793_v48  ;;  %7636 = vmatpush1.bf16.msra.mxu1 %v6795_v13  ;;  %v6873_v48 = vld [vmem:[#allocation6 + $0x2a0] sm:$0xff]  ;;  %v6875_v13 = vld [vmem:[#allocation6 + $0x2b0] sm:$0xff] }
0x21d3   :  { %7514 = vmatprep.subr.bf16.mxu0 %v6802_v2  ;;  %7637 = vmatprep.subr.bf16.mxu1 %v6804_v27  ;;  %v6882_v2 = vld [vmem:[#allocation6 + $0x2e8] sm:$0xff]  ;;  %v6884_v27 = vld [vmem:[#allocation6 + $0x2f8] sm:$0xff] }
0x21d4   :  { %7544 = vmatprep.mubr.bf16.mxu0 %v12632_v59  ;;  %7667 = vmatprep.mubr.bf16.mxu1 %v12632_v59  ;;  %v6825_v59 = vld [vmem:[#allocation6 + $0x120] sm:$0xff] }
0x21d6   :  { %7515 = vmatpush1.bf16.msra.mxu0 %v6801_v3  ;;  %7638 = vmatpush1.bf16.msra.mxu1 %v6803_v30  ;;  %v6881_v3 = vld [vmem:[#allocation6 + $0x2e0] sm:$0xff]  ;;  %v6883_v30 = vld [vmem:[#allocation6 + $0x2f0] sm:$0xff] }
0x21d7   :  { %7516 = vmatprep.subr.bf16.mxu0 %v6810_v4  ;;  %7639 = vmatprep.subr.bf16.mxu1 %v6812_v6  ;;  %v6890_v4 = vld [vmem:[#allocation6 + $0x328] sm:$0xff]  ;;  %v6892_v6 = vld [vmem:[#allocation6 + $0x338] sm:$0xff] }
0x21da   :  { %7517 = vmatpush1.bf16.msra.mxu0 %v6809_v7  ;;  %7640 = vmatpush1.bf16.msra.mxu1 %v6811_v32  ;;  %v6889_v7 = vld [vmem:[#allocation6 + $0x320] sm:$0xff]  ;;  %v6891_v32 = vld [vmem:[#allocation6 + $0x330] sm:$0xff] }
0x21db   :  { %7518 = vmatprep.subr.bf16.mxu0 %v6818_v0  ;;  %7641 = vmatprep.subr.bf16.mxu1 %v6820_v54  ;;  %v6898_v0 = vld [vmem:[#allocation6 + $0x368] sm:$0xff]  ;;  %v6900_v54 = vld [vmem:[#allocation6 + $0x378] sm:$0xff] }
0x21de   :  { %7519 = vmatpush1.bf16.msra.mxu0 %v6817_v35  ;;  %7642 = vmatpush1.bf16.msra.mxu1 %v6819_v31  ;;  %v6897_v35 = vld [vmem:[#allocation6 + $0x360] sm:$0xff]  ;;  %v6899_v31 = vld [vmem:[#allocation6 + $0x370] sm:$0xff] }
0x21df   :  { %7520 = vmatprep.subr.bf16.mxu0 %v6826_v38  ;;  %7643 = vmatprep.subr.bf16.mxu1 %v6828_v1  ;;  %v6906_v38 = vld [vmem:[#allocation6 + $0x3a8] sm:$0xff]  ;;  %v6908_v1 = vld [vmem:[#allocation6 + $0x3b8] sm:$0xff] }
0x21e2   :  { %7521 = vmatpush1.bf16.msra.mxu0 %v6825_v59  ;;  %7644 = vmatpush1.bf16.msra.mxu1 %v6827_v17  ;;  %v6905_v59 = vld [vmem:[#allocation6 + $0x3a0] sm:$0xff]  ;;  %v6907_v17 = vld [vmem:[#allocation6 + $0x3b0] sm:$0xff] }
0x21e3   :  { %7522 = vmatprep.subr.bf16.mxu0 %v6834_v20  ;;  %7645 = vmatprep.subr.bf16.mxu1 %v6836_v21  ;;  %v6914_v20 = vld [vmem:[#allocation6 + $0x3e8] sm:$0xff]  ;;  %v6916_v21 = vld [vmem:[#allocation6 + $0x3f8] sm:$0xff] }
0x21e6   :  { %7523 = vmatpush1.bf16.msra.mxu0 %v6833_v34  ;;  %7646 = vmatpush1.bf16.msra.mxu1 %v6835_v22  ;;  %v6913_v34 = vld [vmem:[#allocation6 + $0x3e0] sm:$0xff]  ;;  %v6915_v22 = vld [vmem:[#allocation6 + $0x3f0] sm:$0xff] }
0x21e7   :  { %7524 = vmatprep.subr.bf16.mxu0 %v6842_v57  ;;  %7647 = vmatprep.subr.bf16.mxu1 %v6844_v18  ;;  %v6922_v57 = vld [vmem:[#allocation6 + $0x428] sm:$0xff]  ;;  %v6924_v18 = vld [vmem:[#allocation6 + $0x438] sm:$0xff] }
0x21ea   :  { %7525 = vmatpush1.bf16.msra.mxu0 %v6841_v53  ;;  %7648 = vmatpush1.bf16.msra.mxu1 %v6843_v24  ;;  %v6921_v53 = vld [vmem:[#allocation6 + $0x420] sm:$0xff]  ;;  %v6923_v24 = vld [vmem:[#allocation6 + $0x430] sm:$0xff] }
0x21eb   :  { %7526 = vmatprep.subr.bf16.mxu0 %v6850_v45  ;;  %7649 = vmatprep.subr.bf16.mxu1 %v6852_v56  ;;  %v6930_v45 = vld [vmem:[#allocation6 + $0x468] sm:$0xff]  ;;  %v6932_v56 = vld [vmem:[#allocation6 + $0x478] sm:$0xff] }
0x21ee   :  { %7527 = vmatpush1.bf16.msra.mxu0 %v6849_v8  ;;  %7650 = vmatpush1.bf16.msra.mxu1 %v6851_v33  ;;  %v6929_v8 = vld [vmem:[#allocation6 + $0x460] sm:$0xff]  ;;  %v6931_v33 = vld [vmem:[#allocation6 + $0x470] sm:$0xff] }
0x21ef   :  { %7528 = vmatprep.subr.bf16.mxu0 %v6858_v37  ;;  %7651 = vmatprep.subr.bf16.mxu1 %v6860_v60  ;;  %v6938_v37 = vld [vmem:[#allocation6 + $0x4a8] sm:$0xff]  ;;  %v6940_v60 = vld [vmem:[#allocation6 + $0x4b8] sm:$0xff] }
0x21f2   :  { %7529 = vmatpush1.bf16.msra.mxu0 %v6857_v10  ;;  %7652 = vmatpush1.bf16.msra.mxu1 %v6859_v29  ;;  %v6937_v10 = vld [vmem:[#allocation6 + $0x4a0] sm:$0xff]  ;;  %v6939_v29 = vld [vmem:[#allocation6 + $0x4b0] sm:$0xff] }
0x21f3   :  { %7530 = vmatprep.subr.bf16.mxu0 %v6866_v40  ;;  %7653 = vmatprep.subr.bf16.mxu1 %v6868_v16  ;;  %v6946_v40 = vld [vmem:[#allocation6 + $0x4e8] sm:$0xff]  ;;  %v6945_v16 = vld [vmem:[#allocation6 + $0x4e0] sm:$0xff] }
0x21f6   :  { %7531 = vmatpush1.bf16.msra.mxu0 %v6865_v28  ;;  %7654 = vmatpush1.bf16.msra.mxu1 %v6867_v14  ;;  %v6947_v28 = vld [vmem:[#allocation6 + $0x4f0] sm:$0xff]  ;;  %v6954_v14 = vld [vmem:[#allocation6 + $0x528] sm:$0xff] }
0x21f7   :  { %7532 = vmatprep.subr.bf16.mxu0 %v6874_v11  ;;  %7655 = vmatprep.subr.bf16.mxu1 %v6876_v12  ;;  %v6956_v11 = vld [vmem:[#allocation6 + $0x538] sm:$0xff]  ;;  %v6955_v12 = vld [vmem:[#allocation6 + $0x530] sm:$0xff] }
0x21fa   :  { %7533 = vmatpush1.bf16.msra.mxu0 %v6873_v48  ;;  %7656 = vmatpush1.bf16.msra.mxu1 %v6875_v13  ;;  %v6962_v48 = vld [vmem:[#allocation6 + $0x568] sm:$0xff]  ;;  %v6964_v13 = vld [vmem:[#allocation6 + $0x578] sm:$0xff] }
0x21fb   :  { %7534 = vmatprep.subr.bf16.mxu0 %v6882_v2  ;;  %7657 = vmatprep.subr.bf16.mxu1 %v6884_v27  ;;  %v6961_v2 = vld [vmem:[#allocation6 + $0x560] sm:$0xff]  ;;  %v6963_v27 = vld [vmem:[#allocation6 + $0x570] sm:$0xff] }
0x21fe   :  { %7535 = vmatpush1.bf16.msra.mxu0 %v6881_v3  ;;  %7658 = vmatpush1.bf16.msra.mxu1 %v6883_v30  ;;  %v6970_v3 = vld [vmem:[#allocation6 + $0x5a8] sm:$0xff]  ;;  %v6972_v30 = vld [vmem:[#allocation6 + $0x5b8] sm:$0xff] }
0x21ff   :  { %7536 = vmatprep.subr.bf16.mxu0 %v6890_v4  ;;  %7659 = vmatprep.subr.bf16.mxu1 %v6892_v6  ;;  %v6969_v4 = vld [vmem:[#allocation6 + $0x5a0] sm:$0xff]  ;;  %v6971_v6 = vld [vmem:[#allocation6 + $0x5b0] sm:$0xff] }
0x2202   :  { %7537 = vmatpush1.bf16.msra.mxu0 %v6889_v7  ;;  %7660 = vmatpush1.bf16.msra.mxu1 %v6891_v32  ;;  %v6978_v7 = vld [vmem:[#allocation6 + $0x5e8] sm:$0xff]  ;;  %v6980_v32 = vld [vmem:[#allocation6 + $0x5f8] sm:$0xff] }
0x2203   :  { %7538 = vmatprep.subr.bf16.mxu0 %v6898_v0  ;;  %7661 = vmatprep.subr.bf16.mxu1 %v6900_v54  ;;  %v6977_v0 = vld [vmem:[#allocation6 + $0x5e0] sm:$0xff]  ;;  %v6979_v54 = vld [vmem:[#allocation6 + $0x5f0] sm:$0xff] }
0x2206   :  { %7539 = vmatpush1.bf16.msra.mxu0 %v6897_v35  ;;  %7662 = vmatpush1.bf16.msra.mxu1 %v6899_v31  ;;  %v6986_v35 = vld [vmem:[#allocation6 + $0x628] sm:$0xff]  ;;  %v6988_v31 = vld [vmem:[#allocation6 + $0x638] sm:$0xff] }
0x2207   :  { %7540 = vmatprep.subr.bf16.mxu0 %v6906_v38  ;;  %7663 = vmatprep.subr.bf16.mxu1 %v6908_v1  ;;  %v6985_v38 = vld [vmem:[#allocation6 + $0x620] sm:$0xff]  ;;  %v6987_v1 = vld [vmem:[#allocation6 + $0x630] sm:$0xff] }
0x220a   :  { %7541 = vmatpush1.bf16.msra.mxu0 %v6905_v59  ;;  %7664 = vmatpush1.bf16.msra.mxu1 %v6907_v17  ;;  %v6994_v59 = vld [vmem:[#allocation6 + $0x668] sm:$0xff]  ;;  %v6996_v17 = vld [vmem:[#allocation6 + $0x678] sm:$0xff] }
0x220b   :  { %7542 = vmatprep.subr.bf16.mxu0 %v6914_v20  ;;  %7665 = vmatprep.subr.bf16.mxu1 %v6916_v21  ;;  %v6993_v20 = vld [vmem:[#allocation6 + $0x660] sm:$0xff]  ;;  %v6995_v21 = vld [vmem:[#allocation6 + $0x670] sm:$0xff] }
0x220e   :  { %7543 = vmatpush1.bf16.msra.mxu0 %v6913_v34  ;;  %7666 = vmatpush1.bf16.msra.mxu1 %v6915_v22  ;;  %v7002_v34 = vld [vmem:[#allocation6 + $0x6a8] sm:$0xff]  ;;  %v7004_v22 = vld [vmem:[#allocation6 + $0x6b8] sm:$0xff] }
0x220f   :  { %7553 = vmatprep.subr.bf16.mxu0 %v6922_v57  ;;  %7676 = vmatprep.subr.bf16.mxu1 %v6924_v18  ;;  %v7001_v57 = vld [vmem:[#allocation6 + $0x6a0] sm:$0xff]  ;;  %v7003_v18 = vld [vmem:[#allocation6 + $0x6b0] sm:$0xff] }
0x2211   :  { %7545 = vmatmul.mubr.bf16.vlgmr.msra.gmra.mrb[84].mxu0 %v12645_v25  ;;  %7668 = vmatmul.mubr.bf16.vlgmr.msra.gmra.mrb[80].mxu1 %v12645_v25  ;;  %v6948_v25 = vld [vmem:[#allocation6 + $0x4f8] sm:$0xff] }
0x2212   :  { %7554 = vmatpush1.bf16.msra.mxu0 %v6921_v53  ;;  %7677 = vmatpush1.bf16.msra.mxu1 %v6923_v24  ;;  %v7010_v53 = vld [vmem:[#allocation6 + $0x6e8] sm:$0xff]  ;;  %v7012_v24 = vld [vmem:[#allocation6 + $0x6f8] sm:$0xff] }
0x2213   :  { %7555 = vmatprep.subr.bf16.mxu0 %v6930_v45  ;;  %7678 = vmatprep.subr.bf16.mxu1 %v6932_v56  ;;  %v7009_v45 = vld [vmem:[#allocation6 + $0x6e0] sm:$0xff]  ;;  %v7011_v56 = vld [vmem:[#allocation6 + $0x6f0] sm:$0xff] }
0x2214   :  { %7585 = vmatprep.mubr.bf16.mxu0 %v12648_v50  ;;  %7708 = vmatprep.mubr.bf16.mxu1 %v12648_v50  ;;  %v6953_v50 = vld [vmem:[#allocation6 + $0x520] sm:$0xff] }
0x2216   :  { %7556 = vmatpush1.bf16.msra.mxu0 %v6929_v8  ;;  %7679 = vmatpush1.bf16.msra.mxu1 %v6931_v33  ;;  %v7018_v8 = vld [vmem:[#allocation6 + $0x728] sm:$0xff]  ;;  %v7020_v33 = vld [vmem:[#allocation6 + $0x738] sm:$0xff] }
0x2217   :  { %7557 = vmatprep.subr.bf16.mxu0 %v6938_v37  ;;  %7680 = vmatprep.subr.bf16.mxu1 %v6940_v60  ;;  %v7017_v37 = vld [vmem:[#allocation6 + $0x720] sm:$0xff]  ;;  %v7019_v60 = vld [vmem:[#allocation6 + $0x730] sm:$0xff] }
0x221a   :  { %7558 = vmatpush1.bf16.msra.mxu0 %v6937_v10  ;;  %7681 = vmatpush1.bf16.msra.mxu1 %v6939_v29  ;;  %v7026_v10 = vld [vmem:[#allocation6 + $0x768] sm:$0xff]  ;;  %v7028_v29 = vld [vmem:[#allocation6 + $0x778] sm:$0xff] }
0x221b   :  { %7559 = vmatprep.subr.bf16.mxu0 %v6946_v40  ;;  %7682 = vmatprep.subr.bf16.mxu1 %v6948_v25  ;;  %v7025_v40 = vld [vmem:[#allocation6 + $0x760] sm:$0xff]  ;;  %v7027_v25 = vld [vmem:[#allocation6 + $0x770] sm:$0xff] }
0x221e   :  { %7560 = vmatpush1.bf16.msra.mxu0 %v6945_v16  ;;  %7683 = vmatpush1.bf16.msra.mxu1 %v6947_v28  ;;  %v7034_v16 = vld [vmem:[#allocation6 + $0x7a8] sm:$0xff]  ;;  %v7036_v28 = vld [vmem:[#allocation6 + $0x7b8] sm:$0xff] }
0x221f   :  { %7561 = vmatprep.subr.bf16.mxu0 %v6954_v14  ;;  %7684 = vmatprep.subr.bf16.mxu1 %v6956_v11  ;;  %v7033_v14 = vld [vmem:[#allocation6 + $0x7a0] sm:$0xff]  ;;  %v7035_v11 = vld [vmem:[#allocation6 + $0x7b0] sm:$0xff] }
0x2222   :  { %7562 = vmatpush1.bf16.msra.mxu0 %v6953_v50  ;;  %7685 = vmatpush1.bf16.msra.mxu1 %v6955_v12  ;;  %v7042_v50 = vld [vmem:[#allocation6 + $0x7e8] sm:$0xff]  ;;  %v7044_v12 = vld [vmem:[#allocation6 + $0x7f8] sm:$0xff] }
0x2223   :  { %7563 = vmatprep.subr.bf16.mxu0 %v6962_v48  ;;  %7686 = vmatprep.subr.bf16.mxu1 %v6964_v13  ;;  %v7041_v48 = vld [vmem:[#allocation6 + $0x7e0] sm:$0xff]  ;;  %v7043_v13 = vld [vmem:[#allocation6 + $0x7f0] sm:$0xff] }
0x2226   :  { %7564 = vmatpush1.bf16.msra.mxu0 %v6961_v2  ;;  %7687 = vmatpush1.bf16.msra.mxu1 %v6963_v27  ;;  %v7050_v2 = vld [vmem:[#allocation6 + $0x828] sm:$0xff]  ;;  %v7052_v27 = vld [vmem:[#allocation6 + $0x838] sm:$0xff] }
0x2227   :  { %7565 = vmatprep.subr.bf16.mxu0 %v6970_v3  ;;  %7688 = vmatprep.subr.bf16.mxu1 %v6972_v30  ;;  %v7049_v3 = vld [vmem:[#allocation6 + $0x820] sm:$0xff]  ;;  %v7051_v30 = vld [vmem:[#allocation6 + $0x830] sm:$0xff] }
0x222a   :  { %7566 = vmatpush1.bf16.msra.mxu0 %v6969_v4  ;;  %7689 = vmatpush1.bf16.msra.mxu1 %v6971_v6  ;;  %v7058_v4 = vld [vmem:[#allocation6 + $0x868] sm:$0xff]  ;;  %v7060_v6 = vld [vmem:[#allocation6 + $0x878] sm:$0xff] }
0x222b   :  { %7567 = vmatprep.subr.bf16.mxu0 %v6978_v7  ;;  %7690 = vmatprep.subr.bf16.mxu1 %v6980_v32  ;;  %v7057_v7 = vld [vmem:[#allocation6 + $0x860] sm:$0xff]  ;;  %v7059_v32 = vld [vmem:[#allocation6 + $0x870] sm:$0xff] }
0x222e   :  { %7568 = vmatpush1.bf16.msra.mxu0 %v6977_v0  ;;  %7691 = vmatpush1.bf16.msra.mxu1 %v6979_v54  ;;  %v7066_v0 = vld [vmem:[#allocation6 + $0x8a8] sm:$0xff]  ;;  %v7068_v54 = vld [vmem:[#allocation6 + $0x8b8] sm:$0xff] }
0x222f   :  { %7569 = vmatprep.subr.bf16.mxu0 %v6986_v35  ;;  %7692 = vmatprep.subr.bf16.mxu1 %v6988_v31  ;;  %v7065_v35 = vld [vmem:[#allocation6 + $0x8a0] sm:$0xff]  ;;  %v7067_v31 = vld [vmem:[#allocation6 + $0x8b0] sm:$0xff] }
0x2232   :  { %7570 = vmatpush1.bf16.msra.mxu0 %v6985_v38  ;;  %7693 = vmatpush1.bf16.msra.mxu1 %v6987_v1  ;;  %v7074_v38 = vld [vmem:[#allocation6 + $0x8e8] sm:$0xff]  ;;  %v7073_v1 = vld [vmem:[#allocation6 + $0x8e0] sm:$0xff] }
0x2233   :  { %7571 = vmatprep.subr.bf16.mxu0 %v6994_v59  ;;  %7694 = vmatprep.subr.bf16.mxu1 %v6996_v17  ;;  %v7075_v59 = vld [vmem:[#allocation6 + $0x8f0] sm:$0xff]  ;;  %v7082_v17 = vld [vmem:[#allocation6 + $0x928] sm:$0xff] }
0x2236   :  { %7572 = vmatpush1.bf16.msra.mxu0 %v6993_v20  ;;  %7695 = vmatpush1.bf16.msra.mxu1 %v6995_v21  ;;  %v7084_v20 = vld [vmem:[#allocation6 + $0x938] sm:$0xff]  ;;  %v7083_v21 = vld [vmem:[#allocation6 + $0x930] sm:$0xff] }
0x2237   :  { %7573 = vmatprep.subr.bf16.mxu0 %v7002_v34  ;;  %7696 = vmatprep.subr.bf16.mxu1 %v7004_v22  ;;  %v7090_v34 = vld [vmem:[#allocation6 + $0x968] sm:$0xff]  ;;  %v7092_v22 = vld [vmem:[#allocation6 + $0x978] sm:$0xff] }
0x223a   :  { %7574 = vmatpush1.bf16.msra.mxu0 %v7001_v57  ;;  %7697 = vmatpush1.bf16.msra.mxu1 %v7003_v18  ;;  %v7089_v57 = vld [vmem:[#allocation6 + $0x960] sm:$0xff]  ;;  %v7091_v18 = vld [vmem:[#allocation6 + $0x970] sm:$0xff] }
0x223b   :  { %7575 = vmatprep.subr.bf16.mxu0 %v7010_v53  ;;  %7698 = vmatprep.subr.bf16.mxu1 %v7012_v24  ;;  %v7098_v53 = vld [vmem:[#allocation6 + $0x9a8] sm:$0xff]  ;;  %v7100_v24 = vld [vmem:[#allocation6 + $0x9b8] sm:$0xff] }
0x223e   :  { %7576 = vmatpush1.bf16.msra.mxu0 %v7009_v45  ;;  %7699 = vmatpush1.bf16.msra.mxu1 %v7011_v56  ;;  %v7097_v45 = vld [vmem:[#allocation6 + $0x9a0] sm:$0xff]  ;;  %v7099_v56 = vld [vmem:[#allocation6 + $0x9b0] sm:$0xff] }
0x223f   :  { %7577 = vmatprep.subr.bf16.mxu0 %v7018_v8  ;;  %7700 = vmatprep.subr.bf16.mxu1 %v7020_v33  ;;  %v7106_v8 = vld [vmem:[#allocation6 + $0x9e8] sm:$0xff]  ;;  %v7108_v33 = vld [vmem:[#allocation6 + $0x9f8] sm:$0xff] }
0x2242   :  { %7578 = vmatpush1.bf16.msra.mxu0 %v7017_v37  ;;  %7701 = vmatpush1.bf16.msra.mxu1 %v7019_v60  ;;  %v7105_v37 = vld [vmem:[#allocation6 + $0x9e0] sm:$0xff]  ;;  %v7107_v60 = vld [vmem:[#allocation6 + $0x9f0] sm:$0xff] }
0x2243   :  { %7579 = vmatprep.subr.bf16.mxu0 %v7026_v10  ;;  %7702 = vmatprep.subr.bf16.mxu1 %v7028_v29  ;;  %v7114_v10 = vld [vmem:[#allocation6 + $0xa28] sm:$0xff]  ;;  %v7116_v29 = vld [vmem:[#allocation6 + $0xa38] sm:$0xff] }
0x2246   :  { %7580 = vmatpush1.bf16.msra.mxu0 %v7025_v40  ;;  %7703 = vmatpush1.bf16.msra.mxu1 %v7027_v25  ;;  %v7113_v40 = vld [vmem:[#allocation6 + $0xa20] sm:$0xff]  ;;  %v7115_v25 = vld [vmem:[#allocation6 + $0xa30] sm:$0xff] }
0x2247   :  { %7581 = vmatprep.subr.bf16.mxu0 %v7034_v16  ;;  %7704 = vmatprep.subr.bf16.mxu1 %v7036_v28  ;;  %v7122_v16 = vld [vmem:[#allocation6 + $0xa68] sm:$0xff]  ;;  %v7124_v28 = vld [vmem:[#allocation6 + $0xa78] sm:$0xff] }
0x224a   :  { %7582 = vmatpush1.bf16.msra.mxu0 %v7033_v14  ;;  %7705 = vmatpush1.bf16.msra.mxu1 %v7035_v11  ;;  %v7121_v14 = vld [vmem:[#allocation6 + $0xa60] sm:$0xff]  ;;  %v7123_v11 = vld [vmem:[#allocation6 + $0xa70] sm:$0xff] }
0x224b   :  { %7583 = vmatprep.subr.bf16.mxu0 %v7042_v50  ;;  %7706 = vmatprep.subr.bf16.mxu1 %v7044_v12  ;;  %v7130_v50 = vld [vmem:[#allocation6 + $0xaa8] sm:$0xff]  ;;  %v7132_v12 = vld [vmem:[#allocation6 + $0xab8] sm:$0xff] }
0x224e   :  { %7584 = vmatpush1.bf16.msra.mxu0 %v7041_v48  ;;  %7707 = vmatpush1.bf16.msra.mxu1 %v7043_v13  ;;  %v7129_v48 = vld [vmem:[#allocation6 + $0xaa0] sm:$0xff]  ;;  %v7131_v13 = vld [vmem:[#allocation6 + $0xab0] sm:$0xff] }
0x224f   :  { %7594 = vmatprep.subr.bf16.mxu0 %v7050_v2  ;;  %7717 = vmatprep.subr.bf16.mxu1 %v7052_v27  ;;  %v7138_v2 = vld [vmem:[#allocation6 + $0xae8] sm:$0xff]  ;;  %v7140_v27 = vld [vmem:[#allocation6 + $0xaf8] sm:$0xff] }
0x2251   :  { %7586 = vmatmul.mubr.bf16.vlgmr.msra.gmra.mrb[84].mxu0 %v12663_v39  ;;  %7709 = vmatmul.mubr.bf16.vlgmr.msra.gmra.mrb[80].mxu1 %v12663_v39  ;;  %v7076_v39 = vld [vmem:[#allocation6 + $0x8f8] sm:$0xff] }
0x2252   :  { %7595 = vmatpush1.bf16.msra.mxu0 %v7049_v3  ;;  %7718 = vmatpush1.bf16.msra.mxu1 %v7051_v30  ;;  %v7137_v3 = vld [vmem:[#allocation6 + $0xae0] sm:$0xff]  ;;  %v7139_v30 = vld [vmem:[#allocation6 + $0xaf0] sm:$0xff] }
0x2253   :  { %7596 = vmatprep.subr.bf16.mxu0 %v7058_v4  ;;  %7719 = vmatprep.subr.bf16.mxu1 %v7060_v6  ;;  %v7146_v4 = vld [vmem:[#allocation6 + $0xb28] sm:$0xff]  ;;  %v7148_v6 = vld [vmem:[#allocation6 + $0xb38] sm:$0xff] }
0x2254   :  { %7626 = vmatprep.mubr.bf16.mxu0 %v12666_v55  ;;  %7749 = vmatprep.mubr.bf16.mxu1 %v12666_v55  ;;  %v7081_v55 = vld [vmem:[#allocation6 + $0x920] sm:$0xff] }
0x2256   :  { %7597 = vmatpush1.bf16.msra.mxu0 %v7057_v7  ;;  %7720 = vmatpush1.bf16.msra.mxu1 %v7059_v32  ;;  %v7145_v7 = vld [vmem:[#allocation6 + $0xb20] sm:$0xff]  ;;  %v7147_v32 = vld [vmem:[#allocation6 + $0xb30] sm:$0xff] }
0x2257   :  { %7598 = vmatprep.subr.bf16.mxu0 %v7066_v0  ;;  %7721 = vmatprep.subr.bf16.mxu1 %v7068_v54  ;;  %v7154_v0 = vld [vmem:[#allocation6 + $0xb68] sm:$0xff]  ;;  %v7156_v54 = vld [vmem:[#allocation6 + $0xb78] sm:$0xff] }
0x225a   :  { %7599 = vmatpush1.bf16.msra.mxu0 %v7065_v35  ;;  %7722 = vmatpush1.bf16.msra.mxu1 %v7067_v31  ;;  %v7153_v35 = vld [vmem:[#allocation6 + $0xb60] sm:$0xff]  ;;  %v7155_v31 = vld [vmem:[#allocation6 + $0xb70] sm:$0xff] }
0x225b   :  { %7600 = vmatprep.subr.bf16.mxu0 %v7074_v38  ;;  %7723 = vmatprep.subr.bf16.mxu1 %v7076_v39  ;;  %v7162_v38 = vld [vmem:[#allocation6 + $0xba8] sm:$0xff]  ;;  %v7164_v39 = vld [vmem:[#allocation6 + $0xbb8] sm:$0xff] }
0x225e   :  { %7601 = vmatpush1.bf16.msra.mxu0 %v7073_v1  ;;  %7724 = vmatpush1.bf16.msra.mxu1 %v7075_v59  ;;  %v7161_v1 = vld [vmem:[#allocation6 + $0xba0] sm:$0xff]  ;;  %v7163_v59 = vld [vmem:[#allocation6 + $0xbb0] sm:$0xff] }
0x225f   :  { %7602 = vmatprep.subr.bf16.mxu0 %v7082_v17  ;;  %7725 = vmatprep.subr.bf16.mxu1 %v7084_v20  ;;  %v7170_v17 = vld [vmem:[#allocation6 + $0xbe8] sm:$0xff]  ;;  %v7172_v20 = vld [vmem:[#allocation6 + $0xbf8] sm:$0xff] }
0x2262   :  { %7603 = vmatpush1.bf16.msra.mxu0 %v7081_v55  ;;  %7726 = vmatpush1.bf16.msra.mxu1 %v7083_v21  ;;  %v7169_v55 = vld [vmem:[#allocation6 + $0xbe0] sm:$0xff]  ;;  %v7171_v21 = vld [vmem:[#allocation6 + $0xbf0] sm:$0xff] }
0x2263   :  { %7604 = vmatprep.subr.bf16.mxu0 %v7090_v34  ;;  %7727 = vmatprep.subr.bf16.mxu1 %v7092_v22  ;;  %v7174_v34 = vld [vmem:[#allocation24 + $0x2] ss:$8 sm:$0xf] }
0x2264   :  { %v7175_v22 = vld [vmem:[#allocation24 + $0x2] ss:$8 sm:$0xf0] }
0x2266   :  { %7605 = vmatpush1.bf16.msra.mxu0 %v7089_v57  ;;  %7728 = vmatpush1.bf16.msra.mxu1 %v7091_v18  ;;  %v7176_v57 = vor.u32 %v7175_v22, %v7174_v34 }
0x2267   :  { %7606 = vmatprep.subr.bf16.mxu0 %v7098_v53  ;;  %7729 = vmatprep.subr.bf16.mxu1 %v7100_v24 }
0x2268   :  { %v7181_v18 = vrot.slane %v7176_v57, %v11570_v62  ;;  %v7189_v53 = vrot.slane %v7176_v57, %v11583_v41  ;;  %v7185_v24 = vrot.slane %v7176_v57, %v11573_v63 }
0x226a   :  { %7607 = vmatpush1.bf16.msra.mxu0 %v7097_v45  ;;  %7730 = vmatpush1.bf16.msra.mxu1 %v7099_v56  ;;  %v7193_v45 = vrot.slane %v7176_v57, %v11603_v36 }
0x226b   :  { %7608 = vmatprep.subr.bf16.mxu0 %v7106_v8  ;;  %7731 = vmatprep.subr.bf16.mxu1 %v7108_v33 }
0x226e   :  { %7609 = vmatpush1.bf16.msra.mxu0 %v7105_v37  ;;  %7732 = vmatpush1.bf16.msra.mxu1 %v7107_v60 }
0x226f   :  { %7610 = vmatprep.subr.bf16.mxu0 %v7114_v10  ;;  %7733 = vmatprep.subr.bf16.mxu1 %v7116_v29 }
0x2272   :  { %7611 = vmatpush1.bf16.msra.mxu0 %v7113_v40  ;;  %7734 = vmatpush1.bf16.msra.mxu1 %v7115_v25 }
0x2273   :  { %7612 = vmatprep.subr.bf16.mxu0 %v7122_v16  ;;  %7735 = vmatprep.subr.bf16.mxu1 %v7124_v28 }
0x2276   :  { %7613 = vmatpush1.bf16.msra.mxu0 %v7121_v14  ;;  %7736 = vmatpush1.bf16.msra.mxu1 %v7123_v11 }
0x2277   :  { %7614 = vmatprep.subr.bf16.mxu0 %v7130_v50  ;;  %7737 = vmatprep.subr.bf16.mxu1 %v7132_v12 }
0x227a   :  { %7615 = vmatpush1.bf16.msra.mxu0 %v7129_v48  ;;  %7738 = vmatpush1.bf16.msra.mxu1 %v7131_v13  ;;  %v7204_v48 = vsub.s32 6, %v11567_v61  ;;  %v7208_v13 = vsub.s32 7, %v11567_v61 }
0x227b   :  { %7616 = vmatprep.subr.bf16.mxu0 %v7138_v2  ;;  %7739 = vmatprep.subr.bf16.mxu1 %v7140_v27  ;;  %v7197_v2 = vrot.slane %v7176_v57, %v12575_v46 }
0x227c   :  { %v7205_v27 = vrot.slane %v7176_v57, %v7204_v48 }
0x227e   :  { %7617 = vmatpush1.bf16.msra.mxu0 %v7137_v3  ;;  %7740 = vmatpush1.bf16.msra.mxu1 %v7139_v30  ;;  %v7201_v3 = vrot.slane %v7176_v57, %v12578_v19  ;;  %v7209_v30 = vrot.slane %v7176_v57, %v7208_v13 }
0x227f   :  { %7618 = vmatprep.subr.bf16.mxu0 %v7146_v4  ;;  %7741 = vmatprep.subr.bf16.mxu1 %v7148_v6 }
0x2282   :  { %7619 = vmatpush1.bf16.msra.mxu0 %v7145_v7  ;;  %7742 = vmatpush1.bf16.msra.mxu1 %v7147_v32 }
0x2283   :  { %7620 = vmatprep.subr.bf16.mxu0 %v7154_v0  ;;  %7743 = vmatprep.subr.bf16.mxu1 %v7156_v54 }
0x2286   :  { %7621 = vmatpush1.bf16.msra.mxu0 %v7153_v35  ;;  %7744 = vmatpush1.bf16.msra.mxu1 %v7155_v31 }
0x2287   :  { %7622 = vmatprep.subr.bf16.mxu0 %v7162_v38  ;;  %7745 = vmatprep.subr.bf16.mxu1 %v7164_v39 }
0x228a   :  { %7623 = vmatpush1.bf16.msra.mxu0 %v7161_v1  ;;  %7746 = vmatpush1.bf16.msra.mxu1 %v7163_v59 }
0x228b   :  { %7624 = vmatprep.subr.bf16.mxu0 %v7170_v17  ;;  %7747 = vmatprep.subr.bf16.mxu1 %v7172_v20 }
0x228e   :  { %7625 = vmatpush1.bf16.msra.mxu0 %v7169_v55  ;;  %7748 = vmatpush1.bf16.msra.mxu1 %v7171_v21 }
0x2291   :  { %7627 = vmatmul.mubr.bf16.vlgmr.msra.gmra.mrb[84].mxu0 %v12677_v47  ;;  %7750 = vmatmul.mubr.bf16.vlgmr.msra.gmra.mrb[80].mxu1 %v12677_v47 }
0x22a4   :  { %v7382_v56 = vpop.f32.mrb[80].mxu0  ;;  %v7505_v8 = vpop.f32.mrb[76].mxu1 }
0x22a5   :  { %v12697_v33 = vadd.f32 %v7382_v56, %v7181_v18  ;;  %v12699_v37 = vadd.f32 %v7505_v8, %v7189_v53  ;;  %v7384_v60 = vpop.f32.mrb[81].mxu0  ;;  %v7507_v10 = vpop.f32.mrb[77].mxu1 }
0x22a6   :  { %v10303_v47 = vadd.f32 %v7384_v60, %v7185_v24  ;;  %v12701_v29 = vadd.f32 %v7507_v10, %v7193_v45  ;;  %v7386_v40 = vpop.f32.mrb[82].mxu0  ;;  %v7509_v25 = vpop.f32.mrb[78].mxu1 }
0x22a7   :  { %v7758_v16 = vmax.f32 %v12697_v33, 0.0  ;;  %v7760_v28 = vmax.f32 %v12699_v37, 0.0  ;;  %v7387_v14 = vpop.f32.mrb[83].mxu0  ;;  %v7510_v11 = vpop.f32.mrb[79].mxu1 }
0x22a8   :  { %v7759_v50 = vmax.f32 %v10303_v47, 0.0  ;;  %v7761_v12 = vmax.f32 %v12701_v29, 0.0 }
0x2364   :  { %v7628_v4 = vpop.f32.mrb[84].mxu0  ;;  %v7751_v6 = vpop.f32.mrb[80].mxu1 }
0x2365   :  { %v12710_v7 = vadd.f32 %v7628_v4, %v7197_v2  ;;  %v12712_v32 = vadd.f32 %v7751_v6, %v7205_v27  ;;  %v7630_v0 = vpop.f32.mrb[85].mxu0  ;;  %v7753_v54 = vpop.f32.mrb[81].mxu1 }
0x2366   :  { %v12714_v35 = vadd.f32 %v7630_v0, %v7201_v3  ;;  %v12716_v31 = vadd.f32 %v7753_v54, %v7209_v30  ;;  %v7632_v38 = vpop.f32.mrb[86].mxu0  ;;  %v7755_v61 = vpop.f32.mrb[82].mxu1 }
0x2367   :  { %v7762_v39 = vmax.f32 %v12710_v7, 0.0  ;;  %v7764_v1 = vmax.f32 %v12712_v32, 0.0  ;;  %v7633_v59 = vpop.f32.mrb[87].mxu0  ;;  %v7756_v17 = vpop.f32.mrb[83].mxu1 }
0x2368   :  { %v7763_v20 = vmax.f32 %v12714_v35, 0.0  ;;  %v7765_v55 = vmax.f32 %v12716_v31, 0.0 }
0x2369   :  { %11033 = dma.done.wait [#allocation8 + $0x5], 49152 }
0x236a   :  { %11034 = vsyncadd [#allocation8 + $0x5], 4294918144  ;;  %v12722_v21 = vpack.c.bf16 %v7759_v50, %v7759_v50  ;;  %v7779_v34 = vld [vmem:[#allocation7 + $0x8] sm:$0xff]  ;;  %v7778_v22 = vld [vmem:[#allocation7] sm:$0xff] }
0x236b   :  { %v7781_v57 = vld [vmem:[#allocation7 + $0x18] sm:$0xff]  ;;  %8197 = vmatprep.subr.bf16.mxu0 %v7779_v34  ;;  %v7780_v53 = vld [vmem:[#allocation7 + $0x10] sm:$0xff]  ;;  %v7787_v24 = vld [vmem:[#allocation7 + $0x48] sm:$0xff] }
0x236c   :  { %8229 = vmatprep.mubr.bf16.mxu0 %v12722_v21  ;;  %8393 = vmatprep.mubr.bf16.mxu1 %v12722_v21  ;;  %v7785_v18 = vld [vmem:[#allocation7 + $0x38] sm:$0xff]  ;;  %v7784_v45 = vld [vmem:[#allocation7 + $0x30] sm:$0xff]  ;;  %v7786_v56 = vld [vmem:[#allocation7 + $0x40] sm:$0xff] }
0x236d   :  { %8361 = vmatprep.subr.bf16.mxu1 %v7781_v57  ;;  %8198 = vmatpush1.bf16.msra.mxu0 %v7778_v22  ;;  %v7791_v8 = vld [vmem:[#allocation7 + $0x68] sm:$0xff]  ;;  %v7793_v60 = vld [vmem:[#allocation7 + $0x78] sm:$0xff]  ;;  %v7790_v10 = vld [vmem:[#allocation7 + $0x60] sm:$0xff] }
0x236e   :  { %8362 = vmatpush1.bf16.msra.mxu1 %v7780_v53  ;;  %8199 = vmatprep.subr.bf16.mxu0 %v7785_v18  ;;  %v7792_v47 = vld [vmem:[#allocation7 + $0x70] sm:$0xff]  ;;  %v7797_v40 = vld [vmem:[#allocation7 + $0x98] sm:$0xff]  ;;  %v7799_v25 = vld [vmem:[#allocation7 + $0xa8] sm:$0xff] }
0x236f   :  { %8363 = vmatprep.subr.bf16.mxu1 %v7787_v24  ;;  %v7796_v14 = vld [vmem:[#allocation7 + $0x90] sm:$0xff]  ;;  %v7798_v11 = vld [vmem:[#allocation7 + $0xa0] sm:$0xff]  ;;  %v7803_v50 = vld [vmem:[#allocation7 + $0xc8] sm:$0xff] }
0x2370   :  { %v7805_v48 = vld [vmem:[#allocation7 + $0xd8] sm:$0xff]  ;;  %v7802_v13 = vld [vmem:[#allocation7 + $0xc0] sm:$0xff]  ;;  %v7804_v2 = vld [vmem:[#allocation7 + $0xd0] sm:$0xff] }
0x2371   :  { %8200 = vmatpush1.bf16.msra.mxu0 %v7784_v45  ;;  %v7809_v27 = vld [vmem:[#allocation7 + $0xf8] sm:$0xff]  ;;  %v7811_v3 = vld [vmem:[#allocation7 + $0x108] sm:$0xff]  ;;  %v7808_v30 = vld [vmem:[#allocation7 + $0xf0] sm:$0xff] }
0x2372   :  { %8364 = vmatpush1.bf16.msra.mxu1 %v7786_v56  ;;  %8201 = vmatprep.subr.bf16.mxu0 %v7791_v8  ;;  %v7810_v4 = vld [vmem:[#allocation7 + $0x100] sm:$0xff]  ;;  %v7815_v6 = vld [vmem:[#allocation7 + $0x128] sm:$0xff]  ;;  %v7817_v0 = vld [vmem:[#allocation7 + $0x138] sm:$0xff] }
0x2373   :  { %8365 = vmatprep.subr.bf16.mxu1 %v7793_v60  ;;  %v7814_v54 = vld [vmem:[#allocation7 + $0x120] sm:$0xff]  ;;  %v7816_v38 = vld [vmem:[#allocation7 + $0x130] sm:$0xff]  ;;  %v7821_v61 = vld [vmem:[#allocation7 + $0x158] sm:$0xff] }
0x2374   :  { %v7823_v59 = vld [vmem:[#allocation7 + $0x168] sm:$0xff]  ;;  %v7820_v17 = vld [vmem:[#allocation7 + $0x150] sm:$0xff]  ;;  %v7822_v34 = vld [vmem:[#allocation7 + $0x160] sm:$0xff] }
0x2375   :  { %8202 = vmatpush1.bf16.msra.mxu0 %v7790_v10  ;;  %v7827_v22 = vld [vmem:[#allocation7 + $0x188] sm:$0xff]  ;;  %v7829_v57 = vld [vmem:[#allocation7 + $0x198] sm:$0xff]  ;;  %v7826_v18 = vld [vmem:[#allocation7 + $0x180] sm:$0xff] }
0x2376   :  { %8366 = vmatpush1.bf16.msra.mxu1 %v7792_v47  ;;  %8203 = vmatprep.subr.bf16.mxu0 %v7797_v40  ;;  %v7828_v53 = vld [vmem:[#allocation7 + $0x190] sm:$0xff]  ;;  %v7833_v24 = vld [vmem:[#allocation7 + $0x1b8] sm:$0xff]  ;;  %v7835_v45 = vld [vmem:[#allocation7 + $0x1c8] sm:$0xff] }
0x2377   :  { %8367 = vmatprep.subr.bf16.mxu1 %v7799_v25  ;;  %v7832_v56 = vld [vmem:[#allocation7 + $0x1b0] sm:$0xff]  ;;  %v7834_v8 = vld [vmem:[#allocation7 + $0x1c0] sm:$0xff]  ;;  %v7839_v60 = vld [vmem:[#allocation7 + $0x1e8] sm:$0xff] }
0x2378   :  { %v7841_v10 = vld [vmem:[#allocation7 + $0x1f8] sm:$0xff]  ;;  %v7838_v47 = vld [vmem:[#allocation7 + $0x1e0] sm:$0xff]  ;;  %v7840_v40 = vld [vmem:[#allocation7 + $0x1f0] sm:$0xff] }
0x2379   :  { %8204 = vmatpush1.bf16.msra.mxu0 %v7796_v14  ;;  %v7845_v25 = vld [vmem:[#allocation7 + $0x218] sm:$0xff]  ;;  %v7847_v14 = vld [vmem:[#allocation7 + $0x228] sm:$0xff]  ;;  %v7880_v33 = vld [vmem:[#allocation7 + $0x330] sm:$0xff] }
0x237a   :  { %8368 = vmatpush1.bf16.msra.mxu1 %v7798_v11  ;;  %8205 = vmatprep.subr.bf16.mxu0 %v7803_v50  ;;  %v7844_v11 = vld [vmem:[#allocation7 + $0x210] sm:$0xff]  ;;  %v7846_v50 = vld [vmem:[#allocation7 + $0x220] sm:$0xff] }
0x237b   :  { %8369 = vmatprep.subr.bf16.mxu1 %v7805_v48  ;;  %v7851_v48 = vld [vmem:[#allocation7 + $0x248] sm:$0xff]  ;;  %v7886_v29 = vld [vmem:[#allocation7 + $0x360] sm:$0xff]  ;;  %v7976_v37 = vld [vmem:[#allocation7 + $0x630] sm:$0xff] }
0x237c   :  { %v7982_v35 = vld [vmem:[#allocation7 + $0x660] sm:$0xff]  ;;  %v8072_v7 = vld [vmem:[#allocation7 + $0x930] sm:$0xff] }
0x237d   :  { %8206 = vmatpush1.bf16.msra.mxu0 %v7802_v13  ;;  %v7853_v13 = vld [vmem:[#allocation7 + $0x258] sm:$0xff]  ;;  %v8078_v31 = vld [vmem:[#allocation7 + $0x960] sm:$0xff] }
0x237e   :  { %8370 = vmatpush1.bf16.msra.mxu1 %v7804_v2  ;;  %8207 = vmatprep.subr.bf16.mxu0 %v7809_v27  ;;  %v7850_v2 = vld [vmem:[#allocation7 + $0x240] sm:$0xff]  ;;  %v7852_v27 = vld [vmem:[#allocation7 + $0x250] sm:$0xff] }
0x237f   :  { %8371 = vmatprep.subr.bf16.mxu1 %v7811_v3  ;;  %v7857_v3 = vld [vmem:[#allocation7 + $0x278] sm:$0xff]  ;;  %v7794_v32 = vld [vmem:[#allocation7 + $0x80] sm:$0xff] }
0x2381   :  { %8208 = vmatpush1.bf16.msra.mxu0 %v7808_v30  ;;  %v7859_v30 = vld [vmem:[#allocation7 + $0x288] sm:$0xff] }
0x2382   :  { %8372 = vmatpush1.bf16.msra.mxu1 %v7810_v4  ;;  %8209 = vmatprep.subr.bf16.mxu0 %v7815_v6  ;;  %v7856_v4 = vld [vmem:[#allocation7 + $0x270] sm:$0xff]  ;;  %v7858_v6 = vld [vmem:[#allocation7 + $0x280] sm:$0xff] }
0x2383   :  { %8373 = vmatprep.subr.bf16.mxu1 %v7817_v0  ;;  %v7863_v0 = vld [vmem:[#allocation7 + $0x2a8] sm:$0xff] }
0x2385   :  { %8210 = vmatpush1.bf16.msra.mxu0 %v7814_v54  ;;  %v7865_v54 = vld [vmem:[#allocation7 + $0x2b8] sm:$0xff] }
0x2386   :  { %8374 = vmatpush1.bf16.msra.mxu1 %v7816_v38  ;;  %8211 = vmatprep.subr.bf16.mxu0 %v7821_v61  ;;  %v7862_v38 = vld [vmem:[#allocation7 + $0x2a0] sm:$0xff]  ;;  %v7864_v61 = vld [vmem:[#allocation7 + $0x2b0] sm:$0xff] }
0x2387   :  { %8375 = vmatprep.subr.bf16.mxu1 %v7823_v59  ;;  %v7869_v59 = vld [vmem:[#allocation7 + $0x2d8] sm:$0xff] }
0x2389   :  { %8212 = vmatpush1.bf16.msra.mxu0 %v7820_v17  ;;  %v7871_v17 = vld [vmem:[#allocation7 + $0x2e8] sm:$0xff] }
0x238a   :  { %8376 = vmatpush1.bf16.msra.mxu1 %v7822_v34  ;;  %8213 = vmatprep.subr.bf16.mxu0 %v7827_v22  ;;  %v7868_v34 = vld [vmem:[#allocation7 + $0x2d0] sm:$0xff]  ;;  %v7870_v22 = vld [vmem:[#allocation7 + $0x2e0] sm:$0xff] }
0x238b   :  { %8377 = vmatprep.subr.bf16.mxu1 %v7829_v57  ;;  %v7875_v57 = vld [vmem:[#allocation7 + $0x308] sm:$0xff] }
0x238d   :  { %8214 = vmatpush1.bf16.msra.mxu0 %v7826_v18  ;;  %v7877_v18 = vld [vmem:[#allocation7 + $0x318] sm:$0xff] }
0x238e   :  { %8378 = vmatpush1.bf16.msra.mxu1 %v7828_v53  ;;  %8215 = vmatprep.subr.bf16.mxu0 %v7833_v24  ;;  %v12729_v53 = vpack.c.bf16 %v7758_v16, %v7758_v16  ;;  %v7874_v24 = vld [vmem:[#allocation7 + $0x300] sm:$0xff] }
0x238f   :  { %8379 = vmatprep.subr.bf16.mxu1 %v7835_v45  ;;  %v7876_v45 = vld [vmem:[#allocation7 + $0x310] sm:$0xff]  ;;  %v7882_v16 = vld [vmem:[#allocation7 + $0x340] sm:$0xff] }
0x2391   :  { %8216 = vmatpush1.bf16.msra.mxu0 %v7832_v56  ;;  %v7881_v56 = vld [vmem:[#allocation7 + $0x338] sm:$0xff] }
0x2392   :  { %8380 = vmatpush1.bf16.msra.mxu1 %v7834_v8  ;;  %8217 = vmatprep.subr.bf16.mxu0 %v7839_v60  ;;  %v7883_v8 = vld [vmem:[#allocation7 + $0x348] sm:$0xff]  ;;  %v12734_v60 = vpack.c.bf16 %v7761_v12, %v7761_v12  ;;  %v7888_v12 = vld [vmem:[#allocation7 + $0x370] sm:$0xff] }
0x2393   :  { %8381 = vmatprep.subr.bf16.mxu1 %v7841_v10  ;;  %v7887_v10 = vld [vmem:[#allocation7 + $0x368] sm:$0xff] }
0x2395   :  { %8218 = vmatpush1.bf16.msra.mxu0 %v7838_v47  ;;  %v7889_v47 = vld [vmem:[#allocation7 + $0x378] sm:$0xff] }
0x2396   :  { %8382 = vmatpush1.bf16.msra.mxu1 %v7840_v40  ;;  %8219 = vmatprep.subr.bf16.mxu0 %v7845_v25  ;;  %v7893_v40 = vld [vmem:[#allocation7 + $0x398] sm:$0xff]  ;;  %v7895_v25 = vld [vmem:[#allocation7 + $0x3a8] sm:$0xff] }
0x2397   :  { %8383 = vmatprep.subr.bf16.mxu1 %v7847_v14  ;;  %v7892_v14 = vld [vmem:[#allocation7 + $0x390] sm:$0xff] }
0x2399   :  { %8220 = vmatpush1.bf16.msra.mxu0 %v7844_v11  ;;  %v7894_v11 = vld [vmem:[#allocation7 + $0x3a0] sm:$0xff] }
0x239a   :  { %8384 = vmatpush1.bf16.msra.mxu1 %v7846_v50  ;;  %8221 = vmatprep.subr.bf16.mxu0 %v7851_v48  ;;  %v7899_v50 = vld [vmem:[#allocation7 + $0x3c8] sm:$0xff]  ;;  %v7901_v48 = vld [vmem:[#allocation7 + $0x3d8] sm:$0xff] }
0x239b   :  { %8385 = vmatprep.subr.bf16.mxu1 %v7853_v13  ;;  %v7898_v13 = vld [vmem:[#allocation7 + $0x3c0] sm:$0xff] }
0x239d   :  { %8222 = vmatpush1.bf16.msra.mxu0 %v7850_v2  ;;  %v7900_v2 = vld [vmem:[#allocation7 + $0x3d0] sm:$0xff] }
0x239e   :  { %8386 = vmatpush1.bf16.msra.mxu1 %v7852_v27  ;;  %8223 = vmatprep.subr.bf16.mxu0 %v7857_v3  ;;  %v7905_v27 = vld [vmem:[#allocation7 + $0x3f8] sm:$0xff]  ;;  %v7907_v3 = vld [vmem:[#allocation7 + $0x408] sm:$0xff] }
0x239f   :  { %8387 = vmatprep.subr.bf16.mxu1 %v7859_v30  ;;  %v7904_v30 = vld [vmem:[#allocation7 + $0x3f0] sm:$0xff] }
0x23a1   :  { %8224 = vmatpush1.bf16.msra.mxu0 %v7856_v4  ;;  %v7906_v4 = vld [vmem:[#allocation7 + $0x400] sm:$0xff] }
0x23a2   :  { %8388 = vmatpush1.bf16.msra.mxu1 %v7858_v6  ;;  %8225 = vmatprep.subr.bf16.mxu0 %v7863_v0  ;;  %v7911_v6 = vld [vmem:[#allocation7 + $0x428] sm:$0xff]  ;;  %v7913_v0 = vld [vmem:[#allocation7 + $0x438] sm:$0xff] }
0x23a3   :  { %8389 = vmatprep.subr.bf16.mxu1 %v7865_v54  ;;  %v7910_v54 = vld [vmem:[#allocation7 + $0x420] sm:$0xff] }
0x23a5   :  { %8226 = vmatpush1.bf16.msra.mxu0 %v7862_v38  ;;  %v7912_v38 = vld [vmem:[#allocation7 + $0x430] sm:$0xff] }
0x23a6   :  { %8390 = vmatpush1.bf16.msra.mxu1 %v7864_v61  ;;  %8227 = vmatprep.subr.bf16.mxu0 %v7869_v59  ;;  %v7917_v61 = vld [vmem:[#allocation7 + $0x458] sm:$0xff]  ;;  %v7919_v59 = vld [vmem:[#allocation7 + $0x468] sm:$0xff] }
0x23a7   :  { %8391 = vmatprep.subr.bf16.mxu1 %v7871_v17  ;;  %v7916_v17 = vld [vmem:[#allocation7 + $0x450] sm:$0xff] }
0x23a9   :  { %8228 = vmatpush1.bf16.msra.mxu0 %v7868_v34  ;;  %v7918_v34 = vld [vmem:[#allocation7 + $0x460] sm:$0xff] }
0x23aa   :  { %8392 = vmatpush1.bf16.msra.mxu1 %v7870_v22  ;;  %8238 = vmatprep.subr.bf16.mxu0 %v7875_v57  ;;  %v7923_v22 = vld [vmem:[#allocation7 + $0x488] sm:$0xff]  ;;  %v7925_v57 = vld [vmem:[#allocation7 + $0x498] sm:$0xff] }
0x23ab   :  { %8402 = vmatprep.subr.bf16.mxu1 %v7877_v18  ;;  %v7922_v18 = vld [vmem:[#allocation7 + $0x480] sm:$0xff] }
0x23ac   :  { %8230 = vmatmul.mubr.bf16.vlgmr.msra.gmra.mrb[88].mxu0 %v12729_v53 }
0x23ad   :  { %8394 = vmatmul.mubr.bf16.vlgmr.msra.gmra.mrb[84].mxu1 %v12729_v53  ;;  %8239 = vmatpush1.bf16.msra.mxu0 %v7874_v24  ;;  %v7924_v24 = vld [vmem:[#allocation7 + $0x490] sm:$0xff] }
0x23ae   :  { %8403 = vmatpush1.bf16.msra.mxu1 %v7876_v45  ;;  %8240 = vmatprep.subr.bf16.mxu0 %v7881_v56  ;;  %v7929_v45 = vld [vmem:[#allocation7 + $0x4b8] sm:$0xff]  ;;  %v7931_v56 = vld [vmem:[#allocation7 + $0x4c8] sm:$0xff] }
0x23af   :  { %8404 = vmatprep.subr.bf16.mxu1 %v7883_v8  ;;  %8270 = vmatprep.mubr.bf16.mxu0 %v12734_v60  ;;  %v7928_v8 = vld [vmem:[#allocation7 + $0x4b0] sm:$0xff] }
0x23b0   :  { %8434 = vmatprep.mubr.bf16.mxu1 %v12734_v60 }
0x23b1   :  { %8241 = vmatpush1.bf16.msra.mxu0 %v7880_v33  ;;  %v7930_v33 = vld [vmem:[#allocation7 + $0x4c0] sm:$0xff] }
0x23b2   :  { %8405 = vmatpush1.bf16.msra.mxu1 %v7882_v16  ;;  %8242 = vmatprep.subr.bf16.mxu0 %v7887_v10  ;;  %v7935_v16 = vld [vmem:[#allocation7 + $0x4e8] sm:$0xff]  ;;  %v7937_v10 = vld [vmem:[#allocation7 + $0x4f8] sm:$0xff] }
0x23b3   :  { %8406 = vmatprep.subr.bf16.mxu1 %v7889_v47  ;;  %v7934_v47 = vld [vmem:[#allocation7 + $0x4e0] sm:$0xff] }
0x23b5   :  { %8243 = vmatpush1.bf16.msra.mxu0 %v7886_v29  ;;  %v7936_v29 = vld [vmem:[#allocation7 + $0x4f0] sm:$0xff] }
0x23b6   :  { %8407 = vmatpush1.bf16.msra.mxu1 %v7888_v12  ;;  %8244 = vmatprep.subr.bf16.mxu0 %v7893_v40  ;;  %v7941_v12 = vld [vmem:[#allocation7 + $0x518] sm:$0xff]  ;;  %v7943_v40 = vld [vmem:[#allocation7 + $0x528] sm:$0xff] }
0x23b7   :  { %8408 = vmatprep.subr.bf16.mxu1 %v7895_v25  ;;  %v7940_v25 = vld [vmem:[#allocation7 + $0x510] sm:$0xff] }
0x23b9   :  { %8245 = vmatpush1.bf16.msra.mxu0 %v7892_v14  ;;  %v7942_v14 = vld [vmem:[#allocation7 + $0x520] sm:$0xff] }
0x23ba   :  { %8409 = vmatpush1.bf16.msra.mxu1 %v7894_v11  ;;  %8246 = vmatprep.subr.bf16.mxu0 %v7899_v50  ;;  %v7947_v11 = vld [vmem:[#allocation7 + $0x548] sm:$0xff]  ;;  %v7949_v50 = vld [vmem:[#allocation7 + $0x558] sm:$0xff] }
0x23bb   :  { %8410 = vmatprep.subr.bf16.mxu1 %v7901_v48  ;;  %v7946_v48 = vld [vmem:[#allocation7 + $0x540] sm:$0xff] }
0x23bd   :  { %8247 = vmatpush1.bf16.msra.mxu0 %v7898_v13  ;;  %v7948_v13 = vld [vmem:[#allocation7 + $0x550] sm:$0xff] }
0x23be   :  { %8411 = vmatpush1.bf16.msra.mxu1 %v7900_v2  ;;  %8248 = vmatprep.subr.bf16.mxu0 %v7905_v27  ;;  %v7953_v2 = vld [vmem:[#allocation7 + $0x578] sm:$0xff]  ;;  %v7955_v27 = vld [vmem:[#allocation7 + $0x588] sm:$0xff] }
0x23bf   :  { %8412 = vmatprep.subr.bf16.mxu1 %v7907_v3  ;;  %v7952_v3 = vld [vmem:[#allocation7 + $0x570] sm:$0xff] }
0x23c1   :  { %8249 = vmatpush1.bf16.msra.mxu0 %v7904_v30  ;;  %v7954_v30 = vld [vmem:[#allocation7 + $0x580] sm:$0xff] }
0x23c2   :  { %8413 = vmatpush1.bf16.msra.mxu1 %v7906_v4  ;;  %8250 = vmatprep.subr.bf16.mxu0 %v7911_v6  ;;  %v7959_v4 = vld [vmem:[#allocation7 + $0x5a8] sm:$0xff]  ;;  %v7961_v6 = vld [vmem:[#allocation7 + $0x5b8] sm:$0xff] }
0x23c3   :  { %8414 = vmatprep.subr.bf16.mxu1 %v7913_v0  ;;  %v7958_v0 = vld [vmem:[#allocation7 + $0x5a0] sm:$0xff] }
0x23c5   :  { %8251 = vmatpush1.bf16.msra.mxu0 %v7910_v54  ;;  %v7960_v54 = vld [vmem:[#allocation7 + $0x5b0] sm:$0xff] }
0x23c6   :  { %8415 = vmatpush1.bf16.msra.mxu1 %v7912_v38  ;;  %8252 = vmatprep.subr.bf16.mxu0 %v7917_v61  ;;  %v7965_v38 = vld [vmem:[#allocation7 + $0x5d8] sm:$0xff]  ;;  %v7967_v61 = vld [vmem:[#allocation7 + $0x5e8] sm:$0xff] }
0x23c7   :  { %8416 = vmatprep.subr.bf16.mxu1 %v7919_v59  ;;  %v7964_v59 = vld [vmem:[#allocation7 + $0x5d0] sm:$0xff] }
0x23c9   :  { %8253 = vmatpush1.bf16.msra.mxu0 %v7916_v17  ;;  %v7966_v17 = vld [vmem:[#allocation7 + $0x5e0] sm:$0xff] }
0x23ca   :  { %8417 = vmatpush1.bf16.msra.mxu1 %v7918_v34  ;;  %8254 = vmatprep.subr.bf16.mxu0 %v7923_v22  ;;  %v7971_v34 = vld [vmem:[#allocation7 + $0x608] sm:$0xff]  ;;  %v7973_v22 = vld [vmem:[#allocation7 + $0x618] sm:$0xff] }
0x23cb   :  { %8418 = vmatprep.subr.bf16.mxu1 %v7925_v57  ;;  %v12743_v57 = vpack.c.bf16 %v7760_v28, %v7760_v28  ;;  %v7978_v28 = vld [vmem:[#allocation7 + $0x640] sm:$0xff] }
0x23cd   :  { %8255 = vmatpush1.bf16.msra.mxu0 %v7922_v18  ;;  %v7970_v18 = vld [vmem:[#allocation7 + $0x600] sm:$0xff] }
0x23ce   :  { %8419 = vmatpush1.bf16.msra.mxu1 %v7924_v24  ;;  %8256 = vmatprep.subr.bf16.mxu0 %v7929_v45  ;;  %v7972_v24 = vld [vmem:[#allocation7 + $0x610] sm:$0xff]  ;;  %v7977_v45 = vld [vmem:[#allocation7 + $0x638] sm:$0xff] }
0x23cf   :  { %8420 = vmatprep.subr.bf16.mxu1 %v7931_v56  ;;  %v7979_v56 = vld [vmem:[#allocation7 + $0x648] sm:$0xff] }
0x23d1   :  { %8257 = vmatpush1.bf16.msra.mxu0 %v7928_v8  ;;  %v12748_v8 = vpack.c.bf16 %v7763_v20, %v7763_v20  ;;  %v7984_v20 = vld [vmem:[#allocation7 + $0x670] sm:$0xff] }
0x23d2   :  { %8421 = vmatpush1.bf16.msra.mxu1 %v7930_v33  ;;  %8258 = vmatprep.subr.bf16.mxu0 %v7935_v16  ;;  %v7983_v33 = vld [vmem:[#allocation7 + $0x668] sm:$0xff]  ;;  %v7985_v16 = vld [vmem:[#allocation7 + $0x678] sm:$0xff] }
0x23d3   :  { %8422 = vmatprep.subr.bf16.mxu1 %v7937_v10  ;;  %v7989_v10 = vld [vmem:[#allocation7 + $0x698] sm:$0xff] }
0x23d5   :  { %8259 = vmatpush1.bf16.msra.mxu0 %v7934_v47  ;;  %v7991_v47 = vld [vmem:[#allocation7 + $0x6a8] sm:$0xff] }
0x23d6   :  { %8423 = vmatpush1.bf16.msra.mxu1 %v7936_v29  ;;  %8260 = vmatprep.subr.bf16.mxu0 %v7941_v12  ;;  %v7988_v29 = vld [vmem:[#allocation7 + $0x690] sm:$0xff]  ;;  %v7990_v12 = vld [vmem:[#allocation7 + $0x6a0] sm:$0xff] }
0x23d7   :  { %8424 = vmatprep.subr.bf16.mxu1 %v7943_v40  ;;  %v7995_v40 = vld [vmem:[#allocation7 + $0x6c8] sm:$0xff] }
0x23d9   :  { %8261 = vmatpush1.bf16.msra.mxu0 %v7940_v25  ;;  %v7997_v25 = vld [vmem:[#allocation7 + $0x6d8] sm:$0xff] }
0x23da   :  { %8425 = vmatpush1.bf16.msra.mxu1 %v7942_v14  ;;  %8262 = vmatprep.subr.bf16.mxu0 %v7947_v11  ;;  %v7994_v14 = vld [vmem:[#allocation7 + $0x6c0] sm:$0xff]  ;;  %v7996_v11 = vld [vmem:[#allocation7 + $0x6d0] sm:$0xff] }
0x23db   :  { %8426 = vmatprep.subr.bf16.mxu1 %v7949_v50  ;;  %v8001_v50 = vld [vmem:[#allocation7 + $0x6f8] sm:$0xff] }
0x23dd   :  { %8263 = vmatpush1.bf16.msra.mxu0 %v7946_v48  ;;  %v8003_v48 = vld [vmem:[#allocation7 + $0x708] sm:$0xff] }
0x23de   :  { %8427 = vmatpush1.bf16.msra.mxu1 %v7948_v13  ;;  %8264 = vmatprep.subr.bf16.mxu0 %v7953_v2  ;;  %v8000_v13 = vld [vmem:[#allocation7 + $0x6f0] sm:$0xff]  ;;  %v8002_v2 = vld [vmem:[#allocation7 + $0x700] sm:$0xff] }
0x23df   :  { %8428 = vmatprep.subr.bf16.mxu1 %v7955_v27  ;;  %v8007_v27 = vld [vmem:[#allocation7 + $0x728] sm:$0xff] }
0x23e1   :  { %8265 = vmatpush1.bf16.msra.mxu0 %v7952_v3  ;;  %v8009_v3 = vld [vmem:[#allocation7 + $0x738] sm:$0xff] }
0x23e2   :  { %8429 = vmatpush1.bf16.msra.mxu1 %v7954_v30  ;;  %8266 = vmatprep.subr.bf16.mxu0 %v7959_v4  ;;  %v8006_v30 = vld [vmem:[#allocation7 + $0x720] sm:$0xff]  ;;  %v8008_v4 = vld [vmem:[#allocation7 + $0x730] sm:$0xff] }
0x23e3   :  { %8430 = vmatprep.subr.bf16.mxu1 %v7961_v6  ;;  %v8013_v6 = vld [vmem:[#allocation7 + $0x758] sm:$0xff] }
0x23e5   :  { %8267 = vmatpush1.bf16.msra.mxu0 %v7958_v0  ;;  %v8015_v0 = vld [vmem:[#allocation7 + $0x768] sm:$0xff] }
0x23e6   :  { %8431 = vmatpush1.bf16.msra.mxu1 %v7960_v54  ;;  %8268 = vmatprep.subr.bf16.mxu0 %v7965_v38  ;;  %v8012_v54 = vld [vmem:[#allocation7 + $0x750] sm:$0xff]  ;;  %v8014_v38 = vld [vmem:[#allocation7 + $0x760] sm:$0xff] }
0x23e7   :  { %8432 = vmatprep.subr.bf16.mxu1 %v7967_v61  ;;  %v8019_v61 = vld [vmem:[#allocation7 + $0x788] sm:$0xff] }
0x23e9   :  { %8269 = vmatpush1.bf16.msra.mxu0 %v7964_v59  ;;  %v8021_v59 = vld [vmem:[#allocation7 + $0x798] sm:$0xff] }
0x23ea   :  { %8433 = vmatpush1.bf16.msra.mxu1 %v7966_v17  ;;  %8279 = vmatprep.subr.bf16.mxu0 %v7971_v34  ;;  %v8018_v17 = vld [vmem:[#allocation7 + $0x780] sm:$0xff]  ;;  %v8020_v34 = vld [vmem:[#allocation7 + $0x790] sm:$0xff] }
0x23eb   :  { %8443 = vmatprep.subr.bf16.mxu1 %v7973_v22  ;;  %v8025_v22 = vld [vmem:[#allocation7 + $0x7b8] sm:$0xff] }
0x23ec   :  { %8271 = vmatmul.mubr.bf16.vlgmr.msra.gmra.mrb[88].mxu0 %v12743_v57 }
0x23ed   :  { %8435 = vmatmul.mubr.bf16.vlgmr.msra.gmra.mrb[84].mxu1 %v12743_v57  ;;  %8280 = vmatpush1.bf16.msra.mxu0 %v7970_v18  ;;  %v8027_v18 = vld [vmem:[#allocation7 + $0x7c8] sm:$0xff] }
0x23ee   :  { %8444 = vmatpush1.bf16.msra.mxu1 %v7972_v24  ;;  %8281 = vmatprep.subr.bf16.mxu0 %v7977_v45  ;;  %v8024_v24 = vld [vmem:[#allocation7 + $0x7b0] sm:$0xff]  ;;  %v8026_v45 = vld [vmem:[#allocation7 + $0x7c0] sm:$0xff] }
0x23ef   :  { %8445 = vmatprep.subr.bf16.mxu1 %v7979_v56  ;;  %8311 = vmatprep.mubr.bf16.mxu0 %v12748_v8  ;;  %v8031_v56 = vld [vmem:[#allocation7 + $0x7e8] sm:$0xff] }
0x23f0   :  { %8475 = vmatprep.mubr.bf16.mxu1 %v12748_v8 }
0x23f1   :  { %8282 = vmatpush1.bf16.msra.mxu0 %v7976_v37  ;;  %v8033_v37 = vld [vmem:[#allocation7 + $0x7f8] sm:$0xff] }
0x23f2   :  { %8446 = vmatpush1.bf16.msra.mxu1 %v7978_v28  ;;  %8283 = vmatprep.subr.bf16.mxu0 %v7983_v33  ;;  %v8030_v28 = vld [vmem:[#allocation7 + $0x7e0] sm:$0xff]  ;;  %v8032_v33 = vld [vmem:[#allocation7 + $0x7f0] sm:$0xff] }
0x23f3   :  { %8447 = vmatprep.subr.bf16.mxu1 %v7985_v16  ;;  %v8037_v16 = vld [vmem:[#allocation7 + $0x818] sm:$0xff] }
0x23f5   :  { %8284 = vmatpush1.bf16.msra.mxu0 %v7982_v35  ;;  %v8039_v35 = vld [vmem:[#allocation7 + $0x828] sm:$0xff] }
0x23f6   :  { %8448 = vmatpush1.bf16.msra.mxu1 %v7984_v20  ;;  %8285 = vmatprep.subr.bf16.mxu0 %v7989_v10  ;;  %v8036_v20 = vld [vmem:[#allocation7 + $0x810] sm:$0xff]  ;;  %v8038_v10 = vld [vmem:[#allocation7 + $0x820] sm:$0xff] }
0x23f7   :  { %8449 = vmatprep.subr.bf16.mxu1 %v7991_v47  ;;  %v8043_v47 = vld [vmem:[#allocation7 + $0x848] sm:$0xff] }
0x23f9   :  { %8286 = vmatpush1.bf16.msra.mxu0 %v7988_v29  ;;  %v8045_v29 = vld [vmem:[#allocation7 + $0x858] sm:$0xff] }
0x23fa   :  { %8450 = vmatpush1.bf16.msra.mxu1 %v7990_v12  ;;  %8287 = vmatprep.subr.bf16.mxu0 %v7995_v40  ;;  %v8042_v12 = vld [vmem:[#allocation7 + $0x840] sm:$0xff]  ;;  %v8044_v40 = vld [vmem:[#allocation7 + $0x850] sm:$0xff] }
0x23fb   :  { %8451 = vmatprep.subr.bf16.mxu1 %v7997_v25  ;;  %v8049_v25 = vld [vmem:[#allocation7 + $0x878] sm:$0xff] }
0x23fd   :  { %8288 = vmatpush1.bf16.msra.mxu0 %v7994_v14  ;;  %v8051_v14 = vld [vmem:[#allocation7 + $0x888] sm:$0xff] }
0x23fe   :  { %8452 = vmatpush1.bf16.msra.mxu1 %v7996_v11  ;;  %8289 = vmatprep.subr.bf16.mxu0 %v8001_v50  ;;  %v8048_v11 = vld [vmem:[#allocation7 + $0x870] sm:$0xff]  ;;  %v8050_v50 = vld [vmem:[#allocation7 + $0x880] sm:$0xff] }
0x23ff   :  { %8453 = vmatprep.subr.bf16.mxu1 %v8003_v48  ;;  %v8055_v48 = vld [vmem:[#allocation7 + $0x8a8] sm:$0xff] }
0x2401   :  { %8290 = vmatpush1.bf16.msra.mxu0 %v8000_v13  ;;  %v8057_v13 = vld [vmem:[#allocation7 + $0x8b8] sm:$0xff] }
0x2402   :  { %8454 = vmatpush1.bf16.msra.mxu1 %v8002_v2  ;;  %8291 = vmatprep.subr.bf16.mxu0 %v8007_v27  ;;  %v8054_v2 = vld [vmem:[#allocation7 + $0x8a0] sm:$0xff]  ;;  %v8056_v27 = vld [vmem:[#allocation7 + $0x8b0] sm:$0xff] }
0x2403   :  { %8455 = vmatprep.subr.bf16.mxu1 %v8009_v3  ;;  %v8061_v3 = vld [vmem:[#allocation7 + $0x8d8] sm:$0xff] }
0x2405   :  { %8292 = vmatpush1.bf16.msra.mxu0 %v8006_v30  ;;  %v8063_v30 = vld [vmem:[#allocation7 + $0x8e8] sm:$0xff] }
0x2406   :  { %8456 = vmatpush1.bf16.msra.mxu1 %v8008_v4  ;;  %8293 = vmatprep.subr.bf16.mxu0 %v8013_v6  ;;  %v8060_v4 = vld [vmem:[#allocation7 + $0x8d0] sm:$0xff]  ;;  %v8062_v6 = vld [vmem:[#allocation7 + $0x8e0] sm:$0xff] }
0x2407   :  { %8457 = vmatprep.subr.bf16.mxu1 %v8015_v0  ;;  %v8067_v0 = vld [vmem:[#allocation7 + $0x908] sm:$0xff] }
0x2409   :  { %8294 = vmatpush1.bf16.msra.mxu0 %v8012_v54  ;;  %v8069_v54 = vld [vmem:[#allocation7 + $0x918] sm:$0xff] }
0x240a   :  { %8458 = vmatpush1.bf16.msra.mxu1 %v8014_v38  ;;  %8295 = vmatprep.subr.bf16.mxu0 %v8019_v61  ;;  %v12757_v38 = vpack.c.bf16 %v7762_v39, %v7762_v39  ;;  %v8066_v61 = vld [vmem:[#allocation7 + $0x900] sm:$0xff] }
0x240b   :  { %8459 = vmatprep.subr.bf16.mxu1 %v8021_v59  ;;  %v8068_v59 = vld [vmem:[#allocation7 + $0x910] sm:$0xff]  ;;  %v8074_v39 = vld [vmem:[#allocation7 + $0x940] sm:$0xff] }
0x240d   :  { %8296 = vmatpush1.bf16.msra.mxu0 %v8018_v17  ;;  %v8073_v17 = vld [vmem:[#allocation7 + $0x938] sm:$0xff] }
0x240e   :  { %8460 = vmatpush1.bf16.msra.mxu1 %v8020_v34  ;;  %8297 = vmatprep.subr.bf16.mxu0 %v8025_v22  ;;  %v8075_v34 = vld [vmem:[#allocation7 + $0x948] sm:$0xff]  ;;  %v12762_v22 = vpack.c.bf16 %v7765_v55, %v7765_v55  ;;  %v8080_v55 = vld [vmem:[#allocation7 + $0x970] sm:$0xff] }
0x240f   :  { %8461 = vmatprep.subr.bf16.mxu1 %v8027_v18  ;;  %v8079_v18 = vld [vmem:[#allocation7 + $0x968] sm:$0xff] }
0x2411   :  { %8298 = vmatpush1.bf16.msra.mxu0 %v8024_v24  ;;  %v8081_v24 = vld [vmem:[#allocation7 + $0x978] sm:$0xff] }
0x2412   :  { %8462 = vmatpush1.bf16.msra.mxu1 %v8026_v45  ;;  %8299 = vmatprep.subr.bf16.mxu0 %v8031_v56  ;;  %v8085_v45 = vld [vmem:[#allocation7 + $0x998] sm:$0xff]  ;;  %v8087_v56 = vld [vmem:[#allocation7 + $0x9a8] sm:$0xff] }
0x2413   :  { %8463 = vmatprep.subr.bf16.mxu1 %v8033_v37  ;;  %v8084_v37 = vld [vmem:[#allocation7 + $0x990] sm:$0xff] }
0x2415   :  { %8300 = vmatpush1.bf16.msra.mxu0 %v8030_v28  ;;  %v8086_v28 = vld [vmem:[#allocation7 + $0x9a0] sm:$0xff] }
0x2416   :  { %8464 = vmatpush1.bf16.msra.mxu1 %v8032_v33  ;;  %8301 = vmatprep.subr.bf16.mxu0 %v8037_v16  ;;  %v8091_v33 = vld [vmem:[#allocation7 + $0x9c8] sm:$0xff]  ;;  %v8093_v16 = vld [vmem:[#allocation7 + $0x9d8] sm:$0xff] }
0x2417   :  { %8465 = vmatprep.subr.bf16.mxu1 %v8039_v35  ;;  %v8090_v35 = vld [vmem:[#allocation7 + $0x9c0] sm:$0xff] }
0x2419   :  { %8302 = vmatpush1.bf16.msra.mxu0 %v8036_v20  ;;  %v8092_v20 = vld [vmem:[#allocation7 + $0x9d0] sm:$0xff] }
0x241a   :  { %8466 = vmatpush1.bf16.msra.mxu1 %v8038_v10  ;;  %8303 = vmatprep.subr.bf16.mxu0 %v8043_v47  ;;  %v8097_v10 = vld [vmem:[#allocation7 + $0x9f8] sm:$0xff]  ;;  %v8099_v47 = vld [vmem:[#allocation7 + $0xa08] sm:$0xff] }
0x241b   :  { %8467 = vmatprep.subr.bf16.mxu1 %v8045_v29  ;;  %v8096_v29 = vld [vmem:[#allocation7 + $0x9f0] sm:$0xff] }
0x241d   :  { %8304 = vmatpush1.bf16.msra.mxu0 %v8042_v12  ;;  %v8098_v12 = vld [vmem:[#allocation7 + $0xa00] sm:$0xff] }
0x241e   :  { %8468 = vmatpush1.bf16.msra.mxu1 %v8044_v40  ;;  %8305 = vmatprep.subr.bf16.mxu0 %v8049_v25  ;;  %v8103_v40 = vld [vmem:[#allocation7 + $0xa28] sm:$0xff]  ;;  %v8105_v25 = vld [vmem:[#allocation7 + $0xa38] sm:$0xff] }
0x241f   :  { %8469 = vmatprep.subr.bf16.mxu1 %v8051_v14  ;;  %v8102_v14 = vld [vmem:[#allocation7 + $0xa20] sm:$0xff] }
0x2421   :  { %8306 = vmatpush1.bf16.msra.mxu0 %v8048_v11  ;;  %v8104_v11 = vld [vmem:[#allocation7 + $0xa30] sm:$0xff] }
0x2422   :  { %8470 = vmatpush1.bf16.msra.mxu1 %v8050_v50  ;;  %8307 = vmatprep.subr.bf16.mxu0 %v8055_v48  ;;  %v8109_v50 = vld [vmem:[#allocation7 + $0xa58] sm:$0xff]  ;;  %v8111_v48 = vld [vmem:[#allocation7 + $0xa68] sm:$0xff] }
0x2423   :  { %8471 = vmatprep.subr.bf16.mxu1 %v8057_v13  ;;  %v8108_v13 = vld [vmem:[#allocation7 + $0xa50] sm:$0xff] }
0x2425   :  { %8308 = vmatpush1.bf16.msra.mxu0 %v8054_v2  ;;  %v8110_v2 = vld [vmem:[#allocation7 + $0xa60] sm:$0xff] }
0x2426   :  { %8472 = vmatpush1.bf16.msra.mxu1 %v8056_v27  ;;  %8309 = vmatprep.subr.bf16.mxu0 %v8061_v3  ;;  %v8115_v27 = vld [vmem:[#allocation7 + $0xa88] sm:$0xff]  ;;  %v8117_v3 = vld [vmem:[#allocation7 + $0xa98] sm:$0xff] }
0x2427   :  { %8473 = vmatprep.subr.bf16.mxu1 %v8063_v30  ;;  %v8114_v30 = vld [vmem:[#allocation7 + $0xa80] sm:$0xff] }
0x2429   :  { %8310 = vmatpush1.bf16.msra.mxu0 %v8060_v4  ;;  %v8116_v4 = vld [vmem:[#allocation7 + $0xa90] sm:$0xff] }
0x242a   :  { %8474 = vmatpush1.bf16.msra.mxu1 %v8062_v6  ;;  %8320 = vmatprep.subr.bf16.mxu0 %v8067_v0  ;;  %v8121_v6 = vld [vmem:[#allocation7 + $0xab8] sm:$0xff]  ;;  %v8123_v0 = vld [vmem:[#allocation7 + $0xac8] sm:$0xff] }
0x242b   :  { %8484 = vmatprep.subr.bf16.mxu1 %v8069_v54  ;;  %v8120_v54 = vld [vmem:[#allocation7 + $0xab0] sm:$0xff] }
0x242c   :  { %8312 = vmatmul.mubr.bf16.vlgmr.msra.gmra.mrb[88].mxu0 %v12757_v38 }
0x242d   :  { %8476 = vmatmul.mubr.bf16.vlgmr.msra.gmra.mrb[84].mxu1 %v12757_v38  ;;  %8321 = vmatpush1.bf16.msra.mxu0 %v8066_v61  ;;  %v8122_v61 = vld [vmem:[#allocation7 + $0xac0] sm:$0xff] }
0x242e   :  { %8485 = vmatpush1.bf16.msra.mxu1 %v8068_v59  ;;  %8322 = vmatprep.subr.bf16.mxu0 %v8073_v17  ;;  %v8127_v59 = vld [vmem:[#allocation7 + $0xae8] sm:$0xff]  ;;  %v8129_v17 = vld [vmem:[#allocation7 + $0xaf8] sm:$0xff] }
0x242f   :  { %8486 = vmatprep.subr.bf16.mxu1 %v8075_v34  ;;  %8352 = vmatprep.mubr.bf16.mxu0 %v12762_v22  ;;  %v8126_v34 = vld [vmem:[#allocation7 + $0xae0] sm:$0xff] }
0x2430   :  { %8516 = vmatprep.mubr.bf16.mxu1 %v12762_v22 }
0x2431   :  { %8323 = vmatpush1.bf16.msra.mxu0 %v8072_v7  ;;  %v8128_v7 = vld [vmem:[#allocation7 + $0xaf0] sm:$0xff] }
0x2432   :  { %8487 = vmatpush1.bf16.msra.mxu1 %v8074_v39  ;;  %8324 = vmatprep.subr.bf16.mxu0 %v8079_v18  ;;  %v8133_v39 = vld [vmem:[#allocation7 + $0xb18] sm:$0xff]  ;;  %v8135_v18 = vld [vmem:[#allocation7 + $0xb28] sm:$0xff] }
0x2433   :  { %8488 = vmatprep.subr.bf16.mxu1 %v8081_v24  ;;  %v8132_v24 = vld [vmem:[#allocation7 + $0xb10] sm:$0xff] }
0x2435   :  { %8325 = vmatpush1.bf16.msra.mxu0 %v8078_v31  ;;  %v8134_v31 = vld [vmem:[#allocation7 + $0xb20] sm:$0xff] }
0x2436   :  { %8489 = vmatpush1.bf16.msra.mxu1 %v8080_v55  ;;  %8326 = vmatprep.subr.bf16.mxu0 %v8085_v45  ;;  %v8139_v55 = vld [vmem:[#allocation7 + $0xb48] sm:$0xff]  ;;  %v8141_v45 = vld [vmem:[#allocation7 + $0xb58] sm:$0xff] }
0x2437   :  { %8490 = vmatprep.subr.bf16.mxu1 %v8087_v56  ;;  %v8138_v56 = vld [vmem:[#allocation7 + $0xb40] sm:$0xff] }
0x2439   :  { %8327 = vmatpush1.bf16.msra.mxu0 %v8084_v37  ;;  %v8140_v37 = vld [vmem:[#allocation7 + $0xb50] sm:$0xff] }
0x243a   :  { %8491 = vmatpush1.bf16.msra.mxu1 %v8086_v28  ;;  %8328 = vmatprep.subr.bf16.mxu0 %v8091_v33  ;;  %v8145_v28 = vld [vmem:[#allocation7 + $0xb78] sm:$0xff]  ;;  %v8147_v33 = vld [vmem:[#allocation7 + $0xb88] sm:$0xff] }
0x243b   :  { %8492 = vmatprep.subr.bf16.mxu1 %v8093_v16  ;;  %v8144_v16 = vld [vmem:[#allocation7 + $0xb70] sm:$0xff] }
0x243d   :  { %8329 = vmatpush1.bf16.msra.mxu0 %v8090_v35  ;;  %v8146_v35 = vld [vmem:[#allocation7 + $0xb80] sm:$0xff] }
0x243e   :  { %8493 = vmatpush1.bf16.msra.mxu1 %v8092_v20  ;;  %8330 = vmatprep.subr.bf16.mxu0 %v8097_v10  ;;  %v8151_v20 = vld [vmem:[#allocation7 + $0xba8] sm:$0xff]  ;;  %v8153_v10 = vld [vmem:[#allocation7 + $0xbb8] sm:$0xff] }
0x243f   :  { %8494 = vmatprep.subr.bf16.mxu1 %v8099_v47  ;;  %v8150_v47 = vld [vmem:[#allocation7 + $0xba0] sm:$0xff] }
0x2441   :  { %8331 = vmatpush1.bf16.msra.mxu0 %v8096_v29  ;;  %v8152_v29 = vld [vmem:[#allocation7 + $0xbb0] sm:$0xff] }
0x2442   :  { %8495 = vmatpush1.bf16.msra.mxu1 %v8098_v12  ;;  %8332 = vmatprep.subr.bf16.mxu0 %v8103_v40  ;;  %v8157_v12 = vld [vmem:[#allocation7 + $0xbd8] sm:$0xff]  ;;  %v8159_v40 = vld [vmem:[#allocation7 + $0xbe8] sm:$0xff] }
0x2443   :  { %8496 = vmatprep.subr.bf16.mxu1 %v8105_v25  ;;  %v8156_v25 = vld [vmem:[#allocation7 + $0xbd0] sm:$0xff] }
0x2445   :  { %8333 = vmatpush1.bf16.msra.mxu0 %v8102_v14  ;;  %v8158_v14 = vld [vmem:[#allocation7 + $0xbe0] sm:$0xff] }
0x2446   :  { %8497 = vmatpush1.bf16.msra.mxu1 %v8104_v11  ;;  %8334 = vmatprep.subr.bf16.mxu0 %v8109_v50  ;;  %v7783_v11 = vld [vmem:[#allocation7 + $0x28] sm:$0xff]  ;;  %v12771_v50 = vpack.c.bf16 %v7764_v1, %v7764_v1  ;;  %v7801_v1 = vld [vmem:[#allocation7 + $0xb8] sm:$0xff] }
0x2447   :  { %8498 = vmatprep.subr.bf16.mxu1 %v8111_v48  ;;  %v7782_v48 = vld [vmem:[#allocation7 + $0x20] sm:$0xff] }
0x2449   :  { %8335 = vmatpush1.bf16.msra.mxu0 %v8108_v13  ;;  %v7789_v13 = vld [vmem:[#allocation7 + $0x58] sm:$0xff] }
0x244a   :  { %8499 = vmatpush1.bf16.msra.mxu1 %v8110_v2  ;;  %8336 = vmatprep.subr.bf16.mxu0 %v8115_v27  ;;  %v7788_v2 = vld [vmem:[#allocation7 + $0x50] sm:$0xff]  ;;  %v7795_v27 = vld [vmem:[#allocation7 + $0x88] sm:$0xff] }
0x244b   :  { %8500 = vmatprep.subr.bf16.mxu1 %v8117_v3  ;;  %v7800_v3 = vld [vmem:[#allocation7 + $0xb0] sm:$0xff] }
0x244d   :  { %8337 = vmatpush1.bf16.msra.mxu0 %v8114_v30  ;;  %v7807_v30 = vld [vmem:[#allocation7 + $0xe8] sm:$0xff] }
0x244e   :  { %8501 = vmatpush1.bf16.msra.mxu1 %v8116_v4  ;;  %8338 = vmatprep.subr.bf16.mxu0 %v8121_v6  ;;  %v7806_v4 = vld [vmem:[#allocation7 + $0xe0] sm:$0xff]  ;;  %v7813_v6 = vld [vmem:[#allocation7 + $0x118] sm:$0xff] }
0x244f   :  { %8502 = vmatprep.subr.bf16.mxu1 %v8123_v0  ;;  %v7812_v0 = vld [vmem:[#allocation7 + $0x110] sm:$0xff] }
0x2451   :  { %8339 = vmatpush1.bf16.msra.mxu0 %v8120_v54  ;;  %v7819_v54 = vld [vmem:[#allocation7 + $0x148] sm:$0xff] }
0x2452   :  { %8503 = vmatpush1.bf16.msra.mxu1 %v8122_v61  ;;  %8340 = vmatprep.subr.bf16.mxu0 %v8127_v59  ;;  %v7825_v61 = vld [vmem:[#allocation7 + $0x178] sm:$0xff]  ;;  %v7824_v59 = vld [vmem:[#allocation7 + $0x170] sm:$0xff] }
0x2453   :  { %8504 = vmatprep.subr.bf16.mxu1 %v8129_v17  ;;  %v7831_v17 = vld [vmem:[#allocation7 + $0x1a8] sm:$0xff] }
0x2455   :  { %8341 = vmatpush1.bf16.msra.mxu0 %v8126_v34  ;;  %v7830_v34 = vld [vmem:[#allocation7 + $0x1a0] sm:$0xff] }
0x2456   :  { %8505 = vmatpush1.bf16.msra.mxu1 %v8128_v7  ;;  %8342 = vmatprep.subr.bf16.mxu0 %v8133_v39  ;;  %v7837_v7 = vld [vmem:[#allocation7 + $0x1d8] sm:$0xff]  ;;  %v7836_v39 = vld [vmem:[#allocation7 + $0x1d0] sm:$0xff] }
0x2457   :  { %8506 = vmatprep.subr.bf16.mxu1 %v8135_v18  ;;  %v7843_v18 = vld [vmem:[#allocation7 + $0x208] sm:$0xff] }
0x2459   :  { %8343 = vmatpush1.bf16.msra.mxu0 %v8132_v24  ;;  %v7842_v24 = vld [vmem:[#allocation7 + $0x200] sm:$0xff] }
0x245a   :  { %8507 = vmatpush1.bf16.msra.mxu1 %v8134_v31  ;;  %8344 = vmatprep.subr.bf16.mxu0 %v8139_v55  ;;  %v7849_v31 = vld [vmem:[#allocation7 + $0x238] sm:$0xff]  ;;  %v7848_v55 = vld [vmem:[#allocation7 + $0x230] sm:$0xff] }
0x245b   :  { %8508 = vmatprep.subr.bf16.mxu1 %v8141_v45  ;;  %v7855_v45 = vld [vmem:[#allocation7 + $0x268] sm:$0xff] }
0x245d   :  { %8345 = vmatpush1.bf16.msra.mxu0 %v8138_v56  ;;  %v7854_v56 = vld [vmem:[#allocation7 + $0x260] sm:$0xff] }
0x245e   :  { %8509 = vmatpush1.bf16.msra.mxu1 %v8140_v37  ;;  %8346 = vmatprep.subr.bf16.mxu0 %v8145_v28  ;;  %v7861_v37 = vld [vmem:[#allocation7 + $0x298] sm:$0xff]  ;;  %v7860_v28 = vld [vmem:[#allocation7 + $0x290] sm:$0xff] }
0x245f   :  { %8510 = vmatprep.subr.bf16.mxu1 %v8147_v33  ;;  %v7867_v33 = vld [vmem:[#allocation7 + $0x2c8] sm:$0xff] }
0x2461   :  { %8347 = vmatpush1.bf16.msra.mxu0 %v8144_v16  ;;  %v7866_v16 = vld [vmem:[#allocation7 + $0x2c0] sm:$0xff] }
0x2462   :  { %8511 = vmatpush1.bf16.msra.mxu1 %v8146_v35  ;;  %8348 = vmatprep.subr.bf16.mxu0 %v8151_v20  ;;  %v7873_v35 = vld [vmem:[#allocation7 + $0x2f8] sm:$0xff]  ;;  %v7872_v20 = vld [vmem:[#allocation7 + $0x2f0] sm:$0xff] }
0x2463   :  { %8512 = vmatprep.subr.bf16.mxu1 %v8153_v10  ;;  %v7879_v10 = vld [vmem:[#allocation7 + $0x328] sm:$0xff] }
0x2465   :  { %8349 = vmatpush1.bf16.msra.mxu0 %v8150_v47  ;;  %v7878_v47 = vld [vmem:[#allocation7 + $0x320] sm:$0xff] }
0x2466   :  { %8513 = vmatpush1.bf16.msra.mxu1 %v8152_v29  ;;  %8350 = vmatprep.subr.bf16.mxu0 %v8157_v12  ;;  %v7885_v29 = vld [vmem:[#allocation7 + $0x358] sm:$0xff]  ;;  %v7884_v12 = vld [vmem:[#allocation7 + $0x350] sm:$0xff] }
0x2467   :  { %8514 = vmatprep.subr.bf16.mxu1 %v8159_v40  ;;  %v7891_v40 = vld [vmem:[#allocation7 + $0x388] sm:$0xff] }
0x2469   :  { %8351 = vmatpush1.bf16.msra.mxu0 %v8156_v25  ;;  %v7890_v25 = vld [vmem:[#allocation7 + $0x380] sm:$0xff] }
0x246a   :  { %8515 = vmatpush1.bf16.msra.mxu1 %v8158_v14  ;;  %8525 = vmatprep.subr.bf16.mxu0 %v7783_v11  ;;  %v7897_v14 = vld [vmem:[#allocation7 + $0x3b8] sm:$0xff]  ;;  %v7896_v11 = vld [vmem:[#allocation7 + $0x3b0] sm:$0xff] }
0x246c   :  { %8353 = vmatmul.mubr.bf16.vlgmr.msra.gmra.mrb[88].mxu0 %v12771_v50 }
0x246d   :  { %8517 = vmatmul.mubr.bf16.vlgmr.msra.gmra.mrb[84].mxu1 %v12771_v50  ;;  %8526 = vmatpush1.bf16.msra.mxu0 %v7782_v48  ;;  %v7903_v48 = vld [vmem:[#allocation7 + $0x3e8] sm:$0xff] }
0x246e   :  { %8557 = vmatprep.mubr.bf16.mxu0 %v12722_v21  ;;  %8527 = vmatprep.subr.bf16.mxu0 %v7789_v13  ;;  %v7818_v21 = vld [vmem:[#allocation7 + $0x140] sm:$0xff] }
0x246f   :  { %v7902_v13 = vld [vmem:[#allocation7 + $0x3e0] sm:$0xff] }
0x2471   :  { %8528 = vmatpush1.bf16.msra.mxu0 %v7788_v2  ;;  %v7909_v2 = vld [vmem:[#allocation7 + $0x418] sm:$0xff] }
0x2472   :  { %8529 = vmatprep.subr.bf16.mxu0 %v7795_v27  ;;  %v7915_v27 = vld [vmem:[#allocation7 + $0x448] sm:$0xff] }
0x2475   :  { %8530 = vmatpush1.bf16.msra.mxu0 %v7794_v32  ;;  %v7921_v32 = vld [vmem:[#allocation7 + $0x478] sm:$0xff] }
0x2476   :  { %8531 = vmatprep.subr.bf16.mxu0 %v7801_v1  ;;  %v7920_v1 = vld [vmem:[#allocation7 + $0x470] sm:$0xff] }
0x2479   :  { %8532 = vmatpush1.bf16.msra.mxu0 %v7800_v3  ;;  %v7927_v3 = vld [vmem:[#allocation7 + $0x4a8] sm:$0xff] }
0x247a   :  { %8533 = vmatprep.subr.bf16.mxu0 %v7807_v30  ;;  %v7926_v30 = vld [vmem:[#allocation7 + $0x4a0] sm:$0xff] }
0x247d   :  { %8534 = vmatpush1.bf16.msra.mxu0 %v7806_v4  ;;  %v7933_v4 = vld [vmem:[#allocation7 + $0x4d8] sm:$0xff] }
0x247e   :  { %8535 = vmatprep.subr.bf16.mxu0 %v7813_v6  ;;  %v7932_v6 = vld [vmem:[#allocation7 + $0x4d0] sm:$0xff] }
0x2481   :  { %8536 = vmatpush1.bf16.msra.mxu0 %v7812_v0  ;;  %v7939_v0 = vld [vmem:[#allocation7 + $0x508] sm:$0xff] }
0x2482   :  { %8537 = vmatprep.subr.bf16.mxu0 %v7819_v54  ;;  %v7938_v54 = vld [vmem:[#allocation7 + $0x500] sm:$0xff] }
0x2485   :  { %8538 = vmatpush1.bf16.msra.mxu0 %v7818_v21  ;;  %v7945_v21 = vld [vmem:[#allocation7 + $0x538] sm:$0xff] }
0x2486   :  { %8539 = vmatprep.subr.bf16.mxu0 %v7825_v61  ;;  %v7944_v61 = vld [vmem:[#allocation7 + $0x530] sm:$0xff] }
0x2489   :  { %8540 = vmatpush1.bf16.msra.mxu0 %v7824_v59  ;;  %v7951_v59 = vld [vmem:[#allocation7 + $0x568] sm:$0xff] }
0x248a   :  { %8541 = vmatprep.subr.bf16.mxu0 %v7831_v17  ;;  %v7950_v17 = vld [vmem:[#allocation7 + $0x560] sm:$0xff] }
0x248d   :  { %8542 = vmatpush1.bf16.msra.mxu0 %v7830_v34  ;;  %v7957_v34 = vld [vmem:[#allocation7 + $0x598] sm:$0xff] }
0x248e   :  { %8543 = vmatprep.subr.bf16.mxu0 %v7837_v7  ;;  %v7956_v7 = vld [vmem:[#allocation7 + $0x590] sm:$0xff] }
0x2491   :  { %8544 = vmatpush1.bf16.msra.mxu0 %v7836_v39  ;;  %v7963_v39 = vld [vmem:[#allocation7 + $0x5c8] sm:$0xff] }
0x2492   :  { %8545 = vmatprep.subr.bf16.mxu0 %v7843_v18  ;;  %v7962_v18 = vld [vmem:[#allocation7 + $0x5c0] sm:$0xff] }
0x2495   :  { %8546 = vmatpush1.bf16.msra.mxu0 %v7842_v24  ;;  %v7969_v24 = vld [vmem:[#allocation7 + $0x5f8] sm:$0xff] }
0x2496   :  { %8547 = vmatprep.subr.bf16.mxu0 %v7849_v31  ;;  %v7968_v31 = vld [vmem:[#allocation7 + $0x5f0] sm:$0xff] }
0x2499   :  { %8548 = vmatpush1.bf16.msra.mxu0 %v7848_v55  ;;  %v7975_v55 = vld [vmem:[#allocation7 + $0x628] sm:$0xff] }
0x249a   :  { %8549 = vmatprep.subr.bf16.mxu0 %v7855_v45  ;;  %v7974_v45 = vld [vmem:[#allocation7 + $0x620] sm:$0xff] }
0x249d   :  { %8550 = vmatpush1.bf16.msra.mxu0 %v7854_v56  ;;  %v7981_v56 = vld [vmem:[#allocation7 + $0x658] sm:$0xff] }
0x249e   :  { %8551 = vmatprep.subr.bf16.mxu0 %v7861_v37  ;;  %v7980_v37 = vld [vmem:[#allocation7 + $0x650] sm:$0xff] }
0x24a1   :  { %8552 = vmatpush1.bf16.msra.mxu0 %v7860_v28  ;;  %v7987_v28 = vld [vmem:[#allocation7 + $0x688] sm:$0xff] }
0x24a2   :  { %8553 = vmatprep.subr.bf16.mxu0 %v7867_v33  ;;  %v7986_v33 = vld [vmem:[#allocation7 + $0x680] sm:$0xff] }
0x24a5   :  { %8554 = vmatpush1.bf16.msra.mxu0 %v7866_v16  ;;  %v7993_v16 = vld [vmem:[#allocation7 + $0x6b8] sm:$0xff] }
0x24a6   :  { %8555 = vmatprep.subr.bf16.mxu0 %v7873_v35  ;;  %v7992_v35 = vld [vmem:[#allocation7 + $0x6b0] sm:$0xff] }
0x24a9   :  { %8556 = vmatpush1.bf16.msra.mxu0 %v7872_v20  ;;  %v7999_v20 = vld [vmem:[#allocation7 + $0x6e8] sm:$0xff] }
0x24aa   :  { %8566 = vmatprep.subr.bf16.mxu0 %v7879_v10  ;;  %v7998_v10 = vld [vmem:[#allocation7 + $0x6e0] sm:$0xff] }
0x24ac   :  { %8558 = vmatmul.mubr.bf16.vlgmr.msra.gmra.mrb[92].mxu0 %v12729_v53  ;;  %v7908_v53 = vld [vmem:[#allocation7 + $0x410] sm:$0xff] }
0x24ad   :  { %8567 = vmatpush1.bf16.msra.mxu0 %v7878_v47  ;;  %8598 = vmatprep.mubr.bf16.mxu0 %v12734_v60  ;;  %v7914_v60 = vld [vmem:[#allocation7 + $0x440] sm:$0xff]  ;;  %v8005_v47 = vld [vmem:[#allocation7 + $0x718] sm:$0xff] }
0x24ae   :  { %8568 = vmatprep.subr.bf16.mxu0 %v7885_v29  ;;  %v8011_v29 = vld [vmem:[#allocation7 + $0x748] sm:$0xff] }
0x24b1   :  { %8569 = vmatpush1.bf16.msra.mxu0 %v7884_v12  ;;  %v8017_v12 = vld [vmem:[#allocation7 + $0x778] sm:$0xff] }
0x24b2   :  { %8570 = vmatprep.subr.bf16.mxu0 %v7891_v40  ;;  %v8016_v40 = vld [vmem:[#allocation7 + $0x770] sm:$0xff] }
0x24b5   :  { %8571 = vmatpush1.bf16.msra.mxu0 %v7890_v25  ;;  %v8023_v25 = vld [vmem:[#allocation7 + $0x7a8] sm:$0xff] }
0x24b6   :  { %8572 = vmatprep.subr.bf16.mxu0 %v7897_v14  ;;  %v8022_v14 = vld [vmem:[#allocation7 + $0x7a0] sm:$0xff] }
0x24b9   :  { %8573 = vmatpush1.bf16.msra.mxu0 %v7896_v11  ;;  %v8029_v11 = vld [vmem:[#allocation7 + $0x7d8] sm:$0xff] }
0x24ba   :  { %8574 = vmatprep.subr.bf16.mxu0 %v7903_v48  ;;  %v8028_v48 = vld [vmem:[#allocation7 + $0x7d0] sm:$0xff] }
0x24bd   :  { %8575 = vmatpush1.bf16.msra.mxu0 %v7902_v13  ;;  %v8035_v13 = vld [vmem:[#allocation7 + $0x808] sm:$0xff] }
0x24be   :  { %8576 = vmatprep.subr.bf16.mxu0 %v7909_v2  ;;  %v8034_v2 = vld [vmem:[#allocation7 + $0x800] sm:$0xff] }
0x24c1   :  { %8577 = vmatpush1.bf16.msra.mxu0 %v7908_v53  ;;  %v8041_v53 = vld [vmem:[#allocation7 + $0x838] sm:$0xff] }
0x24c2   :  { %8578 = vmatprep.subr.bf16.mxu0 %v7915_v27  ;;  %v8040_v27 = vld [vmem:[#allocation7 + $0x830] sm:$0xff] }
0x24c5   :  { %8579 = vmatpush1.bf16.msra.mxu0 %v7914_v60  ;;  %v8047_v60 = vld [vmem:[#allocation7 + $0x868] sm:$0xff] }
0x24c6   :  { %8580 = vmatprep.subr.bf16.mxu0 %v7921_v32  ;;  %v8046_v32 = vld [vmem:[#allocation7 + $0x860] sm:$0xff] }
0x24c9   :  { %8581 = vmatpush1.bf16.msra.mxu0 %v7920_v1  ;;  %v8053_v1 = vld [vmem:[#allocation7 + $0x898] sm:$0xff] }
0x24ca   :  { %8582 = vmatprep.subr.bf16.mxu0 %v7927_v3  ;;  %v8052_v3 = vld [vmem:[#allocation7 + $0x890] sm:$0xff] }
0x24cd   :  { %8583 = vmatpush1.bf16.msra.mxu0 %v7926_v30  ;;  %v8059_v30 = vld [vmem:[#allocation7 + $0x8c8] sm:$0xff] }
0x24ce   :  { %8584 = vmatprep.subr.bf16.mxu0 %v7933_v4  ;;  %v8058_v4 = vld [vmem:[#allocation7 + $0x8c0] sm:$0xff] }
0x24d1   :  { %8585 = vmatpush1.bf16.msra.mxu0 %v7932_v6  ;;  %v8065_v6 = vld [vmem:[#allocation7 + $0x8f8] sm:$0xff] }
0x24d2   :  { %8586 = vmatprep.subr.bf16.mxu0 %v7939_v0  ;;  %v8064_v0 = vld [vmem:[#allocation7 + $0x8f0] sm:$0xff] }
0x24d5   :  { %8587 = vmatpush1.bf16.msra.mxu0 %v7938_v54  ;;  %v8071_v54 = vld [vmem:[#allocation7 + $0x928] sm:$0xff] }
0x24d6   :  { %8588 = vmatprep.subr.bf16.mxu0 %v7945_v21  ;;  %v8070_v21 = vld [vmem:[#allocation7 + $0x920] sm:$0xff] }
0x24d9   :  { %8589 = vmatpush1.bf16.msra.mxu0 %v7944_v61  ;;  %v8077_v61 = vld [vmem:[#allocation7 + $0x958] sm:$0xff] }
0x24da   :  { %8590 = vmatprep.subr.bf16.mxu0 %v7951_v59  ;;  %v8076_v59 = vld [vmem:[#allocation7 + $0x950] sm:$0xff] }
0x24dd   :  { %8591 = vmatpush1.bf16.msra.mxu0 %v7950_v17  ;;  %v8083_v17 = vld [vmem:[#allocation7 + $0x988] sm:$0xff] }
0x24de   :  { %8592 = vmatprep.subr.bf16.mxu0 %v7957_v34  ;;  %v8082_v34 = vld [vmem:[#allocation7 + $0x980] sm:$0xff] }
0x24e1   :  { %8593 = vmatpush1.bf16.msra.mxu0 %v7956_v7  ;;  %v8089_v7 = vld [vmem:[#allocation7 + $0x9b8] sm:$0xff] }
0x24e2   :  { %8594 = vmatprep.subr.bf16.mxu0 %v7963_v39  ;;  %v8088_v39 = vld [vmem:[#allocation7 + $0x9b0] sm:$0xff] }
0x24e5   :  { %8595 = vmatpush1.bf16.msra.mxu0 %v7962_v18  ;;  %v8095_v18 = vld [vmem:[#allocation7 + $0x9e8] sm:$0xff] }
0x24e6   :  { %8596 = vmatprep.subr.bf16.mxu0 %v7969_v24  ;;  %v8094_v24 = vld [vmem:[#allocation7 + $0x9e0] sm:$0xff] }
0x24e9   :  { %8597 = vmatpush1.bf16.msra.mxu0 %v7968_v31  ;;  %v8101_v31 = vld [vmem:[#allocation7 + $0xa18] sm:$0xff] }
0x24ea   :  { %8607 = vmatprep.subr.bf16.mxu0 %v7975_v55 }
0x24ec   :  { %8599 = vmatmul.mubr.bf16.vlgmr.msra.gmra.mrb[92].mxu0 %v12743_v57  ;;  %v8004_v57 = vld [vmem:[#allocation7 + $0x710] sm:$0xff] }
0x24ed   :  { %8608 = vmatpush1.bf16.msra.mxu0 %v7974_v45  ;;  %8639 = vmatprep.mubr.bf16.mxu0 %v12748_v8  ;;  %v8010_v8 = vld [vmem:[#allocation7 + $0x740] sm:$0xff]  ;;  %v8107_v45 = vld [vmem:[#allocation7 + $0xa48] sm:$0xff] }
0x24ee   :  { %8609 = vmatprep.subr.bf16.mxu0 %v7981_v56 }
0x24f1   :  { %8610 = vmatpush1.bf16.msra.mxu0 %v7980_v37 }
0x24f2   :  { %8611 = vmatprep.subr.bf16.mxu0 %v7987_v28 }
0x24f5   :  { %8612 = vmatpush1.bf16.msra.mxu0 %v7986_v33 }
0x24f6   :  { %8613 = vmatprep.subr.bf16.mxu0 %v7993_v16 }
0x24f9   :  { %8614 = vmatpush1.bf16.msra.mxu0 %v7992_v35  ;;  %v8106_v35 = vld [vmem:[#allocation7 + $0xa40] sm:$0xff] }
0x24fa   :  { %8615 = vmatprep.subr.bf16.mxu0 %v7999_v20 }
0x24fd   :  { %8616 = vmatpush1.bf16.msra.mxu0 %v7998_v10  ;;  %v8113_v10 = vld [vmem:[#allocation7 + $0xa78] sm:$0xff] }
0x24fe   :  { %8617 = vmatprep.subr.bf16.mxu0 %v8005_v47  ;;  %v8112_v47 = vld [vmem:[#allocation7 + $0xa70] sm:$0xff] }
0x2501   :  { %8618 = vmatpush1.bf16.msra.mxu0 %v8004_v57  ;;  %v8119_v57 = vld [vmem:[#allocation7 + $0xaa8] sm:$0xff] }
0x2502   :  { %8619 = vmatprep.subr.bf16.mxu0 %v8011_v29  ;;  %v8118_v29 = vld [vmem:[#allocation7 + $0xaa0] sm:$0xff] }
0x2505   :  { %8620 = vmatpush1.bf16.msra.mxu0 %v8010_v8  ;;  %v8125_v8 = vld [vmem:[#allocation7 + $0xad8] sm:$0xff] }
0x2506   :  { %8621 = vmatprep.subr.bf16.mxu0 %v8017_v12  ;;  %v8124_v12 = vld [vmem:[#allocation7 + $0xad0] sm:$0xff] }
0x2509   :  { %8622 = vmatpush1.bf16.msra.mxu0 %v8016_v40  ;;  %v8131_v40 = vld [vmem:[#allocation7 + $0xb08] sm:$0xff] }
0x250a   :  { %8623 = vmatprep.subr.bf16.mxu0 %v8023_v25  ;;  %v8130_v25 = vld [vmem:[#allocation7 + $0xb00] sm:$0xff] }
0x250d   :  { %8624 = vmatpush1.bf16.msra.mxu0 %v8022_v14  ;;  %v8137_v14 = vld [vmem:[#allocation7 + $0xb38] sm:$0xff] }
0x250e   :  { %8625 = vmatprep.subr.bf16.mxu0 %v8029_v11  ;;  %v8136_v11 = vld [vmem:[#allocation7 + $0xb30] sm:$0xff] }
0x2511   :  { %8626 = vmatpush1.bf16.msra.mxu0 %v8028_v48  ;;  %v8143_v48 = vld [vmem:[#allocation7 + $0xb68] sm:$0xff] }
0x2512   :  { %8627 = vmatprep.subr.bf16.mxu0 %v8035_v13  ;;  %v8142_v13 = vld [vmem:[#allocation7 + $0xb60] sm:$0xff] }
0x2515   :  { %8628 = vmatpush1.bf16.msra.mxu0 %v8034_v2  ;;  %v8149_v2 = vld [vmem:[#allocation7 + $0xb98] sm:$0xff] }
0x2516   :  { %8629 = vmatprep.subr.bf16.mxu0 %v8041_v53  ;;  %v8148_v53 = vld [vmem:[#allocation7 + $0xb90] sm:$0xff] }
0x2519   :  { %8630 = vmatpush1.bf16.msra.mxu0 %v8040_v27  ;;  %v8155_v27 = vld [vmem:[#allocation7 + $0xbc8] sm:$0xff] }
0x251a   :  { %8631 = vmatprep.subr.bf16.mxu0 %v8047_v60  ;;  %v8154_v60 = vld [vmem:[#allocation7 + $0xbc0] sm:$0xff] }
0x251d   :  { %8632 = vmatpush1.bf16.msra.mxu0 %v8046_v32  ;;  %v8161_v32 = vld [vmem:[#allocation7 + $0xbf8] sm:$0xff] }
0x251e   :  { %8633 = vmatprep.subr.bf16.mxu0 %v8053_v1  ;;  %v8160_v1 = vld [vmem:[#allocation7 + $0xbf0] sm:$0xff] }
0x2521   :  { %8634 = vmatpush1.bf16.msra.mxu0 %v8052_v3  ;;  %v8163_v3 = vld [vmem:[#allocation24 + $0x3] ss:$8 sm:$0xf] }
0x2522   :  { %8635 = vmatprep.subr.bf16.mxu0 %v8059_v30  ;;  %v8164_v30 = vld [vmem:[#allocation24 + $0x3] ss:$8 sm:$0x30] }
0x2525   :  { %8636 = vmatpush1.bf16.msra.mxu0 %v8058_v4  ;;  %v8165_v4 = vor.u32 %v8164_v30, %v8163_v3 }
0x2526   :  { %8637 = vmatprep.subr.bf16.mxu0 %v8065_v6 }
0x2527   :  { %v8170_v6 = vrot.slane %v8165_v4, %v11570_v62 }
0x2529   :  { %8638 = vmatpush1.bf16.msra.mxu0 %v8064_v0  ;;  %v8174_v0 = vrot.slane %v8165_v4, %v11573_v63 }
0x252a   :  { %8648 = vmatprep.subr.bf16.mxu0 %v8071_v54 }
0x252c   :  { %8640 = vmatmul.mubr.bf16.vlgmr.msra.gmra.mrb[92].mxu0 %v12757_v38  ;;  %v8100_v38 = vld [vmem:[#allocation7 + $0xa10] sm:$0xff] }
0x252d   :  { %8649 = vmatpush1.bf16.msra.mxu0 %v8070_v21  ;;  %8680 = vmatprep.mubr.bf16.mxu0 %v12762_v22 }
0x252e   :  { %8650 = vmatprep.subr.bf16.mxu0 %v8077_v61  ;;  %v8178_v61 = vrot.slane %v8165_v4, %v11583_v41 }
0x2531   :  { %8651 = vmatpush1.bf16.msra.mxu0 %v8076_v59 }
0x2532   :  { %8652 = vmatprep.subr.bf16.mxu0 %v8083_v17 }
0x2535   :  { %8653 = vmatpush1.bf16.msra.mxu0 %v8082_v34 }
0x2536   :  { %8654 = vmatprep.subr.bf16.mxu0 %v8089_v7  ;;  %v8182_v7 = vrot.slane %v8165_v4, %v11603_v36 }
0x2539   :  { %8655 = vmatpush1.bf16.msra.mxu0 %v8088_v39 }
0x253a   :  { %8656 = vmatprep.subr.bf16.mxu0 %v8095_v18 }
0x253d   :  { %8657 = vmatpush1.bf16.msra.mxu0 %v8094_v24 }
0x253e   :  { %8658 = vmatprep.subr.bf16.mxu0 %v8101_v31 }
0x253f   :  { %v8354_v55 = vpop.f32.mrb[88].mxu0 }
0x2540   :  { %v8518_v22 = vpop.f32.mrb[84].mxu1  ;;  %v8356_v56 = vpop.f32.mrb[89].mxu0  ;;  %v10310_v54 = vadd.f32 %v8354_v55, %v8170_v6 }
0x2541   :  { %v8520_v37 = vpop.f32.mrb[85].mxu1  ;;  %v8358_v28 = vpop.f32.mrb[90].mxu0  ;;  %8659 = vmatpush1.bf16.msra.mxu0 %v8100_v38  ;;  %v10311_v21 = vadd.f32 %v8356_v56, %v8174_v0  ;;  %v10312_v34 = vadd.f32 %v8518_v22, %v8178_v61  ;;  %v8971_v61 = vld [vmem:[%s13277_s11 + $0x90] sm:$0xff] }
0x2542   :  { %v8522_v33 = vpop.f32.mrb[86].mxu1  ;;  %v8359_v16 = vpop.f32.mrb[91].mxu0  ;;  %8660 = vmatprep.subr.bf16.mxu0 %v8107_v45  ;;  %v8695_v59 = vrot.slane %v10310_v54, 1  ;;  %v10313_v24 = vadd.f32 %v8520_v37, %v8182_v7  ;;  %v8713_v22 = vadd.f32 %v10310_v54, %v12603_v23  ;;  %v8190_v23 = vrot.slane %v8165_v4, %v12578_v19  ;;  %v8955_v7 = vld [vmem:[%s13277_s11 + $0x10] sm:$0xff] }
0x2543   :  { %v8523_v20 = vpop.f32.mrb[87].mxu1  ;;  %v8696_v17 = vrot.slane %v10311_v21, 1  ;;  %v8697_v18 = vrot.slane %v10312_v34, 1  ;;  %v8714_v56 = vadd.f32 %v10311_v21, %v12605_v26  ;;  %v8186_v16 = vrot.slane %v8165_v4, %v12575_v46  ;;  %v8954_v21 = vld [vmem:[%s13277_s11 + $0x8] sm:$0xff] }
0x2544   :  { %v12788_v39 = vadd.f32 %v8695_v59, %v12615_v49  ;;  %v8698_v45 = vrot.slane %v10313_v24, 1  ;;  %v8715_v49 = vadd.f32 %v10312_v34, %v12607_v9  ;;  %v8716_v9 = vadd.f32 %v10313_v24, %v12609_v44  ;;  %v8972_v59 = vld [vmem:[%s13277_s11 + $0x98] sm:$0xff] }
0x2545   :  { %8661 = vmatpush1.bf16.msra.mxu0 %v8106_v35  ;;  %v12796_v55 = vadd.f32 %v8697_v18, %v12619_v5  ;;  %v10210_v34 = vpack.c.bf16 %v8972_v59, %v8971_v61  ;;  %v8956_v18 = vld [vmem:[%s13277_s11 + $0x18] sm:$0xff]  ;;  %v8974_v61 = vld [vmem:[%s13277_s11 + $0xa8] sm:$0xff] }
0x2546   :  { %8662 = vmatprep.subr.bf16.mxu0 %v8113_v10  ;;  %v8745_v31 = vrot.slane %v12788_v39, 7  ;;  %v8722_v33 = vadd.f32 %v8698_v45, %v12621_v42  ;;  %v10212_v24 = vpack.c.bf16 %v8956_v18, %v8955_v7  ;;  %v8975_v18 = vld [vmem:[%s13277_s11 + $0xb0] sm:$0xff] }
0x2547   :  { %v8749_v37 = vrot.slane %v12796_v55, 7 }
0x2548   :  { %v8746_v28 = vsel %vm3764_vm2, %v8745_v31, %v8713_v22  ;;  %v8751_v20 = vrot.slane %v8722_v33, 7 }
0x2549   :  { %8663 = vmatpush1.bf16.msra.mxu0 %v8112_v47  ;;  %v8763_v5 = vsel %vm6582_vm1, %v8746_v28, 0.0  ;;  %v8750_v26 = vsel %vm3764_vm2, %v8749_v37, %v8715_v49 }
0x254a   :  { %8664 = vmatprep.subr.bf16.mxu0 %v8119_v57 }
0x254d   :  { %8665 = vmatpush1.bf16.msra.mxu0 %v8118_v29 }
0x254e   :  { %8666 = vmatprep.subr.bf16.mxu0 %v8125_v8  ;;  %v8766_v8 = vsel %vm6582_vm1, %v8750_v26, 0.0 }
0x2551   :  { %8667 = vmatpush1.bf16.msra.mxu0 %v8124_v12 }
0x2552   :  { %8668 = vmatprep.subr.bf16.mxu0 %v8131_v40  ;;  %v8752_v40 = vsel %vm3764_vm2, %v8751_v20, %v8716_v9 }
0x2555   :  { %8669 = vmatpush1.bf16.msra.mxu0 %v8130_v25 }
0x2556   :  { %8670 = vmatprep.subr.bf16.mxu0 %v8137_v14 }
0x2559   :  { %8671 = vmatpush1.bf16.msra.mxu0 %v8136_v11 }
0x255a   :  { %8672 = vmatprep.subr.bf16.mxu0 %v8143_v48 }
0x255d   :  { %8673 = vmatpush1.bf16.msra.mxu0 %v8142_v13 }
0x255e   :  { %8674 = vmatprep.subr.bf16.mxu0 %v8149_v2  ;;  %v8768_v2 = vsel %vm6582_vm1, %v8752_v40, 0.0 }
0x2561   :  { %8675 = vmatpush1.bf16.msra.mxu0 %v8148_v53 }
0x2562   :  { %8676 = vmatprep.subr.bf16.mxu0 %v8155_v27 }
0x2565   :  { %8677 = vmatpush1.bf16.msra.mxu0 %v8154_v60 }
0x2566   :  { %8678 = vmatprep.subr.bf16.mxu0 %v8161_v32 }
0x2569   :  { %8679 = vmatpush1.bf16.msra.mxu0 %v8160_v1 }
0x256c   :  { %8681 = vmatmul.mubr.bf16.vlgmr.msra.gmra.mrb[92].mxu0 %v12771_v50  ;;  %v12791_v50 = vadd.f32 %v8696_v17, %v12617_v43 }
0x256e   :  { %v8747_v38 = vrot.slane %v12791_v50, 7 }
0x2570   :  { %v8748_v43 = vsel %vm3764_vm2, %v8747_v38, %v8714_v56 }
0x2571   :  { %v8764_v35 = vsel %vm6582_vm1, %v8748_v43, 0.0 }
0x2572   :  { %v8765_v47 = vadd.f32 %v8764_v35, %v8763_v5 }
0x2574   :  { %v8767_v48 = vadd.f32 %v8766_v8, %v8765_v47 }
0x2576   :  { %v8769_v3 = vadd.f32 %v8768_v2, %v8767_v48 }
0x263f   :  { %v8682_v10 = vpop.f32.mrb[92].mxu0 }
0x2640   :  { %v10314_v57 = vadd.f32 %v8682_v10, %v8186_v16  ;;  %v8684_v29 = vpop.f32.mrb[93].mxu0 }
0x2641   :  { %v10315_v42 = vadd.f32 %v8684_v29, %v8190_v23  ;;  %v8686_v12 = vpop.f32.mrb[94].mxu0 }
0x2642   :  { %v8699_v25 = vrot.slane %v10314_v57, 1  ;;  %v8687_v14 = vpop.f32.mrb[95].mxu0  ;;  %v8717_v53 = vadd.f32 %v10314_v57, %v12611_v51  ;;  %v8969_v51 = vld [vmem:[%s13277_s11 + $0x80] sm:$0xff] }
0x2643   :  { %v8700_v11 = vrot.slane %v10315_v42, 1  ;;  %v8718_v60 = vadd.f32 %v10315_v42, %v12613_v58  ;;  %v8970_v58 = vld [vmem:[%s13277_s11 + $0x88] sm:$0xff] }
0x2644   :  { %v8723_v13 = vadd.f32 %v8699_v25, %v12623_v15  ;;  %v10206_v54 = vpack.c.bf16 %v8970_v58, %v8969_v51 }
0x2645   :  { %v8724_v44 = vadd.f32 %v8700_v11, %v12625_v52  ;;  %v8953_v52 = vld [vmem:[%s13277_s11] sm:$0xff] }
0x2646   :  { %v8753_v27 = vrot.slane %v8723_v13, 7  ;;  %v10208_v17 = vpack.c.bf16 %v8954_v21, %v8953_v52  ;;  %10207 = vmatprep.subr.bf16.mxu1 %v10206_v54  ;;  %v8973_v21 = vld [vmem:[%s13277_s11 + $0xa0] sm:$0xff] }
0x2647   :  { %v8755_v32 = vrot.slane %v8724_v44, 7  ;;  %v10214_v59 = vpack.c.bf16 %v8974_v61, %v8973_v21  ;;  %v8731_v21 = vld [vmem:[#allocation24 + $0x5] ss:$8 sm:$0x30] }
0x2648   :  { %v8754_v1 = vsel %vm3764_vm2, %v8753_v27, %v8717_v53  ;;  %10209 = vmatpush3.bf16.msra.mxu1 %v10208_v17  ;;  %v8957_v17 = vld [vmem:[%s13277_s11 + $0x20] sm:$0xff] }
0x2649   :  { %v8756_v30 = vsel %vm3764_vm2, %v8755_v32, %v8718_v60  ;;  %v8770_v4 = vsel %vm6582_vm1, %v8754_v1, 0.0  ;;  %10211 = vmatprep.subr.bf16.mxu1 %v10210_v34  ;;  %v8958_v34 = vld [vmem:[%s13277_s11 + $0x28] sm:$0xff] }
0x264a   :  { %v8771_v6 = vadd.f32 %v8770_v4, %v8769_v3  ;;  %v8772_v15 = vsel %vm6582_vm1, %v8756_v30, 0.0  ;;  %v10216_v7 = vpack.c.bf16 %v8958_v34, %v8957_v17 }
0x264c   :  { %v8773_v0 = vadd.f32 %v8772_v15, %v8771_v6  ;;  %10213 = vmatpush3.bf16.msra.mxu1 %v10212_v24  ;;  %v8976_v24 = vld [vmem:[%s13277_s11 + $0xb8] sm:$0xff] }
0x264d   :  { %10215 = vmatprep.subr.bf16.mxu1 %v10214_v59 }
0x264e   :  { %8774 = vadd.xlane.f32.xlu0 %v8773_v0 }
0x2650   :  { %10217 = vmatpush3.bf16.msra.mxu1 %v10216_v7 }
0x26db   :  { %v8775_v31 = vpop.xlane.xlu0 %8774 }
0x26dc   :  { %v8776_v38 = vmul.f32 0.0013020834, %v8775_v31  ;;  %v8959_v31 = vld [vmem:[%s13277_s11 + $0x30] sm:$0xff] }
0x26de   :  { %v8778_v45 = vrot.slane %v8776_v38, 1  ;;  %v12846_v28 = vsub.f32 %v8713_v22, %v8776_v38  ;;  %v12848_v43 = vsub.f32 %v8714_v56, %v8776_v38  ;;  %v12850_v37 = vsub.f32 %v8715_v49, %v8776_v38 }
0x26df   :  { %v12867_v22 = vsub.f32 %v8716_v9, %v8776_v38  ;;  %v12869_v56 = vsub.f32 %v8717_v53, %v8776_v38  ;;  %v12889_v40 = vsub.f32 %v8718_v60, %v8776_v38  ;;  %v10218_v38 = vpack.c.bf16 %v8976_v24, %v8975_v18 }
0x26e0   :  { %v12853_v16 = vsub.f32 %v12788_v39, %v8778_v45  ;;  %v12856_v5 = vsub.f32 %v12791_v50, %v8778_v45  ;;  %v12859_v35 = vsub.f32 %v12796_v55, %v8778_v45  ;;  %v12861_v23 = vsub.f32 %v8722_v33, %v8778_v45 }
0x26e1   :  { %v12863_v26 = vsub.f32 %v8723_v13, %v8778_v45  ;;  %v12865_v20 = vsub.f32 %v8724_v44, %v8778_v45  ;;  %v8793_v39 = vmul.f32 %v12846_v28, %v12846_v28  ;;  %v8794_v9 = vmul.f32 %v12848_v43, %v12848_v43  ;;  %v8960_v45 = vld [vmem:[%s13277_s11 + $0x38] sm:$0xff]  ;;  %10219 = vmatprep.subr.bf16.mxu1 %v10218_v38 }
0x26e2   :  { %v8799_v50 = vmul.f32 %v12853_v16, %v12853_v16  ;;  %v8800_v55 = vmul.f32 %v12856_v5, %v12856_v5  ;;  %v8801_v49 = vmul.f32 %v12859_v35, %v12859_v35  ;;  %v8802_v33 = vmul.f32 %v12861_v23, %v12861_v23 }
0x26e3   :  { %v8795_v10 = vmul.f32 %v12850_v37, %v12850_v37  ;;  %v8803_v47 = vmul.f32 %v12863_v26, %v12863_v26  ;;  %v8804_v57 = vmul.f32 %v12865_v20, %v12865_v20  ;;  %v8796_v25 = vmul.f32 %v12867_v22, %v12867_v22 }
0x26e4   :  { %v8817_v29 = vrot.slane %v8799_v50, 7  ;;  %v8819_v8 = vrot.slane %v8800_v55, 7  ;;  %v8821_v42 = vrot.slane %v8801_v49, 7  ;;  %v8823_v12 = vrot.slane %v8802_v33, 7  ;;  %v8978_v50 = vld [vmem:[%s13277_s11 + $0xc8] sm:$0xff]  ;;  %v8961_v33 = vld [vmem:[%s13277_s11 + $0x40] sm:$0xff] }
0x26e5   :  { %v8825_v13 = vrot.slane %v8803_v47, 7  ;;  %v8797_v53 = vmul.f32 %v12869_v56, %v12869_v56  ;;  %v8827_v60 = vrot.slane %v8804_v57, 7  ;;  %v8798_v3 = vmul.f32 %v12889_v40, %v12889_v40  ;;  %v8980_v47 = vld [vmem:[%s13277_s11 + $0xd8] sm:$0xff] }
0x26e6   :  { %v8818_v14 = vsel %vm3764_vm2, %v8817_v29, %v8793_v39  ;;  %v8820_v11 = vsel %vm3764_vm2, %v8819_v8, %v8794_v9  ;;  %v8822_v48 = vsel %vm3764_vm2, %v8821_v42, %v8795_v10  ;;  %v8824_v27 = vsel %vm3764_vm2, %v8823_v12, %v8796_v25  ;;  %v8977_v39 = vld [vmem:[%s13277_s11 + $0xc0] sm:$0xff]  ;;  %v8962_v9 = vld [vmem:[%s13277_s11 + $0x48] sm:$0xff]  ;;  %v8979_v10 = vld [vmem:[%s13277_s11 + $0xd0] sm:$0xff] }
0x26e7   :  { %v8835_v2 = vsel %vm6582_vm1, %v8818_v14, 0.0  ;;  %v8836_v44 = vsel %vm6582_vm1, %v8820_v11, 0.0  ;;  %v8838_v1 = vsel %vm6582_vm1, %v8822_v48, 0.0  ;;  %v8826_v30 = vsel %vm3764_vm2, %v8825_v13, %v8797_v53  ;;  %v8963_v8 = vld [vmem:[%s13277_s11 + $0x50] sm:$0xff]  ;;  %v8964_v42 = vld [vmem:[%s13277_s11 + $0x58] sm:$0xff]  ;;  %v8981_v12 = vld [vmem:[%s13277_s11 + $0xe0] sm:$0xff] }
0x26e8   :  { %v8837_v32 = vadd.f32 %v8836_v44, %v8835_v2  ;;  %v8840_v6 = vsel %vm6582_vm1, %v8824_v27, 0.0  ;;  %v8828_v15 = vsel %vm3764_vm2, %v8827_v60, %v8798_v3  ;;  %v8842_v51 = vsel %vm6582_vm1, %v8826_v30, 0.0  ;;  %v8982_v25 = vld [vmem:[%s13277_s11 + $0xe8] sm:$0xff]  ;;  %v8965_v48 = vld [vmem:[%s13277_s11 + $0x60] sm:$0xff]  ;;  %v8983_v2 = vld [vmem:[%s13277_s11 + $0xf0] sm:$0xff] }
0x26e9   :  { %v8844_v52 = vsel %vm6582_vm1, %v8828_v15, 0.0  ;;  %v10220_v55 = vpack.c.bf16 %v8960_v45, %v8959_v31  ;;  %v10222_v49 = vpack.c.bf16 %v8978_v50, %v8977_v39  ;;  %v10224_v57 = vpack.c.bf16 %v8962_v9, %v8961_v33  ;;  %v8966_v13 = vld [vmem:[%s13277_s11 + $0x68] sm:$0xff]  ;;  %v8984_v44 = vld [vmem:[%s13277_s11 + $0xf8] sm:$0xff]  ;;  %v8967_v60 = vld [vmem:[%s13277_s11 + $0x70] sm:$0xff] }
0x26ea   :  { %v8839_v4 = vadd.f32 %v8838_v1, %v8837_v32  ;;  %v10226_v29 = vpack.c.bf16 %v8980_v47, %v8979_v10  ;;  %v10228_v14 = vpack.c.bf16 %v8964_v42, %v8963_v8  ;;  %v10230_v11 = vpack.c.bf16 %v8982_v25, %v8981_v12  ;;  %v8968_v32 = vld [vmem:[%s13277_s11 + $0x78] sm:$0xff]  ;;  %v9001_v3 = vld [vmem:[%s13277_s11 + $0x180] sm:$0xff]  ;;  %v9002_v30 = vld [vmem:[%s13277_s11 + $0x188] sm:$0xff] }
0x26eb   :  { %10221 = vmatpush3.bf16.msra.mxu1 %v10220_v55  ;;  %v10232_v53 = vpack.c.bf16 %v8966_v13, %v8965_v48  ;;  %v10234_v27 = vpack.c.bf16 %v8984_v44, %v8983_v2  ;;  %v10236_v1 = vpack.c.bf16 %v8968_v32, %v8967_v60  ;;  %v9003_v8 = vld [vmem:[%s13277_s11 + $0x190] sm:$0xff] }
0x26ec   :  { %v8841_v0 = vadd.f32 %v8840_v6, %v8839_v4  ;;  %10223 = vmatprep.subr.bf16.mxu1 %v10222_v49  ;;  %v10238_v4 = vpack.c.bf16 %v9002_v30, %v9001_v3  ;;  %v9005_v3 = vld [vmem:[%s13277_s11 + $0x1a0] sm:$0xff]  ;;  %v9006_v30 = vld [vmem:[%s13277_s11 + $0x1a8] sm:$0xff] }
0x26ee   :  { %v8843_v58 = vadd.f32 %v8842_v51, %v8841_v0  ;;  %v8726_v51 = vld [vmem:[#allocation24 + $0x4] ss:$8 sm:$0xf] }
0x26ef   :  { %10225 = vmatpush3.bf16.msra.mxu1 %v10224_v57 }
0x26f0   :  { %v8845_v54 = vadd.f32 %v8844_v52, %v8843_v58  ;;  %10227 = vmatprep.subr.bf16.mxu1 %v10226_v29  ;;  %v8727_v58 = vld [vmem:[#allocation24 + $0x4] ss:$8 sm:$0x30] }
0x26f1   :  { %v12987_v52 = vor.u32 %v8727_v58, %v8726_v51  ;;  %v10246_v51 = vpack.c.bf16 %v9006_v30, %v9005_v3  ;;  %v8989_v58 = vld [vmem:[%s13277_s11 + $0x120] sm:$0xff] }
0x26f2   :  { %8846 = vadd.xlane.f32.xlu0 %v8845_v54  ;;  %v8730_v54 = vld [vmem:[#allocation24 + $0x5] ss:$8 sm:$0xf] }
0x26f3   :  { %10229 = vmatpush3.bf16.msra.mxu1 %v10228_v14  ;;  %v12989_v61 = vor.u32 %v8731_v21, %v8730_v54  ;;  %v8875_v17 = vrot.slane %v12987_v52, %v11573_v63  ;;  %v8871_v24 = vrot.slane %v12987_v52, %v11570_v62  ;;  %v8883_v31 = vrot.slane %v12987_v52, %v11603_v36  ;;  %v8990_v54 = vld [vmem:[%s13277_s11 + $0x128] sm:$0xff]  ;;  %v9007_v21 = vld [vmem:[%s13277_s11 + $0x1b0] sm:$0xff] }
0x26f4   :  { %10231 = vmatprep.subr.bf16.mxu1 %v10230_v11 }
0x26f5   :  { %v8918_v45 = vrot.slane %v12989_v61, %v11573_v63 }
0x26f7   :  { %10233 = vmatpush3.bf16.msra.mxu1 %v10232_v53 }
0x26f8   :  { %10235 = vmatprep.subr.bf16.mxu1 %v10234_v27 }
0x26fb   :  { %10237 = vmatpush3.bf16.msra.mxu1 %v10236_v1  ;;  %v8987_v1 = vld [vmem:[%s13277_s11 + $0x110] sm:$0xff] }
0x26fc   :  { %10239 = vmatprep.subr.bf16.mxu1 %v10238_v4 }
0x277f   :  { %v8847_v6 = vpop.xlane.xlu0 %8846 }
0x2780   :  { %v8848_v15 = vmul.f32 0.0013020834, %v8847_v6 }
0x2782   :  { %v8849_v0 = vadd.f32 1e-05, %v8848_v15 }
0x2784   :  { %10743 = vrsqrt.f32 %v8849_v0 }
0x278e   :  { %v12991_v59 = vpop.eup %10743 }
0x278f   :  { %v12996_v34 = vrot.slane %v12991_v59, 1  ;;  %v8856_v7 = vmul.f32 %v12991_v59, %v12848_v43  ;;  %v8855_v18 = vmul.f32 %v12991_v59, %v12846_v28  ;;  %v8858_v43 = vmul.f32 %v12991_v59, %v12867_v22 }
0x2790   :  { %v8914_v28 = vrot.slane %v12989_v61, %v11570_v62  ;;  %v8859_v55 = vmul.f32 %v12991_v59, %v12869_v56  ;;  %v8926_v22 = vrot.slane %v12989_v61, %v11603_v36  ;;  %v8930_v62 = vrot.slane %v12989_v61, %v12575_v46  ;;  %v8986_v56 = vld [vmem:[%s13277_s11 + $0x108] sm:$0xff]  ;;  %v9004_v36 = vld [vmem:[%s13277_s11 + $0x198] sm:$0xff] }
0x2791   :  { %v8862_v38 = vmul.f32 %v12996_v34, %v12856_v5  ;;  %v8861_v39 = vmul.f32 %v12996_v34, %v12853_v16  ;;  %v8864_v50 = vmul.f32 %v12996_v34, %v12861_v23  ;;  %v8887_v5 = vrot.slane %v12987_v52, %v12575_v46  ;;  %v8985_v23 = vld [vmem:[%s13277_s11 + $0x100] sm:$0xff] }
0x2792   :  { %v8899_v49 = vmul.f32 %v8875_v17, %v8856_v7  ;;  %v8898_v33 = vmul.f32 %v8871_v24, %v8855_v18  ;;  %v8901_v57 = vmul.f32 %v8883_v31, %v8858_v43  ;;  %v8865_v46 = vmul.f32 %v12996_v34, %v12863_v26  ;;  %v8988_v26 = vld [vmem:[%s13277_s11 + $0x118] sm:$0xff] }
0x2793   :  { %v8905_v63 = vmul.f32 %v8875_v17, %v8862_v38  ;;  %v8904_v9 = vmul.f32 %v8871_v24, %v8861_v39  ;;  %v8907_v16 = vmul.f32 %v8883_v31, %v8864_v50  ;;  %v8902_v42 = vmul.f32 %v8887_v5, %v8859_v55  ;;  %v9008_v17 = vld [vmem:[%s13277_s11 + $0x1b8] sm:$0xff]  ;;  %v8991_v31 = vld [vmem:[%s13277_s11 + $0x130] sm:$0xff]  ;;  %v9010_v39 = vld [vmem:[%s13277_s11 + $0x1c8] sm:$0xff] }
0x2794   :  { %v8942_v12 = vadd.f32 %v8918_v45, %v8899_v49  ;;  %v8941_v14 = vadd.f32 %v8914_v28, %v8898_v33  ;;  %v10240_v48 = vpack.c.bf16 %v8986_v56, %v8985_v23  ;;  %v8908_v2 = vmul.f32 %v8887_v5, %v8865_v46  ;;  %v8992_v38 = vld [vmem:[%s13277_s11 + $0x138] sm:$0xff]  ;;  %v8993_v50 = vld [vmem:[%s13277_s11 + $0x140] sm:$0xff]  ;;  %v8994_v55 = vld [vmem:[%s13277_s11 + $0x148] sm:$0xff] }
0x2795   :  { %v8948_v10 = vadd.f32 %v8918_v45, %v8905_v63  ;;  %v8947_v47 = vadd.f32 %v8914_v28, %v8904_v9  ;;  %v8950_v29 = vadd.f32 %v8926_v22, %v8907_v16  ;;  %v8945_v44 = vadd.f32 %v8930_v62, %v8902_v42  ;;  %v9009_v45 = vld [vmem:[%s13277_s11 + $0x1c0] sm:$0xff]  ;;  %v9011_v5 = vld [vmem:[%s13277_s11 + $0x1d0] sm:$0xff]  ;;  %v9012_v49 = vld [vmem:[%s13277_s11 + $0x1d8] sm:$0xff] }
0x2796   :  { %v8944_v60 = vadd.f32 %v8926_v22, %v8901_v57  ;;  %v10242_v32 = vpack.c.bf16 %v9004_v36, %v9003_v8  ;;  %v8951_v4 = vadd.f32 %v8930_v62, %v8908_v2  ;;  %v10244_v15 = vpack.c.bf16 %v8988_v26, %v8987_v1  ;;  %v8995_v9 = vld [vmem:[%s13277_s11 + $0x150] sm:$0xff]  ;;  %v8996_v16 = vld [vmem:[%s13277_s11 + $0x158] sm:$0xff]  ;;  %v9013_v22 = vld [vmem:[%s13277_s11 + $0x1e0] sm:$0xff] }
0x2797   :  { %v9064_v25 = vrot.slane %v8948_v10, 7  ;;  %v9062_v11 = vrot.slane %v8947_v47, 7  ;;  %v9068_v13 = vrot.slane %v8950_v29, 7  ;;  %v10248_v18 = vpack.c.bf16 %v8990_v54, %v8989_v58  ;;  %v9014_v62 = vld [vmem:[%s13277_s11 + $0x1e8] sm:$0xff]  ;;  %v8997_v29 = vld [vmem:[%s13277_s11 + $0x160] sm:$0xff]  ;;  %v9036_v1 = vld [vmem:[%s13277_s11 + $0x298] sm:$0xff] }
0x2798   :  { %v9070_v0 = vrot.slane %v8951_v4, 7  ;;  %v10250_v24 = vpack.c.bf16 %v9008_v17, %v9007_v21  ;;  %v10252_v43 = vpack.c.bf16 %v8992_v38, %v8991_v31  ;;  %v10254_v28 = vpack.c.bf16 %v9010_v39, %v9009_v45  ;;  %v8998_v8 = vld [vmem:[%s13277_s11 + $0x168] sm:$0xff]  ;;  %v9037_v58 = vld [vmem:[%s13277_s11 + $0x2a0] sm:$0xff]  ;;  %v9039_v38 = vld [vmem:[%s13277_s11 + $0x2b0] sm:$0xff] }
0x2799   :  { %v9065_v53 = vsel %vm3764_vm2, %v9064_v25, %v8942_v12  ;;  %v9063_v27 = vsel %vm3764_vm2, %v9062_v11, %v8941_v14  ;;  %v9069_v6 = vsel %vm3764_vm2, %v9068_v13, %v8944_v60  ;;  %v10256_v63 = vpack.c.bf16 %v8994_v55, %v8993_v50  ;;  %v8999_v14 = vld [vmem:[%s13277_s11 + $0x170] sm:$0xff]  ;;  %v9000_v11 = vld [vmem:[%s13277_s11 + $0x178] sm:$0xff]  ;;  %v9034_v2 = vld [vmem:[%s13277_s11 + $0x288] sm:$0xff] }
0x279a   :  { %9144 = vmatprep.mubr.f32.mxu1 %v9065_v53  ;;  %v13068_v7 = vsel %vm3764_vm2, %v9070_v0, %v8945_v44  ;;  %v10258_v33 = vpack.c.bf16 %v9012_v49, %v9011_v5  ;;  %v8863_v10 = vmul.f32 %v12996_v34, %v12859_v35  ;;  %v8866_v47 = vmul.f32 %v12996_v34, %v12865_v20  ;;  %v9015_v20 = vld [vmem:[%s13277_s11 + $0x1f0] sm:$0xff]  ;;  %v9016_v34 = vld [vmem:[%s13277_s11 + $0x1f8] sm:$0xff]  ;;  %v9038_v54 = vld [vmem:[%s13277_s11 + $0x2a8] sm:$0xff] }
0x279b   :  { %9145 = vmatmul.mubr.f32.vlgmr.msra.gmra.mrb[50].mxu1 %v9063_v27  ;;  %v10260_v23 = vpack.c.bf16 %v8996_v16, %v8995_v9  ;;  %v8879_v56 = vrot.slane %v12987_v52, %v11583_v41  ;;  %v10262_v57 = vpack.c.bf16 %v9014_v62, %v9013_v22  ;;  %v8891_v35 = vrot.slane %v12987_v52, %v12578_v19  ;;  %v9020_v0 = vld [vmem:[%s13277_s11 + $0x218] sm:$0xff]  ;;  %v9022_v31 = vld [vmem:[%s13277_s11 + $0x228] sm:$0xff]  ;;  %v9041_v55 = vld [vmem:[%s13277_s11 + $0x2c0] sm:$0xff] }
0x279c   :  { %10241 = vmatpush3.bf16.msra.mxu1 %v10240_v48  ;;  %9214 = vmatprep.mubr.f32.mxu1 %v9069_v6  ;;  %v10264_v42 = vpack.c.bf16 %v8998_v8, %v8997_v29  ;;  %v8857_v12 = vmul.f32 %v12991_v59, %v12850_v37  ;;  %v8922_v25 = vrot.slane %v12989_v61, %v11583_v41  ;;  %v9033_v41 = vld [vmem:[%s13277_s11 + $0x280] sm:$0xff]  ;;  %v9040_v45 = vld [vmem:[%s13277_s11 + $0x2b8] sm:$0xff]  ;;  %v9042_v5 = vld [vmem:[%s13277_s11 + $0x2c8] sm:$0xff] }
0x279d   :  { %10243 = vmatprep.subr.bf16.mxu1 %v10242_v32  ;;  %v8906_v36 = vmul.f32 %v8879_v56, %v8863_v10  ;;  %v8909_v46 = vmul.f32 %v8891_v35, %v8866_v47  ;;  %v10266_v52 = vpack.c.bf16 %v9016_v34, %v9015_v20  ;;  %v8860_v48 = vmul.f32 %v12991_v59, %v12889_v40  ;;  %v9017_v40 = vld [vmem:[%s13277_s11 + $0x200] sm:$0xff]  ;;  %v9035_v32 = vld [vmem:[%s13277_s11 + $0x290] sm:$0xff]  ;;  %v9024_v50 = vld [vmem:[%s13277_s11 + $0x238] sm:$0xff] }
0x279e   :  { %v8934_v13 = vrot.slane %v12989_v61, %v12578_v19  ;;  %v10268_v53 = vpack.c.bf16 %v9000_v11, %v8999_v14  ;;  %v8900_v27 = vmul.f32 %v8879_v56, %v8857_v12  ;;  %v10270_v60 = vpack.c.bf16 %v9034_v2, %v9033_v41  ;;  %v9018_v19 = vld [vmem:[%s13277_s11 + $0x208] sm:$0xff]  ;;  %v9043_v16 = vld [vmem:[%s13277_s11 + $0x2d0] sm:$0xff]  ;;  %v9044_v22 = vld [vmem:[%s13277_s11 + $0x2d8] sm:$0xff] }
0x279f   :  { %v8949_v37 = vadd.f32 %v8922_v25, %v8906_v36  ;;  %v8903_v61 = vmul.f32 %v8891_v35, %v8860_v48  ;;  %v10272_v30 = vpack.c.bf16 %v9018_v19, %v9017_v40  ;;  %v10274_v6 = vpack.c.bf16 %v9036_v1, %v9035_v32  ;;  %v9026_v9 = vld [vmem:[%s13277_s11 + $0x248] sm:$0xff]  ;;  %v9027_v47 = vld [vmem:[%s13277_s11 + $0x250] sm:$0xff]  ;;  %v9045_v56 = vld [vmem:[%s13277_s11 + $0x2e0] sm:$0xff] }
0x27a0   :  { %10245 = vmatpush3.bf16.msra.mxu1 %v10244_v15  ;;  %v8952_v44 = vadd.f32 %v8934_v13, %v8909_v46  ;;  %v8943_v3 = vadd.f32 %v8922_v25, %v8900_v27  ;;  %v9019_v15 = vld [vmem:[%s13277_s11 + $0x210] sm:$0xff]  ;;  %v10290_v10 = vpack.c.bf16 %v9044_v22, %v9043_v16  ;;  %v9029_v35 = vld [vmem:[%s13277_s11 + $0x260] sm:$0xff]  ;;  %v9030_v20 = vld [vmem:[%s13277_s11 + $0x268] sm:$0xff] }
0x27a1   :  { %10247 = vmatprep.subr.bf16.mxu1 %v10246_v51  ;;  %v9066_v59 = vrot.slane %v8949_v37, 7  ;;  %v8946_v4 = vadd.f32 %v8934_v13, %v8903_v61  ;;  %v10276_v17 = vpack.c.bf16 %v9020_v0, %v9019_v15  ;;  %v9047_v34 = vld [vmem:[%s13277_s11 + $0x2f0] sm:$0xff]  ;;  %v9048_v36 = vld [vmem:[%s13277_s11 + $0x2f8] sm:$0xff]  ;;  %v10296_v46 = vpack.c.bf16 %v9030_v20, %v9029_v35  ;;  %v9049_v13 = vld [vmem:[#allocation24 + $0x6] ss:$0 sm:$0xff] }
0x27a2   :  { %v9072_v26 = vrot.slane %v8952_v44, 7  ;;  %v9031_v12 = vld [vmem:[%s13277_s11 + $0x270] sm:$0xff]  ;;  %v9032_v25 = vld [vmem:[%s13277_s11 + $0x278] sm:$0xff] }
0x27a3   :  { %v9067_v51 = vsel %vm3764_vm2, %v9066_v59, %v8943_v3 }
0x27a4   :  { %10249 = vmatpush3.bf16.msra.mxu1 %v10248_v18  ;;  %v9073_v21 = vsel %vm3764_vm2, %v9072_v26, %v8946_v4  ;;  %v10278_v18 = vpack.c.bf16 %v9038_v54, %v9037_v58 }
0x27a5   :  { %10251 = vmatprep.subr.bf16.mxu1 %v10250_v24  ;;  %v9021_v24 = vld [vmem:[%s13277_s11 + $0x220] sm:$0xff] }
0x27a6   :  { %v10280_v39 = vpack.c.bf16 %v9022_v31, %v9021_v24 }
0x27a8   :  { %10253 = vmatpush3.bf16.msra.mxu1 %v10252_v43  ;;  %v10282_v43 = vpack.c.bf16 %v9040_v45, %v9039_v38 }
0x27a9   :  { %10255 = vmatprep.subr.bf16.mxu1 %v10254_v28  ;;  %v9023_v28 = vld [vmem:[%s13277_s11 + $0x230] sm:$0xff] }
0x27aa   :  { %v10284_v49 = vpack.c.bf16 %v9024_v50, %v9023_v28 }
0x27ac   :  { %10257 = vmatpush3.bf16.msra.mxu1 %v10256_v63  ;;  %v10286_v63 = vpack.c.bf16 %v9042_v5, %v9041_v55 }
0x27ad   :  { %10259 = vmatprep.subr.bf16.mxu1 %v10258_v33  ;;  %v9025_v33 = vld [vmem:[%s13277_s11 + $0x240] sm:$0xff] }
0x27ae   :  { %v10288_v62 = vpack.c.bf16 %v9026_v9, %v9025_v33 }
0x27b0   :  { %10261 = vmatpush3.bf16.msra.mxu1 %v10260_v23  ;;  %v9028_v23 = vld [vmem:[%s13277_s11 + $0x258] sm:$0xff] }
0x27b1   :  { %10263 = vmatprep.subr.bf16.mxu1 %v10262_v57  ;;  %v9046_v57 = vld [vmem:[%s13277_s11 + $0x2e8] sm:$0xff]  ;;  %v10292_v29 = vpack.c.bf16 %v9028_v23, %v9027_v47  ;;  %s11087_s11 = smov [#allocation26]  }
0x27b2   :  { %v10294_v8 = vpack.c.bf16 %v9046_v57, %v9045_v56  ;;  %s9314_s12 = sshll.u32 %s11087_s11, 4  ;;  %s9315_s12 = int_to_ptr.vmem [resolvable:$true] %s9314_s12 }
0x27b3   :  { %s10967_s8 = scalar_lea.vmem %s9315_s12, 32  ;;  %p10972_p11 = scmp.lt.s32.totalorder %s9315_s12, %s9315_s12 }
0x27b4   :  { %10265 = vmatpush3.bf16.msra.mxu1 %v10264_v42  ;;  %v10298_v42 = vpack.c.bf16 %v9048_v36, %v9047_v34  ;;  %p10968_p10 = scmp.ne.s32.totalorder %s9315_s12, %s10967_s8  ;;  %p10973_p12 = scmp.lt.s32.totalorder %s10967_s8, %s10967_s8 }
0x27b5   :  { %10267 = vmatprep.subr.bf16.mxu1 %v10266_v52  ;;  %v10300_v52 = vpack.c.bf16 %v9032_v25, %v9031_v12 }
0x27b6   :  { %p10974_p13 = por %p10973_p12, %p10972_p11 }
0x27b8   :  { %10269 = vmatpush3.bf16.msra.mxu1 %v10268_v53  ;;  %p10975_p0 = pnand %p10974_p13, %p10968_p10 }
0x27b9   :  { %10271 = vmatprep.subr.bf16.mxu1 %v10270_v60 }
0x27bb   :  { %9215 = vmatmul.mubr.f32.vlgmr.msra.gmra.mrb[88].mxu1 %v9067_v51 }
0x27bc   :  { %10273 = vmatpush3.bf16.msra.mxu1 %v10272_v30  ;;  %9284 = vmatprep.mubr.f32.mxu1 %v9073_v21 }
0x27bd   :  { %10275 = vmatprep.subr.bf16.mxu1 %v10274_v6 }
0x27c0   :  { %10277 = vmatpush3.bf16.msra.mxu1 %v10276_v17 }
0x27c1   :  { %10279 = vmatprep.subr.bf16.mxu1 %v10278_v18 }
0x27c4   :  { %10281 = vmatpush3.bf16.msra.mxu1 %v10280_v39 }
0x27c5   :  { %10283 = vmatprep.subr.bf16.mxu1 %v10282_v43 }
0x27c8   :  { %10285 = vmatpush3.bf16.msra.mxu1 %v10284_v49 }
0x27c9   :  { %10287 = vmatprep.subr.bf16.mxu1 %v10286_v63 }
0x27cc   :  { %10289 = vmatpush3.bf16.msra.mxu1 %v10288_v62 }
0x27cd   :  { %10291 = vmatprep.subr.bf16.mxu1 %v10290_v10 }
0x27d0   :  { %10293 = vmatpush3.bf16.msra.mxu1 %v10292_v29 }
0x27d1   :  { %10295 = vmatprep.subr.bf16.mxu1 %v10294_v8 }
0x27d4   :  { %10297 = vmatpush3.bf16.msra.mxu1 %v10296_v46 }
0x27d5   :  { %10299 = vmatprep.subr.bf16.mxu1 %v10298_v42 }
0x27d8   :  { %10301 = vmatpush3.bf16.msra.mxu1 %v10300_v52 }
0x27db   :  { %9285 = vmatmul.mubr.f32.vlgmr.msra.gmra.mrb[90].mxu1 %v13068_v7 }
0x286e   :  { %v9654_v14 = vpop.f32.mrb[50].mxu1 }
0x286f   :  { %v9655_v11 = vpop.f32.mrb[51].mxu1 }
0x2870   :  { %v9656_v48 = vadd.f32 %v9655_v11, %v9654_v14 }
0x2872   :  { %v9147_v2 = vadd.f32 %v9656_v48, %v9049_v13 }
0x288e   :  { %v9689_v37 = vpop.f32.mrb[88].mxu1 }
0x288f   :  { %v9690_v41 = vpop.f32.mrb[89].mxu1 }
0x2890   :  { %v9691_v44 = vadd.f32 %v9690_v41, %v9689_v37 }
0x2892   :  { %v9217_v53 = vadd.f32 %v9691_v44, %v9147_v2 }
0x28ae   :  { %v9724_v27 = vpop.f32.mrb[90].mxu1 }
0x28af   :  { %v9725_v60 = vpop.f32.mrb[91].mxu1 }
0x28b0   :  { %v9726_v40 = vadd.f32 %v9725_v60, %v9724_v27 }
0x28b2   :  { %v9287_v19 = vadd.f32 %v9726_v40, %v9217_v53 }
0x28b4   :  { %v9292_v61 = vsel %vm3391_vm0, %v9287_v19, 0.0 }
0x28b5   :  { %9293 = vadd.xlane.f32.xlu1 %v9292_v61 }
0x2942   :  { %v9294_v59 = vpop.xlane.xlu1 %9293 }
0x2943   :  { %v9295_v32 = vmul.f32 0.03125, %v9294_v59 }
0x2945   :  { %v9296_v1 = vsub.f32 %v9287_v19, %v9295_v32 }
0x2947   :  { %v9297_v7 = vmul.f32 %v9296_v1, %v9296_v1 }
0x2949   :  { %v9298_v26 = vsel %vm3391_vm0, %v9297_v7, 0.0 }
0x294a   :  { %9299 = vadd.xlane.f32.xlu1 %v9298_v26 }
0x294b   :  { %10978 = shalt.err (!%p10975_p0)
}
0x294c   :  { %s10979_s6 = scalar_lea.hbm %s13285_s19, 32 }
0x294d   :  { %p10980_p1 = scmp.ne.s32.totalorder %s13285_s19, %s10979_s6  ;;  %p10983_p2 = scmp.lt.u32.totalorder %s10979_s6, %s13285_s19 }
0x294f   :  { %p10985_p3 = pnand %p10983_p2, %p10980_p1 }
0x2951   :  { %10988 = shalt.err (!%p10985_p3)
}
0x2952   :  { %9317 = dma.vmem_to_hbm [thread:$0]  %s9315_s12, 32, %s13285_s19, [#allocation11]   ;;  %v9290_v15 = vld [vmem:[#allocation24 + $0x7] ss:$0 sm:$0xff]  ;;  %v9291_v51 = vld [vmem:[#allocation24 + $0x40] ss:$0 sm:$0xff] }
0x2953   :  { %s11088_s5 = smov [#allocation27]  }
0x2954   :  { %s9324_s28 = sshll.u32 %s11088_s5, 4  ;;  %s9325_s28 = int_to_ptr.vmem [resolvable:$true] %s9324_s28 }
0x2955   :  { %s10989_s13 = scalar_lea.vmem %s9325_s28, 32  ;;  %p10994_p5 = scmp.lt.s32.totalorder %s9325_s28, %s9325_s28 }
0x2956   :  { %p10990_p4 = scmp.ne.s32.totalorder %s9325_s28, %s10989_s13  ;;  %p10995_p6 = scmp.lt.s32.totalorder %s10989_s13, %s10989_s13 }
0x2958   :  { %p10996_p7 = por %p10995_p6, %p10994_p5 }
0x295a   :  { %p10997_p8 = pnand %p10996_p7, %p10990_p4 }
0x29d7   :  { %v9300_v3 = vpop.xlane.xlu1 %9299 }
0x29d8   :  { %v9301_v30 = vmul.f32 0.03125, %v9300_v3 }
0x29da   :  { %v9302_v4 = vadd.f32 1e-05, %v9301_v30 }
0x29dc   :  { %10745 = vrsqrt.f32 %v9302_v4 }
0x29e6   :  { %v10746_v6 = vpop.eup %10745 }
0x29e7   :  { %v9304_v0 = vmul.f32 %v10746_v6, %v9296_v1 }
0x29e9   :  { %v9305_v58 = vmul.f32 %v9304_v0, %v9290_v15 }
0x29eb   :  { %v9306_v54 = vadd.f32 %v9305_v58, %v9291_v51 }
0x29ed   :  { %9307 = vst.msk [vmem:[#allocation27] sm:$0x3] %vm3391_vm0, %v9306_v54 }
0x29ee   :  { %11000 = shalt.err (!%p10997_p8)
}
0x29ef   :  { %s13318_s0 = sld [smem:[#allocation60_spill]] }
0x29f5   :  { %s11001_s29 = scalar_lea.hbm %s13318_s0, 32 }
0x29f6   :  { %p11002_p9 = scmp.ne.s32.totalorder %s13318_s0, %s11001_s29  ;;  %p11005_p10 = scmp.lt.u32.totalorder %s11001_s29, %s13318_s0 }
0x29f8   :  { %p11007_p11 = pnand %p11005_p10, %p11002_p9 }
0x29fa   :  { %11010 = shalt.err (!%p11007_p11)
}
0x29fb   :  { %9327 = dma.vmem_to_hbm [thread:$0]  %s9325_s28, 32, %s13318_s0, [#allocation28]  }
0x29fc   :  { %11035 = dma.done.wait [#allocation11], 32  }
0x29fd   :  { %11036 = vsyncadd [#allocation11], 4294967264 }
0x29fe   :  { %11037 = dma.done.wait [#allocation28], 32  }
0x29ff   :  { %11038 = vsyncadd [#allocation28], 4294967264 }
0x2a00   :  { %9334 = vsyncpa [#allocation10], 1 }
0x2a01   :  { %9335 = vsyncpa [#allocation13], 1 }
0x2a02   :  { %9336 = vsyncpa [#allocation16], 1 }
0x2a03   :  { %9337 = vsyncpa [#allocation19], 1 }
0x2a04   :  { %9338 = vsyncpa [#allocation22], 1 }
0x2a05   :  { %9339 = vsyncpa [#allocation25], 1 }
0x2a06   :  { %9340 = vsyncpa [#allocation11], 1 }
0x2a07   :  { %9341 = vsyncpa [#allocation28], 1 }
0x2a08   :  { %9342 = vsyncmov [#allocation8] }
0x2a0b   :  { %s9343_s17 = vpop.sfrf %9342 }
0x2a0c   :  { %p9467_p12 = scmp.ne.s32.totalorder %s9343_s17, 0 }
0x2a0e   :  { %9347 = shalt.err (%p9467_p12)  }
0x2a0f   :  { %9349 = vsyncmov [#allocation8 + $0x1] }
0x2a12   :  { %s9350_s3 = vpop.sfrf %9349 }
0x2a13   :  { %p9468_p13 = scmp.ne.s32.totalorder %s9350_s3, 0 }
0x2a15   :  { %9354 = shalt.err (%p9468_p13)  }
0x2a16   :  { %9356 = vsyncmov [#allocation8 + $0x2] }
0x2a19   :  { %s9357_s7 = vpop.sfrf %9356 }
0x2a1a   :  { %p9469_p0 = scmp.ne.s32.totalorder %s9357_s7, 0 }
0x2a1c   :  { %9361 = shalt.err (%p9469_p0)  }
0x2a1d   :  { %9363 = vsyncmov [#allocation8 + $0x3] }
0x2a20   :  { %s9364_s4 = vpop.sfrf %9363 }
0x2a21   :  { %p9470_p1 = scmp.ne.s32.totalorder %s9364_s4, 0 }
0x2a23   :  { %9368 = shalt.err (%p9470_p1)  }
0x2a24   :  { %9370 = vsyncmov [#allocation8 + $0x4] }
0x2a27   :  { %s9371_s18 = vpop.sfrf %9370 }
0x2a28   :  { %p9471_p2 = scmp.ne.s32.totalorder %s9371_s18, 0 }
0x2a2a   :  { %9375 = shalt.err (%p9471_p2)  }
0x2a2b   :  { %9377 = vsyncmov [#allocation8 + $0x5] }
0x2a2e   :  { %s9378_s23 = vpop.sfrf %9377 }
0x2a2f   :  { %p9472_p3 = scmp.ne.s32.totalorder %s9378_s23, 0 }
0x2a31   :  { %9382 = shalt.err (%p9472_p3)  }

</bundles_post_ra>
